<compile_context>
chip_gen: v7x
topology: tpu7x:2x2x1
jax: 0.10.0
libtpu: 0.0.40
codegen_flags: <defaults>
</compile_context>

<pallas_src>
import functools

import jax
import jax.numpy as jnp
from jax.experimental import pallas as pl
from jax.experimental.pallas import tpu as pltpu

_VMEM_LIMIT = 48 * 1024 * 1024  # explicit scoped-VMEM cap; safe on v7x (64 MiB physical)


def _round_up(x, m):
    return (x + m - 1) // m * m


def _apply_act(x, act):
    if act == "id":
        return x
    if act == "lrelu":
        return jnp.maximum(x, 0.2 * x)          # 1 VALU op (v5e-friendly)
    if act == "relu":
        return jnp.maximum(x, 0.0)
    if act == "tanh":
        return jnp.tanh(x)
    raise ValueError(f"unknown activation: {act}")


# ---------------------------------------------------------------------------
# Pallas kernel: bf16 MXU GEMM + bias + (optional) fused BN partial statistics
# ---------------------------------------------------------------------------

def _gemm_kernel(a_ref, w_ref, b_ref, o_ref, *stat_refs,
                 out_act, want_stats, tm, m_actual, need_mask):
    acc = jnp.dot(a_ref[...], w_ref[...], preferred_element_type=jnp.float32)
    acc = acc + b_ref[...]

    if want_stats:
        sum_ref, ssq_ref = stat_refs
        if need_mask:  # only emitted when M padding exists (never for these shapes)
            rows = jax.lax.broadcasted_iota(jnp.int32, acc.shape, 0) + pl.program_id(0) * tm
            accm = jnp.where(rows < m_actual, acc, 0.0)
        else:
            accm = acc
        sum_ref[...] = jnp.sum(accm, axis=0, keepdims=True)[None]
        ssq_ref[...] = jnp.sum(accm * accm, axis=0, keepdims=True)[None]

    o_ref[...] = _apply_act(acc, out_act).astype(o_ref.dtype)


def _choose_tm(m, tm_max=1024):
    """Tile size: multiple of 8, divides M when possible (no pad copy), and gives
    at least two row tiles so 'parallel' semantics can use both v7x TensorCores."""
    cap = max(8, min(tm_max, _round_up(m, 8)))
    if m >= 16:
        cap = max(8, min(cap, _round_up((m + 1) // 2, 8)))
    t = cap - cap % 8
    while t >= 8:
        if m % t == 0:
            return t
        t -= 8
    return cap  # fallback: ragged last tile (masked stats)


def conv_gemm(cols, w_bf16, bias, *, out_act="id", want_stats=False,
              out_dtype=jnp.bfloat16, tm_max=1024):
    """cols: (M, K) bf16; w_bf16: (K, N) bf16; bias: (N,).  Returns act(cols@w + b)
    (and, if want_stats, per-column sum / sum-of-squares of the pre-activation)."""
    M, K = cols.shape
    Kw, Nc = w_bf16.shape
    assert K == Kw
    tm = _choose_tm(M, tm_max)
    Mp = _round_up(M, tm)
    g = Mp // tm
    if Mp != M:                                  # rare fallback path
        cols = jnp.pad(cols, ((0, Mp - M), (0, 0)))

    kernel = functools.partial(_gemm_kernel, out_act=out_act, want_stats=want_stats,
                               tm=tm, m_actual=M, need_mask=(Mp != M))

    if want_stats:
        out_shape = (jax.ShapeDtypeStruct((Mp, Nc), out_dtype),
                     jax.ShapeDtypeStruct((g, 1, Nc), jnp.float32),
                     jax.ShapeDtypeStruct((g, 1, Nc), jnp.float32))
        out_specs = (pl.BlockSpec((tm, Nc), lambda i: (i, 0)),
                     pl.BlockSpec((1, 1, Nc), lambda i: (i, 0, 0)),
                     pl.BlockSpec((1, 1, Nc), lambda i: (i, 0, 0)))
    else:
        out_shape = jax.ShapeDtypeStruct((Mp, Nc), out_dtype)
        out_specs = pl.BlockSpec((tm, Nc), lambda i: (i, 0))

    res = pl.pallas_call(
        kernel,
        out_shape=out_shape,
        grid=(g,),
        in_specs=[
            pl.BlockSpec((tm, K), lambda i: (i, 0)),   # A tiles streamed over M
            pl.BlockSpec((K, Nc), lambda i: (0, 0)),   # weights (resident)
            pl.BlockSpec((1, Nc), lambda i: (0, 0)),   # bias (resident)
        ],
        out_specs=out_specs,
        compiler_params=pltpu.CompilerParams(
            dimension_semantics=("parallel",),         # v7x: shard row tiles over 2 TCs
            vmem_limit_bytes=_VMEM_LIMIT),
    )(cols.astype(jnp.bfloat16), w_bf16, bias.reshape(1, Nc).astype(jnp.float32))

    if want_stats:
        out, psum, pssq = res
        return out[:M], jnp.sum(psum[:, 0, :], axis=0), jnp.sum(pssq[:, 0, :], axis=0)
    return res[:M]


# ---------------------------------------------------------------------------
# JAX glue: patch extraction, sub-pixel interleave, BN stats -> affine, params
# ---------------------------------------------------------------------------

def affine_act_jax(x, scale, shift, act):
    """Per-channel BN affine + activation, applied right before patch extraction
    (XLA fuses this into the pad/slice gather); output bf16 for the MXU."""
    y = x.astype(jnp.float32) * scale + shift
    return _apply_act(y, act).astype(jnp.bfloat16)


def im2col(x_nhwc, kh, kw, stride, pad):
    """Returns ((N*OH*OW, KH*KW*C), OH, OW) with channel-minor column order.
    Padding (zeros) is applied to the given (post-activation) map, as in PyTorch."""
    N, H, W, C = x_nhwc.shape
    xp = jnp.pad(x_nhwc, ((0, 0), (pad, pad), (pad, pad), (0, 0)))
    OH = (H + 2 * pad - kh) // stride + 1
    OW = (W + 2 * pad - kw) // stride + 1
    patches = []
    for i in range(kh):
        for j in range(kw):
            patches.append(xp[:, i:i + stride * (OH - 1) + 1:stride,
                              j:j + stride * (OW - 1) + 1:stride, :])
    cols = jnp.stack(patches, axis=3)              # (N, OH, OW, KH*KW, C)
    return cols.reshape(N * OH * OW, kh * kw * C), OH, OW


def pixel_shuffle_2x(x):
    """(N, H, W, 4, C) with phase dim ordered (rh*2 + rw) -> (N, 2H, 2W, C)."""
    N, H, W, _, C = x.shape
    x = x.reshape(N, H, W, 2, 2, C)
    x = jnp.transpose(x, (0, 1, 3, 2, 4, 5))
    return x.reshape(N, 2 * H, 2 * W, C)


def conv_weight_to_gemm(w_oihw):
    """PyTorch Conv2d weight (Cout, Cin, KH, KW) -> (KH*KW*Cin, Cout), channel-minor."""
    Cout, Cin, KH, KW = w_oihw.shape
    return jnp.transpose(w_oihw, (2, 3, 1, 0)).reshape(KH * KW * Cin, Cout)


def convtranspose_weight_subpixel(w_iokk, bias):
    """PyTorch ConvTranspose2d(k=4, s=2, p=1) weight (Cin, Cout, 4, 4) -> combined
    sub-pixel GEMM weight (9*Cin, 4*Cout) over 3x3/stride-1 patches of the pad-1
    input, plus the matching (4*Cout,) bias.  Output columns are phase-major
    (phase = rh*2 + rw holds output pixel (2a+rh, 2b+rw)), Cout-minor."""
    Cin, Cout, KH, KW = w_iokk.shape
    assert (KH, KW) == (4, 4)
    wg = jnp.zeros((3, 3, Cin, 2, 2, Cout), jnp.float32)
    for rh in range(2):
        for dh in range(3):
            kh = 3 + rh - 2 * dh              # y[2a+rh] taps padded row a+dh with w[.,.,kh,.]
            if not 0 <= kh < 4:
                continue
            for rw in range(2):
                for dw in range(3):
                    kw = 3 + rw - 2 * dw
                    if not 0 <= kw < 4:
                        continue
                    wg = wg.at[dh, dw, :, rh, rw, :].set(w_iokk[:, :, kh, kw])
    return wg.reshape(9 * Cin, 4 * Cout), jnp.tile(bias, 4)


def bn_scale_shift(stat_sum, stat_sumsq, count, gamma, beta, eps=1e-5):
    """Training-mode BN (biased variance) from fused per-channel sum / sum-of-squares."""
    mean = stat_sum / count
    var = jnp.maximum(stat_sumsq / count - mean * mean, 0.0)
    scale = gamma / jnp.sqrt(var + eps)
    return scale, beta - mean * scale


def init_params(key):
    keys = iter(jax.random.split(key, 64))

    def nrm(shape):
        return jax.random.normal(next(keys), shape, jnp.float32) * 0.05

    def bn(c):
        return {"g": jnp.ones((c,), jnp.float32), "be": jnp.zeros((c,), jnp.float32)}

    p = {
        "c1": {"w": nrm((64, 1, 4, 4)), "b": nrm((64,))},
        "c2": {"w": nrm((128, 64, 4, 4)), "b": nrm((128,)), **bn(128)},
        "c3": {"w": nrm((256, 128, 4, 4)), "b": nrm((256,)), **bn(256)},
        # ConvTranspose2d weights use PyTorch layout (Cin, Cout, KH, KW):
        "t1": {"w": nrm((256, 128, 4, 4)), "b": nrm((128,)), **bn(128)},
        "t2": {"w": nrm((128, 64, 4, 4)), "b": nrm((64,)), **bn(64)},
        "t3": {"w": nrm((64, 3, 4, 4)), "b": nrm((3,))},
        "blocks": [],
    }
    for _ in range(6):
        p["blocks"].append({
            "w1": nrm((256, 256, 3, 3)), "b1": nrm((256,)),
            "g1": jnp.ones((256,), jnp.float32), "be1": jnp.zeros((256,), jnp.float32),
            "w2": nrm((256, 256, 3, 3)), "b2": nrm((256,)),
            "g2": jnp.ones((256,), jnp.float32), "be2": jnp.zeros((256,), jnp.float32),
        })
    return p


def prepare_params(p):
    """Convert PyTorch-layout weights to bf16 GEMM layout (done once, outside the forward)."""
    gp = {
        "c1": {"wg": conv_weight_to_gemm(p["c1"]["w"]).astype(jnp.bfloat16), "b": p["c1"]["b"]},
        "c2": {"wg": conv_weight_to_gemm(p["c2"]["w"]).astype(jnp.bfloat16), "b": p["c2"]["b"],
               "g": p["c2"]["g"], "be": p["c2"]["be"]},
        "c3": {"wg": conv_weight_to_gemm(p["c3"]["w"]).astype(jnp.bfloat16), "b": p["c3"]["b"],
               "g": p["c3"]["g"], "be": p["c3"]["be"]},
        "blocks": [],
    }
    for name in ("t1", "t2"):
        wg, bg = convtranspose_weight_subpixel(p[name]["w"], p[name]["b"])
        gp[name] = {"wg": wg.astype(jnp.bfloat16), "bg": bg,
                    "g": p[name]["g"], "be": p[name]["be"]}
    wg3, bg3 = convtranspose_weight_subpixel(p["t3"]["w"], p["t3"]["b"])  # (576, 12)
    gp["t3"] = {"wg_pad": jnp.pad(wg3, ((0, 0), (0, 128 - 12))).astype(jnp.bfloat16),
                "bg_pad": jnp.pad(bg3, (0, 128 - 12))}                    # lane-dense output
    for blk in p["blocks"]:
        gp["blocks"].append({
            "w1g": conv_weight_to_gemm(blk["w1"]).astype(jnp.bfloat16), "b1": blk["b1"],
            "g1": blk["g1"], "be1": blk["be1"],
            "w2g": conv_weight_to_gemm(blk["w2"]).astype(jnp.bfloat16), "b2": blk["b2"],
            "g2": blk["g2"], "be2": blk["be2"],
        })
    return gp


# ---------------------------------------------------------------------------
# Full forward pass
# ---------------------------------------------------------------------------

def advanced_colorizer_forward(gp, x_nchw):
    """x: (N, 1, H, W) -> (N, 3, H, W), matching AdvancedColorizer.forward (training-mode BN)."""
    N = x_nchw.shape[0]
    x = jnp.transpose(x_nchw, (0, 2, 3, 1)).astype(jnp.bfloat16)     # NHWC

    # ---- Conv(1->64, k4 s2 p1) + LeakyReLU(0.2)  (no BN, no stats) ----
    cols, OH, OW = im2col(x, 4, 4, 2, 1)
    a1 = conv_gemm(cols, gp["c1"]["wg"], gp["c1"]["b"], out_act="lrelu")
    a1 = a1.reshape(N, OH, OW, 64)

    # ---- Conv(64->128, k4 s2 p1); BN stats fused into the GEMM epilogue ----
    cols, OH, OW = im2col(a1, 4, 4, 2, 1)
    h2, s2, q2 = conv_gemm(cols, gp["c2"]["wg"], gp["c2"]["b"], want_stats=True)
    sc2, sh2 = bn_scale_shift(s2, q2, h2.shape[0], gp["c2"]["g"], gp["c2"]["be"])
    h2 = h2.reshape(N, OH, OW, 128)

    # ---- Conv(128->256, k4 s2 p1); BN2 + LeakyReLU applied in the gather glue ----
    cols, OH, OW = im2col(affine_act_jax(h2, sc2, sh2, "lrelu"), 4, 4, 2, 1)
    h3, s3, q3 = conv_gemm(cols, gp["c3"]["wg"], gp["c3"]["b"], want_stats=True)
    sc3, sh3 = bn_scale_shift(s3, q3, h3.shape[0], gp["c3"]["g"], gp["c3"]["be"])
    h3 = h3.reshape(N, OH, OW, 256)

    # ---- 6 sequential conv-BN-ReLU-conv-BN blocks (nn.Sequential: no skip adds) ----
    h_pre, sc_pre, sh_pre, act_pre = h3, sc3, sh3, "lrelu"
    for blk in gp["blocks"]:
        xa = affine_act_jax(h_pre, sc_pre, sh_pre, act_pre)
        cols, OH, OW = im2col(xa, 3, 3, 1, 1)
        ha, sa, qa = conv_gemm(cols, blk["w1g"], blk["b1"], want_stats=True)
        sca, sha = bn_scale_shift(sa, qa, ha.shape[0], blk["g1"], blk["be1"])

        xb = affine_act_jax(ha.reshape(N, OH, OW, 256), sca, sha, "relu")
        cols, OH, OW = im2col(xb, 3, 3, 1, 1)
        hb, sb, qb = conv_gemm(cols, blk["w2g"], blk["b2"], want_stats=True)
        scb, shb = bn_scale_shift(sb, qb, hb.shape[0], blk["g2"], blk["be2"])
        h_pre, sc_pre, sh_pre, act_pre = hb.reshape(N, OH, OW, 256), scb, shb, "id"

    # ---- ConvTranspose(256->128) + BN + ReLU  (sub-pixel GEMM, K=9*256, N=4*128) ----
    g0 = affine_act_jax(h_pre, sc_pre, sh_pre, "id")      # trailing block BN, no activation
    cols, OH, OW = im2col(g0, 3, 3, 1, 1)
    ht1, st1, qt1 = conv_gemm(cols, gp["t1"]["wg"], gp["t1"]["bg"], want_stats=True)
    sct1, sht1 = bn_scale_shift(st1.reshape(4, 128).sum(0), qt1.reshape(4, 128).sum(0),
                                ht1.shape[0] * 4, gp["t1"]["g"], gp["t1"]["be"])
    y1 = pixel_shuffle_2x(ht1.reshape(N, OH, OW, 4, 128))

    # ---- ConvTranspose(128->64) + BN + ReLU ----
    cols, OH, OW = im2col(affine_act_jax(y1, sct1, sht1, "relu"), 3, 3, 1, 1)
    ht2, st2, qt2 = conv_gemm(cols, gp["t2"]["wg"], gp["t2"]["bg"], want_stats=True)
    sct2, sht2 = bn_scale_shift(st2.reshape(4, 64).sum(0), qt2.reshape(4, 64).sum(0),
                                ht2.shape[0] * 4, gp["t2"]["g"], gp["t2"]["be"])
    y2 = pixel_shuffle_2x(ht2.reshape(N, OH, OW, 4, 64))

    # ---- ConvTranspose(64->3) + Tanh; 4*3=12 output channels padded to 128 lanes ----
    cols, OH, OW = im2col(affine_act_jax(y2, sct2, sht2, "relu"), 3, 3, 1, 1)
    out = conv_gemm(cols, gp["t3"]["wg_pad"], gp["t3"]["bg_pad"],
                    out_act="tanh", out_dtype=jnp.float32)
    y3 = pixel_shuffle_2x(out[:, :12].reshape(N, OH, OW, 4, 3))
    return jnp.transpose(y3, (0, 3, 1, 2))                            # back to NCHW


if __name__ == "__main__":
    key = jax.random.PRNGKey(0)
    kp, kx = jax.random.split(key)

    params = prepare_params(init_params(kp))

    N, H, W = 2, 32, 32
    x = jax.random.normal(kx, (N, 1, H, W), jnp.float32)

    fwd = jax.jit(advanced_colorizer_forward)
    out = jax.block_until_ready(fwd(params, x))

    assert out.shape == (N, 3, H, W), out.shape
    assert bool(jnp.all(jnp.isfinite(out)))
    assert bool(jnp.all(jnp.abs(out) <= 1.0))
    print("KERNEL_OK")
</pallas_src>

<mosaic_0001>
module attributes {stable_mosaic.version = 11 : i64} {
  func.func @_gemm_kernel(%arg0: i32, %arg1: memref<256x16xbf16, #tpu.memory_space<vmem>>, %arg2: memref<16x64xbf16, #tpu.memory_space<vmem>>, %arg3: memref<1x64xf32, #tpu.memory_space<vmem>>, %arg4: memref<256x64xbf16, #tpu.memory_space<vmem>>) attributes {dimension_semantics = [#tpu.dimension_semantics<parallel>], iteration_bounds = array<i64: 2>, scalar_prefetch = 0 : i64, scratch_operands = 0 : i64, tpu.core_type = #tpu.core_type<tc>, window_params = [{transform_indices = @transform_0, window_bounds = array<i64: 256, 16>}, {pipeline_mode = #tpu.pipeline_mode<synchronous>, transform_indices = @transform_1, window_bounds = array<i64: 16, 64>}, {pipeline_mode = #tpu.pipeline_mode<synchronous>, transform_indices = @transform_2, window_bounds = array<i64: 1, 64>}, {transform_indices = @transform_3, window_bounds = array<i64: 256, 64>}]} {
    %c0 = arith.constant 0 : index
    %c0_0 = arith.constant 0 : index
    %0 = vector.load %arg1[%c0, %c0_0] : memref<256x16xbf16, #tpu.memory_space<vmem>>, vector<256x16xbf16>
    %c0_1 = arith.constant 0 : index
    %c0_2 = arith.constant 0 : index
    %1 = vector.load %arg2[%c0_1, %c0_2] : memref<16x64xbf16, #tpu.memory_space<vmem>>, vector<16x64xbf16>
    %cst = arith.constant dense<0.000000e+00> : vector<256x64xf32>
    %2 = tpu.matmul %0, %1, %cst {dimension_numbers = #tpu.dot_dimension_numbers<[1], [0], [0], [1], [0, 0, 1, 1], [], []>} : vector<256x16xbf16>, vector<16x64xbf16>, vector<256x64xf32> -> vector<256x64xf32>
    %c0_3 = arith.constant 0 : index
    %c0_4 = arith.constant 0 : index
    %3 = vector.load %arg3[%c0_3, %c0_4] : memref<1x64xf32, #tpu.memory_space<vmem>>, vector<1x64xf32>
    %4 = vector.broadcast %3 : vector<1x64xf32> to vector<256x64xf32>
    %5 = arith.addf %2, %4 : vector<256x64xf32>
    %cst_5 = arith.constant 2.000000e-01 : f32
    %6 = vector.broadcast %cst_5 : f32 to vector<256x64xf32>
    %7 = arith.mulf %6, %5 : vector<256x64xf32>
    %8 = arith.maximumf %5, %7 : vector<256x64xf32>
    %9 = arith.truncf %8 : vector<256x64xf32> to vector<256x64xbf16>
    %c0_6 = arith.constant 0 : index
    %c0_7 = arith.constant 0 : index
    %10 = vector.load %arg4[%c0_6, %c0_7] : memref<256x64xbf16, #tpu.memory_space<vmem>>, vector<256x64xbf16>
    tpu.vector_store %arg4[%c0_6, %c0_7], %9 {strides = array<i32>} : memref<256x64xbf16, #tpu.memory_space<vmem>>, vector<256x64xbf16>,
    return
  }
  func.func @transform_0(%arg0: i32) -> (i32, i32) {
    %c0_i32 = arith.constant 0 : i32
    %c0_i32_0 = arith.constant 0 : i32
    return %arg0, %c0_i32 : i32, i32
  }
  func.func @transform_1(%arg0: i32) -> (i32, i32) {
    %c0_i32 = arith.constant 0 : i32
    %c0_i32_0 = arith.constant 0 : i32
    %c0_i32_1 = arith.constant 0 : i32
    return %c0_i32, %c0_i32_0 : i32, i32
  }
  func.func @transform_2(%arg0: i32) -> (i32, i32) {
    %c0_i32 = arith.constant 0 : i32
    %c0_i32_0 = arith.constant 0 : i32
    %c0_i32_1 = arith.constant 0 : i32
    return %c0_i32, %c0_i32_0 : i32, i32
  }
  func.func @transform_3(%arg0: i32) -> (i32, i32) {
    %c0_i32 = arith.constant 0 : i32
    %c0_i32_0 = arith.constant 0 : i32
    return %arg0, %c0_i32 : i32, i32
  }
}

module attributes {stable_mosaic.version = 11 : i64} {
  func.func @_gemm_kernel(%arg0: i32, %arg1: memref<64x1024xbf16, #tpu.memory_space<vmem>>, %arg2: memref<1024x128xbf16, #tpu.memory_space<vmem>>, %arg3: memref<1x128xf32, #tpu.memory_space<vmem>>, %arg4: memref<64x128xbf16, #tpu.memory_space<vmem>>, %arg5: memref<1x1x128xf32, #tpu.memory_space<vmem>>, %arg6: memref<1x1x128xf32, #tpu.memory_space<vmem>>) attributes {dimension_semantics = [#tpu.dimension_semantics<parallel>], iteration_bounds = array<i64: 2>, scalar_prefetch = 0 : i64, scratch_operands = 0 : i64, tpu.core_type = #tpu.core_type<tc>, window_params = [{transform_indices = @transform_0, window_bounds = array<i64: 64, 1024>}, {pipeline_mode = #tpu.pipeline_mode<synchronous>, transform_indices = @transform_1, window_bounds = array<i64: 1024, 128>}, {pipeline_mode = #tpu.pipeline_mode<synchronous>, transform_indices = @transform_2, window_bounds = array<i64: 1, 128>}, {transform_indices = @transform_3, window_bounds = array<i64: 64, 128>}, {transform_indices = @transform_4, window_bounds = array<i64: 1, 1, 128>}, {transform_indices = @transform_5, window_bounds = array<i64: 1, 1, 128>}]} {
    %c0 = arith.constant 0 : index
    %c0_0 = arith.constant 0 : index
    %0 = vector.load %arg1[%c0, %c0_0] : memref<64x1024xbf16, #tpu.memory_space<vmem>>, vector<64x1024xbf16>
    %c0_1 = arith.constant 0 : index
    %c0_2 = arith.constant 0 : index
    %1 = vector.load %arg2[%c0_1, %c0_2] : memref<1024x128xbf16, #tpu.memory_space<vmem>>, vector<1024x128xbf16>
    %cst = arith.constant dense<0.000000e+00> : vector<64x128xf32>
    %2 = tpu.matmul %0, %1, %cst {dimension_numbers = #tpu.dot_dimension_numbers<[1], [0], [0], [1], [0, 0, 1, 1], [], []>} : vector<64x1024xbf16>, vector<1024x128xbf16>, vector<64x128xf32> -> vector<64x128xf32>
    %c0_3 = arith.constant 0 : index
    %c0_4 = arith.constant 0 : index
    %3 = vector.load %arg3[%c0_3, %c0_4] : memref<1x128xf32, #tpu.memory_space<vmem>>, vector<1x128xf32>
    %4 = vector.broadcast %3 : vector<1x128xf32> to vector<64x128xf32>
    %5 = arith.addf %2, %4 : vector<64x128xf32>
    %cst_5 = arith.constant dense<0.000000e+00> : vector<128xf32>
    %6 = vector.multi_reduction <add>, %5, %cst_5 [0] : vector<64x128xf32> to vector<128xf32>
    %7 = vector.shape_cast %6 : vector<128xf32> to vector<1x128xf32>
    %8 = vector.shape_cast %7 : vector<1x128xf32> to vector<1x1x128xf32>
    %c0_6 = arith.constant 0 : index
    %c0_7 = arith.constant 0 : index
    %c0_8 = arith.constant 0 : index
    %9 = vector.load %arg5[%c0_6, %c0_7, %c0_8] : memref<1x1x128xf32, #tpu.memory_space<vmem>>, vector<1x1x128xf32>
    tpu.vector_store %arg5[%c0_6, %c0_7, %c0_8], %8 {strides = array<i32>} : memref<1x1x128xf32, #tpu.memory_space<vmem>>, vector<1x1x128xf32>,
    %10 = arith.mulf %5, %5 : vector<64x128xf32>
    %cst_9 = arith.constant dense<0.000000e+00> : vector<128xf32>
    %11 = vector.multi_reduction <add>, %10, %cst_9 [0] : vector<64x128xf32> to vector<128xf32>
    %12 = vector.shape_cast %11 : vector<128xf32> to vector<1x128xf32>
    %13 = vector.shape_cast %12 : vector<1x128xf32> to vector<1x1x128xf32>
    %c0_10 = arith.constant 0 : index
    %c0_11 = arith.constant 0 : index
    %c0_12 = arith.constant 0 : index
    %14 = vector.load %arg6[%c0_10, %c0_11, %c0_12] : memref<1x1x128xf32, #tpu.memory_space<vmem>>, vector<1x1x128xf32>
    tpu.vector_store %arg6[%c0_10, %c0_11, %c0_12], %13 {strides = array<i32>} : memref<1x1x128xf32, #tpu.memory_space<vmem>>, vector<1x1x128xf32>,
    %15 = arith.truncf %5 : vector<64x128xf32> to vector<64x128xbf16>
    %c0_13 = arith.constant 0 : index
    %c0_14 = arith.constant 0 : index
    %16 = vector.load %arg4[%c0_13, %c0_14] : memref<64x128xbf16, #tpu.memory_space<vmem>>, vector<64x128xbf16>
    tpu.vector_store %arg4[%c0_13, %c0_14], %15 {strides = array<i32>} : memref<64x128xbf16, #tpu.memory_space<vmem>>, vector<64x128xbf16>,
    return
  }
  func.func @transform_0(%arg0: i32) -> (i32, i32) {
    %c0_i32 = arith.constant 0 : i32
    %c0_i32_0 = arith.constant 0 : i32
    return %arg0, %c0_i32 : i32, i32
  }
  func.func @transform_1(%arg0: i32) -> (i32, i32) {
    %c0_i32 = arith.constant 0 : i32
    %c0_i32_0 = arith.constant 0 : i32
    %c0_i32_1 = arith.constant 0 : i32
    return %c0_i32, %c0_i32_0 : i32, i32
  }
  func.func @transform_2(%arg0: i32) -> (i32, i32) {
    %c0_i32 = arith.constant 0 : i32
    %c0_i32_0 = arith.constant 0 : i32
    %c0_i32_1 = arith.constant 0 : i32
    return %c0_i32, %c0_i32_0 : i32, i32
  }
  func.func @transform_3(%arg0: i32) -> (i32, i32) {
    %c0_i32 = arith.constant 0 : i32
    %c0_i32_0 = arith.constant 0 : i32
    return %arg0, %c0_i32 : i32, i32
  }
  func.func @transform_4(%arg0: i32) -> (i32, i32, i32) {
    %c0_i32 = arith.constant 0 : i32
    %c0_i32_0 = arith.constant 0 : i32
    %c0_i32_1 = arith.constant 0 : i32
    return %arg0, %c0_i32, %c0_i32_0 : i32, i32, i32
  }
  func.func @transform_5(%arg0: i32) -> (i32, i32, i32) {
    %c0_i32 = arith.constant 0 : i32
    %c0_i32_0 = arith.constant 0 : i32
    %c0_i32_1 = arith.constant 0 : i32
    return %arg0, %c0_i32, %c0_i32_0 : i32, i32, i32
  }
}

module attributes {stable_mosaic.version = 11 : i64} {
  func.func @_gemm_kernel(%arg0: i32, %arg1: memref<16x2048xbf16, #tpu.memory_space<vmem>>, %arg2: memref<2048x256xbf16, #tpu.memory_space<vmem>>, %arg3: memref<1x256xf32, #tpu.memory_space<vmem>>, %arg4: memref<16x256xbf16, #tpu.memory_space<vmem>>, %arg5: memref<1x1x256xf32, #tpu.memory_space<vmem>>, %arg6: memref<1x1x256xf32, #tpu.memory_space<vmem>>) attributes {dimension_semantics = [#tpu.dimension_semantics<parallel>], iteration_bounds = array<i64: 2>, scalar_prefetch = 0 : i64, scratch_operands = 0 : i64, tpu.core_type = #tpu.core_type<tc>, window_params = [{transform_indices = @transform_0, window_bounds = array<i64: 16, 2048>}, {pipeline_mode = #tpu.pipeline_mode<synchronous>, transform_indices = @transform_1, window_bounds = array<i64: 2048, 256>}, {pipeline_mode = #tpu.pipeline_mode<synchronous>, transform_indices = @transform_2, window_bounds = array<i64: 1, 256>}, {transform_indices = @transform_3, window_bounds = array<i64: 16, 256>}, {transform_indices = @transform_4, window_bounds = array<i64: 1, 1, 256>}, {transform_indices = @transform_5, window_bounds = array<i64: 1, 1, 256>}]} {
    %c0 = arith.constant 0 : index
    %c0_0 = arith.constant 0 : index
    %0 = vector.load %arg1[%c0, %c0_0] : memref<16x2048xbf16, #tpu.memory_space<vmem>>, vector<16x2048xbf16>
    %c0_1 = arith.constant 0 : index
    %c0_2 = arith.constant 0 : index
    %1 = vector.load %arg2[%c0_1, %c0_2] : memref<2048x256xbf16, #tpu.memory_space<vmem>>, vector<2048x256xbf16>
    %cst = arith.constant dense<0.000000e+00> : vector<16x256xf32>
    %2 = tpu.matmul %0, %1, %cst {dimension_numbers = #tpu.dot_dimension_numbers<[1], [0], [0], [1], [0, 0, 1, 1], [], []>} : vector<16x2048xbf16>, vector<2048x256xbf16>, vector<16x256xf32> -> vector<16x256xf32>
    %c0_3 = arith.constant 0 : index
    %c0_4 = arith.constant 0 : index
    %3 = vector.load %arg3[%c0_3, %c0_4] : memref<1x256xf32, #tpu.memory_space<vmem>>, vector<1x256xf32>
    %4 = vector.broadcast %3 : vector<1x256xf32> to vector<16x256xf32>
    %5 = arith.addf %2, %4 : vector<16x256xf32>
    %cst_5 = arith.constant dense<0.000000e+00> : vector<256xf32>
    %6 = vector.multi_reduction <add>, %5, %cst_5 [0] : vector<16x256xf32> to vector<256xf32>
    %7 = vector.shape_cast %6 : vector<256xf32> to vector<1x256xf32>
    %8 = vector.shape_cast %7 : vector<1x256xf32> to vector<1x1x256xf32>
    %c0_6 = arith.constant 0 : index
    %c0_7 = arith.constant 0 : index
    %c0_8 = arith.constant 0 : index
    %9 = vector.load %arg5[%c0_6, %c0_7, %c0_8] : memref<1x1x256xf32, #tpu.memory_space<vmem>>, vector<1x1x256xf32>
    tpu.vector_store %arg5[%c0_6, %c0_7, %c0_8], %8 {strides = array<i32>} : memref<1x1x256xf32, #tpu.memory_space<vmem>>, vector<1x1x256xf32>,
    %10 = arith.mulf %5, %5 : vector<16x256xf32>
    %cst_9 = arith.constant dense<0.000000e+00> : vector<256xf32>
    %11 = vector.multi_reduction <add>, %10, %cst_9 [0] : vector<16x256xf32> to vector<256xf32>
    %12 = vector.shape_cast %11 : vector<256xf32> to vector<1x256xf32>
    %13 = vector.shape_cast %12 : vector<1x256xf32> to vector<1x1x256xf32>
    %c0_10 = arith.constant 0 : index
    %c0_11 = arith.constant 0 : index
    %c0_12 = arith.constant 0 : index
    %14 = vector.load %arg6[%c0_10, %c0_11, %c0_12] : memref<1x1x256xf32, #tpu.memory_space<vmem>>, vector<1x1x256xf32>
    tpu.vector_store %arg6[%c0_10, %c0_11, %c0_12], %13 {strides = array<i32>} : memref<1x1x256xf32, #tpu.memory_space<vmem>>, vector<1x1x256xf32>,
    %15 = arith.truncf %5 : vector<16x256xf32> to vector<16x256xbf16>
    %c0_13 = arith.constant 0 : index
    %c0_14 = arith.constant 0 : index
    %16 = vector.load %arg4[%c0_13, %c0_14] : memref<16x256xbf16, #tpu.memory_space<vmem>>, vector<16x256xbf16>
    tpu.vector_store %arg4[%c0_13, %c0_14], %15 {strides = array<i32>} : memref<16x256xbf16, #tpu.memory_space<vmem>>, vector<16x256xbf16>,
    return
  }
  func.func @transform_0(%arg0: i32) -> (i32, i32) {
    %c0_i32 = arith.constant 0 : i32
    %c0_i32_0 = arith.constant 0 : i32
    return %arg0, %c0_i32 : i32, i32
  }
  func.func @transform_1(%arg0: i32) -> (i32, i32) {
    %c0_i32 = arith.constant 0 : i32
    %c0_i32_0 = arith.constant 0 : i32
    %c0_i32_1 = arith.constant 0 : i32
    return %c0_i32, %c0_i32_0 : i32, i32
  }
  func.func @transform_2(%arg0: i32) -> (i32, i32) {
    %c0_i32 = arith.constant 0 : i32
    %c0_i32_0 = arith.constant 0 : i32
    %c0_i32_1 = arith.constant 0 : i32
    return %c0_i32, %c0_i32_0 : i32, i32
  }
  func.func @transform_3(%arg0: i32) -> (i32, i32) {
    %c0_i32 = arith.constant 0 : i32
    %c0_i32_0 = arith.constant 0 : i32
    return %arg0, %c0_i32 : i32, i32
  }
  func.func @transform_4(%arg0: i32) -> (i32, i32, i32) {
    %c0_i32 = arith.constant 0 : i32
    %c0_i32_0 = arith.constant 0 : i32
    %c0_i32_1 = arith.constant 0 : i32
    return %arg0, %c0_i32, %c0_i32_0 : i32, i32, i32
  }
  func.func @transform_5(%arg0: i32) -> (i32, i32, i32) {
    %c0_i32 = arith.constant 0 : i32
    %c0_i32_0 = arith.constant 0 : i32
    %c0_i32_1 = arith.constant 0 : i32
    return %arg0, %c0_i32, %c0_i32_0 : i32, i32, i32
  }
}

module attributes {stable_mosaic.version = 11 : i64} {
  func.func @_gemm_kernel(%arg0: i32, %arg1: memref<16x2304xbf16, #tpu.memory_space<vmem>>, %arg2: memref<2304x256xbf16, #tpu.memory_space<vmem>>, %arg3: memref<1x256xf32, #tpu.memory_space<vmem>>, %arg4: memref<16x256xbf16, #tpu.memory_space<vmem>>, %arg5: memref<1x1x256xf32, #tpu.memory_space<vmem>>, %arg6: memref<1x1x256xf32, #tpu.memory_space<vmem>>) attributes {dimension_semantics = [#tpu.dimension_semantics<parallel>], iteration_bounds = array<i64: 2>, scalar_prefetch = 0 : i64, scratch_operands = 0 : i64, tpu.core_type = #tpu.core_type<tc>, window_params = [{transform_indices = @transform_0, window_bounds = array<i64: 16, 2304>}, {pipeline_mode = #tpu.pipeline_mode<synchronous>, transform_indices = @transform_1, window_bounds = array<i64: 2304, 256>}, {pipeline_mode = #tpu.pipeline_mode<synchronous>, transform_indices = @transform_2, window_bounds = array<i64: 1, 256>}, {transform_indices = @transform_3, window_bounds = array<i64: 16, 256>}, {transform_indices = @transform_4, window_bounds = array<i64: 1, 1, 256>}, {transform_indices = @transform_5, window_bounds = array<i64: 1, 1, 256>}]} {
    %c0 = arith.constant 0 : index
    %c0_0 = arith.constant 0 : index
    %0 = vector.load %arg1[%c0, %c0_0] : memref<16x2304xbf16, #tpu.memory_space<vmem>>, vector<16x2304xbf16>
    %c0_1 = arith.constant 0 : index
    %c0_2 = arith.constant 0 : index
    %1 = vector.load %arg2[%c0_1, %c0_2] : memref<2304x256xbf16, #tpu.memory_space<vmem>>, vector<2304x256xbf16>
    %cst = arith.constant dense<0.000000e+00> : vector<16x256xf32>
    %2 = tpu.matmul %0, %1, %cst {dimension_numbers = #tpu.dot_dimension_numbers<[1], [0], [0], [1], [0, 0, 1, 1], [], []>} : vector<16x2304xbf16>, vector<2304x256xbf16>, vector<16x256xf32> -> vector<16x256xf32>
    %c0_3 = arith.constant 0 : index
    %c0_4 = arith.constant 0 : index
    %3 = vector.load %arg3[%c0_3, %c0_4] : memref<1x256xf32, #tpu.memory_space<vmem>>, vector<1x256xf32>
    %4 = vector.broadcast %3 : vector<1x256xf32> to vector<16x256xf32>
    %5 = arith.addf %2, %4 : vector<16x256xf32>
    %cst_5 = arith.constant dense<0.000000e+00> : vector<256xf32>
    %6 = vector.multi_reduction <add>, %5, %cst_5 [0] : vector<16x256xf32> to vector<256xf32>
    %7 = vector.shape_cast %6 : vector<256xf32> to vector<1x256xf32>
    %8 = vector.shape_cast %7 : vector<1x256xf32> to vector<1x1x256xf32>
    %c0_6 = arith.constant 0 : index
    %c0_7 = arith.constant 0 : index
    %c0_8 = arith.constant 0 : index
    %9 = vector.load %arg5[%c0_6, %c0_7, %c0_8] : memref<1x1x256xf32, #tpu.memory_space<vmem>>, vector<1x1x256xf32>
    tpu.vector_store %arg5[%c0_6, %c0_7, %c0_8], %8 {strides = array<i32>} : memref<1x1x256xf32, #tpu.memory_space<vmem>>, vector<1x1x256xf32>,
    %10 = arith.mulf %5, %5 : vector<16x256xf32>
    %cst_9 = arith.constant dense<0.000000e+00> : vector<256xf32>
    %11 = vector.multi_reduction <add>, %10, %cst_9 [0] : vector<16x256xf32> to vector<256xf32>
    %12 = vector.shape_cast %11 : vector<256xf32> to vector<1x256xf32>
    %13 = vector.shape_cast %12 : vector<1x256xf32> to vector<1x1x256xf32>
    %c0_10 = arith.constant 0 : index
    %c0_11 = arith.constant 0 : index
    %c0_12 = arith.constant 0 : index
    %14 = vector.load %arg6[%c0_10, %c0_11, %c0_12] : memref<1x1x256xf32, #tpu.memory_space<vmem>>, vector<1x1x256xf32>
    tpu.vector_store %arg6[%c0_10, %c0_11, %c0_12], %13 {strides = array<i32>} : memref<1x1x256xf32, #tpu.memory_space<vmem>>, vector<1x1x256xf32>,
    %15 = arith.truncf %5 : vector<16x256xf32> to vector<16x256xbf16>
    %c0_13 = arith.constant 0 : index
    %c0_14 = arith.constant 0 : index
    %16 = vector.load %arg4[%c0_13, %c0_14] : memref<16x256xbf16, #tpu.memory_space<vmem>>, vector<16x256xbf16>
    tpu.vector_store %arg4[%c0_13, %c0_14], %15 {strides = array<i32>} : memref<16x256xbf16, #tpu.memory_space<vmem>>, vector<16x256xbf16>,
    return
  }
  func.func @transform_0(%arg0: i32) -> (i32, i32) {
    %c0_i32 = arith.constant 0 : i32
    %c0_i32_0 = arith.constant 0 : i32
    return %arg0, %c0_i32 : i32, i32
  }
  func.func @transform_1(%arg0: i32) -> (i32, i32) {
    %c0_i32 = arith.constant 0 : i32
    %c0_i32_0 = arith.constant 0 : i32
    %c0_i32_1 = arith.constant 0 : i32
    return %c0_i32, %c0_i32_0 : i32, i32
  }
  func.func @transform_2(%arg0: i32) -> (i32, i32) {
    %c0_i32 = arith.constant 0 : i32
    %c0_i32_0 = arith.constant 0 : i32
    %c0_i32_1 = arith.constant 0 : i32
    return %c0_i32, %c0_i32_0 : i32, i32
  }
  func.func @transform_3(%arg0: i32) -> (i32, i32) {
    %c0_i32 = arith.constant 0 : i32
    %c0_i32_0 = arith.constant 0 : i32
    return %arg0, %c0_i32 : i32, i32
  }
  func.func @transform_4(%arg0: i32) -> (i32, i32, i32) {
    %c0_i32 = arith.constant 0 : i32
    %c0_i32_0 = arith.constant 0 : i32
    %c0_i32_1 = arith.constant 0 : i32
    return %arg0, %c0_i32, %c0_i32_0 : i32, i32, i32
  }
  func.func @transform_5(%arg0: i32) -> (i32, i32, i32) {
    %c0_i32 = arith.constant 0 : i32
    %c0_i32_0 = arith.constant 0 : i32
    %c0_i32_1 = arith.constant 0 : i32
    return %arg0, %c0_i32, %c0_i32_0 : i32, i32, i32
  }
}

module attributes {stable_mosaic.version = 11 : i64} {
  func.func @_gemm_kernel(%arg0: i32, %arg1: memref<16x2304xbf16, #tpu.memory_space<vmem>>, %arg2: memref<2304x512xbf16, #tpu.memory_space<vmem>>, %arg3: memref<1x512xf32, #tpu.memory_space<vmem>>, %arg4: memref<16x512xbf16, #tpu.memory_space<vmem>>, %arg5: memref<1x1x512xf32, #tpu.memory_space<vmem>>, %arg6: memref<1x1x512xf32, #tpu.memory_space<vmem>>) attributes {dimension_semantics = [#tpu.dimension_semantics<parallel>], iteration_bounds = array<i64: 2>, scalar_prefetch = 0 : i64, scratch_operands = 0 : i64, tpu.core_type = #tpu.core_type<tc>, window_params = [{transform_indices = @transform_0, window_bounds = array<i64: 16, 2304>}, {pipeline_mode = #tpu.pipeline_mode<synchronous>, transform_indices = @transform_1, window_bounds = array<i64: 2304, 512>}, {pipeline_mode = #tpu.pipeline_mode<synchronous>, transform_indices = @transform_2, window_bounds = array<i64: 1, 512>}, {transform_indices = @transform_3, window_bounds = array<i64: 16, 512>}, {transform_indices = @transform_4, window_bounds = array<i64: 1, 1, 512>}, {transform_indices = @transform_5, window_bounds = array<i64: 1, 1, 512>}]} {
    %c0 = arith.constant 0 : index
    %c0_0 = arith.constant 0 : index
    %0 = vector.load %arg1[%c0, %c0_0] : memref<16x2304xbf16, #tpu.memory_space<vmem>>, vector<16x2304xbf16>
    %c0_1 = arith.constant 0 : index
    %c0_2 = arith.constant 0 : index
    %1 = vector.load %arg2[%c0_1, %c0_2] : memref<2304x512xbf16, #tpu.memory_space<vmem>>, vector<2304x512xbf16>
    %cst = arith.constant dense<0.000000e+00> : vector<16x512xf32>
    %2 = tpu.matmul %0, %1, %cst {dimension_numbers = #tpu.dot_dimension_numbers<[1], [0], [0], [1], [0, 0, 1, 1], [], []>} : vector<16x2304xbf16>, vector<2304x512xbf16>, vector<16x512xf32> -> vector<16x512xf32>
    %c0_3 = arith.constant 0 : index
    %c0_4 = arith.constant 0 : index
    %3 = vector.load %arg3[%c0_3, %c0_4] : memref<1x512xf32, #tpu.memory_space<vmem>>, vector<1x512xf32>
    %4 = vector.broadcast %3 : vector<1x512xf32> to vector<16x512xf32>
    %5 = arith.addf %2, %4 : vector<16x512xf32>
    %cst_5 = arith.constant dense<0.000000e+00> : vector<512xf32>
    %6 = vector.multi_reduction <add>, %5, %cst_5 [0] : vector<16x512xf32> to vector<512xf32>
    %7 = vector.shape_cast %6 : vector<512xf32> to vector<1x512xf32>
    %8 = vector.shape_cast %7 : vector<1x512xf32> to vector<1x1x512xf32>
    %c0_6 = arith.constant 0 : index
    %c0_7 = arith.constant 0 : index
    %c0_8 = arith.constant 0 : index
    %9 = vector.load %arg5[%c0_6, %c0_7, %c0_8] : memref<1x1x512xf32, #tpu.memory_space<vmem>>, vector<1x1x512xf32>
    tpu.vector_store %arg5[%c0_6, %c0_7, %c0_8], %8 {strides = array<i32>} : memref<1x1x512xf32, #tpu.memory_space<vmem>>, vector<1x1x512xf32>,
    %10 = arith.mulf %5, %5 : vector<16x512xf32>
    %cst_9 = arith.constant dense<0.000000e+00> : vector<512xf32>
    %11 = vector.multi_reduction <add>, %10, %cst_9 [0] : vector<16x512xf32> to vector<512xf32>
    %12 = vector.shape_cast %11 : vector<512xf32> to vector<1x512xf32>
    %13 = vector.shape_cast %12 : vector<1x512xf32> to vector<1x1x512xf32>
    %c0_10 = arith.constant 0 : index
    %c0_11 = arith.constant 0 : index
    %c0_12 = arith.constant 0 : index
    %14 = vector.load %arg6[%c0_10, %c0_11, %c0_12] : memref<1x1x512xf32, #tpu.memory_space<vmem>>, vector<1x1x512xf32>
    tpu.vector_store %arg6[%c0_10, %c0_11, %c0_12], %13 {strides = array<i32>} : memref<1x1x512xf32, #tpu.memory_space<vmem>>, vector<1x1x512xf32>,
    %15 = arith.truncf %5 : vector<16x512xf32> to vector<16x512xbf16>
    %c0_13 = arith.constant 0 : index
    %c0_14 = arith.constant 0 : index
    %16 = vector.load %arg4[%c0_13, %c0_14] : memref<16x512xbf16, #tpu.memory_space<vmem>>, vector<16x512xbf16>
    tpu.vector_store %arg4[%c0_13, %c0_14], %15 {strides = array<i32>} : memref<16x512xbf16, #tpu.memory_space<vmem>>, vector<16x512xbf16>,
    return
  }
  func.func @transform_0(%arg0: i32) -> (i32, i32) {
    %c0_i32 = arith.constant 0 : i32
    %c0_i32_0 = arith.constant 0 : i32
    return %arg0, %c0_i32 : i32, i32
  }
  func.func @transform_1(%arg0: i32) -> (i32, i32) {
    %c0_i32 = arith.constant 0 : i32
    %c0_i32_0 = arith.constant 0 : i32
    %c0_i32_1 = arith.constant 0 : i32
    return %c0_i32, %c0_i32_0 : i32, i32
  }
  func.func @transform_2(%arg0: i32) -> (i32, i32) {
    %c0_i32 = arith.constant 0 : i32
    %c0_i32_0 = arith.constant 0 : i32
    %c0_i32_1 = arith.constant 0 : i32
    return %c0_i32, %c0_i32_0 : i32, i32
  }
  func.func @transform_3(%arg0: i32) -> (i32, i32) {
    %c0_i32 = arith.constant 0 : i32
    %c0_i32_0 = arith.constant 0 : i32
    return %arg0, %c0_i32 : i32, i32
  }
  func.func @transform_4(%arg0: i32) -> (i32, i32, i32) {
    %c0_i32 = arith.constant 0 : i32
    %c0_i32_0 = arith.constant 0 : i32
    %c0_i32_1 = arith.constant 0 : i32
    return %arg0, %c0_i32, %c0_i32_0 : i32, i32, i32
  }
  func.func @transform_5(%arg0: i32) -> (i32, i32, i32) {
    %c0_i32 = arith.constant 0 : i32
    %c0_i32_0 = arith.constant 0 : i32
    %c0_i32_1 = arith.constant 0 : i32
    return %arg0, %c0_i32, %c0_i32_0 : i32, i32, i32
  }
}

module attributes {stable_mosaic.version = 11 : i64} {
  func.func @_gemm_kernel(%arg0: i32, %arg1: memref<64x1152xbf16, #tpu.memory_space<vmem>>, %arg2: memref<1152x256xbf16, #tpu.memory_space<vmem>>, %arg3: memref<1x256xf32, #tpu.memory_space<vmem>>, %arg4: memref<64x256xbf16, #tpu.memory_space<vmem>>, %arg5: memref<1x1x256xf32, #tpu.memory_space<vmem>>, %arg6: memref<1x1x256xf32, #tpu.memory_space<vmem>>) attributes {dimension_semantics = [#tpu.dimension_semantics<parallel>], iteration_bounds = array<i64: 2>, scalar_prefetch = 0 : i64, scratch_operands = 0 : i64, tpu.core_type = #tpu.core_type<tc>, window_params = [{transform_indices = @transform_0, window_bounds = array<i64: 64, 1152>}, {pipeline_mode = #tpu.pipeline_mode<synchronous>, transform_indices = @transform_1, window_bounds = array<i64: 1152, 256>}, {pipeline_mode = #tpu.pipeline_mode<synchronous>, transform_indices = @transform_2, window_bounds = array<i64: 1, 256>}, {transform_indices = @transform_3, window_bounds = array<i64: 64, 256>}, {transform_indices = @transform_4, window_bounds = array<i64: 1, 1, 256>}, {transform_indices = @transform_5, window_bounds = array<i64: 1, 1, 256>}]} {
    %c0 = arith.constant 0 : index
    %c0_0 = arith.constant 0 : index
    %0 = vector.load %arg1[%c0, %c0_0] : memref<64x1152xbf16, #tpu.memory_space<vmem>>, vector<64x1152xbf16>
    %c0_1 = arith.constant 0 : index
    %c0_2 = arith.constant 0 : index
    %1 = vector.load %arg2[%c0_1, %c0_2] : memref<1152x256xbf16, #tpu.memory_space<vmem>>, vector<1152x256xbf16>
    %cst = arith.constant dense<0.000000e+00> : vector<64x256xf32>
    %2 = tpu.matmul %0, %1, %cst {dimension_numbers = #tpu.dot_dimension_numbers<[1], [0], [0], [1], [0, 0, 1, 1], [], []>} : vector<64x1152xbf16>, vector<1152x256xbf16>, vector<64x256xf32> -> vector<64x256xf32>
    %c0_3 = arith.constant 0 : index
    %c0_4 = arith.constant 0 : index
    %3 = vector.load %arg3[%c0_3, %c0_4] : memref<1x256xf32, #tpu.memory_space<vmem>>, vector<1x256xf32>
    %4 = vector.broadcast %3 : vector<1x256xf32> to vector<64x256xf32>
    %5 = arith.addf %2, %4 : vector<64x256xf32>
    %cst_5 = arith.constant dense<0.000000e+00> : vector<256xf32>
    %6 = vector.multi_reduction <add>, %5, %cst_5 [0] : vector<64x256xf32> to vector<256xf32>
    %7 = vector.shape_cast %6 : vector<256xf32> to vector<1x256xf32>
    %8 = vector.shape_cast %7 : vector<1x256xf32> to vector<1x1x256xf32>
    %c0_6 = arith.constant 0 : index
    %c0_7 = arith.constant 0 : index
    %c0_8 = arith.constant 0 : index
    %9 = vector.load %arg5[%c0_6, %c0_7, %c0_8] : memref<1x1x256xf32, #tpu.memory_space<vmem>>, vector<1x1x256xf32>
    tpu.vector_store %arg5[%c0_6, %c0_7, %c0_8], %8 {strides = array<i32>} : memref<1x1x256xf32, #tpu.memory_space<vmem>>, vector<1x1x256xf32>,
    %10 = arith.mulf %5, %5 : vector<64x256xf32>
    %cst_9 = arith.constant dense<0.000000e+00> : vector<256xf32>
    %11 = vector.multi_reduction <add>, %10, %cst_9 [0] : vector<64x256xf32> to vector<256xf32>
    %12 = vector.shape_cast %11 : vector<256xf32> to vector<1x256xf32>
    %13 = vector.shape_cast %12 : vector<1x256xf32> to vector<1x1x256xf32>
    %c0_10 = arith.constant 0 : index
    %c0_11 = arith.constant 0 : index
    %c0_12 = arith.constant 0 : index
    %14 = vector.load %arg6[%c0_10, %c0_11, %c0_12] : memref<1x1x256xf32, #tpu.memory_space<vmem>>, vector<1x1x256xf32>
    tpu.vector_store %arg6[%c0_10, %c0_11, %c0_12], %13 {strides = array<i32>} : memref<1x1x256xf32, #tpu.memory_space<vmem>>, vector<1x1x256xf32>,
    %15 = arith.truncf %5 : vector<64x256xf32> to vector<64x256xbf16>
    %c0_13 = arith.constant 0 : index
    %c0_14 = arith.constant 0 : index
    %16 = vector.load %arg4[%c0_13, %c0_14] : memref<64x256xbf16, #tpu.memory_space<vmem>>, vector<64x256xbf16>
    tpu.vector_store %arg4[%c0_13, %c0_14], %15 {strides = array<i32>} : memref<64x256xbf16, #tpu.memory_space<vmem>>, vector<64x256xbf16>,
    return
  }
  func.func @transform_0(%arg0: i32) -> (i32, i32) {
    %c0_i32 = arith.constant 0 : i32
    %c0_i32_0 = arith.constant 0 : i32
    return %arg0, %c0_i32 : i32, i32
  }
  func.func @transform_1(%arg0: i32) -> (i32, i32) {
    %c0_i32 = arith.constant 0 : i32
    %c0_i32_0 = arith.constant 0 : i32
    %c0_i32_1 = arith.constant 0 : i32
    return %c0_i32, %c0_i32_0 : i32, i32
  }
  func.func @transform_2(%arg0: i32) -> (i32, i32) {
    %c0_i32 = arith.constant 0 : i32
    %c0_i32_0 = arith.constant 0 : i32
    %c0_i32_1 = arith.constant 0 : i32
    return %c0_i32, %c0_i32_0 : i32, i32
  }
  func.func @transform_3(%arg0: i32) -> (i32, i32) {
    %c0_i32 = arith.constant 0 : i32
    %c0_i32_0 = arith.constant 0 : i32
    return %arg0, %c0_i32 : i32, i32
  }
  func.func @transform_4(%arg0: i32) -> (i32, i32, i32) {
    %c0_i32 = arith.constant 0 : i32
    %c0_i32_0 = arith.constant 0 : i32
    %c0_i32_1 = arith.constant 0 : i32
    return %arg0, %c0_i32, %c0_i32_0 : i32, i32, i32
  }
  func.func @transform_5(%arg0: i32) -> (i32, i32, i32) {
    %c0_i32 = arith.constant 0 : i32
    %c0_i32_0 = arith.constant 0 : i32
    %c0_i32_1 = arith.constant 0 : i32
    return %arg0, %c0_i32, %c0_i32_0 : i32, i32, i32
  }
}

module attributes {stable_mosaic.version = 11 : i64} {
  func.func @_gemm_kernel(%arg0: i32, %arg1: memref<256x576xbf16, #tpu.memory_space<vmem>>, %arg2: memref<576x128xbf16, #tpu.memory_space<vmem>>, %arg3: memref<1x128xf32, #tpu.memory_space<vmem>>, %arg4: memref<256x128xf32, #tpu.memory_space<vmem>>) attributes {dimension_semantics = [#tpu.dimension_semantics<parallel>], iteration_bounds = array<i64: 2>, scalar_prefetch = 0 : i64, scratch_operands = 0 : i64, tpu.core_type = #tpu.core_type<tc>, window_params = [{transform_indices = @transform_0, window_bounds = array<i64: 256, 576>}, {pipeline_mode = #tpu.pipeline_mode<synchronous>, transform_indices = @transform_1, window_bounds = array<i64: 576, 128>}, {pipeline_mode = #tpu.pipeline_mode<synchronous>, transform_indices = @transform_2, window_bounds = array<i64: 1, 128>}, {transform_indices = @transform_3, window_bounds = array<i64: 256, 128>}]} {
    %c0 = arith.constant 0 : index
    %c0_0 = arith.constant 0 : index
    %0 = vector.load %arg1[%c0, %c0_0] : memref<256x576xbf16, #tpu.memory_space<vmem>>, vector<256x576xbf16>
    %c0_1 = arith.constant 0 : index
    %c0_2 = arith.constant 0 : index
    %1 = vector.load %arg2[%c0_1, %c0_2] : memref<576x128xbf16, #tpu.memory_space<vmem>>, vector<576x128xbf16>
    %cst = arith.constant dense<0.000000e+00> : vector<256x128xf32>
    %2 = tpu.matmul %0, %1, %cst {dimension_numbers = #tpu.dot_dimension_numbers<[1], [0], [0], [1], [0, 0, 1, 1], [], []>} : vector<256x576xbf16>, vector<576x128xbf16>, vector<256x128xf32> -> vector<256x128xf32>
    %c0_3 = arith.constant 0 : index
    %c0_4 = arith.constant 0 : index
    %3 = vector.load %arg3[%c0_3, %c0_4] : memref<1x128xf32, #tpu.memory_space<vmem>>, vector<1x128xf32>
    %4 = vector.broadcast %3 : vector<1x128xf32> to vector<256x128xf32>
    %5 = arith.addf %2, %4 : vector<256x128xf32>
    %6 = math.tanh %5 : vector<256x128xf32>
    %c0_5 = arith.constant 0 : index
    %c0_6 = arith.constant 0 : index
    %7 = vector.load %arg4[%c0_5, %c0_6] : memref<256x128xf32, #tpu.memory_space<vmem>>, vector<256x128xf32>
    tpu.vector_store %arg4[%c0_5, %c0_6], %6 {strides = array<i32>} : memref<256x128xf32, #tpu.memory_space<vmem>>, vector<256x128xf32>,
    return
  }
  func.func @transform_0(%arg0: i32) -> (i32, i32) {
    %c0_i32 = arith.constant 0 : i32
    %c0_i32_0 = arith.constant 0 : i32
    return %arg0, %c0_i32 : i32, i32
  }
  func.func @transform_1(%arg0: i32) -> (i32, i32) {
    %c0_i32 = arith.constant 0 : i32
    %c0_i32_0 = arith.constant 0 : i32
    %c0_i32_1 = arith.constant 0 : i32
    return %c0_i32, %c0_i32_0 : i32, i32
  }
  func.func @transform_2(%arg0: i32) -> (i32, i32) {
    %c0_i32 = arith.constant 0 : i32
    %c0_i32_0 = arith.constant 0 : i32
    %c0_i32_1 = arith.constant 0 : i32
    return %c0_i32, %c0_i32_0 : i32, i32
  }
  func.func @transform_3(%arg0: i32) -> (i32, i32) {
    %c0_i32 = arith.constant 0 : i32
    %c0_i32_0 = arith.constant 0 : i32
    return %arg0, %c0_i32 : i32, i32
  }
}

</mosaic_0001>

<bundles_post_ra>
// kernel: advanced_colorizer_forward.18
= control target key start
LH: loop header
LB: loop body
LE: loop exit
PB: predicated region body
PF: predicated region fallthrough
CT: control target
= control target key end

     0   :  { %8 = vsyncpa [#allocation3], 0  ;;  %s1391_s0 = inlined_call_operand.vmem [shape: bf16[512,16], index: 0, kind: input, shape index: {}]   ;;  %s1392_s1 = inlined_call_operand.hbm [shape: bf16[16,64], index: 1, kind: input, shape index: {}]   ;;  %s1393_s2 = inlined_call_operand.hbm [shape: f32[1,64], index: 2, kind: input, shape index: {}]   ;;  %s1394_s3 = inlined_call_operand.vmem [shape: bf16[512,64], index: 3, kind: output, shape index: {}]  }
   0x1   :  { %9 = vsyncpa [#allocation5], 0  ;;  %s1153_s12 = smov 0  }
   0x2 LB: > { %s843_s13 = sadd.s32 4294967295, %s1127_s12   ;;  %p845_p0 = scmp.ge.s32.totalorder %s1127_s12, 1  ;;  %s1127_s12 = sphi %s1153_s12, %s15_s12  }
   0x3   : > { %p114_p1 = scmp.lt.s32.totalorder %s1127_s12, 3  ;;  %s1129_s14 = smov [#allocation2]  }
   0x4   : > { %s126_s15 = sshll.u32 %s1129_s14, 4  ;;  %p1167_p3 = scmp.eq.s32.totalorder %s843_s13, 0  ;;  %s127_s15 = int_to_ptr.vmem [resolvable:$true] %s126_s15 }
   0x5   : > { %p1161_p2 = pnand %p845_p0, %p114_p1  ;;  %s1130_s18 = smov [#allocation4]  }
   0x6   : > { %s1399_s17 = scalar_select %p1167_p3, 1, 0 }
   0x7   : > { %s1398_s16 = scalar_select %p1161_p2, 1, 0 }
   0x8   : > { %p1017_p4 = pneg %p1161_p2  ;;  %s140_s19 = sshll.u32 %s1130_s18, 4  ;;  %s1179_s19 = int_to_ptr.vmem [resolvable:$true] %s140_s19 }
   0x9   : > { %s1057_s23 = scalar_lea.hbm %s1392_s1, 128 }
   0xa   : > { %p1175_p5 = pnand %p1167_p3, %p1017_p4  ;;  %p1058_p6 = scmp.ne.s32.totalorder %s1392_s1, %s1057_s23 }
   0xb   : > { %p1064_p10 = scmp.lt.u32.totalorder %s1057_s23, %s1392_s1 }
   0xc   : > { %p1059_p7 = pneg %p1175_p5 }
   0xe   : > { %p1060_p8 = pnand %p1059_p7, %p1058_p6 }
  0x10   : > { %p1061_p9 = pneg %p1060_p8 }
  0x12   : > { %p1066_p11 = pnand %p1064_p10, %p1061_p9 }
  0x14   : > { %1069 = shalt.err (!%p1066_p11)
}
  0x15   : > { %s1070_s28 = scalar_lea.vmem %s127_s15, 128  ;;  %p1078_p1 = scmp.lt.s32.totalorder %s127_s15, %s127_s15 }
  0x16   : > { %p1071_p12 = scmp.ne.s32.totalorder %s127_s15, %s1070_s28  ;;  %p1079_p4 = scmp.lt.s32.totalorder %s1070_s28, %s1070_s28 }
  0x18   : > { %p1073_p13 = pnand %p1071_p12, %p1059_p7  ;;  %p1080_p3 = por %p1079_p4, %p1078_p1 }
  0x1a   : > { %p1074_p0 = pneg %p1073_p13 }
  0x1c   : > { %p1081_p2 = pnand %p1080_p3, %p1074_p0 }
  0x1e   : > { %1084 = shalt.err (!%p1081_p2)
}
  0x1f   : > { %s1131_s29 = smov 64   ;;  %s1132_s30 = smov 4  }
  0x20   : > { %1020 = dma.hbm_to_vmem [thread:$0]  (!%p1175_p5), %s1392_s1, 128, %s127_s15, [#allocation3], %s1131_s29, %s1131_s29, %s1132_s30  }
  0x21   : > { %s1085_s8 = scalar_lea.hbm %s1393_s2, 16 }
  0x22   : > { %p1086_p6 = scmp.ne.s32.totalorder %s1393_s2, %s1085_s8  ;;  %p1092_p8 = scmp.lt.u32.totalorder %s1085_s8, %s1393_s2 }
  0x24   : > { %p1088_p2 = pnand %p1086_p6, %p1059_p7 }
  0x26   : > { %p1089_p3 = pneg %p1088_p2 }
  0x28   : > { %p1094_p9 = pnand %p1092_p8, %p1089_p3 }
  0x2a   : > { %1097 = shalt.err (!%p1094_p9)
}
  0x2b   : > { %s1098_s15 = scalar_lea.vmem %s1179_s19, 16  ;;  %s1105_s18 = scalar_lea.vmem %s1179_s19, 32 }
  0x2c   : > { %p1099_p10 = scmp.ne.s32.totalorder %s1179_s19, %s1098_s15  ;;  %p1106_p13 = scmp.lt.s32.totalorder %s1179_s19, %s1179_s19 }
  0x2d   : > { %p1107_p0 = scmp.lt.s32.totalorder %s1105_s18, %s1098_s15 }
  0x2e   : > { %p1101_p11 = pnand %p1099_p10, %p1059_p7 }
  0x2f   : > { %p1108_p1 = por %p1107_p0, %p1106_p13 }
  0x30   : > { %p1102_p12 = pneg %p1101_p11 }
  0x32   : > { %p1109_p4 = pnand %p1108_p1, %p1102_p12 }
  0x34   : > { %1112 = shalt.err (!%p1109_p4)
}
  0x35   : > { %1023 = dma.hbm_to_vmem [thread:$0]  (!%p1175_p5), %s1393_s2, 16, %s1179_s19, [#allocation5]  }
  0x36   : > { %p1401_p6 = scmp.ne.s32.totalorder %s1398_s16, 0 }
  0x37   : > { %p1402_p7 = scmp.ne.s32.totalorder (!%p1401_p6), %s1399_s17, 0 }
  0x38   : > { %162 = sbr.rel (%p1401_p6) target bundleno = 326 (0x146), region = 32 }
  0x3f   : > { %1118 = dma.done.wait (%p1402_p7), [#allocation3], 128  }
  0x40   : > { %1120 = vsyncadd (%p1402_p7), [#allocation3], 4294967168 }
  0x41   : > { %1122 = dma.done.wait (%p1402_p7), [#allocation5], 16  }
  0x42   : > { %1124 = vsyncadd (%p1402_p7), [#allocation5], 4294967280  ;;  %s852_s20 = sshll.u32 %s843_s13, 5  ;;  %v1040_v0 = vld [vmem:[#allocation2] sm:$0xff]   ;;  %vm330_vm0 = vcmask 130048   ;;  %vm732_vm1 = vcmask 519168  }
  0x43   : > { %p191_p2 = scmp.lt.s32.totalorder %s852_s20, 63  ;;  %973 = vmatprep.subr.bf16.mxu0 %v1040_v0  ;;  %1007 = vmatprep.subr.bf16.mxu1 %v1040_v0  ;;  %v1283_v17 = vld [vmem:[#allocation4] ss:$0 sm:$0xff] }
  0x44   : > { %974 = vmatpush3.bf16.msra.mxu0 %v1040_v0  ;;  %1008 = vmatpush3.bf16.msra.mxu1 %v1040_v0 }
  0x45   : > { %s1404_s20 = smov (!%p191_p2, %s852_s20), 63 }
  0x46   : > { %s853_s16 = sshll.u32 %s1404_s20, 2 }
  0x47   : > { %s1249_s24 = scalar_lea.vmem %s1391_s0, %s853_s16  ;;  %s1298_s25 = scalar_lea.vmem %s1394_s3, %s853_s16 }
  0x48   : > { %v1041_v1 = vld [vmem:[%s1249_s24] sm:$0xff]   ;;  %v1043_v3 = vld [vmem:[%s1249_s24 + $0x8] sm:$0xff]   ;;  %v1045_v5 = vld [vmem:[%s1249_s24 + $0x10] sm:$0xff]  }
  0x49   : > { %v1042_v2 = vld [vmem:[%s1249_s24 + $0x40] sm:$0xff]   ;;  %975 = vmatprep.mubr.msk.bf16.mxu0 %vm330_vm0, %v1041_v1  ;;  %v1044_v4 = vld [vmem:[%s1249_s24 + $0x48] sm:$0xff]   ;;  %v1046_v6 = vld [vmem:[%s1249_s24 + $0x50] sm:$0xff]  }
  0x4a   : > { %991 = vmatprep.mubr.msk.bf16.mxu1 %vm330_vm0, %v1042_v2  ;;  %976 = vmatmul.mubr.msk.bf16.vlgmr.msra.gmra.mrb[0].mxu0 %vm330_vm0, %v1043_v3  ;;  %v1047_v7 = vld [vmem:[%s1249_s24 + $0x18] sm:$0xff]   ;;  %v1049_v9 = vld [vmem:[%s1249_s24 + $0x20] sm:$0xff]   ;;  %v1051_v11 = vld [vmem:[%s1249_s24 + $0x28] sm:$0xff]  }
  0x4b   : > { %992 = vmatmul.mubr.msk.bf16.vlgmr.msra.gmra.mrb[0].mxu1 %vm330_vm0, %v1044_v4  ;;  %979 = vmatprep.mubr.msk.bf16.mxu0 %vm330_vm0, %v1045_v5  ;;  %v1048_v8 = vld [vmem:[%s1249_s24 + $0x58] sm:$0xff]   ;;  %v1050_v10 = vld [vmem:[%s1249_s24 + $0x60] sm:$0xff]   ;;  %v1052_v12 = vld [vmem:[%s1249_s24 + $0x68] sm:$0xff]  }
  0x4c   : > { %995 = vmatprep.mubr.msk.bf16.mxu1 %vm330_vm0, %v1046_v6  ;;  %v1053_v13 = vld [vmem:[%s1249_s24 + $0x30] sm:$0xff]   ;;  %v1055_v15 = vld [vmem:[%s1249_s24 + $0x38] sm:$0xff]  }
  0x4d   : > { %v1054_v14 = vld [vmem:[%s1249_s24 + $0x70] sm:$0xff]   ;;  %v1056_v16 = vld [vmem:[%s1249_s24 + $0x78] sm:$0xff]  }
  0x52   : > { %980 = vmatmul.mubr.msk.bf16.gmra.mrb[4].mxu0 %vm330_vm0, %v1047_v7 }
  0x53   : > { %996 = vmatmul.mubr.msk.bf16.gmra.mrb[4].mxu1 %vm330_vm0, %v1048_v8  ;;  %983 = vmatprep.mubr.msk.bf16.mxu0 %vm330_vm0, %v1049_v9 }
  0x54   : > { %999 = vmatprep.mubr.msk.bf16.mxu1 %vm330_vm0, %v1050_v10 }
  0x5a   : > { %984 = vmatmul.mubr.msk.bf16.gmra.mrb[8].mxu0 %vm330_vm0, %v1051_v11 }
  0x5b   : > { %1000 = vmatmul.mubr.msk.bf16.gmra.mrb[8].mxu1 %vm330_vm0, %v1052_v12  ;;  %987 = vmatprep.mubr.msk.bf16.mxu0 %vm330_vm0, %v1053_v13 }
  0x5c   : > { %1003 = vmatprep.mubr.msk.bf16.mxu1 %vm330_vm0, %v1054_v14 }
  0x62   : > { %988 = vmatmul.mubr.msk.bf16.gmra.mrb[12].mxu0 %vm330_vm0, %v1055_v15 }
  0x63   : > { %1004 = vmatmul.mubr.msk.bf16.gmra.mrb[12].mxu1 %vm330_vm0, %v1056_v16 }
 0x11d   : > { %v977_v18 = vpop.f32.mrb[0].mxu0 }
 0x11e   : > { %v993_v19 = vpop.f32.mrb[0].mxu1  ;;  %v422_v20 = vadd.f32 %v977_v18, %v1283_v17  ;;  %v413_v22 = vpop.f32.mrb[1].mxu0 }
 0x11f   : > { %v486_v21 = vadd.f32 %v993_v19, %v1283_v17  ;;  %v477_v23 = vpop.f32.mrb[1].mxu1  ;;  %v414_v24 = vadd.f32 %v1283_v17, %v413_v22  ;;  %v978_v26 = vpop.f32.mrb[2].mxu0 }
 0x120   : > { %v478_v25 = vadd.f32 %v1283_v17, %v477_v23  ;;  %v994_v27 = vpop.f32.mrb[2].mxu1  ;;  %v542_v28 = vmul.f32 0.2, %v422_v20  ;;  %v425_v30 = vadd.f32 %v978_v26, %v1283_v17  ;;  %v416_v32 = vpop.f32.mrb[3].mxu0 }
 0x121   : > { %v558_v29 = vmul.f32 0.2, %v486_v21  ;;  %v489_v31 = vadd.f32 %v994_v27, %v1283_v17  ;;  %v480_v33 = vpop.f32.mrb[3].mxu1  ;;  %v540_v34 = vmul.f32 0.2, %v414_v24  ;;  %v417_v36 = vadd.f32 %v1283_v17, %v416_v32 }
 0x122   : > { %v556_v35 = vmul.f32 0.2, %v478_v25  ;;  %v481_v37 = vadd.f32 %v1283_v17, %v480_v33  ;;  %v574_v38 = vmax.f32 %v422_v20, %v542_v28  ;;  %v543_v40 = vmul.f32 0.2, %v425_v30 }
 0x123   : > { %v590_v39 = vmax.f32 %v486_v21, %v558_v29  ;;  %v559_v41 = vmul.f32 0.2, %v489_v31  ;;  %v572_v42 = vmax.f32 %v414_v24, %v540_v34  ;;  %v541_v44 = vmul.f32 0.2, %v417_v36 }
 0x124   : > { %v588_v43 = vmax.f32 %v478_v25, %v556_v35  ;;  %v557_v45 = vmul.f32 0.2, %v481_v37  ;;  %v926_v46 = vpack.c.bf16 %v574_v38, %v574_v38  ;;  %v575_v48 = vmax.f32 %v425_v30, %v543_v40 }
 0x125   : > { %v942_v47 = vpack.c.bf16 %v590_v39, %v590_v39  ;;  %v591_v49 = vmax.f32 %v489_v31, %v559_v41  ;;  %v924_v50 = vpack.c.bf16 %v572_v42, %v572_v42  ;;  %v573_v52 = vmax.f32 %v417_v36, %v541_v44  ;;  %v981_v54 = vpop.f32.mrb[4].mxu0 }
 0x126   : > { %v940_v51 = vpack.c.bf16 %v588_v43, %v588_v43  ;;  %v589_v53 = vmax.f32 %v481_v37, %v557_v45  ;;  %v997_v55 = vpop.f32.mrb[4].mxu1  ;;  %735 = vst.msk [vmem:[%s1298_s25 + $0x8] sm:$0xf] %vm732_vm1, %v926_v46  ;;  %v927_v56 = vpack.c.bf16 %v575_v48, %v575_v48  ;;  %v438_v58 = vadd.f32 %v981_v54, %v1283_v17  ;;  %v429_v60 = vpop.f32.mrb[5].mxu0 }
 0x127   : > { %751 = vst.msk [vmem:[%s1298_s25 + $0x48] sm:$0xf] %vm732_vm1, %v942_v47  ;;  %v943_v57 = vpack.c.bf16 %v591_v49, %v591_v49  ;;  %v502_v59 = vadd.f32 %v997_v55, %v1283_v17  ;;  %v493_v61 = vpop.f32.mrb[5].mxu1  ;;  %733 = vst.msk [vmem:[%s1298_s25] sm:$0xf] %vm732_vm1, %v924_v50  ;;  %v925_v62 = vpack.c.bf16 %v573_v52, %v573_v52  ;;  %v982_v2 = vpop.f32.mrb[6].mxu0 }
 0x128   : > { %749 = vst.msk [vmem:[%s1298_s25 + $0x40] sm:$0xf] %vm732_vm1, %v940_v51  ;;  %v941_v63 = vpack.c.bf16 %v589_v53, %v589_v53  ;;  %v430_v0 = vadd.f32 %v1283_v17, %v429_v60  ;;  %v494_v1 = vadd.f32 %v1283_v17, %v493_v61  ;;  %v998_v3 = vpop.f32.mrb[6].mxu1  ;;  %736 = vst.msk [vmem:[%s1298_s25 + $0xc] sm:$0xf] %vm732_vm1, %v927_v56  ;;  %v432_v8 = vpop.f32.mrb[7].mxu0 }
 0x129   : > { %752 = vst.msk [vmem:[%s1298_s25 + $0x4c] sm:$0xf] %vm732_vm1, %v943_v57  ;;  %v546_v4 = vmul.f32 0.2, %v438_v58  ;;  %v562_v5 = vmul.f32 0.2, %v502_v59  ;;  %v441_v6 = vadd.f32 %v982_v2, %v1283_v17  ;;  %v505_v7 = vadd.f32 %v998_v3, %v1283_v17 }
 0x12a   : > { %v496_v9 = vpop.f32.mrb[7].mxu1  ;;  %734 = vst.msk [vmem:[%s1298_s25 + $0x4] sm:$0xf] %vm732_vm1, %v925_v62  ;;  %750 = vst.msk [vmem:[%s1298_s25 + $0x44] sm:$0xf] %vm732_vm1, %v941_v63  ;;  %v433_v12 = vadd.f32 %v1283_v17, %v432_v8 }
 0x12b   : > { %v544_v10 = vmul.f32 0.2, %v430_v0  ;;  %v560_v11 = vmul.f32 0.2, %v494_v1  ;;  %v497_v13 = vadd.f32 %v1283_v17, %v496_v9  ;;  %v578_v14 = vmax.f32 %v438_v58, %v546_v4 }
 0x12c   : > { %v594_v15 = vmax.f32 %v502_v59, %v562_v5  ;;  %v547_v16 = vmul.f32 0.2, %v441_v6  ;;  %v563_v18 = vmul.f32 0.2, %v505_v7  ;;  %v545_v21 = vmul.f32 0.2, %v433_v12 }
 0x12d   : > { %v576_v19 = vmax.f32 %v430_v0, %v544_v10  ;;  %v592_v20 = vmax.f32 %v494_v1, %v560_v11  ;;  %v561_v22 = vmul.f32 0.2, %v497_v13  ;;  %v930_v23 = vpack.c.bf16 %v578_v14, %v578_v14  ;;  %v985_v31 = vpop.f32.mrb[8].mxu0 }
 0x12e   : > { %v946_v24 = vpack.c.bf16 %v594_v15, %v594_v15  ;;  %v579_v25 = vmax.f32 %v441_v6, %v547_v16  ;;  %v595_v26 = vmax.f32 %v505_v7, %v563_v18  ;;  %v577_v29 = vmax.f32 %v433_v12, %v545_v21  ;;  %v1001_v32 = vpop.f32.mrb[8].mxu1  ;;  %v445_v37 = vpop.f32.mrb[9].mxu0 }
 0x12f   : > { %v928_v27 = vpack.c.bf16 %v576_v19, %v576_v19  ;;  %v944_v28 = vpack.c.bf16 %v592_v20, %v592_v20  ;;  %v593_v30 = vmax.f32 %v497_v13, %v561_v22  ;;  %739 = vst.msk [vmem:[%s1298_s25 + $0x18] sm:$0xf] %vm732_vm1, %v930_v23  ;;  %v454_v35 = vadd.f32 %v985_v31, %v1283_v17  ;;  %v509_v38 = vpop.f32.mrb[9].mxu1  ;;  %v986_v43 = vpop.f32.mrb[10].mxu0 }
 0x130   : > { %755 = vst.msk [vmem:[%s1298_s25 + $0x58] sm:$0xf] %vm732_vm1, %v946_v24  ;;  %v931_v33 = vpack.c.bf16 %v579_v25, %v579_v25  ;;  %v947_v34 = vpack.c.bf16 %v595_v26, %v595_v26  ;;  %v518_v36 = vadd.f32 %v1001_v32, %v1283_v17  ;;  %v929_v39 = vpack.c.bf16 %v577_v29, %v577_v29  ;;  %v1002_v44 = vpop.f32.mrb[10].mxu1  ;;  %v448_v49 = vpop.f32.mrb[11].mxu0 }
 0x131   : > { %737 = vst.msk [vmem:[%s1298_s25 + $0x10] sm:$0xf] %vm732_vm1, %v928_v27  ;;  %753 = vst.msk [vmem:[%s1298_s25 + $0x50] sm:$0xf] %vm732_vm1, %v944_v28  ;;  %v945_v40 = vpack.c.bf16 %v593_v30, %v593_v30  ;;  %v446_v41 = vadd.f32 %v1283_v17, %v445_v37  ;;  %v510_v42 = vadd.f32 %v1283_v17, %v509_v38  ;;  %v550_v45 = vmul.f32 0.2, %v454_v35 }
 0x132   : > { %740 = vst.msk [vmem:[%s1298_s25 + $0x1c] sm:$0xf] %vm732_vm1, %v931_v33  ;;  %756 = vst.msk [vmem:[%s1298_s25 + $0x5c] sm:$0xf] %vm732_vm1, %v947_v34  ;;  %v566_v46 = vmul.f32 0.2, %v518_v36  ;;  %v457_v47 = vadd.f32 %v986_v43, %v1283_v17  ;;  %v521_v48 = vadd.f32 %v1002_v44, %v1283_v17  ;;  %v449_v53 = vadd.f32 %v1283_v17, %v448_v49 }
 0x133   : > { %v512_v50 = vpop.f32.mrb[11].mxu1  ;;  %738 = vst.msk [vmem:[%s1298_s25 + $0x14] sm:$0xf] %vm732_vm1, %v929_v39  ;;  %754 = vst.msk [vmem:[%s1298_s25 + $0x54] sm:$0xf] %vm732_vm1, %v945_v40  ;;  %v582_v55 = vmax.f32 %v454_v35, %v550_v45 }
 0x134   : > { %v548_v51 = vmul.f32 0.2, %v446_v41  ;;  %v564_v52 = vmul.f32 0.2, %v510_v42  ;;  %v513_v54 = vadd.f32 %v1283_v17, %v512_v50  ;;  %v598_v56 = vmax.f32 %v518_v36, %v566_v46 }
 0x135   : > { %v551_v57 = vmul.f32 0.2, %v457_v47  ;;  %v567_v58 = vmul.f32 0.2, %v521_v48  ;;  %v549_v61 = vmul.f32 0.2, %v449_v53  ;;  %v934_v63 = vpack.c.bf16 %v582_v55, %v582_v55 }
 0x136   : > { %v580_v59 = vmax.f32 %v446_v41, %v548_v51  ;;  %v596_v60 = vmax.f32 %v510_v42, %v564_v52  ;;  %v565_v62 = vmul.f32 0.2, %v513_v54  ;;  %v950_v0 = vpack.c.bf16 %v598_v56, %v598_v56  ;;  %v989_v7 = vpop.f32.mrb[12].mxu0  ;;  %v1005_v8 = vpop.f32.mrb[12].mxu1 }
 0x137   : > { %v583_v1 = vmax.f32 %v457_v47, %v551_v57  ;;  %v599_v2 = vmax.f32 %v521_v48, %v567_v58  ;;  %v581_v5 = vmax.f32 %v449_v53, %v549_v61  ;;  %743 = vst.msk [vmem:[%s1298_s25 + $0x28] sm:$0xf] %vm732_vm1, %v934_v63  ;;  %v470_v11 = vadd.f32 %v989_v7, %v1283_v17  ;;  %v461_v13 = vpop.f32.mrb[13].mxu0  ;;  %v525_v14 = vpop.f32.mrb[13].mxu1 }
 0x138   : > { %v932_v3 = vpack.c.bf16 %v580_v59, %v580_v59  ;;  %v948_v4 = vpack.c.bf16 %v596_v60, %v596_v60  ;;  %v597_v6 = vmax.f32 %v513_v54, %v565_v62  ;;  %759 = vst.msk [vmem:[%s1298_s25 + $0x68] sm:$0xf] %vm732_vm1, %v950_v0  ;;  %v534_v12 = vadd.f32 %v1005_v8, %v1283_v17  ;;  %v990_v20 = vpop.f32.mrb[14].mxu0  ;;  %v1006_v21 = vpop.f32.mrb[14].mxu1 }
 0x139   : > { %v935_v9 = vpack.c.bf16 %v583_v1, %v583_v1  ;;  %v951_v10 = vpack.c.bf16 %v599_v2, %v599_v2  ;;  %v933_v15 = vpack.c.bf16 %v581_v5, %v581_v5  ;;  %v462_v18 = vadd.f32 %v1283_v17, %v461_v13  ;;  %v464_v26 = vpop.f32.mrb[15].mxu0  ;;  %v528_v27 = vpop.f32.mrb[15].mxu1 }
 0x13a   : > { %741 = vst.msk [vmem:[%s1298_s25 + $0x20] sm:$0xf] %vm732_vm1, %v932_v3  ;;  %757 = vst.msk [vmem:[%s1298_s25 + $0x60] sm:$0xf] %vm732_vm1, %v948_v4  ;;  %v949_v16 = vpack.c.bf16 %v597_v6, %v597_v6  ;;  %v526_v19 = vadd.f32 %v1283_v17, %v525_v14  ;;  %v554_v22 = vmul.f32 0.2, %v470_v11  ;;  %v473_v24 = vadd.f32 %v990_v20, %v1283_v17 }
 0x13b   : > { %744 = vst.msk [vmem:[%s1298_s25 + $0x2c] sm:$0xf] %vm732_vm1, %v935_v9  ;;  %760 = vst.msk [vmem:[%s1298_s25 + $0x6c] sm:$0xf] %vm732_vm1, %v951_v10  ;;  %v570_v23 = vmul.f32 0.2, %v534_v12  ;;  %v537_v25 = vadd.f32 %v1006_v21, %v1283_v17  ;;  %v465_v30 = vadd.f32 %v1283_v17, %v464_v26  ;;  %v529_v31 = vadd.f32 %v1283_v17, %v528_v27 }
 0x13c   : > { %742 = vst.msk [vmem:[%s1298_s25 + $0x24] sm:$0xf] %vm732_vm1, %v933_v15  ;;  %758 = vst.msk [vmem:[%s1298_s25 + $0x64] sm:$0xf] %vm732_vm1, %v949_v16  ;;  %v552_v28 = vmul.f32 0.2, %v462_v18  ;;  %v586_v32 = vmax.f32 %v470_v11, %v554_v22 }
 0x13d   : > { %v568_v29 = vmul.f32 0.2, %v526_v19  ;;  %v602_v33 = vmax.f32 %v534_v12, %v570_v23  ;;  %v555_v34 = vmul.f32 0.2, %v473_v24  ;;  %v571_v35 = vmul.f32 0.2, %v537_v25 }
 0x13e   : > { %v584_v36 = vmax.f32 %v462_v18, %v552_v28  ;;  %v553_v38 = vmul.f32 0.2, %v465_v30  ;;  %v569_v39 = vmul.f32 0.2, %v529_v31  ;;  %v938_v40 = vpack.c.bf16 %v586_v32, %v586_v32 }
 0x13f   : > { %v600_v37 = vmax.f32 %v526_v19, %v568_v29  ;;  %v954_v41 = vpack.c.bf16 %v602_v33, %v602_v33  ;;  %v587_v42 = vmax.f32 %v473_v24, %v555_v34  ;;  %v603_v43 = vmax.f32 %v537_v25, %v571_v35 }
 0x140   : > { %v936_v17 = vpack.c.bf16 %v584_v36, %v584_v36  ;;  %v585_v45 = vmax.f32 %v465_v30, %v553_v38  ;;  %v601_v46 = vmax.f32 %v529_v31, %v569_v39  ;;  %747 = vst.msk [vmem:[%s1298_s25 + $0x38] sm:$0xf] %vm732_vm1, %v938_v40 }
 0x141   : > { %v952_v44 = vpack.c.bf16 %v600_v37, %v600_v37  ;;  %763 = vst.msk [vmem:[%s1298_s25 + $0x78] sm:$0xf] %vm732_vm1, %v954_v41  ;;  %v939_v47 = vpack.c.bf16 %v587_v42, %v587_v42  ;;  %v955_v48 = vpack.c.bf16 %v603_v43, %v603_v43 }
 0x142   : > { %745 = vst.msk [vmem:[%s1298_s25 + $0x30] sm:$0xf] %vm732_vm1, %v936_v17  ;;  %v937_v49 = vpack.c.bf16 %v585_v45, %v585_v45  ;;  %v953_v50 = vpack.c.bf16 %v601_v46, %v601_v46 }
 0x143   : > { %761 = vst.msk [vmem:[%s1298_s25 + $0x70] sm:$0xf] %vm732_vm1, %v952_v44  ;;  %748 = vst.msk [vmem:[%s1298_s25 + $0x3c] sm:$0xf] %vm732_vm1, %v939_v47 }
 0x144   : > { %764 = vst.msk [vmem:[%s1298_s25 + $0x7c] sm:$0xf] %vm732_vm1, %v955_v48  ;;  %746 = vst.msk [vmem:[%s1298_s25 + $0x34] sm:$0xf] %vm732_vm1, %v937_v49 }
 0x145   : > { %762 = vst.msk [vmem:[%s1298_s25 + $0x74] sm:$0xf] %vm732_vm1, %v953_v50 }
 0x146 PF: > { %s15_s12 = sadd.s32 1, %s1127_s12  }
 0x147   : > { %p12_p5 = scmp.ge.s32.totalorder %s15_s12, 4  }
 0x149   :  { %14 = sbr.rel (!%p12_p5) target bundleno = 2 (0x2), region = 71 }
 0x150   :  { %787 = vsyncpa [#allocation3], 1 }
 0x151   :  { %789 = vsyncpa [#allocation3 + $0x1], 1 }
 0x152   :  { %790 = vsyncpa [#allocation5], 1 }

// kernel: advanced_colorizer_forward.19
= control target key start
LH: loop header
LB: loop body
LE: loop exit
PB: predicated region body
PF: predicated region fallthrough
CT: control target
= control target key end

     0   :  { %s1821_s18 = smov 0   ;;  %s2109_s0 = inlined_call_operand.vmem [shape: bf16[128,1024], index: 0, kind: input, shape index: {}]   ;;  %s2110_s1 = inlined_call_operand.vmem [shape: bf16[1024,128], index: 1, kind: input, shape index: {}]   ;;  %s2111_s2 = inlined_call_operand.vmem [shape: f32[1,128], index: 2, kind: input, shape index: {}]   ;;  %s2112_s3 = inlined_call_operand.vmem [shape: bf16[128,128], index: 3, kind: output, shape index: {0}]   ;;  %s2113_s4 = inlined_call_operand.vmem [shape: f32[2,1,128], index: 4, kind: output, shape index: {1}]   ;;  %s2114_s5 = inlined_call_operand.vmem [shape: f32[2,1,128], index: 5, kind: output, shape index: {2}]  }
   0x1 LB: > { %s1827_s19 = sadd.s32 4294967295, %s1789_s18   ;;  %p1406_p0 = scmp.ge.s32.totalorder %s1789_s18, 1  ;;  %s1789_s18 = sphi %s1821_s18, %s16_s18  }
   0x2   : > { %p194_p1 = scmp.lt.s32.totalorder %s1789_s18, 3 }
   0x4   : > { %p195_p2 = pnand %p1406_p0, %p194_p1 }
   0x5   : > { %v1719_v0 = vld [vmem:[%s2110_s1 + $0x40] sm:$0xff] (!%p195_p2)   ;;  %v1723_v4 = vld [vmem:[%s2110_s1 + $0x48] sm:$0xff] (!%p195_p2)   ;;  %v1727_v8 = vld [vmem:[%s2110_s1 + $0x50] sm:$0xff] (!%p195_p2)   ;;  %s1407_s29 = sshll.u32 (!%p195_p2), %s1827_s19, 3  ;;  %p242_p4 = scmp.lt.s32.totalorder (!%p195_p2), %s1827_s19, 1 }
   0x6   : > { %198 = sbr.rel (%p195_p2) target bundleno = 333 (0x14d), region = 32  ;;  %v1720_v1 = vld [vmem:[%s2110_s1 + $0xc0] sm:$0xff] (!%p195_p2)   ;;  %1551 = vmatprep.subr.bf16.mxu0 (!%p195_p2), %v1719_v0  ;;  %v1724_v5 = vld [vmem:[%s2110_s1 + $0xc8] sm:$0xff] (!%p195_p2)   ;;  %v1728_v9 = vld [vmem:[%s2110_s1 + $0xd0] sm:$0xff] (!%p195_p2)   ;;  %p230_p3 = scmp.lt.s32.totalorder (!%p195_p2), %s1407_s29, 15 }
   0x7   : > { %v1721_v2 = vld [vmem:[%s2110_s1] sm:$0xff] (!%p195_p2)   ;;  %1591 = vmatprep.subr.bf16.mxu1 (!%p195_p2), %v1720_v1  ;;  %v1725_v6 = vld [vmem:[%s2110_s1 + $0x8] sm:$0xff] (!%p195_p2)   ;;  %v1729_v10 = vld [vmem:[%s2110_s1 + $0x10] sm:$0xff] (!%p195_p2)  }
   0x8   : > { %v1722_v3 = vld [vmem:[%s2110_s1 + $0x80] sm:$0xff] (!%p195_p2)   ;;  %1552 = vmatpush3.bf16.msra.mxu0 (!%p195_p2), %v1721_v2  ;;  %v1726_v7 = vld [vmem:[%s2110_s1 + $0x88] sm:$0xff] (!%p195_p2)   ;;  %v1730_v11 = vld [vmem:[%s2110_s1 + $0x90] sm:$0xff] (!%p195_p2)  }
   0x9   : > { %1592 = vmatpush3.bf16.msra.mxu1 (!%p195_p2), %v1722_v3  ;;  %1553 = vmatprep.subr.bf16.mxu0 (!%p195_p2), %v1723_v4  ;;  %v1731_v12 = vld [vmem:[%s2110_s1 + $0x58] sm:$0xff] (!%p195_p2)   ;;  %v1735_v16 = vld [vmem:[%s2110_s1 + $0x60] sm:$0xff] (!%p195_p2)   ;;  %v1739_v20 = vld [vmem:[%s2110_s1 + $0x68] sm:$0xff] (!%p195_p2)  }
   0xa   : > { %1593 = vmatprep.subr.bf16.mxu1 (!%p195_p2), %v1724_v5  ;;  %v1732_v13 = vld [vmem:[%s2110_s1 + $0xd8] sm:$0xff] (!%p195_p2)   ;;  %v1736_v17 = vld [vmem:[%s2110_s1 + $0xe0] sm:$0xff] (!%p195_p2)   ;;  %v1740_v21 = vld [vmem:[%s2110_s1 + $0xe8] sm:$0xff] (!%p195_p2)  }
   0xb   : > { %v1733_v14 = vld [vmem:[%s2110_s1 + $0x18] sm:$0xff] (!%p195_p2)   ;;  %v1737_v18 = vld [vmem:[%s2110_s1 + $0x20] sm:$0xff] (!%p195_p2)   ;;  %v1741_v22 = vld [vmem:[%s2110_s1 + $0x28] sm:$0xff] (!%p195_p2)  }
   0xc   : > { %1554 = vmatpush3.bf16.msra.mxu0 (!%p195_p2), %v1725_v6  ;;  %v1734_v15 = vld [vmem:[%s2110_s1 + $0x98] sm:$0xff] (!%p195_p2)   ;;  %v1738_v19 = vld [vmem:[%s2110_s1 + $0xa0] sm:$0xff] (!%p195_p2)   ;;  %v1742_v23 = vld [vmem:[%s2110_s1 + $0xa8] sm:$0xff] (!%p195_p2)  }
   0xd   : > { %1594 = vmatpush3.bf16.msra.mxu1 %v1726_v7  ;;  %1555 = vmatprep.subr.bf16.mxu0 %v1727_v8  ;;  %s2116_s29 = smov (!%p230_p3, %s1407_s29), 15  ;;  %v1743_v24 = vld [vmem:[%s2110_s1 + $0x70] sm:$0xff]   ;;  %v1747_v28 = vld [vmem:[%s2110_s1 + $0x78] sm:$0xff]   ;;  %v1751_v40 = vld [vmem:[%s2110_s1 + $0x140] sm:$0xff]   ;;  %s2118_s19 = smov (!%p242_p4, %s1827_s19), 1 }
   0xe   : > { %1595 = vmatprep.subr.bf16.mxu1 %v1728_v9  ;;  %v1744_v25 = vld [vmem:[%s2110_s1 + $0xf0] sm:$0xff]   ;;  %s1519_s30 = sshll.u32 %s2116_s29, 5  ;;  %v1748_v29 = vld [vmem:[%s2110_s1 + $0xf8] sm:$0xff]   ;;  %v1752_v41 = vld [vmem:[%s2110_s1 + $0x1c0] sm:$0xff]   ;;  %s244_s28 = scalar_lea.vmem %s2113_s4, %s2118_s19 }
   0xf   : > { %v1745_v26 = vld [vmem:[%s2110_s1 + $0x30] sm:$0xff]   ;;  %s1928_s14 = scalar_lea.vmem %s2109_s0, %s1519_s30  ;;  %v1749_v30 = vld [vmem:[%s2110_s1 + $0x38] sm:$0xff]   ;;  %v1753_v42 = vld [vmem:[%s2110_s1 + $0x100] sm:$0xff]   ;;  %s247_s7 = scalar_lea.vmem %s2114_s5, %s2118_s19 }
  0x10   : > { %1556 = vmatpush3.bf16.msra.mxu0 %v1729_v10  ;;  %v1746_v27 = vld [vmem:[%s2110_s1 + $0xb0] sm:$0xff]   ;;  %v1750_v31 = vld [vmem:[%s2110_s1 + $0xb8] sm:$0xff]   ;;  %v249_v32 = vld [vmem:[%s1928_s14] sm:$0xff] }
  0x11   : > { %1596 = vmatpush3.bf16.msra.mxu1 %v1730_v11  ;;  %1557 = vmatprep.subr.bf16.mxu0 %v1731_v12  ;;  %v253_v33 = vld [vmem:[%s1928_s14 + $0x20] sm:$0xff]  ;;  %v250_v34 = vld [vmem:[%s1928_s14 + $0x8] sm:$0xff]  ;;  %v1759_v56 = vld [vmem:[%s2110_s1 + $0x150] sm:$0xff]  }
  0x12   : > { %1597 = vmatprep.subr.bf16.mxu1 %v1732_v13  ;;  %v1413_v35 = vcombine.low %v249_v32, %v253_v33  ;;  %v1414_v36 = vcombine.high %v249_v32, %v253_v33  ;;  %v254_v37 = vld [vmem:[%s1928_s14 + $0x28] sm:$0xff]  ;;  %v1754_v43 = vld [vmem:[%s2110_s1 + $0x180] sm:$0xff]   ;;  %v1760_v57 = vld [vmem:[%s2110_s1 + $0x1d0] sm:$0xff]  }
  0x13   : > { %v1415_v38 = vcombine.low %v250_v34, %v254_v37  ;;  %v1416_v39 = vcombine.high %v250_v34, %v254_v37  ;;  %v1755_v44 = vld [vmem:[%s2110_s1 + $0x148] sm:$0xff]   ;;  %v257_v48 = vld [vmem:[%s1928_s14 + $0x40] sm:$0xff]  ;;  %v1761_v58 = vld [vmem:[%s2110_s1 + $0x110] sm:$0xff]  }
  0x14   : > { %1558 = vmatpush3.bf16.msra.mxu0 %v1733_v14  ;;  %992 = vmatprep.mubr.bf16.mxu0 %v1414_v36  ;;  %v1756_v45 = vld [vmem:[%s2110_s1 + $0x1c8] sm:$0xff]   ;;  %v261_v49 = vld [vmem:[%s1928_s14 + $0x60] sm:$0xff]  ;;  %v1762_v59 = vld [vmem:[%s2110_s1 + $0x190] sm:$0xff]  }
  0x15   : > { %1598 = vmatpush3.bf16.msra.mxu1 %v1734_v15  ;;  %1559 = vmatprep.subr.bf16.mxu0 %v1735_v16  ;;  %v1757_v46 = vld [vmem:[%s2110_s1 + $0x108] sm:$0xff]   ;;  %v1422_v50 = vcombine.high %v257_v48, %v261_v49  ;;  %v1421_v53 = vcombine.low %v257_v48, %v261_v49  ;;  %v1763_v60 = vld [vmem:[%s2110_s1 + $0x158] sm:$0xff]   ;;  %v265_v0 = vld [vmem:[%s1928_s14 + $0x80] sm:$0xff] }
  0x16   : > { %1599 = vmatprep.subr.bf16.mxu1 %v1736_v17  ;;  %1057 = vmatprep.mubr.bf16.mxu1 %v1416_v39  ;;  %v1758_v47 = vld [vmem:[%s2110_s1 + $0x188] sm:$0xff]   ;;  %v1764_v61 = vld [vmem:[%s2110_s1 + $0x1d8] sm:$0xff]   ;;  %v269_v1 = vld [vmem:[%s1928_s14 + $0xa0] sm:$0xff] }
  0x17   : > { %v258_v51 = vld [vmem:[%s1928_s14 + $0x48] sm:$0xff]  ;;  %v1765_v62 = vld [vmem:[%s2110_s1 + $0x118] sm:$0xff]   ;;  %v1430_v4 = vcombine.high %v265_v0, %v269_v1  ;;  %v1429_v6 = vcombine.low %v265_v0, %v269_v1  ;;  %v1767_v8 = vld [vmem:[%s2110_s1 + $0x160] sm:$0xff]  }
  0x18   : > { %1560 = vmatpush3.bf16.msra.mxu0 %v1737_v18  ;;  %v262_v52 = vld [vmem:[%s1928_s14 + $0x68] sm:$0xff]  ;;  %v1766_v63 = vld [vmem:[%s2110_s1 + $0x198] sm:$0xff]   ;;  %v1768_v9 = vld [vmem:[%s2110_s1 + $0x1e0] sm:$0xff]  }
  0x19   : > { %1600 = vmatpush3.bf16.msra.mxu1 %v1738_v19  ;;  %1561 = vmatprep.subr.bf16.mxu0 %v1739_v20  ;;  %v1424_v54 = vcombine.high %v258_v51, %v262_v52  ;;  %v1423_v55 = vcombine.low %v258_v51, %v262_v52  ;;  %v266_v2 = vld [vmem:[%s1928_s14 + $0x88] sm:$0xff]  ;;  %v1769_v10 = vld [vmem:[%s2110_s1 + $0x120] sm:$0xff]   ;;  %v251_v32 = vld [vmem:[%s1928_s14 + $0x10] sm:$0xff] }
  0x1a   : > { %1601 = vmatprep.subr.bf16.mxu1 %v1740_v21  ;;  %v270_v3 = vld [vmem:[%s1928_s14 + $0xa8] sm:$0xff]  ;;  %v1770_v11 = vld [vmem:[%s2110_s1 + $0x1a0] sm:$0xff]   ;;  %v255_v33 = vld [vmem:[%s1928_s14 + $0x30] sm:$0xff] }
  0x1b   : > { %v1432_v5 = vcombine.high %v266_v2, %v270_v3  ;;  %v1431_v7 = vcombine.low %v266_v2, %v270_v3  ;;  %v1771_v12 = vld [vmem:[%s2110_s1 + $0x168] sm:$0xff]   ;;  %v273_v16 = vld [vmem:[%s1928_s14 + $0xc0] sm:$0xff]  ;;  %v1417_v34 = vcombine.low %v251_v32, %v255_v33  ;;  %v252_v36 = vld [vmem:[%s1928_s14 + $0x18] sm:$0xff] }
  0x1c   : > { %1562 = vmatpush3.bf16.msra.mxu0 %v1741_v22  ;;  %v1772_v13 = vld [vmem:[%s2110_s1 + $0x1e8] sm:$0xff]   ;;  %v277_v17 = vld [vmem:[%s1928_s14 + $0xe0] sm:$0xff]  ;;  %v256_v37 = vld [vmem:[%s1928_s14 + $0x38] sm:$0xff] }
  0x1d   : > { %1602 = vmatpush3.bf16.msra.mxu1 %v1742_v23  ;;  %1563 = vmatprep.subr.bf16.mxu0 %v1743_v24  ;;  %v1773_v14 = vld [vmem:[%s2110_s1 + $0x128] sm:$0xff]   ;;  %v1438_v19 = vcombine.high %v273_v16, %v277_v17  ;;  %v1437_v21 = vcombine.low %v273_v16, %v277_v17  ;;  %v1775_v24 = vld [vmem:[%s2110_s1 + $0x170] sm:$0xff]   ;;  %v1419_v39 = vcombine.low %v252_v36, %v256_v37  ;;  %v268_v48 = vld [vmem:[%s1928_s14 + $0x98] sm:$0xff] }
  0x1e   : > { %1603 = vmatprep.subr.bf16.mxu1 %v1744_v25  ;;  %v1774_v15 = vld [vmem:[%s2110_s1 + $0x1a8] sm:$0xff]   ;;  %v1776_v25 = vld [vmem:[%s2110_s1 + $0x1f0] sm:$0xff]   ;;  %v272_v49 = vld [vmem:[%s1928_s14 + $0xb8] sm:$0xff] }
  0x1f   : > { %v274_v18 = vld [vmem:[%s1928_s14 + $0xc8] sm:$0xff]  ;;  %v1412_v2 = vld [vmem:[%s2111_s2] ss:$0 sm:$0xff] }
  0x20   : > { %1564 = vmatpush3.bf16.msra.mxu0 %v1745_v26  ;;  %v278_v20 = vld [vmem:[%s1928_s14 + $0xe8] sm:$0xff]  ;;  %v1777_v26 = vld [vmem:[%s2110_s1 + $0x130] sm:$0xff]  }
  0x21   : > { %1604 = vmatpush3.bf16.msra.mxu1 %v1746_v27  ;;  %1565 = vmatprep.subr.bf16.mxu0 %v1747_v28  ;;  %v1440_v22 = vcombine.high %v274_v18, %v278_v20  ;;  %v1439_v23 = vcombine.low %v274_v18, %v278_v20  ;;  %v1778_v27 = vld [vmem:[%s2110_s1 + $0x1b0] sm:$0xff]   ;;  %v1779_v28 = vld [vmem:[%s2110_s1 + $0x178] sm:$0xff]  }
  0x22   : > { %1605 = vmatprep.subr.bf16.mxu1 %v1748_v29  ;;  %v1780_v29 = vld [vmem:[%s2110_s1 + $0x1f8] sm:$0xff]  }
  0x24   : > { %1566 = vmatpush3.bf16.msra.mxu0 %v1749_v30  ;;  %v1781_v30 = vld [vmem:[%s2110_s1 + $0x138] sm:$0xff]  }
  0x25   : > { %1606 = vmatpush3.bf16.msra.mxu1 %v1750_v31  ;;  %1631 = vmatprep.subr.bf16.mxu0 %v1751_v40  ;;  %v1782_v31 = vld [vmem:[%s2110_s1 + $0x1b8] sm:$0xff]   ;;  %v1420_v40 = vcombine.high %v252_v36, %v256_v37 }
  0x26   : > { %1671 = vmatprep.subr.bf16.mxu1 %v1752_v41  ;;  %v263_v41 = vld [vmem:[%s1928_s14 + $0x70] sm:$0xff] }
  0x27   : > { %993 = vmatmul.mubr.bf16.vlgmr.msra.gmra.mrb[0].mxu0 %v1413_v35  ;;  %v1418_v35 = vcombine.high %v251_v32, %v255_v33 }
  0x28   : > { %1058 = vmatmul.mubr.bf16.vlgmr.msra.gmra.mrb[0].mxu1 %v1415_v38  ;;  %1632 = vmatpush3.bf16.msra.mxu0 %v1753_v42  ;;  %v259_v38 = vld [vmem:[%s1928_s14 + $0x50] sm:$0xff]  ;;  %v260_v42 = vld [vmem:[%s1928_s14 + $0x58] sm:$0xff] }
  0x29   : > { %1672 = vmatpush3.bf16.msra.mxu1 %v1754_v43  ;;  %1633 = vmatprep.subr.bf16.mxu0 %v1755_v44  ;;  %v264_v43 = vld [vmem:[%s1928_s14 + $0x78] sm:$0xff]  ;;  %v1426_v44 = vcombine.high %v259_v38, %v263_v41 }
  0x2a   : > { %1673 = vmatprep.subr.bf16.mxu1 %v1756_v45  ;;  %1000 = vmatprep.mubr.bf16.mxu0 %v1422_v50  ;;  %v1428_v45 = vcombine.high %v260_v42, %v264_v43  ;;  %v1425_v50 = vcombine.low %v259_v38, %v263_v41  ;;  %v1427_v51 = vcombine.low %v260_v42, %v264_v43 }
  0x2b   : > { %1065 = vmatprep.mubr.bf16.mxu1 %v1424_v54  ;;  %v275_v54 = vld [vmem:[%s1928_s14 + $0xd0] sm:$0xff] }
  0x2c   : > { %1634 = vmatpush3.bf16.msra.mxu0 %v1757_v46  ;;  %v267_v46 = vld [vmem:[%s1928_s14 + $0x90] sm:$0xff] }
  0x2d   : > { %1674 = vmatpush3.bf16.msra.mxu1 %v1758_v47  ;;  %1635 = vmatprep.subr.bf16.mxu0 %v1759_v56  ;;  %v271_v47 = vld [vmem:[%s1928_s14 + $0xb0] sm:$0xff]  ;;  %v276_v56 = vld [vmem:[%s1928_s14 + $0xd8] sm:$0xff] }
  0x2e   : > { %1675 = vmatprep.subr.bf16.mxu1 %v1760_v57  ;;  %v1434_v52 = vcombine.high %v267_v46, %v271_v47  ;;  %v280_v57 = vld [vmem:[%s1928_s14 + $0xf8] sm:$0xff] }
  0x2f   : > { %1001 = vmatmul.mubr.bf16.gmra.mrb[4].mxu0 %v1421_v53  ;;  %v1436_v53 = vcombine.high %v268_v48, %v272_v49 }
  0x30   : > { %1066 = vmatmul.mubr.bf16.gmra.mrb[4].mxu1 %v1423_v55  ;;  %1636 = vmatpush3.bf16.msra.mxu0 %v1761_v58  ;;  %v279_v55 = vld [vmem:[%s1928_s14 + $0xf0] sm:$0xff]  ;;  %v1433_v58 = vcombine.low %v267_v46, %v271_v47  ;;  %s1411_s14 = sshll.u32 %s2116_s29, 2 }
  0x31   : > { %1676 = vmatpush3.bf16.msra.mxu1 %v1762_v59  ;;  %1637 = vmatprep.subr.bf16.mxu0 %v1763_v60  ;;  %v1435_v59 = vcombine.low %v268_v48, %v272_v49  ;;  %v1442_v60 = vcombine.high %v275_v54, %v279_v55  ;;  %s2086_s26 = scalar_lea.vmem %s2112_s3, %s1411_s14 }
  0x32   : > { %1677 = vmatprep.subr.bf16.mxu1 %v1764_v61  ;;  %1008 = vmatprep.mubr.bf16.mxu0 %v1430_v4  ;;  %v1444_v61 = vcombine.high %v276_v56, %v280_v57 }
  0x33   : > { %1073 = vmatprep.mubr.bf16.mxu1 %v1432_v5 }
  0x34   : > { %1638 = vmatpush3.bf16.msra.mxu0 %v1765_v62  ;;  %v1441_v62 = vcombine.low %v275_v54, %v279_v55 }
  0x35   : > { %1678 = vmatpush3.bf16.msra.mxu1 %v1766_v63  ;;  %1639 = vmatprep.subr.bf16.mxu0 %v1767_v8  ;;  %v1443_v63 = vcombine.low %v276_v56, %v280_v57 }
  0x36   : > { %1679 = vmatprep.subr.bf16.mxu1 %v1768_v9 }
  0x37   : > { %1009 = vmatmul.mubr.bf16.gmra.mrb[8].mxu0 %v1429_v6 }
  0x38   : > { %1074 = vmatmul.mubr.bf16.gmra.mrb[8].mxu1 %v1431_v7  ;;  %1640 = vmatpush3.bf16.msra.mxu0 %v1769_v10 }
  0x39   : > { %1680 = vmatpush3.bf16.msra.mxu1 %v1770_v11  ;;  %1641 = vmatprep.subr.bf16.mxu0 %v1771_v12 }
  0x3a   : > { %1681 = vmatprep.subr.bf16.mxu1 %v1772_v13  ;;  %1016 = vmatprep.mubr.bf16.mxu0 %v1438_v19 }
  0x3b   : > { %1081 = vmatprep.mubr.bf16.mxu1 %v1440_v22 }
  0x3c   : > { %1642 = vmatpush3.bf16.msra.mxu0 %v1773_v14 }
  0x3d   : > { %1682 = vmatpush3.bf16.msra.mxu1 %v1774_v15  ;;  %1643 = vmatprep.subr.bf16.mxu0 %v1775_v24 }
  0x3e   : > { %1683 = vmatprep.subr.bf16.mxu1 %v1776_v25 }
  0x3f   : > { %1017 = vmatmul.mubr.bf16.gmra.mrb[12].mxu0 %v1437_v21 }
  0x40   : > { %1082 = vmatmul.mubr.bf16.gmra.mrb[12].mxu1 %v1439_v23  ;;  %1644 = vmatpush3.bf16.msra.mxu0 %v1777_v26 }
  0x41   : > { %1684 = vmatpush3.bf16.msra.mxu1 %v1778_v27  ;;  %1645 = vmatprep.subr.bf16.mxu0 %v1779_v28 }
  0x42   : > { %1685 = vmatprep.subr.bf16.mxu1 %v1780_v29  ;;  %1122 = vmatprep.mubr.bf16.mxu0 %v1418_v35 }
  0x43   : > { %1187 = vmatprep.mubr.bf16.mxu1 %v1420_v40 }
  0x44   : > { %1646 = vmatpush3.bf16.msra.mxu0 %v1781_v30 }
  0x45   : > { %1686 = vmatpush3.bf16.msra.mxu1 %v1782_v31 }
  0x47   : > { %1123 = vmatmul.mubr.bf16.vlgmr.msra.gmra.mrb[16].mxu0 %v1417_v34 }
  0x48   : > { %1188 = vmatmul.mubr.bf16.vlgmr.msra.gmra.mrb[16].mxu1 %v1419_v39  ;;  %1130 = vmatprep.mubr.bf16.mxu0 %v1426_v44 }
  0x49   : > { %1195 = vmatprep.mubr.bf16.mxu1 %v1428_v45 }
  0x4f   : > { %1131 = vmatmul.mubr.bf16.gmra.mrb[20].mxu0 %v1425_v50 }
  0x50   : > { %1196 = vmatmul.mubr.bf16.gmra.mrb[20].mxu1 %v1427_v51  ;;  %1138 = vmatprep.mubr.bf16.mxu0 %v1434_v52 }
  0x51   : > { %1203 = vmatprep.mubr.bf16.mxu1 %v1436_v53 }
  0x57   : > { %1139 = vmatmul.mubr.bf16.gmra.mrb[24].mxu0 %v1433_v58 }
  0x58   : > { %1204 = vmatmul.mubr.bf16.gmra.mrb[24].mxu1 %v1435_v59  ;;  %1146 = vmatprep.mubr.bf16.mxu0 %v1442_v60 }
  0x59   : > { %1211 = vmatprep.mubr.bf16.mxu1 %v1444_v61 }
  0x5f   : > { %1147 = vmatmul.mubr.bf16.gmra.mrb[28].mxu0 %v1441_v62 }
  0x60   : > { %1212 = vmatmul.mubr.bf16.gmra.mrb[28].mxu1 %v1443_v63 }
  0xfa   : > { %v1567_v0 = vpop.f32.mrb[0].mxu0 }
  0xfb   : > { %v1607_v1 = vpop.f32.mrb[0].mxu1  ;;  %v1568_v3 = vpop.f32.mrb[1].mxu0 }
  0xfc   : > { %v1569_v4 = vadd.f32 %v1568_v3, %v1567_v0  ;;  %v1608_v5 = vpop.f32.mrb[1].mxu1  ;;  %v1570_v6 = vpop.f32.mrb[2].mxu0 }
  0xfd   : > { %v1609_v7 = vadd.f32 %v1608_v5, %v1607_v1  ;;  %v1610_v8 = vpop.f32.mrb[2].mxu1  ;;  %v1571_v9 = vpop.f32.mrb[3].mxu0 }
  0xfe   : > { %v995_v10 = vadd.f32 %v1569_v4, %v1412_v2  ;;  %v1572_v11 = vadd.f32 %v1571_v9, %v1570_v6  ;;  %v1611_v12 = vpop.f32.mrb[3].mxu1 }
  0xff   : > { %v1612_v13 = vadd.f32 %v1611_v12, %v1610_v8 }
 0x100   : > { %v1060_v14 = vadd.f32 %v1609_v7, %v995_v10  ;;  %v998_v15 = vadd.f32 %v1572_v11, %v1412_v2 }
 0x102   : > { %v2067_v16 = vadd.f32 %v1612_v13, %v998_v15  ;;  %v1573_v17 = vpop.f32.mrb[4].mxu0 }
 0x103   : > { %v1613_v18 = vpop.f32.mrb[4].mxu1  ;;  %v1574_v19 = vpop.f32.mrb[5].mxu0 }
 0x104   : > { %v1575_v20 = vadd.f32 %v1574_v19, %v1573_v17  ;;  %v1614_v21 = vpop.f32.mrb[5].mxu1  ;;  %v1576_v22 = vpop.f32.mrb[6].mxu0 }
 0x105   : > { %v1615_v23 = vadd.f32 %v1614_v21, %v1613_v18  ;;  %v1616_v24 = vpop.f32.mrb[6].mxu1  ;;  %v1577_v25 = vpop.f32.mrb[7].mxu0 }
 0x106   : > { %v1003_v26 = vadd.f32 %v1575_v20, %v1412_v2  ;;  %v1578_v27 = vadd.f32 %v1577_v25, %v1576_v22  ;;  %v1617_v28 = vpop.f32.mrb[7].mxu1 }
 0x107   : > { %v1618_v29 = vadd.f32 %v1617_v28, %v1616_v24 }
 0x108   : > { %v2069_v30 = vadd.f32 %v1615_v23, %v1003_v26  ;;  %v1006_v31 = vadd.f32 %v1578_v27, %v1412_v2 }
 0x10a   : > { %v2071_v32 = vadd.f32 %v1618_v29, %v1006_v31  ;;  %v1579_v33 = vpop.f32.mrb[8].mxu0 }
 0x10b   : > { %v1619_v34 = vpop.f32.mrb[8].mxu1  ;;  %v1580_v35 = vpop.f32.mrb[9].mxu0 }
 0x10c   : > { %v1620_v36 = vpop.f32.mrb[9].mxu1  ;;  %v1581_v37 = vadd.f32 %v1580_v35, %v1579_v33  ;;  %v1582_v39 = vpop.f32.mrb[10].mxu0 }
 0x10d   : > { %v1621_v38 = vadd.f32 %v1620_v36, %v1619_v34  ;;  %v1622_v40 = vpop.f32.mrb[10].mxu1  ;;  %v1583_v41 = vpop.f32.mrb[11].mxu0 }
 0x10e   : > { %v1623_v42 = vpop.f32.mrb[11].mxu1  ;;  %v1011_v43 = vadd.f32 %v1581_v37, %v1412_v2  ;;  %v1584_v44 = vadd.f32 %v1583_v41, %v1582_v39 }
 0x10f   : > { %v1624_v45 = vadd.f32 %v1623_v42, %v1622_v40 }
 0x110   : > { %v2073_v46 = vadd.f32 %v1621_v38, %v1011_v43  ;;  %v1014_v47 = vadd.f32 %v1584_v44, %v1412_v2 }
 0x112   : > { %v2075_v48 = vadd.f32 %v1624_v45, %v1014_v47  ;;  %v1585_v49 = vpop.f32.mrb[12].mxu0 }
 0x113   : > { %v1625_v50 = vpop.f32.mrb[12].mxu1  ;;  %v1586_v51 = vpop.f32.mrb[13].mxu0 }
 0x114   : > { %v1587_v52 = vadd.f32 %v1586_v51, %v1585_v49  ;;  %v1626_v53 = vpop.f32.mrb[13].mxu1  ;;  %v1588_v54 = vpop.f32.mrb[14].mxu0 }
 0x115   : > { %v1627_v55 = vadd.f32 %v1626_v53, %v1625_v50  ;;  %v1628_v56 = vpop.f32.mrb[14].mxu1  ;;  %v1589_v57 = vpop.f32.mrb[15].mxu0 }
 0x116   : > { %v1019_v58 = vadd.f32 %v1587_v52, %v1412_v2  ;;  %v1590_v59 = vadd.f32 %v1589_v57, %v1588_v54  ;;  %v1629_v60 = vpop.f32.mrb[15].mxu1 }
 0x117   : > { %v1630_v61 = vadd.f32 %v1629_v60, %v1628_v56 }
 0x118   : > { %v2077_v62 = vadd.f32 %v1627_v55, %v1019_v58  ;;  %v1022_v63 = vadd.f32 %v1590_v59, %v1412_v2 }
 0x11a   : > { %v2079_v0 = vadd.f32 %v1630_v61, %v1022_v63  ;;  %v1647_v1 = vpop.f32.mrb[16].mxu0 }
 0x11b   : > { %v1687_v3 = vpop.f32.mrb[16].mxu1  ;;  %v1648_v4 = vpop.f32.mrb[17].mxu0 }
 0x11c   : > { %v1649_v5 = vadd.f32 %v1648_v4, %v1647_v1  ;;  %v1688_v6 = vpop.f32.mrb[17].mxu1  ;;  %v1650_v7 = vpop.f32.mrb[18].mxu0 }
 0x11d   : > { %v1689_v8 = vadd.f32 %v1688_v6, %v1687_v3  ;;  %v1690_v9 = vpop.f32.mrb[18].mxu1  ;;  %v1651_v10 = vpop.f32.mrb[19].mxu0 }
 0x11e   : > { %v1125_v11 = vadd.f32 %v1649_v5, %v1060_v14  ;;  %v1652_v12 = vadd.f32 %v1651_v10, %v1650_v7  ;;  %v1691_v13 = vpop.f32.mrb[19].mxu1 }
 0x11f   : > { %v1692_v15 = vadd.f32 %v1691_v13, %v1690_v9 }
 0x120   : > { %v1190_v17 = vadd.f32 %v1689_v8, %v1125_v11  ;;  %v1128_v18 = vadd.f32 %v1652_v12, %v2067_v16 }
 0x122   : > { %v1193_v2 = vadd.f32 %v1692_v15, %v1128_v18  ;;  %v1653_v19 = vpop.f32.mrb[20].mxu0  ;;  %v1234_v20 = vmul.f32 %v1190_v17, %v1190_v17 }
 0x123   : > { %v1693_v21 = vpop.f32.mrb[20].mxu1  ;;  %v1654_v22 = vpop.f32.mrb[21].mxu0 }
 0x124   : > { %v1220_v23 = vadd.f32 %v1193_v2, %v1190_v17  ;;  %v1235_v14 = vmul.f32 %v1193_v2, %v1193_v2  ;;  %v1531_v24 = vpack.c.bf16 %v1193_v2, %v1190_v17  ;;  %v1655_v25 = vadd.f32 %v1654_v22, %v1653_v19  ;;  %v1694_v26 = vpop.f32.mrb[21].mxu1  ;;  %v1656_v27 = vpop.f32.mrb[22].mxu0 }
 0x125   : > { %v1695_v28 = vadd.f32 %v1694_v26, %v1693_v21  ;;  %v1696_v16 = vpop.f32.mrb[22].mxu1  ;;  %v1657_v29 = vpop.f32.mrb[23].mxu0 }
 0x126   : > { %v1242_v31 = vadd.f32 %v1235_v14, %v1234_v20  ;;  %1532 = vst [vmem:[%s2086_s26] sm:$0xff] %v1531_v24   ;;  %v1133_v33 = vadd.f32 %v1655_v25, %v2069_v30  ;;  %v1658_v34 = vadd.f32 %v1657_v29, %v1656_v27  ;;  %v1697_v35 = vpop.f32.mrb[23].mxu1 }
 0x127   : > { %v1698_v36 = vadd.f32 %v1697_v35, %v1696_v16 }
 0x128   : > { %v1198_v37 = vadd.f32 %v1695_v28, %v1133_v33  ;;  %v1136_v38 = vadd.f32 %v1658_v34, %v2071_v32 }
 0x12a   : > { %v1221_v39 = vadd.f32 %v1220_v23, %v1198_v37  ;;  %v1236_v40 = vmul.f32 %v1198_v37, %v1198_v37  ;;  %v1201_v41 = vadd.f32 %v1698_v36, %v1136_v38  ;;  %v1659_v42 = vpop.f32.mrb[24].mxu0 }
 0x12b   : > { %v1699_v43 = vpop.f32.mrb[24].mxu1  ;;  %v1660_v44 = vpop.f32.mrb[25].mxu0 }
 0x12c   : > { %v1243_v45 = vadd.f32 %v1242_v31, %v1236_v40  ;;  %v1222_v47 = vadd.f32 %v1221_v39, %v1201_v41  ;;  %v1237_v49 = vmul.f32 %v1201_v41, %v1201_v41  ;;  %v1536_v50 = vpack.c.bf16 %v1201_v41, %v1198_v37  ;;  %v1700_v51 = vpop.f32.mrb[25].mxu1  ;;  %v1662_v52 = vpop.f32.mrb[26].mxu0 }
 0x12d   : > { %v1661_v30 = vadd.f32 %v1660_v44, %v1659_v42  ;;  %v1701_v53 = vadd.f32 %v1700_v51, %v1699_v43  ;;  %v1702_v54 = vpop.f32.mrb[26].mxu1  ;;  %v1663_v55 = vpop.f32.mrb[27].mxu0 }
 0x12e   : > { %v1244_v56 = vadd.f32 %v1243_v45, %v1237_v49  ;;  %1548 = vst [vmem:[%s2086_s26 + $0x8] sm:$0xff] %v1536_v50   ;;  %v1664_v32 = vadd.f32 %v1663_v55, %v1662_v52  ;;  %v1703_v57 = vpop.f32.mrb[27].mxu1 }
 0x12f   : > { %v1141_v58 = vadd.f32 %v1661_v30, %v2073_v46  ;;  %v1704_v59 = vadd.f32 %v1703_v57, %v1702_v54 }
 0x130   : > { %v1144_v60 = vadd.f32 %v1664_v32, %v2075_v48 }
 0x131   : > { %v1206_v61 = vadd.f32 %v1701_v53, %v1141_v58 }
 0x132   : > { %v1209_v63 = vadd.f32 %v1704_v59, %v1144_v60  ;;  %v1665_v1 = vpop.f32.mrb[28].mxu0 }
 0x133   : > { %v1223_v3 = vadd.f32 %v1222_v47, %v1206_v61  ;;  %v1238_v4 = vmul.f32 %v1206_v61, %v1206_v61  ;;  %v1705_v5 = vpop.f32.mrb[28].mxu1  ;;  %v1666_v6 = vpop.f32.mrb[29].mxu0 }
 0x134   : > { %v1239_v7 = vmul.f32 %v1209_v63, %v1209_v63  ;;  %v1541_v8 = vpack.c.bf16 %v1209_v63, %v1206_v61  ;;  %v1667_v9 = vadd.f32 %v1666_v6, %v1665_v1  ;;  %v1706_v10 = vpop.f32.mrb[29].mxu1  ;;  %v1668_v11 = vpop.f32.mrb[30].mxu0 }
 0x135   : > { %v1245_v12 = vadd.f32 %v1244_v56, %v1238_v4  ;;  %v1224_v13 = vadd.f32 %v1223_v3, %v1209_v63  ;;  %v1707_v15 = vadd.f32 %v1706_v10, %v1705_v5  ;;  %v1708_v46 = vpop.f32.mrb[30].mxu1  ;;  %v1669_v17 = vpop.f32.mrb[31].mxu0 }
 0x136   : > { %1549 = vst [vmem:[%s2086_s26 + $0x10] sm:$0xff] %v1541_v8   ;;  %v1149_v48 = vadd.f32 %v1667_v9, %v2077_v62  ;;  %v1670_v18 = vadd.f32 %v1669_v17, %v1668_v11  ;;  %v1709_v2 = vpop.f32.mrb[31].mxu1 }
 0x137   : > { %v1246_v19 = vadd.f32 %v1245_v12, %v1239_v7  ;;  %v1710_v20 = vadd.f32 %v1709_v2, %v1708_v46 }
 0x138   : > { %v1214_v21 = vadd.f32 %v1707_v15, %v1149_v48  ;;  %v1152_v22 = vadd.f32 %v1670_v18, %v2079_v0 }
 0x13a   : > { %v1225_v23 = vadd.f32 %v1224_v13, %v1214_v21  ;;  %v1240_v14 = vmul.f32 %v1214_v21, %v1214_v21  ;;  %v1217_v24 = vadd.f32 %v1710_v20, %v1152_v22 }
 0x13c   : > { %v1247_v25 = vadd.f32 %v1246_v19, %v1240_v14  ;;  %v1226_v26 = vadd.f32 %v1225_v23, %v1217_v24  ;;  %v1241_v27 = vmul.f32 %v1217_v24, %v1217_v24  ;;  %v1546_v28 = vpack.c.bf16 %v1217_v24, %v1214_v21 }
 0x13e   : > { %v1227_v16 = vrot.slane %v1226_v26, 4  ;;  %v1248_v29 = vadd.f32 %v1247_v25, %v1241_v27  ;;  %1550 = vst [vmem:[%s2086_s26 + $0x18] sm:$0xff] %v1546_v28  }
 0x140   : > { %v1228_v62 = vadd.f32 %v1227_v16, %v1226_v26  ;;  %v1249_v31 = vrot.slane %v1248_v29, 4 }
 0x142   : > { %v1229_v33 = vrot.slane %v1228_v62, 2  ;;  %v1250_v34 = vadd.f32 %v1249_v31, %v1248_v29 }
 0x144   : > { %v1230_v35 = vadd.f32 %v1229_v33, %v1228_v62  ;;  %v1251_v36 = vrot.slane %v1250_v34, 2 }
 0x146   : > { %v1231_v0 = vrot.slane %v1230_v35, 1  ;;  %v1252_v37 = vadd.f32 %v1251_v36, %v1250_v34 }
 0x148   : > { %v1232_v38 = vadd.f32 %v1231_v0, %v1230_v35  ;;  %v1253_v39 = vrot.slane %v1252_v37, 1 }
 0x14a   : > { %1233 = vst [vmem:[%s244_s28] sm:$0x1] %v1232_v38  ;;  %v1254_v40 = vadd.f32 %v1253_v39, %v1252_v37 }
 0x14c   : > { %1255 = vst [vmem:[%s247_s7] sm:$0x1] %v1254_v40 }
 0x14d PF: > { %s16_s18 = sadd.s32 1, %s1789_s18  }
 0x14e   : > { %p13_p5 = scmp.ge.s32.totalorder %s16_s18, 4  }
 0x150   :  { %15 = sbr.rel (!%p13_p5) target bundleno = 1 (0x1), region = 86 }

// kernel: advanced_colorizer_forward.20
= control target key start
LH: loop header
LB: loop body
LE: loop exit
PB: predicated region body
PF: predicated region fallthrough
CT: control target
= control target key end

     0   :  { %s3207_s18 = smov 0   ;;  %s4078_s0 = inlined_call_operand.vmem [shape: bf16[32,2048], index: 0, kind: input, shape index: {}]   ;;  %s4079_s1 = inlined_call_operand.vmem [shape: bf16[2048,256], index: 1, kind: input, shape index: {}]   ;;  %s4080_s2 = inlined_call_operand.vmem [shape: f32[1,256], index: 2, kind: input, shape index: {}]   ;;  %s4081_s3 = inlined_call_operand.vmem [shape: bf16[32,256], index: 3, kind: output, shape index: {0}]   ;;  %s4082_s4 = inlined_call_operand.vmem [shape: f32[2,1,256], index: 4, kind: output, shape index: {1}]   ;;  %s4083_s5 = inlined_call_operand.vmem [shape: f32[2,1,256], index: 5, kind: output, shape index: {2}]  }
   0x1 LB: > { %s3213_s19 = sadd.s32 4294967295, %s3174_s18   ;;  %p2454_p0 = scmp.ge.s32.totalorder %s3174_s18, 1  ;;  %s3174_s18 = sphi %s3207_s18, %s16_s18  }
   0x2   : > { %p194_p1 = scmp.lt.s32.totalorder %s3174_s18, 3 }
   0x4   : > { %p195_p2 = pnand %p2454_p0, %p194_p1 }
   0x5   : > { %v2784_v0 = vld [vmem:[%s4079_s1 + $0x4] ss:$8 sps:$4 sm:$0xff] (!%p195_p2)   ;;  %v2788_v2 = vld [vmem:[%s4079_s1] ss:$8 sps:$4 sm:$0xff] (!%p195_p2)   ;;  %v2790_v4 = vld [vmem:[%s4079_s1 + $0x14] ss:$8 sps:$4 sm:$0xff] (!%p195_p2)  }
   0x6   : > { %198 = sbr.rel (%p195_p2) target bundleno = 504 (0x1f8), region = 32  ;;  %v2786_v1 = vld [vmem:[%s4079_s1 + $0x404] ss:$8 sps:$4 sm:$0xff] (!%p195_p2)   ;;  %1898 = vmatprep.subr.bf16.mxu1 (!%p195_p2), %v2784_v0  ;;  %v2789_v3 = vld [vmem:[%s4079_s1 + $0x400] ss:$8 sps:$4 sm:$0xff] (!%p195_p2)   ;;  %s2455_s9 = sshll.u32 (!%p195_p2), %s3213_s19, 1 }
   0x7   : > { %2070 = vmatprep.subr.bf16.mxu0 (!%p195_p2), %v2786_v1  ;;  %1899 = vmatpush1.bf16.msra.mxu1 (!%p195_p2), %v2788_v2  ;;  %v2792_v5 = vld [vmem:[%s4079_s1 + $0x414] ss:$8 sps:$4 sm:$0xff] (!%p195_p2)   ;;  %v2794_v6 = vld [vmem:[%s4079_s1 + $0x10] ss:$8 sps:$4 sm:$0xff] (!%p195_p2)   ;;  %v2796_v8 = vld [vmem:[%s4079_s1 + $0x24] ss:$8 sps:$4 sm:$0xff] (!%p195_p2)  }
   0x8   : > { %2071 = vmatpush1.bf16.msra.mxu0 (!%p195_p2), %v2789_v3  ;;  %1900 = vmatprep.subr.bf16.mxu1 (!%p195_p2), %v2790_v4  ;;  %v2795_v7 = vld [vmem:[%s4079_s1 + $0x410] ss:$8 sps:$4 sm:$0xff] (!%p195_p2)   ;;  %v2798_v9 = vld [vmem:[%s4079_s1 + $0x424] ss:$8 sps:$4 sm:$0xff] (!%p195_p2)   ;;  %v2800_v10 = vld [vmem:[%s4079_s1 + $0x20] ss:$8 sps:$4 sm:$0xff] (!%p195_p2)  }
   0x9   : > { %2072 = vmatprep.subr.bf16.mxu0 (!%p195_p2), %v2792_v5  ;;  %v2801_v11 = vld [vmem:[%s4079_s1 + $0x420] ss:$8 sps:$4 sm:$0xff] (!%p195_p2)   ;;  %v2802_v12 = vld [vmem:[%s4079_s1 + $0x34] ss:$8 sps:$4 sm:$0xff] (!%p195_p2)   ;;  %v2806_v14 = vld [vmem:[%s4079_s1 + $0x30] ss:$8 sps:$4 sm:$0xff] (!%p195_p2)  }
   0xa   : > { %v2804_v13 = vld [vmem:[%s4079_s1 + $0x434] ss:$8 sps:$4 sm:$0xff] (!%p195_p2)   ;;  %v2807_v15 = vld [vmem:[%s4079_s1 + $0x430] ss:$8 sps:$4 sm:$0xff] (!%p195_p2)   ;;  %v2808_v16 = vld [vmem:[%s4079_s1 + $0x44] ss:$8 sps:$4 sm:$0xff] (!%p195_p2)  }
   0xb   : > { %1901 = vmatpush1.bf16.msra.mxu1 (!%p195_p2), %v2794_v6  ;;  %v2810_v17 = vld [vmem:[%s4079_s1 + $0x444] ss:$8 sps:$4 sm:$0xff] (!%p195_p2)   ;;  %v2812_v18 = vld [vmem:[%s4079_s1 + $0x40] ss:$8 sps:$4 sm:$0xff] (!%p195_p2)   ;;  %v2814_v20 = vld [vmem:[%s4079_s1 + $0x54] ss:$8 sps:$4 sm:$0xff] (!%p195_p2)  }
   0xc   : > { %2073 = vmatpush1.bf16.msra.mxu0 (!%p195_p2), %v2795_v7  ;;  %1902 = vmatprep.subr.bf16.mxu1 (!%p195_p2), %v2796_v8  ;;  %v2813_v19 = vld [vmem:[%s4079_s1 + $0x440] ss:$8 sps:$4 sm:$0xff] (!%p195_p2)   ;;  %v2816_v21 = vld [vmem:[%s4079_s1 + $0x454] ss:$8 sps:$4 sm:$0xff] (!%p195_p2)   ;;  %v2818_v22 = vld [vmem:[%s4079_s1 + $0x50] ss:$8 sps:$4 sm:$0xff] (!%p195_p2)  }
   0xd   : > { %2074 = vmatprep.subr.bf16.mxu0 %v2798_v9  ;;  %v2819_v23 = vld [vmem:[%s4079_s1 + $0x450] ss:$8 sps:$4 sm:$0xff]   ;;  %v2820_v24 = vld [vmem:[%s4079_s1 + $0x64] ss:$8 sps:$4 sm:$0xff]   ;;  %v2824_v26 = vld [vmem:[%s4079_s1 + $0x60] ss:$8 sps:$4 sm:$0xff]  }
   0xe   : > { %v2822_v25 = vld [vmem:[%s4079_s1 + $0x464] ss:$8 sps:$4 sm:$0xff]   ;;  %v2825_v27 = vld [vmem:[%s4079_s1 + $0x460] ss:$8 sps:$4 sm:$0xff]   ;;  %v2826_v28 = vld [vmem:[%s4079_s1 + $0x74] ss:$8 sps:$4 sm:$0xff]  }
   0xf   : > { %1903 = vmatpush1.bf16.msra.mxu1 %v2800_v10  ;;  %v2828_v29 = vld [vmem:[%s4079_s1 + $0x474] ss:$8 sps:$4 sm:$0xff]   ;;  %v2830_v30 = vld [vmem:[%s4079_s1 + $0x70] ss:$8 sps:$4 sm:$0xff]   ;;  %v2832_v32 = vld [vmem:[%s4079_s1 + $0x84] ss:$8 sps:$4 sm:$0xff]  }
  0x10   : > { %2075 = vmatpush1.bf16.msra.mxu0 %v2801_v11  ;;  %1904 = vmatprep.subr.bf16.mxu1 %v2802_v12  ;;  %v2831_v31 = vld [vmem:[%s4079_s1 + $0x470] ss:$8 sps:$4 sm:$0xff]   ;;  %p233_p3 = scmp.lt.s32.totalorder %s2455_s9, 3  ;;  %v2834_v33 = vld [vmem:[%s4079_s1 + $0x484] ss:$8 sps:$4 sm:$0xff]   ;;  %p246_p4 = scmp.lt.s32.totalorder %s3213_s19, 1 }
  0x11   : > { %2076 = vmatprep.subr.bf16.mxu0 %v2804_v13  ;;  %v2836_v34 = vld [vmem:[%s4079_s1 + $0x80] ss:$8 sps:$4 sm:$0xff]   ;;  %v2838_v36 = vld [vmem:[%s4079_s1 + $0x94] ss:$8 sps:$4 sm:$0xff]   ;;  %v2842_v38 = vld [vmem:[%s4079_s1 + $0x90] ss:$8 sps:$4 sm:$0xff]  }
  0x12   : > { %v2837_v35 = vld [vmem:[%s4079_s1 + $0x480] ss:$8 sps:$4 sm:$0xff]   ;;  %s4085_s9 = smov (!%p233_p3, %s2455_s9), 3  ;;  %v2840_v37 = vld [vmem:[%s4079_s1 + $0x494] ss:$8 sps:$4 sm:$0xff]   ;;  %s4087_s19 = smov (!%p246_p4, %s3213_s19), 1 }
  0x13   : > { %1905 = vmatpush1.bf16.msra.mxu1 %v2806_v14  ;;  %v2843_v39 = vld [vmem:[%s4079_s1 + $0x490] ss:$8 sps:$4 sm:$0xff]   ;;  %v2844_v40 = vld [vmem:[%s4079_s1 + $0xa4] ss:$8 sps:$4 sm:$0xff]   ;;  %s2739_s10 = sshll.u32 %s4085_s9, 6  ;;  %s2740_s22 = sshll.u32 %s4085_s9, 3 }
  0x14   : > { %2077 = vmatpush1.bf16.msra.mxu0 %v2807_v15  ;;  %1906 = vmatprep.subr.bf16.mxu1 %v2808_v16  ;;  %v2846_v41 = vld [vmem:[%s4079_s1 + $0x4a4] ss:$8 sps:$4 sm:$0xff]   ;;  %v2848_v42 = vld [vmem:[%s4079_s1 + $0xa0] ss:$8 sps:$4 sm:$0xff]   ;;  %s3356_s21 = scalar_lea.vmem %s4078_s0, %s2739_s10  ;;  %v2850_v44 = vld [vmem:[%s4079_s1 + $0xb4] ss:$8 sps:$4 sm:$0xff]   ;;  %s244_s25 = scalar_lea.vmem %s4081_s3, %s2740_s22 }
  0x15   : > { %2078 = vmatprep.subr.bf16.mxu0 %v2810_v17  ;;  %v2849_v43 = vld [vmem:[%s4079_s1 + $0x4a0] ss:$8 sps:$4 sm:$0xff]   ;;  %v2852_v45 = vld [vmem:[%s4079_s1 + $0x4b4] ss:$8 sps:$4 sm:$0xff]   ;;  %v2854_v46 = vld [vmem:[%s4079_s1 + $0xb0] ss:$8 sps:$4 sm:$0xff]  }
  0x16   : > { %v2855_v47 = vld [vmem:[%s4079_s1 + $0x4b0] ss:$8 sps:$4 sm:$0xff]   ;;  %v254_v48 = vld [vmem:[%s3356_s21] sm:$0xff]  ;;  %v2862_v58 = vld [vmem:[%s4079_s1 + $0xd4] ss:$8 sps:$4 sm:$0xff]   ;;  %s2461_s9 = sshll.u32 %s4087_s19, 1 }
  0x17   : > { %1907 = vmatpush1.bf16.msra.mxu1 %v2812_v18  ;;  %v262_v49 = vld [vmem:[%s3356_s21 + $0x40] sm:$0xff]  ;;  %v2864_v59 = vld [vmem:[%s4079_s1 + $0x4d4] ss:$8 sps:$4 sm:$0xff]   ;;  %v2866_v60 = vld [vmem:[%s4079_s1 + $0xd0] ss:$8 sps:$4 sm:$0xff]   ;;  %s249_s28 = scalar_lea.vmem %s4082_s4, %s2461_s9  ;;  %s253_s6 = scalar_lea.vmem %s4083_s5, %s2461_s9 }
  0x18   : > { %2079 = vmatpush1.bf16.msra.mxu0 %v2813_v19  ;;  %1908 = vmatprep.subr.bf16.mxu1 %v2814_v20  ;;  %v2856_v50 = vld [vmem:[%s4079_s1 + $0xc4] ss:$8 sps:$4 sm:$0xff]   ;;  %v2464_v52 = vcombine.high %v254_v48, %v262_v49  ;;  %v2860_v56 = vld [vmem:[%s4079_s1 + $0xc0] ss:$8 sps:$4 sm:$0xff]   ;;  %v2867_v61 = vld [vmem:[%s4079_s1 + $0x4d0] ss:$8 sps:$4 sm:$0xff]   ;;  %v2463_v8 = vcombine.low %v254_v48, %v262_v49 }
  0x19   : > { %2080 = vmatprep.subr.bf16.mxu0 %v2816_v21  ;;  %v2858_v51 = vld [vmem:[%s4079_s1 + $0x4c4] ss:$8 sps:$4 sm:$0xff]   ;;  %v2861_v57 = vld [vmem:[%s4079_s1 + $0x4c0] ss:$8 sps:$4 sm:$0xff]   ;;  %v2874_v2 = vld [vmem:[%s4079_s1 + $0xf4] ss:$8 sps:$4 sm:$0xff]  }
  0x1a   : > { %v258_v53 = vld [vmem:[%s3356_s21 + $0x20] sm:$0xff]  ;;  %1930 = vmatprep.mubr.bf16.mxu1 %v2464_v52  ;;  %v2876_v3 = vld [vmem:[%s4079_s1 + $0x4f4] ss:$8 sps:$4 sm:$0xff]   ;;  %v2878_v4 = vld [vmem:[%s4079_s1 + $0xf0] ss:$8 sps:$4 sm:$0xff]  }
  0x1b   : > { %1909 = vmatpush1.bf16.msra.mxu1 %v2818_v22  ;;  %v266_v54 = vld [vmem:[%s3356_s21 + $0x60] sm:$0xff]  ;;  %v2879_v5 = vld [vmem:[%s4079_s1 + $0x4f0] ss:$8 sps:$4 sm:$0xff]   ;;  %v2888_v12 = vld [vmem:[%s4079_s1 + $0x114] ss:$8 sps:$4 sm:$0xff]  }
  0x1c   : > { %2081 = vmatpush1.bf16.msra.mxu0 %v2819_v23  ;;  %1910 = vmatprep.subr.bf16.mxu1 %v2820_v24  ;;  %v2472_v55 = vcombine.high %v258_v53, %v266_v54  ;;  %v2868_v62 = vld [vmem:[%s4079_s1 + $0xe4] ss:$8 sps:$4 sm:$0xff]   ;;  %v2872_v0 = vld [vmem:[%s4079_s1 + $0xe0] ss:$8 sps:$4 sm:$0xff]   ;;  %v2471_v10 = vcombine.low %v258_v53, %v266_v54  ;;  %v2891_v13 = vld [vmem:[%s4079_s1 + $0x514] ss:$8 sps:$4 sm:$0xff]  }
  0x1d   : > { %2082 = vmatprep.subr.bf16.mxu0 %v2822_v25  ;;  %v2870_v63 = vld [vmem:[%s4079_s1 + $0x4e4] ss:$8 sps:$4 sm:$0xff]   ;;  %v2873_v1 = vld [vmem:[%s4079_s1 + $0x4e0] ss:$8 sps:$4 sm:$0xff]   ;;  %v2886_v14 = vld [vmem:[%s4079_s1 + $0x110] ss:$8 sps:$4 sm:$0xff]  }
  0x1e   : > { %2102 = vmatprep.mubr.bf16.mxu0 %v2472_v55  ;;  %v2882_v6 = vld [vmem:[%s4079_s1 + $0x104] ss:$8 sps:$4 sm:$0xff]   ;;  %v2880_v9 = vld [vmem:[%s4079_s1 + $0x100] ss:$8 sps:$4 sm:$0xff]   ;;  %v2889_v15 = vld [vmem:[%s4079_s1 + $0x510] ss:$8 sps:$4 sm:$0xff]  }
  0x1f   : > { %1911 = vmatpush1.bf16.msra.mxu1 %v2824_v26  ;;  %v2885_v7 = vld [vmem:[%s4079_s1 + $0x504] ss:$8 sps:$4 sm:$0xff]   ;;  %v2883_v11 = vld [vmem:[%s4079_s1 + $0x500] ss:$8 sps:$4 sm:$0xff]   ;;  %v2900_v20 = vld [vmem:[%s4079_s1 + $0x134] ss:$8 sps:$4 sm:$0xff]  }
  0x20   : > { %2083 = vmatpush1.bf16.msra.mxu0 %v2825_v27  ;;  %1912 = vmatprep.subr.bf16.mxu1 %v2826_v28  ;;  %v2894_v16 = vld [vmem:[%s4079_s1 + $0x124] ss:$8 sps:$4 sm:$0xff]   ;;  %v2892_v18 = vld [vmem:[%s4079_s1 + $0x120] ss:$8 sps:$4 sm:$0xff]   ;;  %v2903_v21 = vld [vmem:[%s4079_s1 + $0x534] ss:$8 sps:$4 sm:$0xff]  }
  0x21   : > { %2084 = vmatprep.subr.bf16.mxu0 %v2828_v29  ;;  %v2897_v17 = vld [vmem:[%s4079_s1 + $0x524] ss:$8 sps:$4 sm:$0xff]   ;;  %v2895_v19 = vld [vmem:[%s4079_s1 + $0x520] ss:$8 sps:$4 sm:$0xff]   ;;  %v2898_v22 = vld [vmem:[%s4079_s1 + $0x130] ss:$8 sps:$4 sm:$0xff]  }
  0x22   : > { %v2901_v23 = vld [vmem:[%s4079_s1 + $0x530] ss:$8 sps:$4 sm:$0xff]   ;;  %v2906_v24 = vld [vmem:[%s4079_s1 + $0x144] ss:$8 sps:$4 sm:$0xff]   ;;  %v2904_v26 = vld [vmem:[%s4079_s1 + $0x140] ss:$8 sps:$4 sm:$0xff]  }
  0x23   : > { %1913 = vmatpush1.bf16.msra.mxu1 %v2830_v30  ;;  %v2909_v25 = vld [vmem:[%s4079_s1 + $0x544] ss:$8 sps:$4 sm:$0xff]   ;;  %v2907_v27 = vld [vmem:[%s4079_s1 + $0x540] ss:$8 sps:$4 sm:$0xff]   ;;  %v2912_v28 = vld [vmem:[%s4079_s1 + $0x154] ss:$8 sps:$4 sm:$0xff]  }
  0x24   : > { %2085 = vmatpush1.bf16.msra.mxu0 %v2831_v31  ;;  %1914 = vmatprep.subr.bf16.mxu1 %v2832_v32  ;;  %v2915_v29 = vld [vmem:[%s4079_s1 + $0x554] ss:$8 sps:$4 sm:$0xff]   ;;  %v2910_v30 = vld [vmem:[%s4079_s1 + $0x150] ss:$8 sps:$4 sm:$0xff]   ;;  %v2918_v32 = vld [vmem:[%s4079_s1 + $0x164] ss:$8 sps:$4 sm:$0xff]  }
  0x25   : > { %2086 = vmatprep.subr.bf16.mxu0 %v2834_v33  ;;  %v2913_v31 = vld [vmem:[%s4079_s1 + $0x550] ss:$8 sps:$4 sm:$0xff]   ;;  %v2921_v33 = vld [vmem:[%s4079_s1 + $0x564] ss:$8 sps:$4 sm:$0xff]   ;;  %v2928_v48 = vld [vmem:[%s4079_s1 + $0x180] ss:$8 sps:$4 sm:$0xff]  }
  0x26   : > { %v2931_v49 = vld [vmem:[%s4079_s1 + $0x580] ss:$8 sps:$4 sm:$0xff]   ;;  %v2934_v52 = vld [vmem:[%s4079_s1 + $0x190] ss:$8 sps:$4 sm:$0xff]   ;;  %v2942_v54 = vld [vmem:[%s4079_s1 + $0x1a4] ss:$8 sps:$4 sm:$0xff]  }
  0x27   : > { %1915 = vmatpush1.bf16.msra.mxu1 %v2836_v34  ;;  %v2916_v34 = vld [vmem:[%s4079_s1 + $0x160] ss:$8 sps:$4 sm:$0xff]   ;;  %v2937_v53 = vld [vmem:[%s4079_s1 + $0x590] ss:$8 sps:$4 sm:$0xff]   ;;  %v2945_v55 = vld [vmem:[%s4079_s1 + $0x5a4] ss:$8 sps:$4 sm:$0xff]  }
  0x28   : > { %2087 = vmatpush1.bf16.msra.mxu0 %v2837_v35  ;;  %1916 = vmatprep.subr.bf16.mxu1 %v2838_v36  ;;  %v2919_v35 = vld [vmem:[%s4079_s1 + $0x560] ss:$8 sps:$4 sm:$0xff]  }
  0x29   : > { %2088 = vmatprep.subr.bf16.mxu0 %v2840_v37  ;;  %v3507_v36 = vld [vmem:[%s3356_s21 + $0x8] sm:$0xff] }
  0x2a   : > { %v3510_v37 = vld [vmem:[%s3356_s21 + $0x48] sm:$0xff] }
  0x2b   : > { %1917 = vmatpush1.bf16.msra.mxu1 %v2842_v38  ;;  %v2924_v38 = vld [vmem:[%s4079_s1 + $0x174] ss:$8 sps:$4 sm:$0xff]  }
  0x2c   : > { %2089 = vmatpush1.bf16.msra.mxu0 %v2843_v39  ;;  %1918 = vmatprep.subr.bf16.mxu1 %v2844_v40  ;;  %v2927_v39 = vld [vmem:[%s4079_s1 + $0x574] ss:$8 sps:$4 sm:$0xff]   ;;  %v2466_v40 = vcombine.high %v3507_v36, %v3510_v37 }
  0x2d   : > { %2090 = vmatprep.subr.bf16.mxu0 %v2846_v41  ;;  %v3521_v41 = vld [vmem:[%s3356_s21 + $0x28] sm:$0xff] }
  0x2f   : > { %1919 = vmatpush1.bf16.msra.mxu1 %v2848_v42  ;;  %v3524_v42 = vld [vmem:[%s3356_s21 + $0x68] sm:$0xff] }
  0x30   : > { %2091 = vmatpush1.bf16.msra.mxu0 %v2849_v43  ;;  %1920 = vmatprep.subr.bf16.mxu1 %v2850_v44  ;;  %v2474_v43 = vcombine.high %v3521_v41, %v3524_v42  ;;  %v2922_v44 = vld [vmem:[%s4079_s1 + $0x170] ss:$8 sps:$4 sm:$0xff]  }
  0x31   : > { %2092 = vmatprep.subr.bf16.mxu0 %v2852_v45  ;;  %v2925_v45 = vld [vmem:[%s4079_s1 + $0x570] ss:$8 sps:$4 sm:$0xff]  }
  0x33   : > { %1921 = vmatpush1.bf16.msra.mxu1 %v2854_v46  ;;  %v2930_v46 = vld [vmem:[%s4079_s1 + $0x184] ss:$8 sps:$4 sm:$0xff]  }
  0x34   : > { %2093 = vmatpush1.bf16.msra.mxu0 %v2855_v47  ;;  %1922 = vmatprep.subr.bf16.mxu1 %v2856_v50  ;;  %v2933_v47 = vld [vmem:[%s4079_s1 + $0x584] ss:$8 sps:$4 sm:$0xff]   ;;  %v2936_v50 = vld [vmem:[%s4079_s1 + $0x194] ss:$8 sps:$4 sm:$0xff]  }
  0x35   : > { %2094 = vmatprep.subr.bf16.mxu0 %v2858_v51  ;;  %v2939_v51 = vld [vmem:[%s4079_s1 + $0x594] ss:$8 sps:$4 sm:$0xff]  }
  0x37   : > { %1923 = vmatpush1.bf16.msra.mxu1 %v2860_v56  ;;  %v2940_v56 = vld [vmem:[%s4079_s1 + $0x1a0] ss:$8 sps:$4 sm:$0xff]  }
  0x38   : > { %2095 = vmatpush1.bf16.msra.mxu0 %v2861_v57  ;;  %1924 = vmatprep.subr.bf16.mxu1 %v2862_v58  ;;  %v2943_v57 = vld [vmem:[%s4079_s1 + $0x5a0] ss:$8 sps:$4 sm:$0xff]   ;;  %v2948_v58 = vld [vmem:[%s4079_s1 + $0x1b4] ss:$8 sps:$4 sm:$0xff]  }
  0x39   : > { %2096 = vmatprep.subr.bf16.mxu0 %v2864_v59  ;;  %v2951_v59 = vld [vmem:[%s4079_s1 + $0x5b4] ss:$8 sps:$4 sm:$0xff]  }
  0x3b   : > { %1925 = vmatpush1.bf16.msra.mxu1 %v2866_v60  ;;  %v2946_v60 = vld [vmem:[%s4079_s1 + $0x1b0] ss:$8 sps:$4 sm:$0xff]  }
  0x3c   : > { %2097 = vmatpush1.bf16.msra.mxu0 %v2867_v61  ;;  %1926 = vmatprep.subr.bf16.mxu1 %v2868_v62  ;;  %v2949_v61 = vld [vmem:[%s4079_s1 + $0x5b0] ss:$8 sps:$4 sm:$0xff]   ;;  %v2954_v62 = vld [vmem:[%s4079_s1 + $0x1c4] ss:$8 sps:$4 sm:$0xff]  }
  0x3d   : > { %2098 = vmatprep.subr.bf16.mxu0 %v2870_v63  ;;  %v2957_v63 = vld [vmem:[%s4079_s1 + $0x5c4] ss:$8 sps:$4 sm:$0xff]  }
  0x3f   : > { %1927 = vmatpush1.bf16.msra.mxu1 %v2872_v0  ;;  %v2952_v0 = vld [vmem:[%s4079_s1 + $0x1c0] ss:$8 sps:$4 sm:$0xff]  }
  0x40   : > { %2099 = vmatpush1.bf16.msra.mxu0 %v2873_v1  ;;  %1928 = vmatprep.subr.bf16.mxu1 %v2874_v2  ;;  %v2955_v1 = vld [vmem:[%s4079_s1 + $0x5c0] ss:$8 sps:$4 sm:$0xff]   ;;  %v2960_v2 = vld [vmem:[%s4079_s1 + $0x1d4] ss:$8 sps:$4 sm:$0xff]  }
  0x41   : > { %2100 = vmatprep.subr.bf16.mxu0 %v2876_v3  ;;  %v2963_v3 = vld [vmem:[%s4079_s1 + $0x5d4] ss:$8 sps:$4 sm:$0xff]  }
  0x43   : > { %1929 = vmatpush1.bf16.msra.mxu1 %v2878_v4  ;;  %v2958_v4 = vld [vmem:[%s4079_s1 + $0x1d0] ss:$8 sps:$4 sm:$0xff]  }
  0x44   : > { %2101 = vmatpush1.bf16.msra.mxu0 %v2879_v5  ;;  %1941 = vmatprep.subr.bf16.mxu1 %v2882_v6  ;;  %v2961_v5 = vld [vmem:[%s4079_s1 + $0x5d0] ss:$8 sps:$4 sm:$0xff]   ;;  %v2966_v6 = vld [vmem:[%s4079_s1 + $0x1e4] ss:$8 sps:$4 sm:$0xff]  }
  0x45   : > { %2113 = vmatprep.subr.bf16.mxu0 %v2885_v7  ;;  %v2969_v7 = vld [vmem:[%s4079_s1 + $0x5e4] ss:$8 sps:$4 sm:$0xff]  }
  0x46   : > { %1931 = vmatmul.mubr.bf16.vlgmr.msra.gmra.mrb[0].mxu1 %v2463_v8  ;;  %v2964_v8 = vld [vmem:[%s4079_s1 + $0x1e0] ss:$8 sps:$4 sm:$0xff]  }
  0x47   : > { %2103 = vmatmul.mubr.bf16.vlgmr.msra.gmra.mrb[0].mxu0 %v2471_v10  ;;  %1942 = vmatpush1.bf16.msra.mxu1 %v2880_v9  ;;  %v2967_v9 = vld [vmem:[%s4079_s1 + $0x5e0] ss:$8 sps:$4 sm:$0xff]   ;;  %v2972_v10 = vld [vmem:[%s4079_s1 + $0x1f4] ss:$8 sps:$4 sm:$0xff]  }
  0x48   : > { %2114 = vmatpush1.bf16.msra.mxu0 %v2883_v11  ;;  %1943 = vmatprep.subr.bf16.mxu1 %v2888_v12  ;;  %v2975_v11 = vld [vmem:[%s4079_s1 + $0x5f4] ss:$8 sps:$4 sm:$0xff]   ;;  %v2970_v12 = vld [vmem:[%s4079_s1 + $0x1f0] ss:$8 sps:$4 sm:$0xff]  }
  0x49   : > { %2115 = vmatprep.subr.bf16.mxu0 %v2891_v13  ;;  %1973 = vmatprep.mubr.bf16.mxu1 %v2466_v40  ;;  %v2973_v13 = vld [vmem:[%s4079_s1 + $0x5f0] ss:$8 sps:$4 sm:$0xff]   ;;  %v3000_v40 = vld [vmem:[%s4079_s1 + $0x240] ss:$8 sps:$4 sm:$0xff]  }
  0x4a   : > { %2145 = vmatprep.mubr.bf16.mxu0 %v2474_v43  ;;  %v3011_v43 = vld [vmem:[%s4079_s1 + $0x654] ss:$8 sps:$4 sm:$0xff]  }
  0x4b   : > { %1944 = vmatpush1.bf16.msra.mxu1 %v2886_v14  ;;  %v2978_v14 = vld [vmem:[%s4079_s1 + $0x204] ss:$8 sps:$4 sm:$0xff]  }
  0x4c   : > { %2116 = vmatpush1.bf16.msra.mxu0 %v2889_v15  ;;  %1945 = vmatprep.subr.bf16.mxu1 %v2894_v16  ;;  %v2981_v15 = vld [vmem:[%s4079_s1 + $0x604] ss:$8 sps:$4 sm:$0xff]   ;;  %v2465_v16 = vcombine.low %v3507_v36, %v3510_v37  ;;  %v2994_v36 = vld [vmem:[%s4079_s1 + $0x230] ss:$8 sps:$4 sm:$0xff]  }
  0x4d   : > { %2117 = vmatprep.subr.bf16.mxu0 %v2897_v17  ;;  %v2976_v17 = vld [vmem:[%s4079_s1 + $0x200] ss:$8 sps:$4 sm:$0xff]   ;;  %v2997_v37 = vld [vmem:[%s4079_s1 + $0x630] ss:$8 sps:$4 sm:$0xff]  }
  0x4f   : > { %1946 = vmatpush1.bf16.msra.mxu1 %v2892_v18  ;;  %v2473_v18 = vcombine.low %v3521_v41, %v3524_v42  ;;  %v3003_v41 = vld [vmem:[%s4079_s1 + $0x640] ss:$8 sps:$4 sm:$0xff]   ;;  %v3008_v42 = vld [vmem:[%s4079_s1 + $0x254] ss:$8 sps:$4 sm:$0xff]  }
  0x50   : > { %2118 = vmatpush1.bf16.msra.mxu0 %v2895_v19  ;;  %1947 = vmatprep.subr.bf16.mxu1 %v2900_v20  ;;  %v2979_v19 = vld [vmem:[%s4079_s1 + $0x600] ss:$8 sps:$4 sm:$0xff]   ;;  %v2984_v20 = vld [vmem:[%s4079_s1 + $0x214] ss:$8 sps:$4 sm:$0xff]  }
  0x51   : > { %2119 = vmatprep.subr.bf16.mxu0 %v2903_v21  ;;  %v2987_v21 = vld [vmem:[%s4079_s1 + $0x614] ss:$8 sps:$4 sm:$0xff]  }
  0x53   : > { %1948 = vmatpush1.bf16.msra.mxu1 %v2898_v22  ;;  %v2982_v22 = vld [vmem:[%s4079_s1 + $0x210] ss:$8 sps:$4 sm:$0xff]  }
  0x54   : > { %2120 = vmatpush1.bf16.msra.mxu0 %v2901_v23  ;;  %1949 = vmatprep.subr.bf16.mxu1 %v2906_v24  ;;  %v2985_v23 = vld [vmem:[%s4079_s1 + $0x610] ss:$8 sps:$4 sm:$0xff]  }
  0x55   : > { %2121 = vmatprep.subr.bf16.mxu0 %v2909_v25  ;;  %v3659_v24 = vld [vmem:[%s3356_s21 + $0x10] sm:$0xff] }
  0x56   : > { %v3662_v25 = vld [vmem:[%s3356_s21 + $0x50] sm:$0xff] }
  0x57   : > { %1950 = vmatpush1.bf16.msra.mxu1 %v2904_v26  ;;  %v2990_v26 = vld [vmem:[%s4079_s1 + $0x224] ss:$8 sps:$4 sm:$0xff]  }
  0x58   : > { %2122 = vmatpush1.bf16.msra.mxu0 %v2907_v27  ;;  %1951 = vmatprep.subr.bf16.mxu1 %v2912_v28  ;;  %v2993_v27 = vld [vmem:[%s4079_s1 + $0x624] ss:$8 sps:$4 sm:$0xff]   ;;  %v2468_v28 = vcombine.high %v3659_v24, %v3662_v25 }
  0x59   : > { %2123 = vmatprep.subr.bf16.mxu0 %v2915_v29  ;;  %v3673_v29 = vld [vmem:[%s3356_s21 + $0x30] sm:$0xff] }
  0x5b   : > { %1952 = vmatpush1.bf16.msra.mxu1 %v2910_v30  ;;  %v3676_v30 = vld [vmem:[%s3356_s21 + $0x70] sm:$0xff] }
  0x5c   : > { %2124 = vmatpush1.bf16.msra.mxu0 %v2913_v31  ;;  %1953 = vmatprep.subr.bf16.mxu1 %v2918_v32  ;;  %v2476_v31 = vcombine.high %v3673_v29, %v3676_v30  ;;  %v2988_v32 = vld [vmem:[%s4079_s1 + $0x220] ss:$8 sps:$4 sm:$0xff]  }
  0x5d   : > { %2125 = vmatprep.subr.bf16.mxu0 %v2921_v33  ;;  %v2991_v33 = vld [vmem:[%s4079_s1 + $0x620] ss:$8 sps:$4 sm:$0xff]  }
  0x5f   : > { %1954 = vmatpush1.bf16.msra.mxu1 %v2916_v34  ;;  %v2996_v34 = vld [vmem:[%s4079_s1 + $0x234] ss:$8 sps:$4 sm:$0xff]  }
  0x60   : > { %2126 = vmatpush1.bf16.msra.mxu0 %v2919_v35  ;;  %1955 = vmatprep.subr.bf16.mxu1 %v2924_v38  ;;  %v2999_v35 = vld [vmem:[%s4079_s1 + $0x634] ss:$8 sps:$4 sm:$0xff]   ;;  %v3002_v38 = vld [vmem:[%s4079_s1 + $0x244] ss:$8 sps:$4 sm:$0xff]  }
  0x61   : > { %2127 = vmatprep.subr.bf16.mxu0 %v2927_v39  ;;  %v3005_v39 = vld [vmem:[%s4079_s1 + $0x644] ss:$8 sps:$4 sm:$0xff]  }
  0x63   : > { %1956 = vmatpush1.bf16.msra.mxu1 %v2922_v44  ;;  %v3006_v44 = vld [vmem:[%s4079_s1 + $0x250] ss:$8 sps:$4 sm:$0xff]  }
  0x64   : > { %2128 = vmatpush1.bf16.msra.mxu0 %v2925_v45  ;;  %1957 = vmatprep.subr.bf16.mxu1 %v2930_v46  ;;  %v3009_v45 = vld [vmem:[%s4079_s1 + $0x650] ss:$8 sps:$4 sm:$0xff]   ;;  %v3014_v46 = vld [vmem:[%s4079_s1 + $0x264] ss:$8 sps:$4 sm:$0xff]  }
  0x65   : > { %2129 = vmatprep.subr.bf16.mxu0 %v2933_v47  ;;  %v3017_v47 = vld [vmem:[%s4079_s1 + $0x664] ss:$8 sps:$4 sm:$0xff]  }
  0x67   : > { %1958 = vmatpush1.bf16.msra.mxu1 %v2928_v48  ;;  %v3012_v48 = vld [vmem:[%s4079_s1 + $0x260] ss:$8 sps:$4 sm:$0xff]  }
  0x68   : > { %2130 = vmatpush1.bf16.msra.mxu0 %v2931_v49  ;;  %1959 = vmatprep.subr.bf16.mxu1 %v2936_v50  ;;  %v3015_v49 = vld [vmem:[%s4079_s1 + $0x660] ss:$8 sps:$4 sm:$0xff]   ;;  %v3020_v50 = vld [vmem:[%s4079_s1 + $0x274] ss:$8 sps:$4 sm:$0xff]  }
  0x69   : > { %2131 = vmatprep.subr.bf16.mxu0 %v2939_v51  ;;  %v3023_v51 = vld [vmem:[%s4079_s1 + $0x674] ss:$8 sps:$4 sm:$0xff]  }
  0x6b   : > { %1960 = vmatpush1.bf16.msra.mxu1 %v2934_v52  ;;  %v3018_v52 = vld [vmem:[%s4079_s1 + $0x270] ss:$8 sps:$4 sm:$0xff]  }
  0x6c   : > { %2132 = vmatpush1.bf16.msra.mxu0 %v2937_v53  ;;  %1961 = vmatprep.subr.bf16.mxu1 %v2942_v54  ;;  %v3021_v53 = vld [vmem:[%s4079_s1 + $0x670] ss:$8 sps:$4 sm:$0xff]   ;;  %v3026_v54 = vld [vmem:[%s4079_s1 + $0x284] ss:$8 sps:$4 sm:$0xff]  }
  0x6d   : > { %2133 = vmatprep.subr.bf16.mxu0 %v2945_v55  ;;  %v3029_v55 = vld [vmem:[%s4079_s1 + $0x684] ss:$8 sps:$4 sm:$0xff]  }
  0x6f   : > { %1962 = vmatpush1.bf16.msra.mxu1 %v2940_v56  ;;  %v3024_v56 = vld [vmem:[%s4079_s1 + $0x280] ss:$8 sps:$4 sm:$0xff]  }
  0x70   : > { %2134 = vmatpush1.bf16.msra.mxu0 %v2943_v57  ;;  %1963 = vmatprep.subr.bf16.mxu1 %v2948_v58  ;;  %v3027_v57 = vld [vmem:[%s4079_s1 + $0x680] ss:$8 sps:$4 sm:$0xff]   ;;  %v3032_v58 = vld [vmem:[%s4079_s1 + $0x294] ss:$8 sps:$4 sm:$0xff]  }
  0x71   : > { %2135 = vmatprep.subr.bf16.mxu0 %v2951_v59  ;;  %v3035_v59 = vld [vmem:[%s4079_s1 + $0x694] ss:$8 sps:$4 sm:$0xff]  }
  0x73   : > { %1964 = vmatpush1.bf16.msra.mxu1 %v2946_v60  ;;  %v3030_v60 = vld [vmem:[%s4079_s1 + $0x290] ss:$8 sps:$4 sm:$0xff]  }
  0x74   : > { %2136 = vmatpush1.bf16.msra.mxu0 %v2949_v61  ;;  %1965 = vmatprep.subr.bf16.mxu1 %v2954_v62  ;;  %v3033_v61 = vld [vmem:[%s4079_s1 + $0x690] ss:$8 sps:$4 sm:$0xff]   ;;  %v3038_v62 = vld [vmem:[%s4079_s1 + $0x2a4] ss:$8 sps:$4 sm:$0xff]  }
  0x75   : > { %2137 = vmatprep.subr.bf16.mxu0 %v2957_v63  ;;  %v3041_v63 = vld [vmem:[%s4079_s1 + $0x6a4] ss:$8 sps:$4 sm:$0xff]  }
  0x77   : > { %1966 = vmatpush1.bf16.msra.mxu1 %v2952_v0  ;;  %v3036_v0 = vld [vmem:[%s4079_s1 + $0x2a0] ss:$8 sps:$4 sm:$0xff]  }
  0x78   : > { %2138 = vmatpush1.bf16.msra.mxu0 %v2955_v1  ;;  %1967 = vmatprep.subr.bf16.mxu1 %v2960_v2  ;;  %v3039_v1 = vld [vmem:[%s4079_s1 + $0x6a0] ss:$8 sps:$4 sm:$0xff]   ;;  %v3044_v2 = vld [vmem:[%s4079_s1 + $0x2b4] ss:$8 sps:$4 sm:$0xff]  }
  0x79   : > { %2139 = vmatprep.subr.bf16.mxu0 %v2963_v3  ;;  %v3047_v3 = vld [vmem:[%s4079_s1 + $0x6b4] ss:$8 sps:$4 sm:$0xff]  }
  0x7b   : > { %1968 = vmatpush1.bf16.msra.mxu1 %v2958_v4  ;;  %v3042_v4 = vld [vmem:[%s4079_s1 + $0x2b0] ss:$8 sps:$4 sm:$0xff]  }
  0x7c   : > { %2140 = vmatpush1.bf16.msra.mxu0 %v2961_v5  ;;  %1969 = vmatprep.subr.bf16.mxu1 %v2966_v6  ;;  %v3045_v5 = vld [vmem:[%s4079_s1 + $0x6b0] ss:$8 sps:$4 sm:$0xff]   ;;  %v3050_v6 = vld [vmem:[%s4079_s1 + $0x2c4] ss:$8 sps:$4 sm:$0xff]  }
  0x7d   : > { %2141 = vmatprep.subr.bf16.mxu0 %v2969_v7  ;;  %v3053_v7 = vld [vmem:[%s4079_s1 + $0x6c4] ss:$8 sps:$4 sm:$0xff]  }
  0x7f   : > { %1970 = vmatpush1.bf16.msra.mxu1 %v2964_v8  ;;  %v3048_v8 = vld [vmem:[%s4079_s1 + $0x2c0] ss:$8 sps:$4 sm:$0xff]  }
  0x80   : > { %2142 = vmatpush1.bf16.msra.mxu0 %v2967_v9  ;;  %1971 = vmatprep.subr.bf16.mxu1 %v2972_v10  ;;  %v3051_v9 = vld [vmem:[%s4079_s1 + $0x6c0] ss:$8 sps:$4 sm:$0xff]   ;;  %v3056_v10 = vld [vmem:[%s4079_s1 + $0x2d4] ss:$8 sps:$4 sm:$0xff]  }
  0x81   : > { %2143 = vmatprep.subr.bf16.mxu0 %v2975_v11  ;;  %v3059_v11 = vld [vmem:[%s4079_s1 + $0x6d4] ss:$8 sps:$4 sm:$0xff]  }
  0x83   : > { %1972 = vmatpush1.bf16.msra.mxu1 %v2970_v12  ;;  %v3054_v12 = vld [vmem:[%s4079_s1 + $0x2d0] ss:$8 sps:$4 sm:$0xff]  }
  0x84   : > { %2144 = vmatpush1.bf16.msra.mxu0 %v2973_v13  ;;  %1984 = vmatprep.subr.bf16.mxu1 %v2978_v14  ;;  %v3057_v13 = vld [vmem:[%s4079_s1 + $0x6d0] ss:$8 sps:$4 sm:$0xff]   ;;  %v3062_v14 = vld [vmem:[%s4079_s1 + $0x2e4] ss:$8 sps:$4 sm:$0xff]  }
  0x85   : > { %2156 = vmatprep.subr.bf16.mxu0 %v2981_v15  ;;  %v3065_v15 = vld [vmem:[%s4079_s1 + $0x6e4] ss:$8 sps:$4 sm:$0xff]  }
  0x86   : > { %1974 = vmatmul.mubr.bf16.vlgmr.msra.gmra.mrb[0].mxu1 %v2465_v16  ;;  %v3060_v16 = vld [vmem:[%s4079_s1 + $0x2e0] ss:$8 sps:$4 sm:$0xff]  }
  0x87   : > { %2146 = vmatmul.mubr.bf16.vlgmr.msra.gmra.mrb[0].mxu0 %v2473_v18  ;;  %1985 = vmatpush1.bf16.msra.mxu1 %v2976_v17  ;;  %v3063_v17 = vld [vmem:[%s4079_s1 + $0x6e0] ss:$8 sps:$4 sm:$0xff]   ;;  %v3068_v18 = vld [vmem:[%s4079_s1 + $0x2f4] ss:$8 sps:$4 sm:$0xff]  }
  0x88   : > { %2157 = vmatpush1.bf16.msra.mxu0 %v2979_v19  ;;  %1986 = vmatprep.subr.bf16.mxu1 %v2984_v20  ;;  %v3071_v19 = vld [vmem:[%s4079_s1 + $0x6f4] ss:$8 sps:$4 sm:$0xff]   ;;  %v3066_v20 = vld [vmem:[%s4079_s1 + $0x2f0] ss:$8 sps:$4 sm:$0xff]  }
  0x89   : > { %2158 = vmatprep.subr.bf16.mxu0 %v2987_v21  ;;  %2016 = vmatprep.mubr.bf16.mxu1 %v2468_v28  ;;  %v3069_v21 = vld [vmem:[%s4079_s1 + $0x6f0] ss:$8 sps:$4 sm:$0xff]   ;;  %v2475_v28 = vcombine.low %v3673_v29, %v3676_v30 }
  0x8a   : > { %2188 = vmatprep.mubr.bf16.mxu0 %v2476_v31  ;;  %v3856_v31 = vld [vmem:[%s3356_s21 + $0x58] sm:$0xff] }
  0x8b   : > { %1987 = vmatpush1.bf16.msra.mxu1 %v2982_v22  ;;  %v3074_v22 = vld [vmem:[%s4079_s1 + $0x304] ss:$8 sps:$4 sm:$0xff]  }
  0x8c   : > { %2159 = vmatpush1.bf16.msra.mxu0 %v2985_v23  ;;  %1988 = vmatprep.subr.bf16.mxu1 %v2990_v26  ;;  %v3077_v23 = vld [vmem:[%s4079_s1 + $0x704] ss:$8 sps:$4 sm:$0xff]   ;;  %v3849_v26 = vld [vmem:[%s3356_s21 + $0x18] sm:$0xff] }
  0x8d   : > { %2160 = vmatprep.subr.bf16.mxu0 %v2993_v27  ;;  %v2467_v27 = vcombine.low %v3659_v24, %v3662_v25  ;;  %v3080_v24 = vld [vmem:[%s4079_s1 + $0x314] ss:$8 sps:$4 sm:$0xff]   ;;  %v2470_v29 = vcombine.high %v3849_v26, %v3856_v31 }
  0x8e   : > { %v3083_v25 = vld [vmem:[%s4079_s1 + $0x714] ss:$8 sps:$4 sm:$0xff]  }
  0x8f   : > { %1989 = vmatpush1.bf16.msra.mxu1 %v2988_v32  ;;  %v3859_v32 = vld [vmem:[%s3356_s21 + $0x38] sm:$0xff] }
  0x90   : > { %2161 = vmatpush1.bf16.msra.mxu0 %v2991_v33  ;;  %1990 = vmatprep.subr.bf16.mxu1 %v2996_v34  ;;  %v3862_v33 = vld [vmem:[%s3356_s21 + $0x78] sm:$0xff]  ;;  %v3072_v34 = vld [vmem:[%s4079_s1 + $0x300] ss:$8 sps:$4 sm:$0xff]  }
  0x91   : > { %2162 = vmatprep.subr.bf16.mxu0 %v2999_v35  ;;  %v3075_v35 = vld [vmem:[%s4079_s1 + $0x700] ss:$8 sps:$4 sm:$0xff]   ;;  %v2478_v30 = vcombine.high %v3859_v32, %v3862_v33 }
  0x93   : > { %1991 = vmatpush1.bf16.msra.mxu1 %v2994_v36  ;;  %v3078_v36 = vld [vmem:[%s4079_s1 + $0x310] ss:$8 sps:$4 sm:$0xff]  }
  0x94   : > { %2163 = vmatpush1.bf16.msra.mxu0 %v2997_v37  ;;  %1992 = vmatprep.subr.bf16.mxu1 %v3002_v38  ;;  %v3081_v37 = vld [vmem:[%s4079_s1 + $0x710] ss:$8 sps:$4 sm:$0xff]   ;;  %v3086_v38 = vld [vmem:[%s4079_s1 + $0x324] ss:$8 sps:$4 sm:$0xff]  }
  0x95   : > { %2164 = vmatprep.subr.bf16.mxu0 %v3005_v39  ;;  %v3089_v39 = vld [vmem:[%s4079_s1 + $0x724] ss:$8 sps:$4 sm:$0xff]  }
  0x97   : > { %1993 = vmatpush1.bf16.msra.mxu1 %v3000_v40  ;;  %v3084_v40 = vld [vmem:[%s4079_s1 + $0x320] ss:$8 sps:$4 sm:$0xff]  }
  0x98   : > { %2165 = vmatpush1.bf16.msra.mxu0 %v3003_v41  ;;  %1994 = vmatprep.subr.bf16.mxu1 %v3008_v42  ;;  %v3087_v41 = vld [vmem:[%s4079_s1 + $0x720] ss:$8 sps:$4 sm:$0xff]   ;;  %v3092_v42 = vld [vmem:[%s4079_s1 + $0x334] ss:$8 sps:$4 sm:$0xff]  }
  0x99   : > { %2166 = vmatprep.subr.bf16.mxu0 %v3011_v43  ;;  %v3095_v43 = vld [vmem:[%s4079_s1 + $0x734] ss:$8 sps:$4 sm:$0xff]  }
  0x9b   : > { %1995 = vmatpush1.bf16.msra.mxu1 %v3006_v44  ;;  %v3090_v44 = vld [vmem:[%s4079_s1 + $0x330] ss:$8 sps:$4 sm:$0xff]  }
  0x9c   : > { %2167 = vmatpush1.bf16.msra.mxu0 %v3009_v45  ;;  %1996 = vmatprep.subr.bf16.mxu1 %v3014_v46  ;;  %v3093_v45 = vld [vmem:[%s4079_s1 + $0x730] ss:$8 sps:$4 sm:$0xff]   ;;  %v3098_v46 = vld [vmem:[%s4079_s1 + $0x344] ss:$8 sps:$4 sm:$0xff]  }
  0x9d   : > { %2168 = vmatprep.subr.bf16.mxu0 %v3017_v47  ;;  %v3101_v47 = vld [vmem:[%s4079_s1 + $0x744] ss:$8 sps:$4 sm:$0xff]  }
  0x9f   : > { %1997 = vmatpush1.bf16.msra.mxu1 %v3012_v48  ;;  %v3096_v48 = vld [vmem:[%s4079_s1 + $0x340] ss:$8 sps:$4 sm:$0xff]  }
  0xa0   : > { %2169 = vmatpush1.bf16.msra.mxu0 %v3015_v49  ;;  %1998 = vmatprep.subr.bf16.mxu1 %v3020_v50  ;;  %v3099_v49 = vld [vmem:[%s4079_s1 + $0x740] ss:$8 sps:$4 sm:$0xff]   ;;  %v3104_v50 = vld [vmem:[%s4079_s1 + $0x354] ss:$8 sps:$4 sm:$0xff]  }
  0xa1   : > { %2170 = vmatprep.subr.bf16.mxu0 %v3023_v51  ;;  %v3107_v51 = vld [vmem:[%s4079_s1 + $0x754] ss:$8 sps:$4 sm:$0xff]  }
  0xa3   : > { %1999 = vmatpush1.bf16.msra.mxu1 %v3018_v52  ;;  %v3102_v52 = vld [vmem:[%s4079_s1 + $0x350] ss:$8 sps:$4 sm:$0xff]  }
  0xa4   : > { %2171 = vmatpush1.bf16.msra.mxu0 %v3021_v53  ;;  %2000 = vmatprep.subr.bf16.mxu1 %v3026_v54  ;;  %v3105_v53 = vld [vmem:[%s4079_s1 + $0x750] ss:$8 sps:$4 sm:$0xff]   ;;  %v3110_v54 = vld [vmem:[%s4079_s1 + $0x364] ss:$8 sps:$4 sm:$0xff]  }
  0xa5   : > { %2172 = vmatprep.subr.bf16.mxu0 %v3029_v55  ;;  %v3113_v55 = vld [vmem:[%s4079_s1 + $0x764] ss:$8 sps:$4 sm:$0xff]  }
  0xa7   : > { %2001 = vmatpush1.bf16.msra.mxu1 %v3024_v56  ;;  %v3108_v56 = vld [vmem:[%s4079_s1 + $0x360] ss:$8 sps:$4 sm:$0xff]  }
  0xa8   : > { %2173 = vmatpush1.bf16.msra.mxu0 %v3027_v57  ;;  %2002 = vmatprep.subr.bf16.mxu1 %v3032_v58  ;;  %v3111_v57 = vld [vmem:[%s4079_s1 + $0x760] ss:$8 sps:$4 sm:$0xff]   ;;  %v3116_v58 = vld [vmem:[%s4079_s1 + $0x374] ss:$8 sps:$4 sm:$0xff]  }
  0xa9   : > { %2174 = vmatprep.subr.bf16.mxu0 %v3035_v59  ;;  %v3119_v59 = vld [vmem:[%s4079_s1 + $0x774] ss:$8 sps:$4 sm:$0xff]  }
  0xab   : > { %2003 = vmatpush1.bf16.msra.mxu1 %v3030_v60  ;;  %v3114_v60 = vld [vmem:[%s4079_s1 + $0x370] ss:$8 sps:$4 sm:$0xff]  }
  0xac   : > { %2175 = vmatpush1.bf16.msra.mxu0 %v3033_v61  ;;  %2004 = vmatprep.subr.bf16.mxu1 %v3038_v62  ;;  %v3117_v61 = vld [vmem:[%s4079_s1 + $0x770] ss:$8 sps:$4 sm:$0xff]   ;;  %v3122_v62 = vld [vmem:[%s4079_s1 + $0x384] ss:$8 sps:$4 sm:$0xff]  }
  0xad   : > { %2176 = vmatprep.subr.bf16.mxu0 %v3041_v63  ;;  %v3125_v63 = vld [vmem:[%s4079_s1 + $0x784] ss:$8 sps:$4 sm:$0xff]  }
  0xaf   : > { %2005 = vmatpush1.bf16.msra.mxu1 %v3036_v0  ;;  %v3120_v0 = vld [vmem:[%s4079_s1 + $0x380] ss:$8 sps:$4 sm:$0xff]  }
  0xb0   : > { %2177 = vmatpush1.bf16.msra.mxu0 %v3039_v1  ;;  %2006 = vmatprep.subr.bf16.mxu1 %v3044_v2  ;;  %v3123_v1 = vld [vmem:[%s4079_s1 + $0x780] ss:$8 sps:$4 sm:$0xff]   ;;  %v3128_v2 = vld [vmem:[%s4079_s1 + $0x394] ss:$8 sps:$4 sm:$0xff]  }
  0xb1   : > { %2178 = vmatprep.subr.bf16.mxu0 %v3047_v3  ;;  %v3131_v3 = vld [vmem:[%s4079_s1 + $0x794] ss:$8 sps:$4 sm:$0xff]  }
  0xb3   : > { %2007 = vmatpush1.bf16.msra.mxu1 %v3042_v4  ;;  %v3126_v4 = vld [vmem:[%s4079_s1 + $0x390] ss:$8 sps:$4 sm:$0xff]  }
  0xb4   : > { %2179 = vmatpush1.bf16.msra.mxu0 %v3045_v5  ;;  %2008 = vmatprep.subr.bf16.mxu1 %v3050_v6  ;;  %v3129_v5 = vld [vmem:[%s4079_s1 + $0x790] ss:$8 sps:$4 sm:$0xff]   ;;  %v3134_v6 = vld [vmem:[%s4079_s1 + $0x3a4] ss:$8 sps:$4 sm:$0xff]  }
  0xb5   : > { %2180 = vmatprep.subr.bf16.mxu0 %v3053_v7  ;;  %v3137_v7 = vld [vmem:[%s4079_s1 + $0x7a4] ss:$8 sps:$4 sm:$0xff]  }
  0xb7   : > { %2009 = vmatpush1.bf16.msra.mxu1 %v3048_v8  ;;  %v3132_v8 = vld [vmem:[%s4079_s1 + $0x3a0] ss:$8 sps:$4 sm:$0xff]  }
  0xb8   : > { %2181 = vmatpush1.bf16.msra.mxu0 %v3051_v9  ;;  %2010 = vmatprep.subr.bf16.mxu1 %v3056_v10  ;;  %v3135_v9 = vld [vmem:[%s4079_s1 + $0x7a0] ss:$8 sps:$4 sm:$0xff]   ;;  %v3140_v10 = vld [vmem:[%s4079_s1 + $0x3b4] ss:$8 sps:$4 sm:$0xff]  }
  0xb9   : > { %2182 = vmatprep.subr.bf16.mxu0 %v3059_v11  ;;  %v3143_v11 = vld [vmem:[%s4079_s1 + $0x7b4] ss:$8 sps:$4 sm:$0xff]  }
  0xbb   : > { %2011 = vmatpush1.bf16.msra.mxu1 %v3054_v12  ;;  %v3138_v12 = vld [vmem:[%s4079_s1 + $0x3b0] ss:$8 sps:$4 sm:$0xff]  }
  0xbc   : > { %2183 = vmatpush1.bf16.msra.mxu0 %v3057_v13  ;;  %2012 = vmatprep.subr.bf16.mxu1 %v3062_v14  ;;  %v3141_v13 = vld [vmem:[%s4079_s1 + $0x7b0] ss:$8 sps:$4 sm:$0xff]   ;;  %v3146_v14 = vld [vmem:[%s4079_s1 + $0x3c4] ss:$8 sps:$4 sm:$0xff]  }
  0xbd   : > { %2184 = vmatprep.subr.bf16.mxu0 %v3065_v15  ;;  %v3149_v15 = vld [vmem:[%s4079_s1 + $0x7c4] ss:$8 sps:$4 sm:$0xff]  }
  0xbf   : > { %2013 = vmatpush1.bf16.msra.mxu1 %v3060_v16  ;;  %v3144_v16 = vld [vmem:[%s4079_s1 + $0x3c0] ss:$8 sps:$4 sm:$0xff]  }
  0xc0   : > { %2185 = vmatpush1.bf16.msra.mxu0 %v3063_v17  ;;  %2014 = vmatprep.subr.bf16.mxu1 %v3068_v18  ;;  %v3147_v17 = vld [vmem:[%s4079_s1 + $0x7c0] ss:$8 sps:$4 sm:$0xff]   ;;  %v3152_v18 = vld [vmem:[%s4079_s1 + $0x3d4] ss:$8 sps:$4 sm:$0xff]  }
  0xc1   : > { %2186 = vmatprep.subr.bf16.mxu0 %v3071_v19  ;;  %v3155_v19 = vld [vmem:[%s4079_s1 + $0x7d4] ss:$8 sps:$4 sm:$0xff]  }
  0xc3   : > { %2015 = vmatpush1.bf16.msra.mxu1 %v3066_v20  ;;  %v3150_v20 = vld [vmem:[%s4079_s1 + $0x3d0] ss:$8 sps:$4 sm:$0xff]  }
  0xc4   : > { %2187 = vmatpush1.bf16.msra.mxu0 %v3069_v21  ;;  %2027 = vmatprep.subr.bf16.mxu1 %v3074_v22  ;;  %v3153_v21 = vld [vmem:[%s4079_s1 + $0x7d0] ss:$8 sps:$4 sm:$0xff]   ;;  %v3158_v22 = vld [vmem:[%s4079_s1 + $0x3e4] ss:$8 sps:$4 sm:$0xff]  }
  0xc5   : > { %2199 = vmatprep.subr.bf16.mxu0 %v3077_v23  ;;  %v3161_v23 = vld [vmem:[%s4079_s1 + $0x7e4] ss:$8 sps:$4 sm:$0xff]  }
  0xc6   : > { %2017 = vmatmul.mubr.bf16.vlgmr.msra.gmra.mrb[0].mxu1 %v2467_v27  ;;  %v3156_v27 = vld [vmem:[%s4079_s1 + $0x3e0] ss:$8 sps:$4 sm:$0xff]  }
  0xc7   : > { %2189 = vmatmul.mubr.bf16.vlgmr.msra.gmra.mrb[0].mxu0 %v2475_v28  ;;  %2028 = vmatpush1.bf16.msra.mxu1 %v3072_v34  ;;  %v3159_v28 = vld [vmem:[%s4079_s1 + $0x7e0] ss:$8 sps:$4 sm:$0xff]   ;;  %v3164_v34 = vld [vmem:[%s4079_s1 + $0x3f4] ss:$8 sps:$4 sm:$0xff]  }
  0xc8   : > { %2200 = vmatpush1.bf16.msra.mxu0 %v3075_v35  ;;  %2029 = vmatprep.subr.bf16.mxu1 %v3080_v24  ;;  %v3167_v35 = vld [vmem:[%s4079_s1 + $0x7f4] ss:$8 sps:$4 sm:$0xff]   ;;  %v3162_v24 = vld [vmem:[%s4079_s1 + $0x3f0] ss:$8 sps:$4 sm:$0xff]  }
  0xc9   : > { %2201 = vmatprep.subr.bf16.mxu0 %v3083_v25  ;;  %2059 = vmatprep.mubr.bf16.mxu1 %v2470_v29  ;;  %v3165_v25 = vld [vmem:[%s4079_s1 + $0x7f0] ss:$8 sps:$4 sm:$0xff]   ;;  %v2469_v29 = vcombine.low %v3849_v26, %v3856_v31 }
  0xca   : > { %2231 = vmatprep.mubr.bf16.mxu0 %v2478_v30  ;;  %v2477_v30 = vcombine.low %v3859_v32, %v3862_v33 }
  0xcb   : > { %2030 = vmatpush1.bf16.msra.mxu1 %v3078_v36  ;;  %v528_v36 = vlaneseq }
  0xcc   : > { %2202 = vmatpush1.bf16.msra.mxu0 %v3081_v37  ;;  %2031 = vmatprep.subr.bf16.mxu1 %v3086_v38 }
  0xcd   : > { %2203 = vmatprep.subr.bf16.mxu0 %v3089_v39  ;;  %v529_v37 = vshrl.u32 %v528_v36, 7  ;;  %v526_v39 = vld [vmem:[%s4080_s2] sm:$0x3]  ;;  %vm2276_vm0 = vcmp.lt.s32.totalorder %v528_v36, 256 }
  0xcf   : > { %2032 = vmatpush1.bf16.msra.mxu1 %v3084_v40  ;;  %v530_v38 = vsub.s32 0, %v529_v37  ;;  %v534_v40 = vsub.s32 1, %v529_v37 }
  0xd0   : > { %2204 = vmatpush1.bf16.msra.mxu0 %v3087_v41  ;;  %2033 = vmatprep.subr.bf16.mxu1 %v3092_v42 }
  0xd1   : > { %2205 = vmatprep.subr.bf16.mxu0 %v3095_v43  ;;  %v531_v41 = vrot.slane %v526_v39, %v530_v38  ;;  %v535_v42 = vrot.slane %v526_v39, %v534_v40 }
  0xd3   : > { %2034 = vmatpush1.bf16.msra.mxu1 %v3090_v44 }
  0xd4   : > { %2206 = vmatpush1.bf16.msra.mxu0 %v3093_v45  ;;  %2035 = vmatprep.subr.bf16.mxu1 %v3098_v46 }
  0xd5   : > { %2207 = vmatprep.subr.bf16.mxu0 %v3101_v47 }
  0xd7   : > { %2036 = vmatpush1.bf16.msra.mxu1 %v3096_v48 }
  0xd8   : > { %2208 = vmatpush1.bf16.msra.mxu0 %v3099_v49  ;;  %2037 = vmatprep.subr.bf16.mxu1 %v3104_v50 }
  0xd9   : > { %2209 = vmatprep.subr.bf16.mxu0 %v3107_v51 }
  0xdb   : > { %2038 = vmatpush1.bf16.msra.mxu1 %v3102_v52 }
  0xdc   : > { %2210 = vmatpush1.bf16.msra.mxu0 %v3105_v53  ;;  %2039 = vmatprep.subr.bf16.mxu1 %v3110_v54 }
  0xdd   : > { %2211 = vmatprep.subr.bf16.mxu0 %v3113_v55 }
  0xdf   : > { %2040 = vmatpush1.bf16.msra.mxu1 %v3108_v56 }
  0xe0   : > { %2212 = vmatpush1.bf16.msra.mxu0 %v3111_v57  ;;  %2041 = vmatprep.subr.bf16.mxu1 %v3116_v58 }
  0xe1   : > { %2213 = vmatprep.subr.bf16.mxu0 %v3119_v59 }
  0xe3   : > { %2042 = vmatpush1.bf16.msra.mxu1 %v3114_v60 }
  0xe4   : > { %2214 = vmatpush1.bf16.msra.mxu0 %v3117_v61  ;;  %2043 = vmatprep.subr.bf16.mxu1 %v3122_v62 }
  0xe5   : > { %2215 = vmatprep.subr.bf16.mxu0 %v3125_v63 }
  0xe7   : > { %2044 = vmatpush1.bf16.msra.mxu1 %v3120_v0 }
  0xe8   : > { %2216 = vmatpush1.bf16.msra.mxu0 %v3123_v1  ;;  %2045 = vmatprep.subr.bf16.mxu1 %v3128_v2 }
  0xe9   : > { %2217 = vmatprep.subr.bf16.mxu0 %v3131_v3 }
  0xeb   : > { %2046 = vmatpush1.bf16.msra.mxu1 %v3126_v4 }
  0xec   : > { %2218 = vmatpush1.bf16.msra.mxu0 %v3129_v5  ;;  %2047 = vmatprep.subr.bf16.mxu1 %v3134_v6  ;;  %v3176_v5 = vmov 1966171168  }
  0xed   : > { %2219 = vmatprep.subr.bf16.mxu0 %v3137_v7  ;;  %v2260_v6 = vunpack.c.l.s4 %v3176_v5 }
  0xef   : > { %2048 = vmatpush1.bf16.msra.mxu1 %v3132_v8 }
  0xf0   : > { %2220 = vmatpush1.bf16.msra.mxu0 %v3135_v9  ;;  %2049 = vmatprep.subr.bf16.mxu1 %v3140_v10 }
  0xf1   : > { %2221 = vmatprep.subr.bf16.mxu0 %v3143_v11 }
  0xf3   : > { %2050 = vmatpush1.bf16.msra.mxu1 %v3138_v12 }
  0xf4   : > { %2222 = vmatpush1.bf16.msra.mxu0 %v3141_v13  ;;  %2051 = vmatprep.subr.bf16.mxu1 %v3146_v14 }
  0xf5   : > { %2223 = vmatprep.subr.bf16.mxu0 %v3149_v15  ;;  %v2261_v15 = vunpack.c.0.s8 %v2260_v6 }
  0xf7   : > { %2052 = vmatpush1.bf16.msra.mxu1 %v3144_v16 }
  0xf8   : > { %2224 = vmatpush1.bf16.msra.mxu0 %v3147_v17  ;;  %2053 = vmatprep.subr.bf16.mxu1 %v3152_v18 }
  0xf9   : > { %2225 = vmatprep.subr.bf16.mxu0 %v3155_v19 }
  0xfb   : > { %2054 = vmatpush1.bf16.msra.mxu1 %v3150_v20 }
  0xfc   : > { %2226 = vmatpush1.bf16.msra.mxu0 %v3153_v21  ;;  %2055 = vmatprep.subr.bf16.mxu1 %v3158_v22 }
  0xfd   : > { %2227 = vmatprep.subr.bf16.mxu0 %v3161_v23 }
  0xff   : > { %2056 = vmatpush1.bf16.msra.mxu1 %v3156_v27  ;;  %v2264_v27 = vsub.s32 %v2261_v15, %v529_v37 }
 0x100   : > { %2228 = vmatpush1.bf16.msra.mxu0 %v3159_v28  ;;  %2057 = vmatprep.subr.bf16.mxu1 %v3164_v34 }
 0x101   : > { %2229 = vmatprep.subr.bf16.mxu0 %v3167_v35 }
 0x103   : > { %2058 = vmatpush1.bf16.msra.mxu1 %v3162_v24 }
 0x104   : > { %2230 = vmatpush1.bf16.msra.mxu0 %v3165_v25 }
 0x106   : > { %2060 = vmatmul.mubr.bf16.vlgmr.msra.gmra.mrb[0].mxu1 %v2469_v29 }
 0x107   : > { %2232 = vmatmul.mubr.bf16.vlgmr.msra.gmra.mrb[0].mxu0 %v2477_v30 }
 0x1d9   : > { %v2061_v26 = vpop.f32.mrb[0].mxu1 }
 0x1da   : > { %v2233_v31 = vpop.f32.mrb[0].mxu0  ;;  %v2743_v43 = vadd.f32 %v2061_v26, %v531_v41  ;;  %v2063_v32 = vpop.f32.mrb[1].mxu1 }
 0x1db   : > { %v2235_v33 = vpop.f32.mrb[1].mxu0  ;;  %v2745_v44 = vadd.f32 %v2063_v32, %v535_v42  ;;  %v2065_v45 = vpop.f32.mrb[2].mxu1 }
 0x1dc   : > { %v2237_v46 = vpop.f32.mrb[2].mxu0  ;;  %v2744_v47 = vadd.f32 %v2743_v43, %v2233_v31  ;;  %v2747_v48 = vadd.f32 %v2065_v45, %v531_v41  ;;  %v2067_v49 = vpop.f32.mrb[3].mxu1 }
 0x1dd   : > { %v2239_v50 = vpop.f32.mrb[3].mxu0  ;;  %v2746_v51 = vadd.f32 %v2745_v44, %v2235_v33  ;;  %v2749_v52 = vadd.f32 %v2067_v49, %v535_v42 }
 0x1de   : > { %v2748_v53 = vadd.f32 %v2747_v48, %v2237_v46  ;;  %v2279_v56 = vmul.f32 %v2744_v47, %v2744_v47 }
 0x1df   : > { %v2741_v54 = vpack.c.bf16 %v2746_v51, %v2744_v47  ;;  %v2750_v55 = vadd.f32 %v2749_v52, %v2239_v50  ;;  %v2280_v59 = vmul.f32 %v2746_v51, %v2746_v51 }
 0x1e0   : > { %v2242_v57 = vadd.f32 %v2748_v53, %v2744_v47  ;;  %v2281_v58 = vmul.f32 %v2748_v53, %v2748_v53 }
 0x1e1   : > { %2328 = vst [vmem:[%s244_s25] sm:$0xff] %v2741_v54  ;;  %v2249_v60 = vadd.f32 %v2750_v55, %v2746_v51  ;;  %v2282_v61 = vmul.f32 %v2750_v55, %v2750_v55  ;;  %v2742_v62 = vpack.c.bf16 %v2750_v55, %v2748_v53 }
 0x1e2   : > { %v2243_v63 = vrot.slane %v2242_v57, 4  ;;  %v2283_v0 = vadd.f32 %v2281_v58, %v2279_v56 }
 0x1e3   : > { %v2250_v1 = vrot.slane %v2249_v60, 4  ;;  %v2290_v2 = vadd.f32 %v2282_v61, %v2280_v59  ;;  %2329 = vst [vmem:[%s244_s25 + $0x8] sm:$0xff] %v2742_v62 }
 0x1e4   : > { %v2244_v3 = vadd.f32 %v2243_v63, %v2242_v57  ;;  %v2284_v4 = vrot.slane %v2283_v0, 4 }
 0x1e5   : > { %v2251_v7 = vadd.f32 %v2250_v1, %v2249_v60  ;;  %v2291_v8 = vrot.slane %v2290_v2, 4 }
 0x1e6   : > { %v2245_v9 = vrot.slane %v2244_v3, 2  ;;  %v2285_v10 = vadd.f32 %v2284_v4, %v2283_v0 }
 0x1e7   : > { %v2252_v11 = vrot.slane %v2251_v7, 2  ;;  %v2292_v12 = vadd.f32 %v2291_v8, %v2290_v2 }
 0x1e8   : > { %v2246_v13 = vadd.f32 %v2245_v9, %v2244_v3  ;;  %v2286_v14 = vrot.slane %v2285_v10, 2 }
 0x1e9   : > { %v2253_v16 = vadd.f32 %v2252_v11, %v2251_v7  ;;  %v2293_v17 = vrot.slane %v2292_v12, 2 }
 0x1ea   : > { %v2247_v18 = vrot.slane %v2246_v13, 1  ;;  %v2287_v19 = vadd.f32 %v2286_v14, %v2285_v10 }
 0x1eb   : > { %v2254_v20 = vrot.slane %v2253_v16, 1  ;;  %v2294_v21 = vadd.f32 %v2293_v17, %v2292_v12 }
 0x1ec   : > { %v2248_v22 = vadd.f32 %v2247_v18, %v2246_v13  ;;  %v2288_v23 = vrot.slane %v2287_v19, 1 }
 0x1ed   : > { %v2255_v28 = vadd.f32 %v2254_v20, %v2253_v16  ;;  %v2295_v34 = vrot.slane %v2294_v21, 1 }
 0x1ee   : > { %v2289_v35 = vadd.f32 %v2288_v23, %v2287_v19 }
 0x1ef   : > { %v2258_v24 = vcombine.low %v2248_v22, %v2255_v28  ;;  %v2296_v25 = vadd.f32 %v2295_v34, %v2294_v21 }
 0x1f1   : > { %v2265_v29 = vrot.slane %v2258_v24, %v2264_v27  ;;  %v2299_v30 = vcombine.low %v2289_v35, %v2296_v25 }
 0x1f3   : > { %v2272_v38 = vrot.slane %v2265_v29, %v2264_v27  ;;  %v2306_v39 = vrot.slane %v2299_v30, %v2264_v27 }
 0x1f5   : > { %2278 = vst.msk [vmem:[%s249_s28] sm:$0x3] %vm2276_vm0, %v2272_v38  ;;  %v2313_v37 = vrot.slane %v2306_v39, %v2264_v27 }
 0x1f7   : > { %2315 = vst.msk [vmem:[%s253_s6] sm:$0x3] %vm2276_vm0, %v2313_v37 }
 0x1f8 PF: > { %s16_s18 = sadd.s32 1, %s3174_s18  }
 0x1f9   : > { %p13_p5 = scmp.ge.s32.totalorder %s16_s18, 4  }
 0x1fb   :  { %15 = sbr.rel (!%p13_p5) target bundleno = 1 (0x1), region = 86 }

// kernel: advanced_colorizer_forward.21
= control target key start
LH: loop header
LB: loop body
LE: loop exit
PB: predicated region body
PF: predicated region fallthrough
CT: control target
= control target key end

     0   :  { %s3566_s18 = smov 0   ;;  %s4487_s0 = inlined_call_operand.vmem [shape: bf16[32,2304], index: 0, kind: input, shape index: {}]   ;;  %s4488_s1 = inlined_call_operand.vmem [shape: bf16[2304,256], index: 1, kind: input, shape index: {}]   ;;  %s4489_s2 = inlined_call_operand.vmem [shape: f32[1,256], index: 2, kind: input, shape index: {}]   ;;  %s4490_s3 = inlined_call_operand.vmem [shape: bf16[32,256], index: 3, kind: output, shape index: {0}]   ;;  %s4491_s4 = inlined_call_operand.vmem [shape: f32[2,1,256], index: 4, kind: output, shape index: {1}]   ;;  %s4492_s5 = inlined_call_operand.vmem [shape: f32[2,1,256], index: 5, kind: output, shape index: {2}]  }
   0x1 LB: > { %s3572_s19 = sadd.s32 4294967295, %s3533_s18   ;;  %p2701_p0 = scmp.ge.s32.totalorder %s3533_s18, 1  ;;  %s3533_s18 = sphi %s3566_s18, %s16_s18  }
   0x2   : > { %p194_p1 = scmp.lt.s32.totalorder %s3533_s18, 3 }
   0x4   : > { %p195_p2 = pnand %p2701_p0, %p194_p1 }
   0x5   : > { %v3068_v0 = vld [vmem:[%s4488_s1 + $0x4] ss:$8 sps:$4 sm:$0xff] (!%p195_p2)   ;;  %v3072_v2 = vld [vmem:[%s4488_s1] ss:$8 sps:$4 sm:$0xff] (!%p195_p2)   ;;  %v3074_v4 = vld [vmem:[%s4488_s1 + $0x14] ss:$8 sps:$4 sm:$0xff] (!%p195_p2)  }
   0x6   : > { %198 = sbr.rel (%p195_p2) target bundleno = 567 (0x237), region = 32  ;;  %v3070_v1 = vld [vmem:[%s4488_s1 + $0x404] ss:$8 sps:$4 sm:$0xff] (!%p195_p2)   ;;  %2102 = vmatprep.subr.bf16.mxu1 (!%p195_p2), %v3068_v0  ;;  %v3073_v3 = vld [vmem:[%s4488_s1 + $0x400] ss:$8 sps:$4 sm:$0xff] (!%p195_p2)   ;;  %s2702_s9 = sshll.u32 (!%p195_p2), %s3572_s19, 1 }
   0x7   : > { %2274 = vmatprep.subr.bf16.mxu0 (!%p195_p2), %v3070_v1  ;;  %2103 = vmatpush1.bf16.msra.mxu1 (!%p195_p2), %v3072_v2  ;;  %v3076_v5 = vld [vmem:[%s4488_s1 + $0x414] ss:$8 sps:$4 sm:$0xff] (!%p195_p2)   ;;  %v3078_v6 = vld [vmem:[%s4488_s1 + $0x10] ss:$8 sps:$4 sm:$0xff] (!%p195_p2)   ;;  %v3080_v8 = vld [vmem:[%s4488_s1 + $0x24] ss:$8 sps:$4 sm:$0xff] (!%p195_p2)  }
   0x8   : > { %2275 = vmatpush1.bf16.msra.mxu0 (!%p195_p2), %v3073_v3  ;;  %2104 = vmatprep.subr.bf16.mxu1 (!%p195_p2), %v3074_v4  ;;  %v3079_v7 = vld [vmem:[%s4488_s1 + $0x410] ss:$8 sps:$4 sm:$0xff] (!%p195_p2)   ;;  %v3082_v9 = vld [vmem:[%s4488_s1 + $0x424] ss:$8 sps:$4 sm:$0xff] (!%p195_p2)   ;;  %v3084_v10 = vld [vmem:[%s4488_s1 + $0x20] ss:$8 sps:$4 sm:$0xff] (!%p195_p2)  }
   0x9   : > { %2276 = vmatprep.subr.bf16.mxu0 (!%p195_p2), %v3076_v5  ;;  %v3085_v11 = vld [vmem:[%s4488_s1 + $0x420] ss:$8 sps:$4 sm:$0xff] (!%p195_p2)   ;;  %v3086_v12 = vld [vmem:[%s4488_s1 + $0x34] ss:$8 sps:$4 sm:$0xff] (!%p195_p2)   ;;  %v3090_v14 = vld [vmem:[%s4488_s1 + $0x30] ss:$8 sps:$4 sm:$0xff] (!%p195_p2)  }
   0xa   : > { %v3088_v13 = vld [vmem:[%s4488_s1 + $0x434] ss:$8 sps:$4 sm:$0xff] (!%p195_p2)   ;;  %v3091_v15 = vld [vmem:[%s4488_s1 + $0x430] ss:$8 sps:$4 sm:$0xff] (!%p195_p2)   ;;  %v3092_v16 = vld [vmem:[%s4488_s1 + $0x44] ss:$8 sps:$4 sm:$0xff] (!%p195_p2)  }
   0xb   : > { %2105 = vmatpush1.bf16.msra.mxu1 (!%p195_p2), %v3078_v6  ;;  %v3094_v17 = vld [vmem:[%s4488_s1 + $0x444] ss:$8 sps:$4 sm:$0xff] (!%p195_p2)   ;;  %v3096_v18 = vld [vmem:[%s4488_s1 + $0x40] ss:$8 sps:$4 sm:$0xff] (!%p195_p2)   ;;  %v3098_v20 = vld [vmem:[%s4488_s1 + $0x54] ss:$8 sps:$4 sm:$0xff] (!%p195_p2)  }
   0xc   : > { %2277 = vmatpush1.bf16.msra.mxu0 (!%p195_p2), %v3079_v7  ;;  %2106 = vmatprep.subr.bf16.mxu1 (!%p195_p2), %v3080_v8  ;;  %v3097_v19 = vld [vmem:[%s4488_s1 + $0x440] ss:$8 sps:$4 sm:$0xff] (!%p195_p2)   ;;  %v3100_v21 = vld [vmem:[%s4488_s1 + $0x454] ss:$8 sps:$4 sm:$0xff] (!%p195_p2)   ;;  %v3102_v22 = vld [vmem:[%s4488_s1 + $0x50] ss:$8 sps:$4 sm:$0xff] (!%p195_p2)  }
   0xd   : > { %2278 = vmatprep.subr.bf16.mxu0 %v3082_v9  ;;  %v3103_v23 = vld [vmem:[%s4488_s1 + $0x450] ss:$8 sps:$4 sm:$0xff]   ;;  %v3104_v24 = vld [vmem:[%s4488_s1 + $0x64] ss:$8 sps:$4 sm:$0xff]   ;;  %v3108_v26 = vld [vmem:[%s4488_s1 + $0x60] ss:$8 sps:$4 sm:$0xff]  }
   0xe   : > { %v3106_v25 = vld [vmem:[%s4488_s1 + $0x464] ss:$8 sps:$4 sm:$0xff]   ;;  %v3109_v27 = vld [vmem:[%s4488_s1 + $0x460] ss:$8 sps:$4 sm:$0xff]   ;;  %v3110_v28 = vld [vmem:[%s4488_s1 + $0x74] ss:$8 sps:$4 sm:$0xff]  }
   0xf   : > { %2107 = vmatpush1.bf16.msra.mxu1 %v3084_v10  ;;  %v3112_v29 = vld [vmem:[%s4488_s1 + $0x474] ss:$8 sps:$4 sm:$0xff]   ;;  %v3114_v30 = vld [vmem:[%s4488_s1 + $0x70] ss:$8 sps:$4 sm:$0xff]   ;;  %v3116_v32 = vld [vmem:[%s4488_s1 + $0x84] ss:$8 sps:$4 sm:$0xff]  }
  0x10   : > { %2279 = vmatpush1.bf16.msra.mxu0 %v3085_v11  ;;  %2108 = vmatprep.subr.bf16.mxu1 %v3086_v12  ;;  %v3115_v31 = vld [vmem:[%s4488_s1 + $0x470] ss:$8 sps:$4 sm:$0xff]   ;;  %p233_p3 = scmp.lt.s32.totalorder %s2702_s9, 3  ;;  %v3118_v33 = vld [vmem:[%s4488_s1 + $0x484] ss:$8 sps:$4 sm:$0xff]   ;;  %p246_p4 = scmp.lt.s32.totalorder %s3572_s19, 1 }
  0x11   : > { %2280 = vmatprep.subr.bf16.mxu0 %v3088_v13  ;;  %v3120_v34 = vld [vmem:[%s4488_s1 + $0x80] ss:$8 sps:$4 sm:$0xff]   ;;  %v3122_v36 = vld [vmem:[%s4488_s1 + $0x94] ss:$8 sps:$4 sm:$0xff]   ;;  %v3126_v38 = vld [vmem:[%s4488_s1 + $0x90] ss:$8 sps:$4 sm:$0xff]  }
  0x12   : > { %v3121_v35 = vld [vmem:[%s4488_s1 + $0x480] ss:$8 sps:$4 sm:$0xff]   ;;  %s4494_s9 = smov (!%p233_p3, %s2702_s9), 3  ;;  %v3124_v37 = vld [vmem:[%s4488_s1 + $0x494] ss:$8 sps:$4 sm:$0xff]   ;;  %s4496_s19 = smov (!%p246_p4, %s3572_s19), 1 }
  0x13   : > { %2109 = vmatpush1.bf16.msra.mxu1 %v3090_v14  ;;  %v3127_v39 = vld [vmem:[%s4488_s1 + $0x490] ss:$8 sps:$4 sm:$0xff]   ;;  %v3128_v40 = vld [vmem:[%s4488_s1 + $0xa4] ss:$8 sps:$4 sm:$0xff]   ;;  %s3058_s10 = smul.u32 72, %s4494_s9 }
  0x14   : > { %2281 = vmatpush1.bf16.msra.mxu0 %v3091_v15  ;;  %2110 = vmatprep.subr.bf16.mxu1 %v3092_v16  ;;  %v3130_v41 = vld [vmem:[%s4488_s1 + $0x4a4] ss:$8 sps:$4 sm:$0xff]   ;;  %v3132_v42 = vld [vmem:[%s4488_s1 + $0xa0] ss:$8 sps:$4 sm:$0xff]   ;;  %v3134_v44 = vld [vmem:[%s4488_s1 + $0xb4] ss:$8 sps:$4 sm:$0xff]  }
  0x15   : > { %2282 = vmatprep.subr.bf16.mxu0 %v3094_v17  ;;  %v3133_v43 = vld [vmem:[%s4488_s1 + $0x4a0] ss:$8 sps:$4 sm:$0xff]   ;;  %s3718_s23 = scalar_lea.vmem %s4487_s0, %s3058_s10  ;;  %v3136_v45 = vld [vmem:[%s4488_s1 + $0x4b4] ss:$8 sps:$4 sm:$0xff]   ;;  %v3138_v46 = vld [vmem:[%s4488_s1 + $0xb0] ss:$8 sps:$4 sm:$0xff]  }
  0x16   : > { %v3139_v47 = vld [vmem:[%s4488_s1 + $0x4b0] ss:$8 sps:$4 sm:$0xff]   ;;  %v3166_v48 = vld [vmem:[%s3718_s23 + $0x4] ss:$72 sps:$4 sm:$0xff]   ;;  %v3144_v52 = vld [vmem:[%s4488_s1 + $0xc0] ss:$8 sps:$4 sm:$0xff]  }
  0x17   : > { %2111 = vmatpush1.bf16.msra.mxu1 %v3096_v18  ;;  %v3140_v49 = vld [vmem:[%s4488_s1 + $0xc4] ss:$8 sps:$4 sm:$0xff]   ;;  %2134 = vmatprep.mubr.bf16.mxu1 %v3166_v48  ;;  %v3145_v53 = vld [vmem:[%s4488_s1 + $0x4c0] ss:$8 sps:$4 sm:$0xff]   ;;  %v3146_v54 = vld [vmem:[%s4488_s1 + $0xd4] ss:$8 sps:$4 sm:$0xff]  }
  0x18   : > { %2283 = vmatpush1.bf16.msra.mxu0 %v3097_v19  ;;  %2112 = vmatprep.subr.bf16.mxu1 %v3098_v20  ;;  %v3142_v50 = vld [vmem:[%s4488_s1 + $0x4c4] ss:$8 sps:$4 sm:$0xff]   ;;  %v3148_v55 = vld [vmem:[%s4488_s1 + $0x4d4] ss:$8 sps:$4 sm:$0xff]   ;;  %v3150_v56 = vld [vmem:[%s4488_s1 + $0xd0] ss:$8 sps:$4 sm:$0xff]  }
  0x19   : > { %2284 = vmatprep.subr.bf16.mxu0 %v3100_v21  ;;  %v3172_v51 = vld [vmem:[%s3718_s23 + $0x24] ss:$72 sps:$4 sm:$0xff]   ;;  %v3151_v57 = vld [vmem:[%s4488_s1 + $0x4d0] ss:$8 sps:$4 sm:$0xff]   ;;  %v3156_v60 = vld [vmem:[%s4488_s1 + $0xe0] ss:$8 sps:$4 sm:$0xff]  }
  0x1a   : > { %2306 = vmatprep.mubr.bf16.mxu0 %v3172_v51  ;;  %v3152_v58 = vld [vmem:[%s4488_s1 + $0xe4] ss:$8 sps:$4 sm:$0xff]   ;;  %v3157_v61 = vld [vmem:[%s4488_s1 + $0x4e0] ss:$8 sps:$4 sm:$0xff]   ;;  %v3158_v62 = vld [vmem:[%s4488_s1 + $0xf4] ss:$8 sps:$4 sm:$0xff]  }
  0x1b   : > { %2113 = vmatpush1.bf16.msra.mxu1 %v3102_v22  ;;  %v3154_v59 = vld [vmem:[%s4488_s1 + $0x4e4] ss:$8 sps:$4 sm:$0xff]   ;;  %v3160_v63 = vld [vmem:[%s4488_s1 + $0x4f4] ss:$8 sps:$4 sm:$0xff]   ;;  %v3162_v0 = vld [vmem:[%s4488_s1 + $0xf0] ss:$8 sps:$4 sm:$0xff]  }
  0x1c   : > { %2285 = vmatpush1.bf16.msra.mxu0 %v3103_v23  ;;  %2114 = vmatprep.subr.bf16.mxu1 %v3104_v24  ;;  %v3163_v1 = vld [vmem:[%s4488_s1 + $0x4f0] ss:$8 sps:$4 sm:$0xff]   ;;  %v3169_v2 = vld [vmem:[%s4488_s1 + $0x104] ss:$8 sps:$4 sm:$0xff]   ;;  %v3164_v4 = vld [vmem:[%s3718_s23] ss:$72 sps:$4 sm:$0xff]  }
  0x1d   : > { %2286 = vmatprep.subr.bf16.mxu0 %v3106_v25  ;;  %v3175_v3 = vld [vmem:[%s4488_s1 + $0x504] ss:$8 sps:$4 sm:$0xff]   ;;  %v3167_v5 = vld [vmem:[%s4488_s1 + $0x100] ss:$8 sps:$4 sm:$0xff]   ;;  %v3178_v8 = vld [vmem:[%s4488_s1 + $0x114] ss:$8 sps:$4 sm:$0xff]  }
  0x1e   : > { %v3170_v6 = vld [vmem:[%s3718_s23 + $0x20] ss:$72 sps:$4 sm:$0xff]   ;;  %v3181_v9 = vld [vmem:[%s4488_s1 + $0x514] ss:$8 sps:$4 sm:$0xff]   ;;  %v3176_v10 = vld [vmem:[%s4488_s1 + $0x110] ss:$8 sps:$4 sm:$0xff]  }
  0x1f   : > { %2115 = vmatpush1.bf16.msra.mxu1 %v3108_v26  ;;  %v3173_v7 = vld [vmem:[%s4488_s1 + $0x500] ss:$8 sps:$4 sm:$0xff]   ;;  %v3179_v11 = vld [vmem:[%s4488_s1 + $0x510] ss:$8 sps:$4 sm:$0xff]   ;;  %v3184_v12 = vld [vmem:[%s4488_s1 + $0x124] ss:$8 sps:$4 sm:$0xff]  }
  0x20   : > { %2287 = vmatpush1.bf16.msra.mxu0 %v3109_v27  ;;  %2116 = vmatprep.subr.bf16.mxu1 %v3110_v28  ;;  %v3187_v13 = vld [vmem:[%s4488_s1 + $0x524] ss:$8 sps:$4 sm:$0xff]   ;;  %v3182_v14 = vld [vmem:[%s4488_s1 + $0x120] ss:$8 sps:$4 sm:$0xff]   ;;  %v3190_v16 = vld [vmem:[%s4488_s1 + $0x134] ss:$8 sps:$4 sm:$0xff]  }
  0x21   : > { %2288 = vmatprep.subr.bf16.mxu0 %v3112_v29  ;;  %v3185_v15 = vld [vmem:[%s4488_s1 + $0x520] ss:$8 sps:$4 sm:$0xff]   ;;  %v3193_v17 = vld [vmem:[%s4488_s1 + $0x534] ss:$8 sps:$4 sm:$0xff]   ;;  %v3188_v18 = vld [vmem:[%s4488_s1 + $0x130] ss:$8 sps:$4 sm:$0xff]  }
  0x22   : > { %v3191_v19 = vld [vmem:[%s4488_s1 + $0x530] ss:$8 sps:$4 sm:$0xff]   ;;  %v3196_v20 = vld [vmem:[%s4488_s1 + $0x144] ss:$8 sps:$4 sm:$0xff]   ;;  %v3194_v22 = vld [vmem:[%s4488_s1 + $0x140] ss:$8 sps:$4 sm:$0xff]  }
  0x23   : > { %2117 = vmatpush1.bf16.msra.mxu1 %v3114_v30  ;;  %v3199_v21 = vld [vmem:[%s4488_s1 + $0x544] ss:$8 sps:$4 sm:$0xff]   ;;  %v3197_v23 = vld [vmem:[%s4488_s1 + $0x540] ss:$8 sps:$4 sm:$0xff]   ;;  %v3202_v24 = vld [vmem:[%s4488_s1 + $0x154] ss:$8 sps:$4 sm:$0xff]  }
  0x24   : > { %2289 = vmatpush1.bf16.msra.mxu0 %v3115_v31  ;;  %2118 = vmatprep.subr.bf16.mxu1 %v3116_v32  ;;  %v3205_v25 = vld [vmem:[%s4488_s1 + $0x554] ss:$8 sps:$4 sm:$0xff]   ;;  %v3200_v26 = vld [vmem:[%s4488_s1 + $0x150] ss:$8 sps:$4 sm:$0xff]   ;;  %v3208_v28 = vld [vmem:[%s4488_s1 + $0x164] ss:$8 sps:$4 sm:$0xff]  }
  0x25   : > { %2290 = vmatprep.subr.bf16.mxu0 %v3118_v33  ;;  %v3203_v27 = vld [vmem:[%s4488_s1 + $0x550] ss:$8 sps:$4 sm:$0xff]   ;;  %v3211_v29 = vld [vmem:[%s4488_s1 + $0x564] ss:$8 sps:$4 sm:$0xff]   ;;  %v3206_v30 = vld [vmem:[%s4488_s1 + $0x160] ss:$8 sps:$4 sm:$0xff]  }
  0x26   : > { %v3209_v31 = vld [vmem:[%s4488_s1 + $0x560] ss:$8 sps:$4 sm:$0xff]   ;;  %v3214_v32 = vld [vmem:[%s4488_s1 + $0x174] ss:$8 sps:$4 sm:$0xff]  }
  0x27   : > { %2119 = vmatpush1.bf16.msra.mxu1 %v3120_v34  ;;  %v3217_v33 = vld [vmem:[%s4488_s1 + $0x574] ss:$8 sps:$4 sm:$0xff]   ;;  %v3230_v48 = vld [vmem:[%s4488_s1 + $0x1a0] ss:$8 sps:$4 sm:$0xff]  }
  0x28   : > { %2291 = vmatpush1.bf16.msra.mxu0 %v3121_v35  ;;  %2120 = vmatprep.subr.bf16.mxu1 %v3122_v36  ;;  %v3268_v34 = vld [vmem:[%s3718_s23 + $0xc] ss:$72 sps:$4 sm:$0xff]   ;;  %v3212_v35 = vld [vmem:[%s4488_s1 + $0x170] ss:$8 sps:$4 sm:$0xff]  }
  0x29   : > { %2292 = vmatprep.subr.bf16.mxu0 %v3124_v37  ;;  %v3215_v36 = vld [vmem:[%s4488_s1 + $0x570] ss:$8 sps:$4 sm:$0xff]   ;;  %v3274_v37 = vld [vmem:[%s3718_s23 + $0x2c] ss:$72 sps:$4 sm:$0xff]  }
  0x2a   : > { %v3241_v51 = vld [vmem:[%s4488_s1 + $0x5b4] ss:$8 sps:$4 sm:$0xff]  }
  0x2b   : > { %2121 = vmatpush1.bf16.msra.mxu1 %v3126_v38  ;;  %v3220_v38 = vld [vmem:[%s4488_s1 + $0x184] ss:$8 sps:$4 sm:$0xff]  }
  0x2c   : > { %2293 = vmatpush1.bf16.msra.mxu0 %v3127_v39  ;;  %2122 = vmatprep.subr.bf16.mxu1 %v3128_v40  ;;  %v3223_v39 = vld [vmem:[%s4488_s1 + $0x584] ss:$8 sps:$4 sm:$0xff]   ;;  %v3218_v40 = vld [vmem:[%s4488_s1 + $0x180] ss:$8 sps:$4 sm:$0xff]  }
  0x2d   : > { %2294 = vmatprep.subr.bf16.mxu0 %v3130_v41  ;;  %v3221_v41 = vld [vmem:[%s4488_s1 + $0x580] ss:$8 sps:$4 sm:$0xff]  }
  0x2f   : > { %2123 = vmatpush1.bf16.msra.mxu1 %v3132_v42  ;;  %v3226_v42 = vld [vmem:[%s4488_s1 + $0x194] ss:$8 sps:$4 sm:$0xff]  }
  0x30   : > { %2295 = vmatpush1.bf16.msra.mxu0 %v3133_v43  ;;  %2124 = vmatprep.subr.bf16.mxu1 %v3134_v44  ;;  %v3229_v43 = vld [vmem:[%s4488_s1 + $0x594] ss:$8 sps:$4 sm:$0xff]   ;;  %v3224_v44 = vld [vmem:[%s4488_s1 + $0x190] ss:$8 sps:$4 sm:$0xff]  }
  0x31   : > { %2296 = vmatprep.subr.bf16.mxu0 %v3136_v45  ;;  %v3227_v45 = vld [vmem:[%s4488_s1 + $0x590] ss:$8 sps:$4 sm:$0xff]  }
  0x33   : > { %2125 = vmatpush1.bf16.msra.mxu1 %v3138_v46  ;;  %v3232_v46 = vld [vmem:[%s4488_s1 + $0x1a4] ss:$8 sps:$4 sm:$0xff]  }
  0x34   : > { %2297 = vmatpush1.bf16.msra.mxu0 %v3139_v47  ;;  %2126 = vmatprep.subr.bf16.mxu1 %v3140_v49  ;;  %v3235_v47 = vld [vmem:[%s4488_s1 + $0x5a4] ss:$8 sps:$4 sm:$0xff]   ;;  %v3233_v49 = vld [vmem:[%s4488_s1 + $0x5a0] ss:$8 sps:$4 sm:$0xff]  }
  0x35   : > { %2298 = vmatprep.subr.bf16.mxu0 %v3142_v50  ;;  %v3238_v50 = vld [vmem:[%s4488_s1 + $0x1b4] ss:$8 sps:$4 sm:$0xff]  }
  0x37   : > { %2127 = vmatpush1.bf16.msra.mxu1 %v3144_v52  ;;  %v3236_v52 = vld [vmem:[%s4488_s1 + $0x1b0] ss:$8 sps:$4 sm:$0xff]  }
  0x38   : > { %2299 = vmatpush1.bf16.msra.mxu0 %v3145_v53  ;;  %2128 = vmatprep.subr.bf16.mxu1 %v3146_v54  ;;  %v3239_v53 = vld [vmem:[%s4488_s1 + $0x5b0] ss:$8 sps:$4 sm:$0xff]   ;;  %v3244_v54 = vld [vmem:[%s4488_s1 + $0x1c4] ss:$8 sps:$4 sm:$0xff]  }
  0x39   : > { %2300 = vmatprep.subr.bf16.mxu0 %v3148_v55  ;;  %v3247_v55 = vld [vmem:[%s4488_s1 + $0x5c4] ss:$8 sps:$4 sm:$0xff]  }
  0x3b   : > { %2129 = vmatpush1.bf16.msra.mxu1 %v3150_v56  ;;  %v3242_v56 = vld [vmem:[%s4488_s1 + $0x1c0] ss:$8 sps:$4 sm:$0xff]  }
  0x3c   : > { %2301 = vmatpush1.bf16.msra.mxu0 %v3151_v57  ;;  %2130 = vmatprep.subr.bf16.mxu1 %v3152_v58  ;;  %v3245_v57 = vld [vmem:[%s4488_s1 + $0x5c0] ss:$8 sps:$4 sm:$0xff]   ;;  %v3250_v58 = vld [vmem:[%s4488_s1 + $0x1d4] ss:$8 sps:$4 sm:$0xff]  }
  0x3d   : > { %2302 = vmatprep.subr.bf16.mxu0 %v3154_v59  ;;  %v3253_v59 = vld [vmem:[%s4488_s1 + $0x5d4] ss:$8 sps:$4 sm:$0xff]  }
  0x3f   : > { %2131 = vmatpush1.bf16.msra.mxu1 %v3156_v60  ;;  %v3248_v60 = vld [vmem:[%s4488_s1 + $0x1d0] ss:$8 sps:$4 sm:$0xff]  }
  0x40   : > { %2303 = vmatpush1.bf16.msra.mxu0 %v3157_v61  ;;  %2132 = vmatprep.subr.bf16.mxu1 %v3158_v62  ;;  %v3251_v61 = vld [vmem:[%s4488_s1 + $0x5d0] ss:$8 sps:$4 sm:$0xff]   ;;  %v3256_v62 = vld [vmem:[%s4488_s1 + $0x1e4] ss:$8 sps:$4 sm:$0xff]  }
  0x41   : > { %2304 = vmatprep.subr.bf16.mxu0 %v3160_v63  ;;  %v3259_v63 = vld [vmem:[%s4488_s1 + $0x5e4] ss:$8 sps:$4 sm:$0xff]  }
  0x43   : > { %2133 = vmatpush1.bf16.msra.mxu1 %v3162_v0  ;;  %v3254_v0 = vld [vmem:[%s4488_s1 + $0x1e0] ss:$8 sps:$4 sm:$0xff]  }
  0x44   : > { %2305 = vmatpush1.bf16.msra.mxu0 %v3163_v1  ;;  %2145 = vmatprep.subr.bf16.mxu1 %v3169_v2  ;;  %v3257_v1 = vld [vmem:[%s4488_s1 + $0x5e0] ss:$8 sps:$4 sm:$0xff]   ;;  %v3262_v2 = vld [vmem:[%s4488_s1 + $0x1f4] ss:$8 sps:$4 sm:$0xff]  }
  0x45   : > { %2317 = vmatprep.subr.bf16.mxu0 %v3175_v3  ;;  %v3265_v3 = vld [vmem:[%s4488_s1 + $0x5f4] ss:$8 sps:$4 sm:$0xff]  }
  0x46   : > { %2135 = vmatmul.mubr.bf16.vlgmr.msra.gmra.mrb[0].mxu1 %v3164_v4  ;;  %v3260_v4 = vld [vmem:[%s4488_s1 + $0x1f0] ss:$8 sps:$4 sm:$0xff]  }
  0x47   : > { %2307 = vmatmul.mubr.bf16.vlgmr.msra.gmra.mrb[0].mxu0 %v3170_v6  ;;  %2146 = vmatpush1.bf16.msra.mxu1 %v3167_v5  ;;  %v3263_v5 = vld [vmem:[%s4488_s1 + $0x5f0] ss:$8 sps:$4 sm:$0xff]   ;;  %v3271_v6 = vld [vmem:[%s4488_s1 + $0x204] ss:$8 sps:$4 sm:$0xff]  }
  0x48   : > { %2318 = vmatpush1.bf16.msra.mxu0 %v3173_v7  ;;  %2147 = vmatprep.subr.bf16.mxu1 %v3178_v8  ;;  %v3277_v7 = vld [vmem:[%s4488_s1 + $0x604] ss:$8 sps:$4 sm:$0xff]   ;;  %v3266_v8 = vld [vmem:[%s3718_s23 + $0x8] ss:$72 sps:$4 sm:$0xff]  }
  0x49   : > { %2319 = vmatprep.subr.bf16.mxu0 %v3181_v9  ;;  %2177 = vmatprep.mubr.bf16.mxu1 %v3268_v34  ;;  %v3269_v9 = vld [vmem:[%s4488_s1 + $0x200] ss:$8 sps:$4 sm:$0xff]   ;;  %v3310_v34 = vld [vmem:[%s4488_s1 + $0x264] ss:$8 sps:$4 sm:$0xff]  }
  0x4a   : > { %2349 = vmatprep.mubr.bf16.mxu0 %v3274_v37  ;;  %v3311_v37 = vld [vmem:[%s4488_s1 + $0x660] ss:$8 sps:$4 sm:$0xff]  }
  0x4b   : > { %2148 = vmatpush1.bf16.msra.mxu1 %v3176_v10  ;;  %v3272_v10 = vld [vmem:[%s3718_s23 + $0x28] ss:$72 sps:$4 sm:$0xff]  }
  0x4c   : > { %2320 = vmatpush1.bf16.msra.mxu0 %v3179_v11  ;;  %2149 = vmatprep.subr.bf16.mxu1 %v3184_v12  ;;  %v3275_v11 = vld [vmem:[%s4488_s1 + $0x600] ss:$8 sps:$4 sm:$0xff]   ;;  %v3280_v12 = vld [vmem:[%s4488_s1 + $0x214] ss:$8 sps:$4 sm:$0xff]  }
  0x4d   : > { %2321 = vmatprep.subr.bf16.mxu0 %v3187_v13  ;;  %v3283_v13 = vld [vmem:[%s4488_s1 + $0x614] ss:$8 sps:$4 sm:$0xff]  }
  0x4f   : > { %2150 = vmatpush1.bf16.msra.mxu1 %v3182_v14  ;;  %v3278_v14 = vld [vmem:[%s4488_s1 + $0x210] ss:$8 sps:$4 sm:$0xff]  }
  0x50   : > { %2322 = vmatpush1.bf16.msra.mxu0 %v3185_v15  ;;  %2151 = vmatprep.subr.bf16.mxu1 %v3190_v16  ;;  %v3281_v15 = vld [vmem:[%s4488_s1 + $0x610] ss:$8 sps:$4 sm:$0xff]   ;;  %v3286_v16 = vld [vmem:[%s4488_s1 + $0x224] ss:$8 sps:$4 sm:$0xff]  }
  0x51   : > { %2323 = vmatprep.subr.bf16.mxu0 %v3193_v17  ;;  %v3289_v17 = vld [vmem:[%s4488_s1 + $0x624] ss:$8 sps:$4 sm:$0xff]  }
  0x53   : > { %2152 = vmatpush1.bf16.msra.mxu1 %v3188_v18  ;;  %v3284_v18 = vld [vmem:[%s4488_s1 + $0x220] ss:$8 sps:$4 sm:$0xff]  }
  0x54   : > { %2324 = vmatpush1.bf16.msra.mxu0 %v3191_v19  ;;  %2153 = vmatprep.subr.bf16.mxu1 %v3196_v20  ;;  %v3370_v19 = vld [vmem:[%s3718_s23 + $0x14] ss:$72 sps:$4 sm:$0xff]   ;;  %v3287_v20 = vld [vmem:[%s4488_s1 + $0x620] ss:$8 sps:$4 sm:$0xff]  }
  0x55   : > { %2325 = vmatprep.subr.bf16.mxu0 %v3199_v21  ;;  %v3292_v21 = vld [vmem:[%s4488_s1 + $0x234] ss:$8 sps:$4 sm:$0xff]  }
  0x57   : > { %2154 = vmatpush1.bf16.msra.mxu1 %v3194_v22  ;;  %v3295_v22 = vld [vmem:[%s4488_s1 + $0x634] ss:$8 sps:$4 sm:$0xff]  }
  0x58   : > { %2326 = vmatpush1.bf16.msra.mxu0 %v3197_v23  ;;  %2155 = vmatprep.subr.bf16.mxu1 %v3202_v24  ;;  %v3376_v23 = vld [vmem:[%s3718_s23 + $0x34] ss:$72 sps:$4 sm:$0xff]   ;;  %v3290_v24 = vld [vmem:[%s4488_s1 + $0x230] ss:$8 sps:$4 sm:$0xff]  }
  0x59   : > { %2327 = vmatprep.subr.bf16.mxu0 %v3205_v25  ;;  %v3293_v25 = vld [vmem:[%s4488_s1 + $0x630] ss:$8 sps:$4 sm:$0xff]  }
  0x5b   : > { %2156 = vmatpush1.bf16.msra.mxu1 %v3200_v26  ;;  %v3298_v26 = vld [vmem:[%s4488_s1 + $0x244] ss:$8 sps:$4 sm:$0xff]  }
  0x5c   : > { %2328 = vmatpush1.bf16.msra.mxu0 %v3203_v27  ;;  %2157 = vmatprep.subr.bf16.mxu1 %v3208_v28  ;;  %v3301_v27 = vld [vmem:[%s4488_s1 + $0x644] ss:$8 sps:$4 sm:$0xff]   ;;  %v3296_v28 = vld [vmem:[%s4488_s1 + $0x240] ss:$8 sps:$4 sm:$0xff]  }
  0x5d   : > { %2329 = vmatprep.subr.bf16.mxu0 %v3211_v29  ;;  %v3299_v29 = vld [vmem:[%s4488_s1 + $0x640] ss:$8 sps:$4 sm:$0xff]  }
  0x5f   : > { %2158 = vmatpush1.bf16.msra.mxu1 %v3206_v30  ;;  %v3304_v30 = vld [vmem:[%s4488_s1 + $0x254] ss:$8 sps:$4 sm:$0xff]  }
  0x60   : > { %2330 = vmatpush1.bf16.msra.mxu0 %v3209_v31  ;;  %2159 = vmatprep.subr.bf16.mxu1 %v3214_v32  ;;  %v3307_v31 = vld [vmem:[%s4488_s1 + $0x654] ss:$8 sps:$4 sm:$0xff]   ;;  %v3302_v32 = vld [vmem:[%s4488_s1 + $0x250] ss:$8 sps:$4 sm:$0xff]  }
  0x61   : > { %2331 = vmatprep.subr.bf16.mxu0 %v3217_v33  ;;  %v3305_v33 = vld [vmem:[%s4488_s1 + $0x650] ss:$8 sps:$4 sm:$0xff]  }
  0x63   : > { %2160 = vmatpush1.bf16.msra.mxu1 %v3212_v35  ;;  %v3313_v35 = vld [vmem:[%s4488_s1 + $0x664] ss:$8 sps:$4 sm:$0xff]  }
  0x64   : > { %2332 = vmatpush1.bf16.msra.mxu0 %v3215_v36  ;;  %2161 = vmatprep.subr.bf16.mxu1 %v3220_v38  ;;  %v3308_v36 = vld [vmem:[%s4488_s1 + $0x260] ss:$8 sps:$4 sm:$0xff]   ;;  %v3316_v38 = vld [vmem:[%s4488_s1 + $0x274] ss:$8 sps:$4 sm:$0xff]  }
  0x65   : > { %2333 = vmatprep.subr.bf16.mxu0 %v3223_v39  ;;  %v3319_v39 = vld [vmem:[%s4488_s1 + $0x674] ss:$8 sps:$4 sm:$0xff]  }
  0x67   : > { %2162 = vmatpush1.bf16.msra.mxu1 %v3218_v40  ;;  %v3314_v40 = vld [vmem:[%s4488_s1 + $0x270] ss:$8 sps:$4 sm:$0xff]  }
  0x68   : > { %2334 = vmatpush1.bf16.msra.mxu0 %v3221_v41  ;;  %2163 = vmatprep.subr.bf16.mxu1 %v3226_v42  ;;  %v3317_v41 = vld [vmem:[%s4488_s1 + $0x670] ss:$8 sps:$4 sm:$0xff]   ;;  %v3322_v42 = vld [vmem:[%s4488_s1 + $0x284] ss:$8 sps:$4 sm:$0xff]  }
  0x69   : > { %2335 = vmatprep.subr.bf16.mxu0 %v3229_v43  ;;  %v3325_v43 = vld [vmem:[%s4488_s1 + $0x684] ss:$8 sps:$4 sm:$0xff]  }
  0x6b   : > { %2164 = vmatpush1.bf16.msra.mxu1 %v3224_v44  ;;  %v3320_v44 = vld [vmem:[%s4488_s1 + $0x280] ss:$8 sps:$4 sm:$0xff]  }
  0x6c   : > { %2336 = vmatpush1.bf16.msra.mxu0 %v3227_v45  ;;  %2165 = vmatprep.subr.bf16.mxu1 %v3232_v46  ;;  %v3323_v45 = vld [vmem:[%s4488_s1 + $0x680] ss:$8 sps:$4 sm:$0xff]   ;;  %v3328_v46 = vld [vmem:[%s4488_s1 + $0x294] ss:$8 sps:$4 sm:$0xff]  }
  0x6d   : > { %2337 = vmatprep.subr.bf16.mxu0 %v3235_v47  ;;  %v3331_v47 = vld [vmem:[%s4488_s1 + $0x694] ss:$8 sps:$4 sm:$0xff]  }
  0x6f   : > { %2166 = vmatpush1.bf16.msra.mxu1 %v3230_v48  ;;  %v3326_v48 = vld [vmem:[%s4488_s1 + $0x290] ss:$8 sps:$4 sm:$0xff]  }
  0x70   : > { %2338 = vmatpush1.bf16.msra.mxu0 %v3233_v49  ;;  %2167 = vmatprep.subr.bf16.mxu1 %v3238_v50  ;;  %v3329_v49 = vld [vmem:[%s4488_s1 + $0x690] ss:$8 sps:$4 sm:$0xff]   ;;  %v3334_v50 = vld [vmem:[%s4488_s1 + $0x2a4] ss:$8 sps:$4 sm:$0xff]  }
  0x71   : > { %2339 = vmatprep.subr.bf16.mxu0 %v3241_v51  ;;  %v3337_v51 = vld [vmem:[%s4488_s1 + $0x6a4] ss:$8 sps:$4 sm:$0xff]  }
  0x73   : > { %2168 = vmatpush1.bf16.msra.mxu1 %v3236_v52  ;;  %v3332_v52 = vld [vmem:[%s4488_s1 + $0x2a0] ss:$8 sps:$4 sm:$0xff]  }
  0x74   : > { %2340 = vmatpush1.bf16.msra.mxu0 %v3239_v53  ;;  %2169 = vmatprep.subr.bf16.mxu1 %v3244_v54  ;;  %v3335_v53 = vld [vmem:[%s4488_s1 + $0x6a0] ss:$8 sps:$4 sm:$0xff]   ;;  %v3340_v54 = vld [vmem:[%s4488_s1 + $0x2b4] ss:$8 sps:$4 sm:$0xff]  }
  0x75   : > { %2341 = vmatprep.subr.bf16.mxu0 %v3247_v55  ;;  %v3343_v55 = vld [vmem:[%s4488_s1 + $0x6b4] ss:$8 sps:$4 sm:$0xff]  }
  0x77   : > { %2170 = vmatpush1.bf16.msra.mxu1 %v3242_v56  ;;  %v3338_v56 = vld [vmem:[%s4488_s1 + $0x2b0] ss:$8 sps:$4 sm:$0xff]  }
  0x78   : > { %2342 = vmatpush1.bf16.msra.mxu0 %v3245_v57  ;;  %2171 = vmatprep.subr.bf16.mxu1 %v3250_v58  ;;  %v3341_v57 = vld [vmem:[%s4488_s1 + $0x6b0] ss:$8 sps:$4 sm:$0xff]   ;;  %v3346_v58 = vld [vmem:[%s4488_s1 + $0x2c4] ss:$8 sps:$4 sm:$0xff]  }
  0x79   : > { %2343 = vmatprep.subr.bf16.mxu0 %v3253_v59  ;;  %v3349_v59 = vld [vmem:[%s4488_s1 + $0x6c4] ss:$8 sps:$4 sm:$0xff]  }
  0x7b   : > { %2172 = vmatpush1.bf16.msra.mxu1 %v3248_v60  ;;  %v3344_v60 = vld [vmem:[%s4488_s1 + $0x2c0] ss:$8 sps:$4 sm:$0xff]  }
  0x7c   : > { %2344 = vmatpush1.bf16.msra.mxu0 %v3251_v61  ;;  %2173 = vmatprep.subr.bf16.mxu1 %v3256_v62  ;;  %v3347_v61 = vld [vmem:[%s4488_s1 + $0x6c0] ss:$8 sps:$4 sm:$0xff]   ;;  %v3352_v62 = vld [vmem:[%s4488_s1 + $0x2d4] ss:$8 sps:$4 sm:$0xff]  }
  0x7d   : > { %2345 = vmatprep.subr.bf16.mxu0 %v3259_v63  ;;  %v3355_v63 = vld [vmem:[%s4488_s1 + $0x6d4] ss:$8 sps:$4 sm:$0xff]  }
  0x7f   : > { %2174 = vmatpush1.bf16.msra.mxu1 %v3254_v0  ;;  %v3350_v0 = vld [vmem:[%s4488_s1 + $0x2d0] ss:$8 sps:$4 sm:$0xff]  }
  0x80   : > { %2346 = vmatpush1.bf16.msra.mxu0 %v3257_v1  ;;  %2175 = vmatprep.subr.bf16.mxu1 %v3262_v2  ;;  %v3353_v1 = vld [vmem:[%s4488_s1 + $0x6d0] ss:$8 sps:$4 sm:$0xff]   ;;  %v3358_v2 = vld [vmem:[%s4488_s1 + $0x2e4] ss:$8 sps:$4 sm:$0xff]  }
  0x81   : > { %2347 = vmatprep.subr.bf16.mxu0 %v3265_v3  ;;  %v3361_v3 = vld [vmem:[%s4488_s1 + $0x6e4] ss:$8 sps:$4 sm:$0xff]  }
  0x83   : > { %2176 = vmatpush1.bf16.msra.mxu1 %v3260_v4  ;;  %v3356_v4 = vld [vmem:[%s4488_s1 + $0x2e0] ss:$8 sps:$4 sm:$0xff]  }
  0x84   : > { %2348 = vmatpush1.bf16.msra.mxu0 %v3263_v5  ;;  %2188 = vmatprep.subr.bf16.mxu1 %v3271_v6  ;;  %v3359_v5 = vld [vmem:[%s4488_s1 + $0x6e0] ss:$8 sps:$4 sm:$0xff]   ;;  %v3364_v6 = vld [vmem:[%s4488_s1 + $0x2f4] ss:$8 sps:$4 sm:$0xff]  }
  0x85   : > { %2360 = vmatprep.subr.bf16.mxu0 %v3277_v7  ;;  %v3367_v7 = vld [vmem:[%s4488_s1 + $0x6f4] ss:$8 sps:$4 sm:$0xff]  }
  0x86   : > { %2178 = vmatmul.mubr.bf16.vlgmr.msra.gmra.mrb[0].mxu1 %v3266_v8  ;;  %v3362_v8 = vld [vmem:[%s4488_s1 + $0x2f0] ss:$8 sps:$4 sm:$0xff]  }
  0x87   : > { %2350 = vmatmul.mubr.bf16.vlgmr.msra.gmra.mrb[0].mxu0 %v3272_v10  ;;  %2189 = vmatpush1.bf16.msra.mxu1 %v3269_v9  ;;  %v3365_v9 = vld [vmem:[%s4488_s1 + $0x6f0] ss:$8 sps:$4 sm:$0xff]   ;;  %v3373_v10 = vld [vmem:[%s4488_s1 + $0x304] ss:$8 sps:$4 sm:$0xff]  }
  0x88   : > { %2361 = vmatpush1.bf16.msra.mxu0 %v3275_v11  ;;  %2190 = vmatprep.subr.bf16.mxu1 %v3280_v12  ;;  %v3379_v11 = vld [vmem:[%s4488_s1 + $0x704] ss:$8 sps:$4 sm:$0xff]   ;;  %v3368_v12 = vld [vmem:[%s3718_s23 + $0x10] ss:$72 sps:$4 sm:$0xff]  }
  0x89   : > { %2362 = vmatprep.subr.bf16.mxu0 %v3283_v13  ;;  %2220 = vmatprep.mubr.bf16.mxu1 %v3370_v19  ;;  %v3371_v13 = vld [vmem:[%s4488_s1 + $0x300] ss:$8 sps:$4 sm:$0xff]   ;;  %v3475_v19 = vld [vmem:[%s3718_s23 + $0x3c] ss:$72 sps:$4 sm:$0xff]  }
  0x8a   : > { %2392 = vmatprep.mubr.bf16.mxu0 %v3376_v23  ;;  %v3391_v23 = vld [vmem:[%s4488_s1 + $0x724] ss:$8 sps:$4 sm:$0xff]  }
  0x8b   : > { %2191 = vmatpush1.bf16.msra.mxu1 %v3278_v14  ;;  %v3374_v14 = vld [vmem:[%s3718_s23 + $0x30] ss:$72 sps:$4 sm:$0xff]  }
  0x8c   : > { %2363 = vmatpush1.bf16.msra.mxu0 %v3281_v15  ;;  %2192 = vmatprep.subr.bf16.mxu1 %v3286_v16  ;;  %v3377_v15 = vld [vmem:[%s4488_s1 + $0x700] ss:$8 sps:$4 sm:$0xff]   ;;  %v3382_v16 = vld [vmem:[%s4488_s1 + $0x314] ss:$8 sps:$4 sm:$0xff]  }
  0x8d   : > { %2364 = vmatprep.subr.bf16.mxu0 %v3289_v17  ;;  %v3385_v17 = vld [vmem:[%s4488_s1 + $0x714] ss:$8 sps:$4 sm:$0xff]  }
  0x8f   : > { %2193 = vmatpush1.bf16.msra.mxu1 %v3284_v18  ;;  %v3472_v18 = vld [vmem:[%s3718_s23 + $0x1c] ss:$72 sps:$4 sm:$0xff]  }
  0x90   : > { %2365 = vmatpush1.bf16.msra.mxu0 %v3287_v20  ;;  %2194 = vmatprep.subr.bf16.mxu1 %v3292_v21  ;;  %v3380_v20 = vld [vmem:[%s4488_s1 + $0x310] ss:$8 sps:$4 sm:$0xff]  }
  0x91   : > { %2366 = vmatprep.subr.bf16.mxu0 %v3295_v22  ;;  %v3383_v21 = vld [vmem:[%s4488_s1 + $0x710] ss:$8 sps:$4 sm:$0xff]   ;;  %v3388_v22 = vld [vmem:[%s4488_s1 + $0x324] ss:$8 sps:$4 sm:$0xff]  }
  0x93   : > { %2195 = vmatpush1.bf16.msra.mxu1 %v3290_v24  ;;  %v3386_v24 = vld [vmem:[%s4488_s1 + $0x320] ss:$8 sps:$4 sm:$0xff]  }
  0x94   : > { %2367 = vmatpush1.bf16.msra.mxu0 %v3293_v25  ;;  %2196 = vmatprep.subr.bf16.mxu1 %v3298_v26  ;;  %v3389_v25 = vld [vmem:[%s4488_s1 + $0x720] ss:$8 sps:$4 sm:$0xff]   ;;  %v3394_v26 = vld [vmem:[%s4488_s1 + $0x334] ss:$8 sps:$4 sm:$0xff]  }
  0x95   : > { %2368 = vmatprep.subr.bf16.mxu0 %v3301_v27  ;;  %v3397_v27 = vld [vmem:[%s4488_s1 + $0x734] ss:$8 sps:$4 sm:$0xff]  }
  0x97   : > { %2197 = vmatpush1.bf16.msra.mxu1 %v3296_v28  ;;  %v3392_v28 = vld [vmem:[%s4488_s1 + $0x330] ss:$8 sps:$4 sm:$0xff]  }
  0x98   : > { %2369 = vmatpush1.bf16.msra.mxu0 %v3299_v29  ;;  %2198 = vmatprep.subr.bf16.mxu1 %v3304_v30  ;;  %v3395_v29 = vld [vmem:[%s4488_s1 + $0x730] ss:$8 sps:$4 sm:$0xff]   ;;  %v3400_v30 = vld [vmem:[%s4488_s1 + $0x344] ss:$8 sps:$4 sm:$0xff]  }
  0x99   : > { %2370 = vmatprep.subr.bf16.mxu0 %v3307_v31  ;;  %v3403_v31 = vld [vmem:[%s4488_s1 + $0x744] ss:$8 sps:$4 sm:$0xff]  }
  0x9b   : > { %2199 = vmatpush1.bf16.msra.mxu1 %v3302_v32  ;;  %v3398_v32 = vld [vmem:[%s4488_s1 + $0x340] ss:$8 sps:$4 sm:$0xff]  }
  0x9c   : > { %2371 = vmatpush1.bf16.msra.mxu0 %v3305_v33  ;;  %2200 = vmatprep.subr.bf16.mxu1 %v3310_v34  ;;  %v3401_v33 = vld [vmem:[%s4488_s1 + $0x740] ss:$8 sps:$4 sm:$0xff]   ;;  %v3406_v34 = vld [vmem:[%s4488_s1 + $0x354] ss:$8 sps:$4 sm:$0xff]  }
  0x9d   : > { %2372 = vmatprep.subr.bf16.mxu0 %v3313_v35  ;;  %v3409_v35 = vld [vmem:[%s4488_s1 + $0x754] ss:$8 sps:$4 sm:$0xff]  }
  0x9f   : > { %2201 = vmatpush1.bf16.msra.mxu1 %v3308_v36  ;;  %v3404_v36 = vld [vmem:[%s4488_s1 + $0x350] ss:$8 sps:$4 sm:$0xff]  }
  0xa0   : > { %2373 = vmatpush1.bf16.msra.mxu0 %v3311_v37  ;;  %2202 = vmatprep.subr.bf16.mxu1 %v3316_v38  ;;  %v3407_v37 = vld [vmem:[%s4488_s1 + $0x750] ss:$8 sps:$4 sm:$0xff]   ;;  %v3412_v38 = vld [vmem:[%s4488_s1 + $0x364] ss:$8 sps:$4 sm:$0xff]  }
  0xa1   : > { %2374 = vmatprep.subr.bf16.mxu0 %v3319_v39  ;;  %v3415_v39 = vld [vmem:[%s4488_s1 + $0x764] ss:$8 sps:$4 sm:$0xff]  }
  0xa3   : > { %2203 = vmatpush1.bf16.msra.mxu1 %v3314_v40  ;;  %v3410_v40 = vld [vmem:[%s4488_s1 + $0x360] ss:$8 sps:$4 sm:$0xff]  }
  0xa4   : > { %2375 = vmatpush1.bf16.msra.mxu0 %v3317_v41  ;;  %2204 = vmatprep.subr.bf16.mxu1 %v3322_v42  ;;  %v3413_v41 = vld [vmem:[%s4488_s1 + $0x760] ss:$8 sps:$4 sm:$0xff]   ;;  %v3418_v42 = vld [vmem:[%s4488_s1 + $0x374] ss:$8 sps:$4 sm:$0xff]  }
  0xa5   : > { %2376 = vmatprep.subr.bf16.mxu0 %v3325_v43  ;;  %v3421_v43 = vld [vmem:[%s4488_s1 + $0x774] ss:$8 sps:$4 sm:$0xff]  }
  0xa7   : > { %2205 = vmatpush1.bf16.msra.mxu1 %v3320_v44  ;;  %v3416_v44 = vld [vmem:[%s4488_s1 + $0x370] ss:$8 sps:$4 sm:$0xff]  }
  0xa8   : > { %2377 = vmatpush1.bf16.msra.mxu0 %v3323_v45  ;;  %2206 = vmatprep.subr.bf16.mxu1 %v3328_v46  ;;  %v3419_v45 = vld [vmem:[%s4488_s1 + $0x770] ss:$8 sps:$4 sm:$0xff]   ;;  %v3424_v46 = vld [vmem:[%s4488_s1 + $0x384] ss:$8 sps:$4 sm:$0xff]  }
  0xa9   : > { %2378 = vmatprep.subr.bf16.mxu0 %v3331_v47  ;;  %v3427_v47 = vld [vmem:[%s4488_s1 + $0x784] ss:$8 sps:$4 sm:$0xff]  }
  0xab   : > { %2207 = vmatpush1.bf16.msra.mxu1 %v3326_v48  ;;  %v3422_v48 = vld [vmem:[%s4488_s1 + $0x380] ss:$8 sps:$4 sm:$0xff]  }
  0xac   : > { %2379 = vmatpush1.bf16.msra.mxu0 %v3329_v49  ;;  %2208 = vmatprep.subr.bf16.mxu1 %v3334_v50  ;;  %v3425_v49 = vld [vmem:[%s4488_s1 + $0x780] ss:$8 sps:$4 sm:$0xff]   ;;  %v3430_v50 = vld [vmem:[%s4488_s1 + $0x394] ss:$8 sps:$4 sm:$0xff]  }
  0xad   : > { %2380 = vmatprep.subr.bf16.mxu0 %v3337_v51  ;;  %v3433_v51 = vld [vmem:[%s4488_s1 + $0x794] ss:$8 sps:$4 sm:$0xff]  }
  0xaf   : > { %2209 = vmatpush1.bf16.msra.mxu1 %v3332_v52  ;;  %v3428_v52 = vld [vmem:[%s4488_s1 + $0x390] ss:$8 sps:$4 sm:$0xff]  }
  0xb0   : > { %2381 = vmatpush1.bf16.msra.mxu0 %v3335_v53  ;;  %2210 = vmatprep.subr.bf16.mxu1 %v3340_v54  ;;  %v3431_v53 = vld [vmem:[%s4488_s1 + $0x790] ss:$8 sps:$4 sm:$0xff]   ;;  %v3436_v54 = vld [vmem:[%s4488_s1 + $0x3a4] ss:$8 sps:$4 sm:$0xff]  }
  0xb1   : > { %2382 = vmatprep.subr.bf16.mxu0 %v3343_v55  ;;  %v3439_v55 = vld [vmem:[%s4488_s1 + $0x7a4] ss:$8 sps:$4 sm:$0xff]  }
  0xb3   : > { %2211 = vmatpush1.bf16.msra.mxu1 %v3338_v56  ;;  %v3434_v56 = vld [vmem:[%s4488_s1 + $0x3a0] ss:$8 sps:$4 sm:$0xff]  }
  0xb4   : > { %2383 = vmatpush1.bf16.msra.mxu0 %v3341_v57  ;;  %2212 = vmatprep.subr.bf16.mxu1 %v3346_v58  ;;  %v3437_v57 = vld [vmem:[%s4488_s1 + $0x7a0] ss:$8 sps:$4 sm:$0xff]   ;;  %v3442_v58 = vld [vmem:[%s4488_s1 + $0x3b4] ss:$8 sps:$4 sm:$0xff]  }
  0xb5   : > { %2384 = vmatprep.subr.bf16.mxu0 %v3349_v59  ;;  %v3445_v59 = vld [vmem:[%s4488_s1 + $0x7b4] ss:$8 sps:$4 sm:$0xff]  }
  0xb7   : > { %2213 = vmatpush1.bf16.msra.mxu1 %v3344_v60  ;;  %v3440_v60 = vld [vmem:[%s4488_s1 + $0x3b0] ss:$8 sps:$4 sm:$0xff]  }
  0xb8   : > { %2385 = vmatpush1.bf16.msra.mxu0 %v3347_v61  ;;  %2214 = vmatprep.subr.bf16.mxu1 %v3352_v62  ;;  %v3443_v61 = vld [vmem:[%s4488_s1 + $0x7b0] ss:$8 sps:$4 sm:$0xff]   ;;  %v3448_v62 = vld [vmem:[%s4488_s1 + $0x3c4] ss:$8 sps:$4 sm:$0xff]  }
  0xb9   : > { %2386 = vmatprep.subr.bf16.mxu0 %v3355_v63  ;;  %v3451_v63 = vld [vmem:[%s4488_s1 + $0x7c4] ss:$8 sps:$4 sm:$0xff]  }
  0xbb   : > { %2215 = vmatpush1.bf16.msra.mxu1 %v3350_v0  ;;  %v3446_v0 = vld [vmem:[%s4488_s1 + $0x3c0] ss:$8 sps:$4 sm:$0xff]  }
  0xbc   : > { %2387 = vmatpush1.bf16.msra.mxu0 %v3353_v1  ;;  %2216 = vmatprep.subr.bf16.mxu1 %v3358_v2  ;;  %v3449_v1 = vld [vmem:[%s4488_s1 + $0x7c0] ss:$8 sps:$4 sm:$0xff]   ;;  %v3454_v2 = vld [vmem:[%s4488_s1 + $0x3d4] ss:$8 sps:$4 sm:$0xff]  }
  0xbd   : > { %2388 = vmatprep.subr.bf16.mxu0 %v3361_v3  ;;  %v3457_v3 = vld [vmem:[%s4488_s1 + $0x7d4] ss:$8 sps:$4 sm:$0xff]  }
  0xbf   : > { %2217 = vmatpush1.bf16.msra.mxu1 %v3356_v4  ;;  %v3452_v4 = vld [vmem:[%s4488_s1 + $0x3d0] ss:$8 sps:$4 sm:$0xff]  }
  0xc0   : > { %2389 = vmatpush1.bf16.msra.mxu0 %v3359_v5  ;;  %2218 = vmatprep.subr.bf16.mxu1 %v3364_v6  ;;  %v3455_v5 = vld [vmem:[%s4488_s1 + $0x7d0] ss:$8 sps:$4 sm:$0xff]   ;;  %v3460_v6 = vld [vmem:[%s4488_s1 + $0x3e4] ss:$8 sps:$4 sm:$0xff]  }
  0xc1   : > { %2390 = vmatprep.subr.bf16.mxu0 %v3367_v7  ;;  %v3463_v7 = vld [vmem:[%s4488_s1 + $0x7e4] ss:$8 sps:$4 sm:$0xff]  }
  0xc3   : > { %2219 = vmatpush1.bf16.msra.mxu1 %v3362_v8  ;;  %v3458_v8 = vld [vmem:[%s4488_s1 + $0x3e0] ss:$8 sps:$4 sm:$0xff]  }
  0xc4   : > { %2391 = vmatpush1.bf16.msra.mxu0 %v3365_v9  ;;  %2231 = vmatprep.subr.bf16.mxu1 %v3373_v10  ;;  %v3461_v9 = vld [vmem:[%s4488_s1 + $0x7e0] ss:$8 sps:$4 sm:$0xff]   ;;  %v3466_v10 = vld [vmem:[%s4488_s1 + $0x3f4] ss:$8 sps:$4 sm:$0xff]  }
  0xc5   : > { %2403 = vmatprep.subr.bf16.mxu0 %v3379_v11  ;;  %v3469_v11 = vld [vmem:[%s4488_s1 + $0x7f4] ss:$8 sps:$4 sm:$0xff]  }
  0xc6   : > { %2221 = vmatmul.mubr.bf16.vlgmr.msra.gmra.mrb[0].mxu1 %v3368_v12  ;;  %v3464_v12 = vld [vmem:[%s4488_s1 + $0x3f0] ss:$8 sps:$4 sm:$0xff]  }
  0xc7   : > { %2393 = vmatmul.mubr.bf16.vlgmr.msra.gmra.mrb[0].mxu0 %v3374_v14  ;;  %2232 = vmatpush1.bf16.msra.mxu1 %v3371_v13  ;;  %v3467_v13 = vld [vmem:[%s4488_s1 + $0x7f0] ss:$8 sps:$4 sm:$0xff]   ;;  %v3478_v14 = vld [vmem:[%s4488_s1 + $0x804] ss:$8 sps:$4 sm:$0xff]  }
  0xc8   : > { %2404 = vmatpush1.bf16.msra.mxu0 %v3377_v15  ;;  %2233 = vmatprep.subr.bf16.mxu1 %v3382_v16  ;;  %v3470_v15 = vld [vmem:[%s3718_s23 + $0x18] ss:$72 sps:$4 sm:$0xff]  }
  0xc9   : > { %2405 = vmatprep.subr.bf16.mxu0 %v3385_v17  ;;  %2263 = vmatprep.mubr.bf16.mxu1 %v3472_v18  ;;  %v3473_v16 = vld [vmem:[%s3718_s23 + $0x38] ss:$72 sps:$4 sm:$0xff]   ;;  %v3526_v18 = vld [vmem:[%s3718_s23 + $0x44] ss:$72 sps:$4 sm:$0xff]  }
  0xca   : > { %2435 = vmatprep.mubr.bf16.mxu0 %v3475_v19  ;;  %v3476_v17 = vld [vmem:[%s4488_s1 + $0x800] ss:$8 sps:$4 sm:$0xff]   ;;  %v3481_v19 = vld [vmem:[%s4488_s1 + $0x814] ss:$8 sps:$4 sm:$0xff]  }
  0xcb   : > { %2234 = vmatpush1.bf16.msra.mxu1 %v3380_v20  ;;  %v3479_v20 = vld [vmem:[%s4488_s1 + $0x810] ss:$8 sps:$4 sm:$0xff]  }
  0xcc   : > { %2406 = vmatpush1.bf16.msra.mxu0 %v3383_v21  ;;  %2235 = vmatprep.subr.bf16.mxu1 %v3388_v22  ;;  %v3484_v21 = vld [vmem:[%s4488_s1 + $0x824] ss:$8 sps:$4 sm:$0xff]   ;;  %v3482_v22 = vld [vmem:[%s4488_s1 + $0x820] ss:$8 sps:$4 sm:$0xff]  }
  0xcd   : > { %2407 = vmatprep.subr.bf16.mxu0 %v3391_v23  ;;  %v3487_v23 = vld [vmem:[%s4488_s1 + $0x834] ss:$8 sps:$4 sm:$0xff]  }
  0xcf   : > { %2236 = vmatpush1.bf16.msra.mxu1 %v3386_v24  ;;  %v3485_v24 = vld [vmem:[%s4488_s1 + $0x830] ss:$8 sps:$4 sm:$0xff]  }
  0xd0   : > { %2408 = vmatpush1.bf16.msra.mxu0 %v3389_v25  ;;  %2237 = vmatprep.subr.bf16.mxu1 %v3394_v26  ;;  %v3490_v25 = vld [vmem:[%s4488_s1 + $0x844] ss:$8 sps:$4 sm:$0xff]   ;;  %v3488_v26 = vld [vmem:[%s4488_s1 + $0x840] ss:$8 sps:$4 sm:$0xff]  }
  0xd1   : > { %2409 = vmatprep.subr.bf16.mxu0 %v3397_v27  ;;  %v3493_v27 = vld [vmem:[%s4488_s1 + $0x854] ss:$8 sps:$4 sm:$0xff]  }
  0xd3   : > { %2238 = vmatpush1.bf16.msra.mxu1 %v3392_v28  ;;  %v3491_v28 = vld [vmem:[%s4488_s1 + $0x850] ss:$8 sps:$4 sm:$0xff]  }
  0xd4   : > { %2410 = vmatpush1.bf16.msra.mxu0 %v3395_v29  ;;  %2239 = vmatprep.subr.bf16.mxu1 %v3400_v30  ;;  %v3496_v29 = vld [vmem:[%s4488_s1 + $0x864] ss:$8 sps:$4 sm:$0xff]   ;;  %v3494_v30 = vld [vmem:[%s4488_s1 + $0x860] ss:$8 sps:$4 sm:$0xff]  }
  0xd5   : > { %2411 = vmatprep.subr.bf16.mxu0 %v3403_v31  ;;  %v3499_v31 = vld [vmem:[%s4488_s1 + $0x874] ss:$8 sps:$4 sm:$0xff]  }
  0xd7   : > { %2240 = vmatpush1.bf16.msra.mxu1 %v3398_v32  ;;  %v3497_v32 = vld [vmem:[%s4488_s1 + $0x870] ss:$8 sps:$4 sm:$0xff]  }
  0xd8   : > { %2412 = vmatpush1.bf16.msra.mxu0 %v3401_v33  ;;  %2241 = vmatprep.subr.bf16.mxu1 %v3406_v34  ;;  %v3502_v33 = vld [vmem:[%s4488_s1 + $0x884] ss:$8 sps:$4 sm:$0xff]   ;;  %v3500_v34 = vld [vmem:[%s4488_s1 + $0x880] ss:$8 sps:$4 sm:$0xff]  }
  0xd9   : > { %2413 = vmatprep.subr.bf16.mxu0 %v3409_v35  ;;  %v3505_v35 = vld [vmem:[%s4488_s1 + $0x894] ss:$8 sps:$4 sm:$0xff]  }
  0xdb   : > { %2242 = vmatpush1.bf16.msra.mxu1 %v3404_v36  ;;  %v3503_v36 = vld [vmem:[%s4488_s1 + $0x890] ss:$8 sps:$4 sm:$0xff]  }
  0xdc   : > { %2414 = vmatpush1.bf16.msra.mxu0 %v3407_v37  ;;  %2243 = vmatprep.subr.bf16.mxu1 %v3412_v38  ;;  %v3508_v37 = vld [vmem:[%s4488_s1 + $0x8a4] ss:$8 sps:$4 sm:$0xff]   ;;  %v3506_v38 = vld [vmem:[%s4488_s1 + $0x8a0] ss:$8 sps:$4 sm:$0xff]  }
  0xdd   : > { %2415 = vmatprep.subr.bf16.mxu0 %v3415_v39  ;;  %v3511_v39 = vld [vmem:[%s4488_s1 + $0x8b4] ss:$8 sps:$4 sm:$0xff]  }
  0xdf   : > { %2244 = vmatpush1.bf16.msra.mxu1 %v3410_v40  ;;  %v3509_v40 = vld [vmem:[%s4488_s1 + $0x8b0] ss:$8 sps:$4 sm:$0xff]  }
  0xe0   : > { %2416 = vmatpush1.bf16.msra.mxu0 %v3413_v41  ;;  %2245 = vmatprep.subr.bf16.mxu1 %v3418_v42  ;;  %v3514_v41 = vld [vmem:[%s4488_s1 + $0x8c4] ss:$8 sps:$4 sm:$0xff]   ;;  %v3512_v42 = vld [vmem:[%s4488_s1 + $0x8c0] ss:$8 sps:$4 sm:$0xff]  }
  0xe1   : > { %2417 = vmatprep.subr.bf16.mxu0 %v3421_v43  ;;  %v3517_v43 = vld [vmem:[%s4488_s1 + $0x8d4] ss:$8 sps:$4 sm:$0xff]  }
  0xe3   : > { %2246 = vmatpush1.bf16.msra.mxu1 %v3416_v44  ;;  %v3515_v44 = vld [vmem:[%s4488_s1 + $0x8d0] ss:$8 sps:$4 sm:$0xff]  }
  0xe4   : > { %2418 = vmatpush1.bf16.msra.mxu0 %v3419_v45  ;;  %2247 = vmatprep.subr.bf16.mxu1 %v3424_v46  ;;  %v3520_v45 = vld [vmem:[%s4488_s1 + $0x8e4] ss:$8 sps:$4 sm:$0xff]   ;;  %v3518_v46 = vld [vmem:[%s4488_s1 + $0x8e0] ss:$8 sps:$4 sm:$0xff]  }
  0xe5   : > { %2419 = vmatprep.subr.bf16.mxu0 %v3427_v47  ;;  %v3523_v47 = vld [vmem:[%s4488_s1 + $0x8f4] ss:$8 sps:$4 sm:$0xff]  }
  0xe7   : > { %2248 = vmatpush1.bf16.msra.mxu1 %v3422_v48  ;;  %v3521_v48 = vld [vmem:[%s4488_s1 + $0x8f0] ss:$8 sps:$4 sm:$0xff]  }
  0xe8   : > { %2420 = vmatpush1.bf16.msra.mxu0 %v3425_v49  ;;  %2249 = vmatprep.subr.bf16.mxu1 %v3430_v50  ;;  %v3524_v49 = vld [vmem:[%s3718_s23 + $0x40] ss:$72 sps:$4 sm:$0xff]   ;;  %s3019_s23 = sshll.u32 %s4494_s9, 3  ;;  %s2707_s9 = sshll.u32 %s4496_s19, 1 }
  0xe9   : > { %2421 = vmatprep.subr.bf16.mxu0 %v3433_v51  ;;  %s244_s6 = scalar_lea.vmem %s4490_s3, %s3019_s23  ;;  %s249_s10 = scalar_lea.vmem %s4491_s4, %s2707_s9 }
  0xea   : > { %s253_s13 = scalar_lea.vmem %s4492_s5, %s2707_s9 }
  0xeb   : > { %2250 = vmatpush1.bf16.msra.mxu1 %v3428_v52 }
  0xec   : > { %2422 = vmatpush1.bf16.msra.mxu0 %v3431_v53  ;;  %2251 = vmatprep.subr.bf16.mxu1 %v3436_v54  ;;  %v562_v54 = vlaneseq }
  0xed   : > { %2423 = vmatprep.subr.bf16.mxu0 %v3439_v55 }
  0xee   : > { %v563_v55 = vshrl.u32 %v562_v54, 7  ;;  %vm2523_vm0 = vcmp.lt.s32.totalorder %v562_v54, 256 }
  0xef   : > { %2252 = vmatpush1.bf16.msra.mxu1 %v3434_v56 }
  0xf0   : > { %2424 = vmatpush1.bf16.msra.mxu0 %v3437_v57  ;;  %2253 = vmatprep.subr.bf16.mxu1 %v3442_v58  ;;  %v564_v56 = vsub.s32 0, %v563_v55  ;;  %v560_v57 = vld [vmem:[%s4489_s2] sm:$0x3]  ;;  %v568_v58 = vsub.s32 1, %v563_v55 }
  0xf1   : > { %2425 = vmatprep.subr.bf16.mxu0 %v3445_v59 }
  0xf2   : > { %v565_v59 = vrot.slane %v560_v57, %v564_v56 }
  0xf3   : > { %2254 = vmatpush1.bf16.msra.mxu1 %v3440_v60  ;;  %v569_v60 = vrot.slane %v560_v57, %v568_v58 }
  0xf4   : > { %2426 = vmatpush1.bf16.msra.mxu0 %v3443_v61  ;;  %2255 = vmatprep.subr.bf16.mxu1 %v3448_v62 }
  0xf5   : > { %2427 = vmatprep.subr.bf16.mxu0 %v3451_v63 }
  0xf7   : > { %2256 = vmatpush1.bf16.msra.mxu1 %v3446_v0 }
  0xf8   : > { %2428 = vmatpush1.bf16.msra.mxu0 %v3449_v1  ;;  %2257 = vmatprep.subr.bf16.mxu1 %v3454_v2 }
  0xf9   : > { %2429 = vmatprep.subr.bf16.mxu0 %v3457_v3 }
  0xfb   : > { %2258 = vmatpush1.bf16.msra.mxu1 %v3452_v4 }
  0xfc   : > { %2430 = vmatpush1.bf16.msra.mxu0 %v3455_v5  ;;  %2259 = vmatprep.subr.bf16.mxu1 %v3460_v6 }
  0xfd   : > { %2431 = vmatprep.subr.bf16.mxu0 %v3463_v7 }
  0xff   : > { %2260 = vmatpush1.bf16.msra.mxu1 %v3458_v8 }
 0x100   : > { %2432 = vmatpush1.bf16.msra.mxu0 %v3461_v9  ;;  %2261 = vmatprep.subr.bf16.mxu1 %v3466_v10 }
 0x101   : > { %2433 = vmatprep.subr.bf16.mxu0 %v3469_v11 }
 0x103   : > { %2262 = vmatpush1.bf16.msra.mxu1 %v3464_v12 }
 0x104   : > { %2434 = vmatpush1.bf16.msra.mxu0 %v3467_v13 }
 0x105   : > { %2446 = vmatprep.subr.bf16.mxu0 %v3478_v14 }
 0x106   : > { %2264 = vmatmul.mubr.bf16.vlgmr.msra.gmra.mrb[0].mxu1 %v3470_v15 }
 0x107   : > { %2436 = vmatmul.mubr.bf16.vlgmr.msra.gmra.mrb[0].mxu0 %v3473_v16 }
 0x108   : > { %2447 = vmatpush1.bf16.msra.mxu0 %v3476_v17  ;;  %2478 = vmatprep.mubr.bf16.mxu0 %v3526_v18 }
 0x109   : > { %2448 = vmatprep.subr.bf16.mxu0 %v3481_v19 }
 0x10c   : > { %2449 = vmatpush1.bf16.msra.mxu0 %v3479_v20 }
 0x10d   : > { %2450 = vmatprep.subr.bf16.mxu0 %v3484_v21 }
 0x110   : > { %2451 = vmatpush1.bf16.msra.mxu0 %v3482_v22 }
 0x111   : > { %2452 = vmatprep.subr.bf16.mxu0 %v3487_v23  ;;  %v3535_v23 = vmov 1966171168  }
 0x114   : > { %2453 = vmatpush1.bf16.msra.mxu0 %v3485_v24  ;;  %v2507_v24 = vunpack.c.l.s4 %v3535_v23 }
 0x115   : > { %2454 = vmatprep.subr.bf16.mxu0 %v3490_v25 }
 0x118   : > { %2455 = vmatpush1.bf16.msra.mxu0 %v3488_v26 }
 0x119   : > { %2456 = vmatprep.subr.bf16.mxu0 %v3493_v27 }
 0x11c   : > { %2457 = vmatpush1.bf16.msra.mxu0 %v3491_v28 }
 0x11d   : > { %2458 = vmatprep.subr.bf16.mxu0 %v3496_v29 }
 0x120   : > { %2459 = vmatpush1.bf16.msra.mxu0 %v3494_v30 }
 0x121   : > { %2460 = vmatprep.subr.bf16.mxu0 %v3499_v31 }
 0x124   : > { %2461 = vmatpush1.bf16.msra.mxu0 %v3497_v32 }
 0x125   : > { %2462 = vmatprep.subr.bf16.mxu0 %v3502_v33  ;;  %v2508_v33 = vunpack.c.0.s8 %v2507_v24 }
 0x128   : > { %2463 = vmatpush1.bf16.msra.mxu0 %v3500_v34 }
 0x129   : > { %2464 = vmatprep.subr.bf16.mxu0 %v3505_v35 }
 0x12c   : > { %2465 = vmatpush1.bf16.msra.mxu0 %v3503_v36 }
 0x12d   : > { %2466 = vmatprep.subr.bf16.mxu0 %v3508_v37 }
 0x130   : > { %2467 = vmatpush1.bf16.msra.mxu0 %v3506_v38 }
 0x131   : > { %2468 = vmatprep.subr.bf16.mxu0 %v3511_v39 }
 0x134   : > { %2469 = vmatpush1.bf16.msra.mxu0 %v3509_v40 }
 0x135   : > { %2470 = vmatprep.subr.bf16.mxu0 %v3514_v41 }
 0x138   : > { %2471 = vmatpush1.bf16.msra.mxu0 %v3512_v42  ;;  %v2511_v42 = vsub.s32 %v2508_v33, %v563_v55 }
 0x139   : > { %2472 = vmatprep.subr.bf16.mxu0 %v3517_v43 }
 0x13c   : > { %2473 = vmatpush1.bf16.msra.mxu0 %v3515_v44 }
 0x13d   : > { %2474 = vmatprep.subr.bf16.mxu0 %v3520_v45 }
 0x140   : > { %2475 = vmatpush1.bf16.msra.mxu0 %v3518_v46 }
 0x141   : > { %2476 = vmatprep.subr.bf16.mxu0 %v3523_v47 }
 0x144   : > { %2477 = vmatpush1.bf16.msra.mxu0 %v3521_v48 }
 0x147   : > { %2479 = vmatmul.mubr.bf16.vlgmr.msra.gmra.mrb[0].mxu0 %v3524_v49 }
 0x1d9   : > { %v2265_v50 = vpop.f32.mrb[0].mxu1 }
 0x1da   : > { %v2267_v51 = vpop.f32.mrb[1].mxu1  ;;  %v3022_v61 = vadd.f32 %v2265_v50, %v565_v59 }
 0x1db   : > { %v2269_v52 = vpop.f32.mrb[2].mxu1  ;;  %v3024_v62 = vadd.f32 %v2267_v51, %v569_v60 }
 0x1dc   : > { %v2271_v53 = vpop.f32.mrb[3].mxu1  ;;  %v3026_v0 = vadd.f32 %v2269_v52, %v565_v59 }
 0x1dd   : > { %v3028_v3 = vadd.f32 %v2271_v53, %v569_v60 }
 0x21a   : > { %v2480_v63 = vpop.f32.mrb[0].mxu0 }
 0x21b   : > { %v3023_v1 = vadd.f32 %v3022_v61, %v2480_v63  ;;  %v2482_v2 = vpop.f32.mrb[1].mxu0 }
 0x21c   : > { %v3025_v4 = vadd.f32 %v3024_v62, %v2482_v2  ;;  %v2484_v5 = vpop.f32.mrb[2].mxu0 }
 0x21d   : > { %v3027_v6 = vadd.f32 %v3026_v0, %v2484_v5  ;;  %v2486_v7 = vpop.f32.mrb[3].mxu0  ;;  %v2526_v10 = vmul.f32 %v3023_v1, %v3023_v1 }
 0x21e   : > { %v3020_v8 = vpack.c.bf16 %v3025_v4, %v3023_v1  ;;  %v3029_v9 = vadd.f32 %v3028_v3, %v2486_v7  ;;  %v2527_v13 = vmul.f32 %v3025_v4, %v3025_v4 }
 0x21f   : > { %v2489_v11 = vadd.f32 %v3027_v6, %v3023_v1  ;;  %v2528_v12 = vmul.f32 %v3027_v6, %v3027_v6 }
 0x220   : > { %2575 = vst [vmem:[%s244_s6] sm:$0xff] %v3020_v8  ;;  %v2496_v14 = vadd.f32 %v3029_v9, %v3025_v4  ;;  %v2529_v15 = vmul.f32 %v3029_v9, %v3029_v9  ;;  %v3021_v16 = vpack.c.bf16 %v3029_v9, %v3027_v6 }
 0x221   : > { %v2490_v17 = vrot.slane %v2489_v11, 4  ;;  %v2530_v18 = vadd.f32 %v2528_v12, %v2526_v10 }
 0x222   : > { %v2497_v19 = vrot.slane %v2496_v14, 4  ;;  %v2537_v20 = vadd.f32 %v2529_v15, %v2527_v13  ;;  %2576 = vst [vmem:[%s244_s6 + $0x8] sm:$0xff] %v3021_v16 }
 0x223   : > { %v2491_v21 = vadd.f32 %v2490_v17, %v2489_v11  ;;  %v2531_v22 = vrot.slane %v2530_v18, 4 }
 0x224   : > { %v2498_v25 = vadd.f32 %v2497_v19, %v2496_v14  ;;  %v2538_v26 = vrot.slane %v2537_v20, 4 }
 0x225   : > { %v2492_v27 = vrot.slane %v2491_v21, 2  ;;  %v2532_v28 = vadd.f32 %v2531_v22, %v2530_v18 }
 0x226   : > { %v2499_v29 = vrot.slane %v2498_v25, 2  ;;  %v2539_v30 = vadd.f32 %v2538_v26, %v2537_v20 }
 0x227   : > { %v2493_v31 = vadd.f32 %v2492_v27, %v2491_v21  ;;  %v2533_v32 = vrot.slane %v2532_v28, 2 }
 0x228   : > { %v2500_v34 = vadd.f32 %v2499_v29, %v2498_v25  ;;  %v2540_v35 = vrot.slane %v2539_v30, 2 }
 0x229   : > { %v2494_v36 = vrot.slane %v2493_v31, 1  ;;  %v2534_v37 = vadd.f32 %v2533_v32, %v2532_v28 }
 0x22a   : > { %v2501_v38 = vrot.slane %v2500_v34, 1  ;;  %v2541_v39 = vadd.f32 %v2540_v35, %v2539_v30 }
 0x22b   : > { %v2495_v40 = vadd.f32 %v2494_v36, %v2493_v31  ;;  %v2535_v41 = vrot.slane %v2534_v37, 1 }
 0x22c   : > { %v2502_v43 = vadd.f32 %v2501_v38, %v2500_v34  ;;  %v2542_v44 = vrot.slane %v2541_v39, 1 }
 0x22d   : > { %v2536_v45 = vadd.f32 %v2535_v41, %v2534_v37 }
 0x22e   : > { %v2505_v46 = vcombine.low %v2495_v40, %v2502_v43  ;;  %v2543_v47 = vadd.f32 %v2542_v44, %v2541_v39 }
 0x230   : > { %v2512_v48 = vrot.slane %v2505_v46, %v2511_v42  ;;  %v2546_v49 = vcombine.low %v2536_v45, %v2543_v47 }
 0x232   : > { %v2519_v50 = vrot.slane %v2512_v48, %v2511_v42  ;;  %v2553_v51 = vrot.slane %v2546_v49, %v2511_v42 }
 0x234   : > { %2525 = vst.msk [vmem:[%s249_s10] sm:$0x3] %vm2523_vm0, %v2519_v50  ;;  %v2560_v52 = vrot.slane %v2553_v51, %v2511_v42 }
 0x236   : > { %2562 = vst.msk [vmem:[%s253_s13] sm:$0x3] %vm2523_vm0, %v2560_v52 }
 0x237 PF: > { %s16_s18 = sadd.s32 1, %s3533_s18  }
 0x238   : > { %p13_p5 = scmp.ge.s32.totalorder %s16_s18, 4  }
 0x23a   :  { %15 = sbr.rel (!%p13_p5) target bundleno = 1 (0x1), region = 86 }

// kernel: advanced_colorizer_forward.34
= control target key start
LH: loop header
LB: loop body
LE: loop exit
PB: predicated region body
PF: predicated region fallthrough
CT: control target
= control target key end

     0   :  { %s2632_s18 = smov 0   ;;  %s3204_s0 = inlined_call_operand.vmem [shape: bf16[128,1152], index: 0, kind: input, shape index: {}]   ;;  %s3205_s1 = inlined_call_operand.vmem [shape: bf16[1152,256], index: 1, kind: input, shape index: {}]   ;;  %s3206_s2 = inlined_call_operand.vmem [shape: f32[1,256], index: 2, kind: input, shape index: {}]   ;;  %s3207_s3 = inlined_call_operand.vmem [shape: bf16[128,256], index: 3, kind: output, shape index: {0}]   ;;  %s3208_s4 = inlined_call_operand.vmem [shape: f32[2,1,256], index: 4, kind: output, shape index: {1}]   ;;  %s3209_s5 = inlined_call_operand.vmem [shape: f32[2,1,256], index: 5, kind: output, shape index: {2}]  }
   0x1 LB: > { %s2638_s19 = sadd.s32 4294967295, %s2598_s18   ;;  %p2010_p0 = scmp.ge.s32.totalorder %s2598_s18, 1  ;;  %s2598_s18 = sphi %s2632_s18, %s16_s18  }
   0x2   : > { %p194_p1 = scmp.lt.s32.totalorder %s2598_s18, 3 }
   0x4   : > { %p195_p2 = pnand %p2010_p0, %p194_p1 }
   0x5   : > { %v2324_v0 = vld [vmem:[%s3205_s1 + $0x4] ss:$8 sps:$4 sm:$0xff] (!%p195_p2)   ;;  %v2328_v2 = vld [vmem:[%s3205_s1] ss:$8 sps:$4 sm:$0xff] (!%p195_p2)   ;;  %v2330_v4 = vld [vmem:[%s3205_s1 + $0x14] ss:$8 sps:$4 sm:$0xff] (!%p195_p2)  }
   0x6   : > { %198 = sbr.rel (%p195_p2) target bundleno = 423 (0x1a7), region = 32  ;;  %v2326_v1 = vld [vmem:[%s3205_s1 + $0x204] ss:$8 sps:$4 sm:$0xff] (!%p195_p2)   ;;  %1355 = vmatprep.subr.bf16.mxu1 (!%p195_p2), %v2324_v0  ;;  %v2329_v3 = vld [vmem:[%s3205_s1 + $0x200] ss:$8 sps:$4 sm:$0xff] (!%p195_p2)   ;;  %s2011_s9 = sshll.u32 (!%p195_p2), %s2638_s19, 3 }
   0x7   : > { %1501 = vmatprep.subr.bf16.mxu0 (!%p195_p2), %v2326_v1  ;;  %1356 = vmatpush1.bf16.msra.mxu1 (!%p195_p2), %v2328_v2  ;;  %v2332_v5 = vld [vmem:[%s3205_s1 + $0x214] ss:$8 sps:$4 sm:$0xff] (!%p195_p2)   ;;  %v2334_v6 = vld [vmem:[%s3205_s1 + $0x10] ss:$8 sps:$4 sm:$0xff] (!%p195_p2)   ;;  %v2336_v8 = vld [vmem:[%s3205_s1 + $0x24] ss:$8 sps:$4 sm:$0xff] (!%p195_p2)  }
   0x8   : > { %1502 = vmatpush1.bf16.msra.mxu0 (!%p195_p2), %v2329_v3  ;;  %1357 = vmatprep.subr.bf16.mxu1 (!%p195_p2), %v2330_v4  ;;  %v2335_v7 = vld [vmem:[%s3205_s1 + $0x210] ss:$8 sps:$4 sm:$0xff] (!%p195_p2)   ;;  %v2338_v9 = vld [vmem:[%s3205_s1 + $0x224] ss:$8 sps:$4 sm:$0xff] (!%p195_p2)   ;;  %v2340_v10 = vld [vmem:[%s3205_s1 + $0x20] ss:$8 sps:$4 sm:$0xff] (!%p195_p2)  }
   0x9   : > { %1503 = vmatprep.subr.bf16.mxu0 (!%p195_p2), %v2332_v5  ;;  %v2341_v11 = vld [vmem:[%s3205_s1 + $0x220] ss:$8 sps:$4 sm:$0xff] (!%p195_p2)   ;;  %v2342_v12 = vld [vmem:[%s3205_s1 + $0x34] ss:$8 sps:$4 sm:$0xff] (!%p195_p2)   ;;  %v2346_v14 = vld [vmem:[%s3205_s1 + $0x30] ss:$8 sps:$4 sm:$0xff] (!%p195_p2)  }
   0xa   : > { %v2344_v13 = vld [vmem:[%s3205_s1 + $0x234] ss:$8 sps:$4 sm:$0xff] (!%p195_p2)   ;;  %v2347_v15 = vld [vmem:[%s3205_s1 + $0x230] ss:$8 sps:$4 sm:$0xff] (!%p195_p2)   ;;  %v2348_v16 = vld [vmem:[%s3205_s1 + $0x44] ss:$8 sps:$4 sm:$0xff] (!%p195_p2)  }
   0xb   : > { %1358 = vmatpush1.bf16.msra.mxu1 (!%p195_p2), %v2334_v6  ;;  %v2350_v17 = vld [vmem:[%s3205_s1 + $0x244] ss:$8 sps:$4 sm:$0xff] (!%p195_p2)   ;;  %v2352_v18 = vld [vmem:[%s3205_s1 + $0x40] ss:$8 sps:$4 sm:$0xff] (!%p195_p2)   ;;  %v2354_v20 = vld [vmem:[%s3205_s1 + $0x54] ss:$8 sps:$4 sm:$0xff] (!%p195_p2)  }
   0xc   : > { %1504 = vmatpush1.bf16.msra.mxu0 (!%p195_p2), %v2335_v7  ;;  %1359 = vmatprep.subr.bf16.mxu1 (!%p195_p2), %v2336_v8  ;;  %v2353_v19 = vld [vmem:[%s3205_s1 + $0x240] ss:$8 sps:$4 sm:$0xff] (!%p195_p2)   ;;  %v2356_v21 = vld [vmem:[%s3205_s1 + $0x254] ss:$8 sps:$4 sm:$0xff] (!%p195_p2)   ;;  %v2358_v22 = vld [vmem:[%s3205_s1 + $0x50] ss:$8 sps:$4 sm:$0xff] (!%p195_p2)  }
   0xd   : > { %1505 = vmatprep.subr.bf16.mxu0 %v2338_v9  ;;  %v2359_v23 = vld [vmem:[%s3205_s1 + $0x250] ss:$8 sps:$4 sm:$0xff]   ;;  %v2360_v24 = vld [vmem:[%s3205_s1 + $0x64] ss:$8 sps:$4 sm:$0xff]   ;;  %v2364_v26 = vld [vmem:[%s3205_s1 + $0x60] ss:$8 sps:$4 sm:$0xff]  }
   0xe   : > { %v2362_v25 = vld [vmem:[%s3205_s1 + $0x264] ss:$8 sps:$4 sm:$0xff]   ;;  %v2365_v27 = vld [vmem:[%s3205_s1 + $0x260] ss:$8 sps:$4 sm:$0xff]   ;;  %v2366_v28 = vld [vmem:[%s3205_s1 + $0x74] ss:$8 sps:$4 sm:$0xff]  }
   0xf   : > { %1360 = vmatpush1.bf16.msra.mxu1 %v2340_v10  ;;  %v2368_v29 = vld [vmem:[%s3205_s1 + $0x274] ss:$8 sps:$4 sm:$0xff]   ;;  %v2370_v30 = vld [vmem:[%s3205_s1 + $0x70] ss:$8 sps:$4 sm:$0xff]   ;;  %v2372_v32 = vld [vmem:[%s3205_s1 + $0x84] ss:$8 sps:$4 sm:$0xff]  }
  0x10   : > { %1506 = vmatpush1.bf16.msra.mxu0 %v2341_v11  ;;  %1361 = vmatprep.subr.bf16.mxu1 %v2342_v12  ;;  %v2371_v31 = vld [vmem:[%s3205_s1 + $0x270] ss:$8 sps:$4 sm:$0xff]   ;;  %p233_p3 = scmp.lt.s32.totalorder %s2011_s9, 15  ;;  %v2374_v33 = vld [vmem:[%s3205_s1 + $0x284] ss:$8 sps:$4 sm:$0xff]   ;;  %p246_p4 = scmp.lt.s32.totalorder %s2638_s19, 1 }
  0x11   : > { %1507 = vmatprep.subr.bf16.mxu0 %v2344_v13  ;;  %v2376_v34 = vld [vmem:[%s3205_s1 + $0x80] ss:$8 sps:$4 sm:$0xff]   ;;  %v2378_v36 = vld [vmem:[%s3205_s1 + $0x94] ss:$8 sps:$4 sm:$0xff]   ;;  %v2382_v38 = vld [vmem:[%s3205_s1 + $0x90] ss:$8 sps:$4 sm:$0xff]  }
  0x12   : > { %v2377_v35 = vld [vmem:[%s3205_s1 + $0x280] ss:$8 sps:$4 sm:$0xff]   ;;  %s3211_s9 = smov (!%p233_p3, %s2011_s9), 15  ;;  %v2380_v37 = vld [vmem:[%s3205_s1 + $0x294] ss:$8 sps:$4 sm:$0xff]   ;;  %s3213_s19 = smov (!%p246_p4, %s2638_s19), 1 }
  0x13   : > { %1362 = vmatpush1.bf16.msra.mxu1 %v2346_v14  ;;  %v2383_v39 = vld [vmem:[%s3205_s1 + $0x290] ss:$8 sps:$4 sm:$0xff]   ;;  %v2384_v40 = vld [vmem:[%s3205_s1 + $0xa4] ss:$8 sps:$4 sm:$0xff]   ;;  %s2313_s10 = smul.u32 36, %s3211_s9 }
  0x14   : > { %1508 = vmatpush1.bf16.msra.mxu0 %v2347_v15  ;;  %1363 = vmatprep.subr.bf16.mxu1 %v2348_v16  ;;  %v2386_v41 = vld [vmem:[%s3205_s1 + $0x2a4] ss:$8 sps:$4 sm:$0xff]   ;;  %v2388_v42 = vld [vmem:[%s3205_s1 + $0xa0] ss:$8 sps:$4 sm:$0xff]   ;;  %v2390_v44 = vld [vmem:[%s3205_s1 + $0xb4] ss:$8 sps:$4 sm:$0xff]  }
  0x15   : > { %1509 = vmatprep.subr.bf16.mxu0 %v2350_v17  ;;  %v2389_v43 = vld [vmem:[%s3205_s1 + $0x2a0] ss:$8 sps:$4 sm:$0xff]   ;;  %s2784_s23 = scalar_lea.vmem %s3204_s0, %s2313_s10  ;;  %v2392_v45 = vld [vmem:[%s3205_s1 + $0x2b4] ss:$8 sps:$4 sm:$0xff]   ;;  %v2394_v46 = vld [vmem:[%s3205_s1 + $0xb0] ss:$8 sps:$4 sm:$0xff]  }
  0x16   : > { %v2395_v47 = vld [vmem:[%s3205_s1 + $0x2b0] ss:$8 sps:$4 sm:$0xff]   ;;  %v2422_v48 = vld [vmem:[%s2784_s23 + $0x4] ss:$36 sps:$4 sm:$0xff]   ;;  %v2402_v54 = vld [vmem:[%s3205_s1 + $0xd4] ss:$8 sps:$4 sm:$0xff]  }
  0x17   : > { %1364 = vmatpush1.bf16.msra.mxu1 %v2352_v18  ;;  %v2396_v49 = vld [vmem:[%s3205_s1 + $0xc4] ss:$8 sps:$4 sm:$0xff]   ;;  %1387 = vmatprep.mubr.bf16.mxu1 %v2422_v48  ;;  %v2428_v51 = vld [vmem:[%s2784_s23 + $0x14] ss:$36 sps:$4 sm:$0xff]   ;;  %v2400_v52 = vld [vmem:[%s3205_s1 + $0xc0] ss:$8 sps:$4 sm:$0xff]  }
  0x18   : > { %1510 = vmatpush1.bf16.msra.mxu0 %v2353_v19  ;;  %1365 = vmatprep.subr.bf16.mxu1 %v2354_v20  ;;  %v2398_v50 = vld [vmem:[%s3205_s1 + $0x2c4] ss:$8 sps:$4 sm:$0xff]   ;;  %v2401_v53 = vld [vmem:[%s3205_s1 + $0x2c0] ss:$8 sps:$4 sm:$0xff]   ;;  %v2404_v55 = vld [vmem:[%s3205_s1 + $0x2d4] ss:$8 sps:$4 sm:$0xff]  }
  0x19   : > { %1511 = vmatprep.subr.bf16.mxu0 %v2356_v21  ;;  %1533 = vmatprep.mubr.bf16.mxu0 %v2428_v51  ;;  %v2406_v56 = vld [vmem:[%s3205_s1 + $0xd0] ss:$8 sps:$4 sm:$0xff]   ;;  %v2408_v58 = vld [vmem:[%s3205_s1 + $0xe4] ss:$8 sps:$4 sm:$0xff]   ;;  %v2412_v60 = vld [vmem:[%s3205_s1 + $0xe0] ss:$8 sps:$4 sm:$0xff]  }
  0x1a   : > { %v2407_v57 = vld [vmem:[%s3205_s1 + $0x2d0] ss:$8 sps:$4 sm:$0xff]   ;;  %v2410_v59 = vld [vmem:[%s3205_s1 + $0x2e4] ss:$8 sps:$4 sm:$0xff]   ;;  %v2413_v61 = vld [vmem:[%s3205_s1 + $0x2e0] ss:$8 sps:$4 sm:$0xff]  }
  0x1b   : > { %1366 = vmatpush1.bf16.msra.mxu1 %v2358_v22  ;;  %v2414_v62 = vld [vmem:[%s3205_s1 + $0xf4] ss:$8 sps:$4 sm:$0xff]   ;;  %v2418_v0 = vld [vmem:[%s3205_s1 + $0xf0] ss:$8 sps:$4 sm:$0xff]   ;;  %v2425_v2 = vld [vmem:[%s3205_s1 + $0x104] ss:$8 sps:$4 sm:$0xff]  }
  0x1c   : > { %1512 = vmatpush1.bf16.msra.mxu0 %v2359_v23  ;;  %1367 = vmatprep.subr.bf16.mxu1 %v2360_v24  ;;  %v2416_v63 = vld [vmem:[%s3205_s1 + $0x2f4] ss:$8 sps:$4 sm:$0xff]   ;;  %v2419_v1 = vld [vmem:[%s3205_s1 + $0x2f0] ss:$8 sps:$4 sm:$0xff]   ;;  %v2431_v3 = vld [vmem:[%s3205_s1 + $0x304] ss:$8 sps:$4 sm:$0xff]  }
  0x1d   : > { %1513 = vmatprep.subr.bf16.mxu0 %v2362_v25  ;;  %v2420_v4 = vld [vmem:[%s2784_s23] ss:$36 sps:$4 sm:$0xff]   ;;  %v2426_v6 = vld [vmem:[%s2784_s23 + $0x10] ss:$36 sps:$4 sm:$0xff]   ;;  %v2490_v20 = vld [vmem:[%s2784_s23 + $0x48] ss:$36 sps:$4 sm:$0xff]  }
  0x1e   : > { %v2423_v5 = vld [vmem:[%s3205_s1 + $0x100] ss:$8 sps:$4 sm:$0xff]   ;;  %v2434_v8 = vld [vmem:[%s3205_s1 + $0x114] ss:$8 sps:$4 sm:$0xff]   ;;  %v2432_v10 = vld [vmem:[%s3205_s1 + $0x110] ss:$8 sps:$4 sm:$0xff]  }
  0x1f   : > { %1368 = vmatpush1.bf16.msra.mxu1 %v2364_v26  ;;  %v2429_v7 = vld [vmem:[%s3205_s1 + $0x300] ss:$8 sps:$4 sm:$0xff]   ;;  %v2437_v9 = vld [vmem:[%s3205_s1 + $0x314] ss:$8 sps:$4 sm:$0xff]   ;;  %v2435_v11 = vld [vmem:[%s3205_s1 + $0x310] ss:$8 sps:$4 sm:$0xff]  }
  0x20   : > { %1514 = vmatpush1.bf16.msra.mxu0 %v2365_v27  ;;  %1369 = vmatprep.subr.bf16.mxu1 %v2366_v28  ;;  %v2440_v12 = vld [vmem:[%s3205_s1 + $0x124] ss:$8 sps:$4 sm:$0xff]   ;;  %v2438_v14 = vld [vmem:[%s3205_s1 + $0x120] ss:$8 sps:$4 sm:$0xff]   ;;  %v2446_v16 = vld [vmem:[%s3205_s1 + $0x134] ss:$8 sps:$4 sm:$0xff]  }
  0x21   : > { %1515 = vmatprep.subr.bf16.mxu0 %v2368_v29  ;;  %v2443_v13 = vld [vmem:[%s3205_s1 + $0x324] ss:$8 sps:$4 sm:$0xff]   ;;  %v2441_v15 = vld [vmem:[%s3205_s1 + $0x320] ss:$8 sps:$4 sm:$0xff]   ;;  %v2449_v17 = vld [vmem:[%s3205_s1 + $0x334] ss:$8 sps:$4 sm:$0xff]  }
  0x22   : > { %v2486_v18 = vld [vmem:[%s2784_s23 + $0x4c] ss:$36 sps:$4 sm:$0xff]   ;;  %v2488_v19 = vld [vmem:[%s2784_s23 + $0x5c] ss:$36 sps:$4 sm:$0xff]   ;;  %s2208_s10 = sshll.u32 %s3211_s9, 3  ;;  %s2016_s9 = sshll.u32 %s3213_s19, 1 }
  0x23   : > { %1370 = vmatpush1.bf16.msra.mxu1 %v2370_v30  ;;  %v2444_v21 = vld [vmem:[%s3205_s1 + $0x130] ss:$8 sps:$4 sm:$0xff]   ;;  %v2452_v24 = vld [vmem:[%s3205_s1 + $0x144] ss:$8 sps:$4 sm:$0xff]   ;;  %v2450_v26 = vld [vmem:[%s3205_s1 + $0x140] ss:$8 sps:$4 sm:$0xff]   ;;  %s3163_s13 = scalar_lea.vmem %s3207_s3, %s2208_s10  ;;  %s249_s16 = scalar_lea.vmem %s3208_s4, %s2016_s9 }
  0x24   : > { %1516 = vmatpush1.bf16.msra.mxu0 %v2371_v31  ;;  %1371 = vmatprep.subr.bf16.mxu1 %v2372_v32  ;;  %v2447_v22 = vld [vmem:[%s3205_s1 + $0x330] ss:$8 sps:$4 sm:$0xff]   ;;  %v2455_v25 = vld [vmem:[%s3205_s1 + $0x344] ss:$8 sps:$4 sm:$0xff]   ;;  %v2453_v27 = vld [vmem:[%s3205_s1 + $0x340] ss:$8 sps:$4 sm:$0xff]   ;;  %s253_s21 = scalar_lea.vmem %s3209_s5, %s2016_s9 }
  0x25   : > { %1517 = vmatprep.subr.bf16.mxu0 %v2374_v33  ;;  %v2494_v23 = vld [vmem:[%s2784_s23 + $0x58] ss:$36 sps:$4 sm:$0xff]   ;;  %v2506_v31 = vld [vmem:[%s2784_s23 + $0xa4] ss:$36 sps:$4 sm:$0xff]   ;;  %v2508_v32 = vld [vmem:[%s2784_s23 + $0x90] ss:$36 sps:$4 sm:$0xff]  }
  0x26   : > { %v2458_v28 = vld [vmem:[%s3205_s1 + $0x154] ss:$8 sps:$4 sm:$0xff]   ;;  %v2456_v33 = vld [vmem:[%s3205_s1 + $0x150] ss:$8 sps:$4 sm:$0xff]   ;;  %v2476_v48 = vld [vmem:[%s3205_s1 + $0x184] ss:$8 sps:$4 sm:$0xff]  }
  0x27   : > { %1372 = vmatpush1.bf16.msra.mxu1 %v2376_v34  ;;  %v2461_v29 = vld [vmem:[%s3205_s1 + $0x354] ss:$8 sps:$4 sm:$0xff]   ;;  %v2459_v34 = vld [vmem:[%s3205_s1 + $0x350] ss:$8 sps:$4 sm:$0xff]   ;;  %v2477_v51 = vld [vmem:[%s3205_s1 + $0x380] ss:$8 sps:$4 sm:$0xff]  }
  0x28   : > { %1518 = vmatpush1.bf16.msra.mxu0 %v2377_v35  ;;  %1373 = vmatprep.subr.bf16.mxu1 %v2378_v36  ;;  %v2504_v30 = vld [vmem:[%s2784_s23 + $0x94] ss:$36 sps:$4 sm:$0xff]   ;;  %v2512_v35 = vld [vmem:[%s2784_s23 + $0xa0] ss:$36 sps:$4 sm:$0xff]  }
  0x29   : > { %1519 = vmatprep.subr.bf16.mxu0 %v2380_v37  ;;  %v2464_v36 = vld [vmem:[%s3205_s1 + $0x164] ss:$8 sps:$4 sm:$0xff]  }
  0x2a   : > { %v2467_v37 = vld [vmem:[%s3205_s1 + $0x364] ss:$8 sps:$4 sm:$0xff]  }
  0x2b   : > { %1374 = vmatpush1.bf16.msra.mxu1 %v2382_v38  ;;  %v2462_v38 = vld [vmem:[%s3205_s1 + $0x160] ss:$8 sps:$4 sm:$0xff]  }
  0x2c   : > { %1520 = vmatpush1.bf16.msra.mxu0 %v2383_v39  ;;  %1375 = vmatprep.subr.bf16.mxu1 %v2384_v40  ;;  %v2465_v39 = vld [vmem:[%s3205_s1 + $0x360] ss:$8 sps:$4 sm:$0xff]   ;;  %v2470_v40 = vld [vmem:[%s3205_s1 + $0x174] ss:$8 sps:$4 sm:$0xff]  }
  0x2d   : > { %1521 = vmatprep.subr.bf16.mxu0 %v2386_v41  ;;  %v2473_v41 = vld [vmem:[%s3205_s1 + $0x374] ss:$8 sps:$4 sm:$0xff]  }
  0x2f   : > { %1376 = vmatpush1.bf16.msra.mxu1 %v2388_v42  ;;  %v2522_v42 = vld [vmem:[%s2784_s23 + $0xdc] ss:$36 sps:$4 sm:$0xff]  }
  0x30   : > { %1522 = vmatpush1.bf16.msra.mxu0 %v2389_v43  ;;  %1377 = vmatprep.subr.bf16.mxu1 %v2390_v44  ;;  %v2524_v43 = vld [vmem:[%s2784_s23 + $0xec] ss:$36 sps:$4 sm:$0xff]   ;;  %v2526_v44 = vld [vmem:[%s2784_s23 + $0xd8] ss:$36 sps:$4 sm:$0xff]  }
  0x31   : > { %1523 = vmatprep.subr.bf16.mxu0 %v2392_v45  ;;  %v2468_v45 = vld [vmem:[%s3205_s1 + $0x170] ss:$8 sps:$4 sm:$0xff]  }
  0x33   : > { %1378 = vmatpush1.bf16.msra.mxu1 %v2394_v46  ;;  %v2471_v46 = vld [vmem:[%s3205_s1 + $0x370] ss:$8 sps:$4 sm:$0xff]  }
  0x34   : > { %1524 = vmatpush1.bf16.msra.mxu0 %v2395_v47  ;;  %1379 = vmatprep.subr.bf16.mxu1 %v2396_v49  ;;  %v2530_v47 = vld [vmem:[%s2784_s23 + $0xe8] ss:$36 sps:$4 sm:$0xff]  }
  0x35   : > { %1525 = vmatprep.subr.bf16.mxu0 %v2398_v50  ;;  %v2479_v49 = vld [vmem:[%s3205_s1 + $0x384] ss:$8 sps:$4 sm:$0xff]   ;;  %v2474_v50 = vld [vmem:[%s3205_s1 + $0x180] ss:$8 sps:$4 sm:$0xff]  }
  0x37   : > { %1380 = vmatpush1.bf16.msra.mxu1 %v2400_v52  ;;  %v2482_v52 = vld [vmem:[%s3205_s1 + $0x194] ss:$8 sps:$4 sm:$0xff]  }
  0x38   : > { %1526 = vmatpush1.bf16.msra.mxu0 %v2401_v53  ;;  %1381 = vmatprep.subr.bf16.mxu1 %v2402_v54  ;;  %v2485_v53 = vld [vmem:[%s3205_s1 + $0x394] ss:$8 sps:$4 sm:$0xff]   ;;  %v2542_v54 = vld [vmem:[%s2784_s23 + $0xc] ss:$36 sps:$4 sm:$0xff]  }
  0x39   : > { %1527 = vmatprep.subr.bf16.mxu0 %v2404_v55  ;;  %v2545_v55 = vld [vmem:[%s2784_s23 + $0x1c] ss:$36 sps:$4 sm:$0xff]  }
  0x3b   : > { %1382 = vmatpush1.bf16.msra.mxu1 %v2406_v56  ;;  %v2480_v56 = vld [vmem:[%s3205_s1 + $0x190] ss:$8 sps:$4 sm:$0xff]  }
  0x3c   : > { %1528 = vmatpush1.bf16.msra.mxu0 %v2407_v57  ;;  %1383 = vmatprep.subr.bf16.mxu1 %v2408_v58  ;;  %v2483_v57 = vld [vmem:[%s3205_s1 + $0x390] ss:$8 sps:$4 sm:$0xff]   ;;  %v2493_v58 = vld [vmem:[%s3205_s1 + $0x1a4] ss:$8 sps:$4 sm:$0xff]  }
  0x3d   : > { %1529 = vmatprep.subr.bf16.mxu0 %v2410_v59  ;;  %v2497_v59 = vld [vmem:[%s3205_s1 + $0x3a4] ss:$8 sps:$4 sm:$0xff]  }
  0x3f   : > { %1384 = vmatpush1.bf16.msra.mxu1 %v2412_v60  ;;  %v2491_v60 = vld [vmem:[%s3205_s1 + $0x1a0] ss:$8 sps:$4 sm:$0xff]  }
  0x40   : > { %1530 = vmatpush1.bf16.msra.mxu0 %v2413_v61  ;;  %1385 = vmatprep.subr.bf16.mxu1 %v2414_v62  ;;  %v2495_v61 = vld [vmem:[%s3205_s1 + $0x3a0] ss:$8 sps:$4 sm:$0xff]   ;;  %v2500_v62 = vld [vmem:[%s3205_s1 + $0x1b4] ss:$8 sps:$4 sm:$0xff]  }
  0x41   : > { %1531 = vmatprep.subr.bf16.mxu0 %v2416_v63  ;;  %v2503_v63 = vld [vmem:[%s3205_s1 + $0x3b4] ss:$8 sps:$4 sm:$0xff]  }
  0x43   : > { %1386 = vmatpush1.bf16.msra.mxu1 %v2418_v0  ;;  %v2498_v0 = vld [vmem:[%s3205_s1 + $0x1b0] ss:$8 sps:$4 sm:$0xff]  }
  0x44   : > { %1532 = vmatpush1.bf16.msra.mxu0 %v2419_v1  ;;  %1428 = vmatprep.subr.bf16.mxu1 %v2425_v2  ;;  %v2501_v1 = vld [vmem:[%s3205_s1 + $0x3b0] ss:$8 sps:$4 sm:$0xff]   ;;  %v2511_v2 = vld [vmem:[%s3205_s1 + $0x1c4] ss:$8 sps:$4 sm:$0xff]  }
  0x45   : > { %1574 = vmatprep.subr.bf16.mxu0 %v2431_v3  ;;  %v2515_v3 = vld [vmem:[%s3205_s1 + $0x3c4] ss:$8 sps:$4 sm:$0xff]  }
  0x46   : > { %1388 = vmatmul.mubr.bf16.vlgmr.msra.gmra.mrb[0].mxu1 %v2420_v4  ;;  %v2509_v4 = vld [vmem:[%s3205_s1 + $0x1c0] ss:$8 sps:$4 sm:$0xff]  }
  0x47   : > { %1534 = vmatmul.mubr.bf16.vlgmr.msra.gmra.mrb[0].mxu0 %v2426_v6  ;;  %1429 = vmatpush1.bf16.msra.mxu1 %v2423_v5  ;;  %v2513_v5 = vld [vmem:[%s3205_s1 + $0x3c0] ss:$8 sps:$4 sm:$0xff]   ;;  %v2518_v6 = vld [vmem:[%s3205_s1 + $0x1d4] ss:$8 sps:$4 sm:$0xff]  }
  0x48   : > { %1575 = vmatpush1.bf16.msra.mxu0 %v2429_v7  ;;  %1430 = vmatprep.subr.bf16.mxu1 %v2434_v8  ;;  %v2521_v7 = vld [vmem:[%s3205_s1 + $0x3d4] ss:$8 sps:$4 sm:$0xff]   ;;  %v2516_v8 = vld [vmem:[%s3205_s1 + $0x1d0] ss:$8 sps:$4 sm:$0xff]  }
  0x49   : > { %1576 = vmatprep.subr.bf16.mxu0 %v2437_v9  ;;  %1397 = vmatprep.mubr.bf16.mxu1 %v2486_v18  ;;  %v2519_v9 = vld [vmem:[%s3205_s1 + $0x3d0] ss:$8 sps:$4 sm:$0xff]   ;;  %v2548_v18 = vld [vmem:[%s3205_s1 + $0x404] ss:$8 sps:$4 sm:$0xff]  }
  0x4a   : > { %1543 = vmatprep.mubr.bf16.mxu0 %v2488_v19  ;;  %v2540_v19 = vld [vmem:[%s2784_s23 + $0x8] ss:$36 sps:$4 sm:$0xff]  }
  0x4b   : > { %1431 = vmatpush1.bf16.msra.mxu1 %v2432_v10  ;;  %v2529_v10 = vld [vmem:[%s3205_s1 + $0x1e4] ss:$8 sps:$4 sm:$0xff]  }
  0x4c   : > { %1577 = vmatpush1.bf16.msra.mxu0 %v2435_v11  ;;  %1432 = vmatprep.subr.bf16.mxu1 %v2440_v12  ;;  %v2533_v11 = vld [vmem:[%s3205_s1 + $0x3e4] ss:$8 sps:$4 sm:$0xff]   ;;  %v2527_v12 = vld [vmem:[%s3205_s1 + $0x1e0] ss:$8 sps:$4 sm:$0xff]  }
  0x4d   : > { %1578 = vmatprep.subr.bf16.mxu0 %v2443_v13  ;;  %v2531_v13 = vld [vmem:[%s3205_s1 + $0x3e0] ss:$8 sps:$4 sm:$0xff]  }
  0x4e   : > { %1398 = vmatmul.mubr.bf16.gmra.mrb[4].mxu1 %v2490_v20  ;;  %v2543_v20 = vld [vmem:[%s2784_s23 + $0x18] ss:$36 sps:$4 sm:$0xff]  }
  0x4f   : > { %1433 = vmatpush1.bf16.msra.mxu1 %v2438_v14  ;;  %1544 = vmatmul.mubr.bf16.gmra.mrb[4].mxu0 %v2494_v23  ;;  %v2536_v14 = vld [vmem:[%s3205_s1 + $0x1f4] ss:$8 sps:$4 sm:$0xff]  }
  0x50   : > { %1579 = vmatpush1.bf16.msra.mxu0 %v2441_v15  ;;  %1434 = vmatprep.subr.bf16.mxu1 %v2446_v16  ;;  %v2539_v15 = vld [vmem:[%s3205_s1 + $0x3f4] ss:$8 sps:$4 sm:$0xff]   ;;  %v2534_v16 = vld [vmem:[%s3205_s1 + $0x1f0] ss:$8 sps:$4 sm:$0xff]  }
  0x51   : > { %1580 = vmatprep.subr.bf16.mxu0 %v2449_v17  ;;  %1407 = vmatprep.mubr.bf16.mxu1 %v2504_v30  ;;  %v2537_v17 = vld [vmem:[%s3205_s1 + $0x3f0] ss:$8 sps:$4 sm:$0xff]   ;;  %v2563_v30 = vld [vmem:[%s3205_s1 + $0x434] ss:$8 sps:$4 sm:$0xff]  }
  0x52   : > { %1553 = vmatprep.mubr.bf16.mxu0 %v2506_v31  ;;  %v2552_v23 = vld [vmem:[%s2784_s23 + $0x54] ss:$36 sps:$4 sm:$0xff]   ;;  %v2564_v31 = vld [vmem:[%s2784_s23 + $0x9c] ss:$36 sps:$4 sm:$0xff]  }
  0x53   : > { %1435 = vmatpush1.bf16.msra.mxu1 %v2444_v21  ;;  %v2546_v21 = vld [vmem:[%s3205_s1 + $0x400] ss:$8 sps:$4 sm:$0xff]  }
  0x54   : > { %1581 = vmatpush1.bf16.msra.mxu0 %v2447_v22  ;;  %1436 = vmatprep.subr.bf16.mxu1 %v2452_v24  ;;  %v2551_v22 = vld [vmem:[%s3205_s1 + $0x414] ss:$8 sps:$4 sm:$0xff]   ;;  %v2554_v24 = vld [vmem:[%s2784_s23 + $0x64] ss:$36 sps:$4 sm:$0xff]  }
  0x55   : > { %1582 = vmatprep.subr.bf16.mxu0 %v2455_v25  ;;  %v2549_v25 = vld [vmem:[%s3205_s1 + $0x410] ss:$8 sps:$4 sm:$0xff]  }
  0x56   : > { %1408 = vmatmul.mubr.bf16.gmra.mrb[8].mxu1 %v2508_v32  ;;  %v2566_v32 = vld [vmem:[%s2784_s23 + $0xac] ss:$36 sps:$4 sm:$0xff]  }
  0x57   : > { %1437 = vmatpush1.bf16.msra.mxu1 %v2450_v26  ;;  %1554 = vmatmul.mubr.bf16.gmra.mrb[8].mxu0 %v2512_v35  ;;  %v2560_v26 = vld [vmem:[%s3205_s1 + $0x424] ss:$8 sps:$4 sm:$0xff]   ;;  %v2568_v35 = vld [vmem:[%s2784_s23 + $0x98] ss:$36 sps:$4 sm:$0xff]  }
  0x58   : > { %1583 = vmatpush1.bf16.msra.mxu0 %v2453_v27  ;;  %1438 = vmatprep.subr.bf16.mxu1 %v2458_v28  ;;  %v2556_v27 = vld [vmem:[%s2784_s23 + $0x50] ss:$36 sps:$4 sm:$0xff]   ;;  %v2557_v28 = vld [vmem:[%s2784_s23 + $0x60] ss:$36 sps:$4 sm:$0xff]  }
  0x59   : > { %1584 = vmatprep.subr.bf16.mxu0 %v2461_v29  ;;  %1417 = vmatprep.mubr.bf16.mxu1 %v2522_v42  ;;  %v2558_v29 = vld [vmem:[%s3205_s1 + $0x420] ss:$8 sps:$4 sm:$0xff]   ;;  %v2584_v42 = vld [vmem:[%s3205_s1 + $0x464] ss:$8 sps:$4 sm:$0xff]  }
  0x5a   : > { %1563 = vmatprep.mubr.bf16.mxu0 %v2524_v43  ;;  %v2580_v43 = vld [vmem:[%s2784_s23 + $0xe0] ss:$36 sps:$4 sm:$0xff]  }
  0x5b   : > { %1439 = vmatpush1.bf16.msra.mxu1 %v2456_v33  ;;  %v2561_v33 = vld [vmem:[%s3205_s1 + $0x430] ss:$8 sps:$4 sm:$0xff]  }
  0x5c   : > { %1585 = vmatpush1.bf16.msra.mxu0 %v2459_v34  ;;  %1440 = vmatprep.subr.bf16.mxu1 %v2464_v36  ;;  %v2572_v34 = vld [vmem:[%s3205_s1 + $0x444] ss:$8 sps:$4 sm:$0xff]  }
  0x5d   : > { %1586 = vmatprep.subr.bf16.mxu0 %v2467_v37  ;;  %v2569_v36 = vld [vmem:[%s2784_s23 + $0xa8] ss:$36 sps:$4 sm:$0xff]  }
  0x5e   : > { %1418 = vmatmul.mubr.bf16.gmra.mrb[12].mxu1 %v2526_v44  ;;  %v2570_v37 = vld [vmem:[%s3205_s1 + $0x440] ss:$8 sps:$4 sm:$0xff]   ;;  %v2581_v44 = vld [vmem:[%s2784_s23 + $0xf0] ss:$36 sps:$4 sm:$0xff]  }
  0x5f   : > { %1441 = vmatpush1.bf16.msra.mxu1 %v2462_v38  ;;  %1564 = vmatmul.mubr.bf16.gmra.mrb[12].mxu0 %v2530_v47  ;;  %v2575_v38 = vld [vmem:[%s3205_s1 + $0x454] ss:$8 sps:$4 sm:$0xff]   ;;  %v2585_v47 = vld [vmem:[%s3205_s1 + $0x470] ss:$8 sps:$4 sm:$0xff]  }
  0x60   : > { %1587 = vmatpush1.bf16.msra.mxu0 %v2465_v39  ;;  %1442 = vmatprep.subr.bf16.mxu1 %v2470_v40  ;;  %v2576_v39 = vld [vmem:[%s2784_s23 + $0xe4] ss:$36 sps:$4 sm:$0xff]   ;;  %v2578_v40 = vld [vmem:[%s2784_s23 + $0xf4] ss:$36 sps:$4 sm:$0xff]  }
  0x61   : > { %1588 = vmatprep.subr.bf16.mxu0 %v2473_v41  ;;  %1460 = vmatprep.mubr.bf16.mxu1 %v2542_v54  ;;  %v2573_v41 = vld [vmem:[%s3205_s1 + $0x450] ss:$8 sps:$4 sm:$0xff]  }
  0x62   : > { %1606 = vmatprep.mubr.bf16.mxu0 %v2545_v55 }
  0x63   : > { %1443 = vmatpush1.bf16.msra.mxu1 %v2468_v45  ;;  %v2582_v45 = vld [vmem:[%s3205_s1 + $0x460] ss:$8 sps:$4 sm:$0xff]  }
  0x64   : > { %1589 = vmatpush1.bf16.msra.mxu0 %v2471_v46  ;;  %1444 = vmatprep.subr.bf16.mxu1 %v2476_v48  ;;  %v2587_v46 = vld [vmem:[%s3205_s1 + $0x474] ss:$8 sps:$4 sm:$0xff]   ;;  %v2600_v48 = vmov 0  }
  0x65   : > { %1590 = vmatprep.subr.bf16.mxu0 %v2479_v49  ;;  %v2588_v49 = vld [vmem:[%s2784_s23 + $0x20] ss:$36 sps:$4 sm:$0xff]  }
  0x67   : > { %1445 = vmatpush1.bf16.msra.mxu1 %v2474_v50  ;;  %v2589_v50 = vld [vmem:[%s2784_s23 + $0xb0] ss:$36 sps:$4 sm:$0xff]  }
  0x68   : > { %1591 = vmatpush1.bf16.msra.mxu0 %v2477_v51  ;;  %1446 = vmatprep.subr.bf16.mxu1 %v2482_v52  ;;  %v2590_v51 = vld [vmem:[%s2784_s23 + $0x68] ss:$36 sps:$4 sm:$0xff]   ;;  %v2591_v52 = vld [vmem:[%s2784_s23 + $0xf8] ss:$36 sps:$4 sm:$0xff]  }
  0x69   : > { %1592 = vmatprep.subr.bf16.mxu0 %v2485_v53 }
  0x6b   : > { %1447 = vmatpush1.bf16.msra.mxu1 %v2480_v56  ;;  %v441_v56 = vlaneseq }
  0x6c   : > { %1593 = vmatpush1.bf16.msra.mxu0 %v2483_v57  ;;  %1448 = vmatprep.subr.bf16.mxu1 %v2493_v58 }
  0x6d   : > { %1594 = vmatprep.subr.bf16.mxu0 %v2497_v59  ;;  %v3120_v58 = vshrl.u32 %v441_v56, 7  ;;  %vm1766_vm0 = vcmp.lt.s32.totalorder %v441_v56, 256 }
  0x6f   : > { %1449 = vmatpush1.bf16.msra.mxu1 %v2491_v60 }
  0x70   : > { %1595 = vmatpush1.bf16.msra.mxu0 %v2495_v61  ;;  %1450 = vmatprep.subr.bf16.mxu1 %v2500_v62  ;;  %v443_v62 = vsub.s32 0, %v3120_v58 }
  0x71   : > { %1596 = vmatprep.subr.bf16.mxu0 %v2503_v63 }
  0x73   : > { %1451 = vmatpush1.bf16.msra.mxu1 %v2498_v0  ;;  %v439_v0 = vld [vmem:[%s3206_s2] sm:$0x3] }
  0x74   : > { %1597 = vmatpush1.bf16.msra.mxu0 %v2501_v1  ;;  %1452 = vmatprep.subr.bf16.mxu1 %v2511_v2  ;;  %v447_v1 = vsub.s32 1, %v3120_v58  ;;  %v3135_v2 = vrot.slane %v439_v0, %v443_v62 }
  0x75   : > { %1598 = vmatprep.subr.bf16.mxu0 %v2515_v3 }
  0x76   : > { %v3137_v3 = vrot.slane %v439_v0, %v447_v1 }
  0x77   : > { %1453 = vmatpush1.bf16.msra.mxu1 %v2509_v4 }
  0x78   : > { %1599 = vmatpush1.bf16.msra.mxu0 %v2513_v5  ;;  %1454 = vmatprep.subr.bf16.mxu1 %v2518_v6 }
  0x79   : > { %1600 = vmatprep.subr.bf16.mxu0 %v2521_v7 }
  0x7b   : > { %1455 = vmatpush1.bf16.msra.mxu1 %v2516_v8 }
  0x7c   : > { %1601 = vmatpush1.bf16.msra.mxu0 %v2519_v9  ;;  %1456 = vmatprep.subr.bf16.mxu1 %v2529_v10 }
  0x7d   : > { %1602 = vmatprep.subr.bf16.mxu0 %v2533_v11 }
  0x7f   : > { %1457 = vmatpush1.bf16.msra.mxu1 %v2527_v12 }
  0x80   : > { %1603 = vmatpush1.bf16.msra.mxu0 %v2531_v13  ;;  %1458 = vmatprep.subr.bf16.mxu1 %v2536_v14 }
  0x81   : > { %1604 = vmatprep.subr.bf16.mxu0 %v2539_v15 }
  0x83   : > { %1459 = vmatpush1.bf16.msra.mxu1 %v2534_v16 }
  0x84   : > { %1605 = vmatpush1.bf16.msra.mxu0 %v2537_v17  ;;  %2217 = vmatprep.subr.bf16.mxu1 %v2548_v18 }
  0x85   : > { %1647 = vmatprep.subr.bf16.mxu0 %v2548_v18 }
  0x86   : > { %1461 = vmatmul.mubr.bf16.vlgmr.msra.gmra.mrb[0].mxu1 %v2540_v19 }
  0x87   : > { %1607 = vmatmul.mubr.bf16.vlgmr.msra.gmra.mrb[0].mxu0 %v2543_v20  ;;  %2225 = vmatpush1.bf16.msra.mxu1 %v2546_v21 }
  0x88   : > { %1648 = vmatpush1.bf16.msra.mxu0 %v2546_v21  ;;  %2218 = vmatprep.subr.bf16.mxu1 %v2551_v22 }
  0x89   : > { %1649 = vmatprep.subr.bf16.mxu0 %v2551_v22  ;;  %1470 = vmatprep.mubr.bf16.mxu1 %v2552_v23 }
  0x8a   : > { %1616 = vmatprep.mubr.bf16.mxu0 %v2554_v24 }
  0x8b   : > { %2226 = vmatpush1.bf16.msra.mxu1 %v2549_v25 }
  0x8c   : > { %1650 = vmatpush1.bf16.msra.mxu0 %v2549_v25  ;;  %2219 = vmatprep.subr.bf16.mxu1 %v2560_v26 }
  0x8d   : > { %1651 = vmatprep.subr.bf16.mxu0 %v2560_v26 }
  0x8e   : > { %1471 = vmatmul.mubr.bf16.gmra.mrb[4].mxu1 %v2556_v27 }
  0x8f   : > { %1617 = vmatmul.mubr.bf16.gmra.mrb[4].mxu0 %v2557_v28  ;;  %2227 = vmatpush1.bf16.msra.mxu1 %v2558_v29 }
  0x90   : > { %1652 = vmatpush1.bf16.msra.mxu0 %v2558_v29  ;;  %2220 = vmatprep.subr.bf16.mxu1 %v2563_v30 }
  0x91   : > { %1653 = vmatprep.subr.bf16.mxu0 %v2563_v30  ;;  %1480 = vmatprep.mubr.bf16.mxu1 %v2564_v31 }
  0x92   : > { %1626 = vmatprep.mubr.bf16.mxu0 %v2566_v32 }
  0x93   : > { %2228 = vmatpush1.bf16.msra.mxu1 %v2561_v33 }
  0x94   : > { %1654 = vmatpush1.bf16.msra.mxu0 %v2561_v33  ;;  %2221 = vmatprep.subr.bf16.mxu1 %v2572_v34 }
  0x95   : > { %1655 = vmatprep.subr.bf16.mxu0 %v2572_v34 }
  0x96   : > { %1481 = vmatmul.mubr.bf16.gmra.mrb[8].mxu1 %v2568_v35 }
  0x97   : > { %1627 = vmatmul.mubr.bf16.gmra.mrb[8].mxu0 %v2569_v36  ;;  %2229 = vmatpush1.bf16.msra.mxu1 %v2570_v37 }
  0x98   : > { %1656 = vmatpush1.bf16.msra.mxu0 %v2570_v37  ;;  %2222 = vmatprep.subr.bf16.mxu1 %v2575_v38 }
  0x99   : > { %1657 = vmatprep.subr.bf16.mxu0 %v2575_v38  ;;  %1490 = vmatprep.mubr.bf16.mxu1 %v2576_v39 }
  0x9a   : > { %1636 = vmatprep.mubr.bf16.mxu0 %v2578_v40 }
  0x9b   : > { %2230 = vmatpush1.bf16.msra.mxu1 %v2573_v41 }
  0x9c   : > { %1658 = vmatpush1.bf16.msra.mxu0 %v2573_v41  ;;  %2223 = vmatprep.subr.bf16.mxu1 %v2584_v42 }
  0x9d   : > { %1659 = vmatprep.subr.bf16.mxu0 %v2584_v42 }
  0x9e   : > { %1491 = vmatmul.mubr.bf16.gmra.mrb[12].mxu1 %v2580_v43 }
  0x9f   : > { %1637 = vmatmul.mubr.bf16.gmra.mrb[12].mxu0 %v2581_v44  ;;  %2231 = vmatpush1.bf16.msra.mxu1 %v2582_v45 }
  0xa0   : > { %1660 = vmatpush1.bf16.msra.mxu0 %v2582_v45  ;;  %2224 = vmatprep.subr.bf16.mxu1 %v2587_v46 }
  0xa1   : > { %1661 = vmatprep.subr.bf16.mxu0 %v2587_v46  ;;  %1679 = vmatprep.mubr.bf16.mxu0 %v2600_v48 }
  0xa2   : > { %1699 = vmatprep.mubr.bf16.mxu1 %v2600_v48 }
  0xa3   : > { %2232 = vmatpush1.bf16.msra.mxu1 %v2585_v47 }
  0xa4   : > { %1662 = vmatpush1.bf16.msra.mxu0 %v2585_v47 }
  0xa6   : > { %1700 = vmatmul.mubr.bf16.vlgmr.msra.gmra.mrb[16].mxu1 %v2589_v50 }
  0xa7   : > { %1680 = vmatmul.mubr.bf16.vlgmr.msra.gmra.mrb[0].mxu0 %v2588_v49  ;;  %1709 = vmatprep.mubr.bf16.mxu1 %v2600_v48 }
  0xa8   : > { %1689 = vmatprep.mubr.bf16.mxu0 %v2600_v48 }
  0xae   : > { %1710 = vmatmul.mubr.bf16.gmra.mrb[20].mxu1 %v2591_v52 }
  0xaf   : > { %1690 = vmatmul.mubr.bf16.gmra.mrb[4].mxu0 %v2590_v51 }
 0x159   : > { %v1462_v53 = vpop.f32.mrb[0].mxu1 }
 0x15a   : > { %v1464_v54 = vpop.f32.mrb[1].mxu1  ;;  %v2233_v36 = vadd.f32 %v1462_v53, %v3135_v2 }
 0x15b   : > { %v1466_v55 = vpop.f32.mrb[2].mxu1  ;;  %v2235_v37 = vadd.f32 %v1464_v54, %v3137_v3 }
 0x15c   : > { %v1468_v57 = vpop.f32.mrb[3].mxu1  ;;  %v2237_v40 = vadd.f32 %v1466_v55, %v3135_v2 }
 0x15d   : > { %v2239_v49 = vadd.f32 %v1468_v57, %v3137_v3 }
 0x161   : > { %v3122_v59 = vpop.f32.mrb[4].mxu1 }
 0x162   : > { %v3124_v60 = vpop.f32.mrb[5].mxu1  ;;  %v2241_v57 = vadd.f32 %v3122_v59, %v3135_v2 }
 0x163   : > { %v3126_v61 = vpop.f32.mrb[6].mxu1 }
 0x164   : > { %v3129_v63 = vpop.f32.mrb[7].mxu1 }
 0x169   : > { %v1482_v4 = vpop.f32.mrb[8].mxu1 }
 0x16a   : > { %v1628_v5 = vpop.f32.mrb[8].mxu0  ;;  %v2249_v6 = vadd.f32 %v1482_v4, %v3135_v2  ;;  %v1484_v7 = vpop.f32.mrb[9].mxu1 }
 0x16b   : > { %v1630_v8 = vpop.f32.mrb[9].mxu0  ;;  %v2252_v9 = vadd.f32 %v1484_v7, %v3137_v3  ;;  %v1486_v10 = vpop.f32.mrb[10].mxu1 }
 0x16c   : > { %v1632_v11 = vpop.f32.mrb[10].mxu0  ;;  %v2250_v12 = vadd.f32 %v2249_v6, %v1628_v5  ;;  %v2255_v13 = vadd.f32 %v1486_v10, %v3135_v2  ;;  %v1488_v14 = vpop.f32.mrb[11].mxu1 }
 0x16d   : > { %v1634_v15 = vpop.f32.mrb[11].mxu0  ;;  %v2253_v16 = vadd.f32 %v2252_v9, %v1630_v8  ;;  %v2258_v17 = vadd.f32 %v1488_v14, %v3137_v3 }
 0x16e   : > { %v2256_v18 = vadd.f32 %v2255_v13, %v1632_v11  ;;  %v2243_v11 = vadd.f32 %v3124_v60, %v3137_v3 }
 0x16f   : > { %v2259_v19 = vadd.f32 %v2258_v17, %v1634_v15  ;;  %v2245_v15 = vadd.f32 %v3126_v61, %v3135_v2  ;;  %v2247_v61 = vadd.f32 %v3129_v63, %v3137_v3 }
 0x171   : > { %v1492_v20 = vpop.f32.mrb[12].mxu1 }
 0x172   : > { %v1638_v21 = vpop.f32.mrb[12].mxu0  ;;  %v2261_v22 = vadd.f32 %v1492_v20, %v3135_v2  ;;  %v1494_v23 = vpop.f32.mrb[13].mxu1 }
 0x173   : > { %v1640_v24 = vpop.f32.mrb[13].mxu0  ;;  %v2264_v25 = vadd.f32 %v1494_v23, %v3137_v3  ;;  %v1496_v26 = vpop.f32.mrb[14].mxu1 }
 0x174   : > { %v1642_v27 = vpop.f32.mrb[14].mxu0  ;;  %v2262_v28 = vadd.f32 %v2261_v22, %v1638_v21  ;;  %v2267_v29 = vadd.f32 %v1496_v26, %v3135_v2  ;;  %v1498_v30 = vpop.f32.mrb[15].mxu1 }
 0x175   : > { %v1644_v31 = vpop.f32.mrb[15].mxu0  ;;  %v2265_v32 = vadd.f32 %v2264_v25, %v1640_v24  ;;  %v2270_v33 = vadd.f32 %v1498_v30, %v3137_v3 }
 0x176   : > { %v3147_v34 = vadd.f32 %v2267_v29, %v1642_v27 }
 0x177   : > { %v3149_v35 = vadd.f32 %v2270_v33, %v1644_v31 }
 0x179   : > { %v1701_v39 = vpop.f32.mrb[16].mxu1 }
 0x17a   : > { %v1681_v38 = vpop.f32.mrb[0].mxu0  ;;  %v3155_v42 = vadd.f32 %v2250_v12, %v1701_v39  ;;  %v1703_v44 = vpop.f32.mrb[17].mxu1 }
 0x17b   : > { %v2234_v41 = vadd.f32 %v2233_v36, %v1681_v38  ;;  %v1683_v43 = vpop.f32.mrb[1].mxu0  ;;  %v3157_v46 = vadd.f32 %v2253_v16, %v1703_v44  ;;  %v1705_v48 = vpop.f32.mrb[18].mxu1 }
 0x17c   : > { %v2236_v45 = vadd.f32 %v2235_v37, %v1683_v43  ;;  %v1685_v47 = vpop.f32.mrb[2].mxu0  ;;  %v2257_v51 = vadd.f32 %v2256_v18, %v1705_v48  ;;  %v1707_v53 = vpop.f32.mrb[19].mxu1 }
 0x17d   : > { %v2238_v50 = vadd.f32 %v2237_v40, %v1685_v47  ;;  %v1687_v52 = vpop.f32.mrb[3].mxu0  ;;  %v2213_v55 = vpack.c.bf16 %v3157_v46, %v3155_v42  ;;  %v1769_v62 = vmul.f32 %v2234_v41, %v2234_v41  ;;  %v2260_v6 = vadd.f32 %v2259_v19, %v1707_v53 }
 0x17e   : > { %v2209_v54 = vpack.c.bf16 %v2236_v45, %v2234_v41  ;;  %v2240_v4 = vadd.f32 %v2239_v49, %v1687_v52  ;;  %v1770_v5 = vmul.f32 %v2236_v45, %v2236_v45  ;;  %v1777_v40 = vmul.f32 %v3155_v42, %v3155_v42 }
 0x17f   : > { %v1720_v0 = vadd.f32 %v2238_v50, %v2234_v41  ;;  %v1771_v1 = vmul.f32 %v2238_v50, %v2238_v50  ;;  %1882 = vst [vmem:[%s3163_s13 + $0x20] sm:$0xff] %v2213_v55  ;;  %v2214_v12 = vpack.c.bf16 %v2260_v6, %v2257_v51 }
 0x180   : > { %1878 = vst [vmem:[%s3163_s13] sm:$0xff] %v2209_v54  ;;  %v1733_v8 = vadd.f32 %v2240_v4, %v2236_v45  ;;  %v1772_v9 = vmul.f32 %v2240_v4, %v2240_v4  ;;  %v2210_v10 = vpack.c.bf16 %v2240_v4, %v2238_v50  ;;  %v1779_v45 = vmul.f32 %v2257_v51, %v2257_v51 }
 0x181   : > { %v1785_v7 = vadd.f32 %v1771_v1, %v1769_v62  ;;  %v1711_v14 = vpop.f32.mrb[20].mxu1  ;;  %1883 = vst [vmem:[%s3163_s13 + $0x28] sm:$0xff] %v2214_v12 }
 0x182   : > { %v1691_v13 = vpop.f32.mrb[4].mxu0  ;;  %v1798_v16 = vadd.f32 %v1772_v9, %v1770_v5  ;;  %1879 = vst [vmem:[%s3163_s13 + $0x8] sm:$0xff] %v2210_v10  ;;  %v2263_v17 = vadd.f32 %v2262_v28, %v1711_v14  ;;  %v1713_v19 = vpop.f32.mrb[21].mxu1 }
 0x183   : > { %v2242_v59 = vadd.f32 %v2241_v57, %v1691_v13  ;;  %v1693_v18 = vpop.f32.mrb[5].mxu0  ;;  %v2266_v21 = vadd.f32 %v2265_v32, %v1713_v19  ;;  %v1715_v23 = vpop.f32.mrb[22].mxu1 }
 0x184   : > { %v2244_v20 = vadd.f32 %v2243_v11, %v1693_v18  ;;  %v1695_v22 = vpop.f32.mrb[6].mxu0  ;;  %v1717_v27 = vpop.f32.mrb[23].mxu1  ;;  %v2269_v37 = vadd.f32 %v3147_v34, %v1715_v23  ;;  %v1778_v34 = vmul.f32 %v3157_v46, %v3157_v46  ;;  %v1781_v52 = vmul.f32 %v2263_v17, %v2263_v17 }
 0x185   : > { %v1721_v24 = vadd.f32 %v2242_v59, %v1720_v0  ;;  %v1773_v60 = vmul.f32 %v2242_v59, %v2242_v59  ;;  %v2246_v25 = vadd.f32 %v2245_v15, %v1695_v22  ;;  %v1697_v26 = vpop.f32.mrb[7].mxu0  ;;  %v2215_v31 = vpack.c.bf16 %v2266_v21, %v2263_v17 }
 0x186   : > { %v1734_v2 = vadd.f32 %v2244_v20, %v1733_v8  ;;  %v1774_v29 = vmul.f32 %v2244_v20, %v2244_v20  ;;  %v2211_v28 = vpack.c.bf16 %v2244_v20, %v2242_v59  ;;  %v2248_v38 = vadd.f32 %v2247_v61, %v1697_v26 }
 0x187   : > { %v1786_v30 = vadd.f32 %v1785_v7, %v1773_v60  ;;  %v1722_v33 = vadd.f32 %v2246_v25, %v1721_v24  ;;  %v1775_v36 = vmul.f32 %v2246_v25, %v2246_v25  ;;  %v2272_v39 = vadd.f32 %v3149_v35, %v1717_v27  ;;  %1884 = vst [vmem:[%s3163_s13 + $0x30] sm:$0xff] %v2215_v31 }
 0x188   : > { %v1799_v32 = vadd.f32 %v1798_v16, %v1774_v29  ;;  %1880 = vst [vmem:[%s3163_s13 + $0x10] sm:$0xff] %v2211_v28  ;;  %v1735_v41 = vadd.f32 %v2248_v38, %v1734_v2  ;;  %v1776_v43 = vmul.f32 %v2248_v38, %v2248_v38  ;;  %v2212_v44 = vpack.c.bf16 %v2248_v38, %v2246_v25 }
 0x189   : > { %v1723_v63 = vadd.f32 %v3155_v42, %v1722_v33  ;;  %v1787_v3 = vadd.f32 %v1786_v30, %v1775_v36  ;;  %v2216_v49 = vpack.c.bf16 %v2272_v39, %v2269_v37  ;;  %v1780_v42 = vmul.f32 %v2260_v6, %v2260_v6 }
 0x18a   : > { %v1736_v35 = vadd.f32 %v3157_v46, %v1735_v41  ;;  %v1800_v50 = vadd.f32 %v1799_v32, %v1776_v43  ;;  %1881 = vst [vmem:[%s3163_s13 + $0x18] sm:$0xff] %v2212_v44  ;;  %v1783_v1 = vmul.f32 %v2269_v37, %v2269_v37  ;;  %v1782_v57 = vmul.f32 %v2266_v21, %v2266_v21 }
 0x18b   : > { %v1788_v47 = vadd.f32 %v1787_v3, %v1777_v40  ;;  %v1724_v48 = vadd.f32 %v2257_v51, %v1723_v63  ;;  %1885 = vst [vmem:[%s3163_s13 + $0x38] sm:$0xff] %v2216_v49  ;;  %v1784_v46 = vmul.f32 %v2272_v39, %v2272_v39 }
 0x18c   : > { %v1801_v55 = vadd.f32 %v1800_v50, %v1778_v34  ;;  %v1737_v62 = vadd.f32 %v2260_v6, %v1736_v35  ;;  %v2601_v6 = vmov 1966171168  }
 0x18d   : > { %v1725_v53 = vadd.f32 %v2263_v17, %v1724_v48  ;;  %v1789_v54 = vadd.f32 %v1788_v47, %v1779_v45  ;;  %v1750_v17 = vunpack.c.l.s4 %v2601_v6 }
 0x18e   : > { %v1738_v51 = vadd.f32 %v2266_v21, %v1737_v62  ;;  %v1802_v5 = vadd.f32 %v1801_v55, %v1780_v42 }
 0x18f   : > { %v1726_v0 = vadd.f32 %v2269_v37, %v1725_v53  ;;  %v1790_v4 = vadd.f32 %v1789_v54, %v1781_v52  ;;  %v1751_v25 = vunpack.c.0.s8 %v1750_v17 }
 0x190   : > { %v1739_v9 = vadd.f32 %v2272_v39, %v1738_v51  ;;  %v1803_v10 = vadd.f32 %v1802_v5, %v1782_v57 }
 0x191   : > { %v1727_v7 = vrot.slane %v1726_v0, 4  ;;  %v1791_v8 = vadd.f32 %v1790_v4, %v1783_v1  ;;  %v1754_v31 = vsub.s32 %v1751_v25, %v3120_v58 }
 0x192   : > { %v1740_v13 = vrot.slane %v1739_v9, 4  ;;  %v1804_v14 = vadd.f32 %v1803_v10, %v1784_v46 }
 0x193   : > { %v1728_v11 = vadd.f32 %v1727_v7, %v1726_v0  ;;  %v1792_v12 = vrot.slane %v1791_v8, 4 }
 0x194   : > { %v1741_v59 = vadd.f32 %v1740_v13, %v1739_v9  ;;  %v1805_v18 = vrot.slane %v1804_v14, 4 }
 0x195   : > { %v1729_v15 = vrot.slane %v1728_v11, 2  ;;  %v1793_v16 = vadd.f32 %v1792_v12, %v1791_v8 }
 0x196   : > { %v1742_v21 = vrot.slane %v1741_v59, 2  ;;  %v1806_v22 = vadd.f32 %v1805_v18, %v1804_v14 }
 0x197   : > { %v1730_v19 = vadd.f32 %v1729_v15, %v1728_v11  ;;  %v1794_v20 = vrot.slane %v1793_v16, 2 }
 0x198   : > { %v1743_v60 = vadd.f32 %v1742_v21, %v1741_v59  ;;  %v1807_v26 = vrot.slane %v1806_v22, 2 }
 0x199   : > { %v1731_v23 = vrot.slane %v1730_v19, 1  ;;  %v1795_v24 = vadd.f32 %v1794_v20, %v1793_v16 }
 0x19a   : > { %v1744_v2 = vrot.slane %v1743_v60, 1  ;;  %v1808_v29 = vadd.f32 %v1807_v26, %v1806_v22 }
 0x19b   : > { %v1796_v27 = vrot.slane %v1795_v24, 1  ;;  %v1732_v61 = vadd.f32 %v1731_v23, %v1730_v19 }
 0x19c   : > { %v1745_v30 = vadd.f32 %v1744_v2, %v1743_v60  ;;  %v1809_v33 = vrot.slane %v1808_v29, 1 }
 0x19d   : > { %v1797_v28 = vadd.f32 %v1796_v27, %v1795_v24 }
 0x19e   : > { %v1748_v36 = vcombine.low %v1732_v61, %v1745_v30  ;;  %v1810_v32 = vadd.f32 %v1809_v33, %v1808_v29 }
 0x1a0   : > { %v1755_v37 = vrot.slane %v1748_v36, %v1754_v31  ;;  %v1813_v38 = vcombine.low %v1797_v28, %v1810_v32 }
 0x1a2   : > { %v1762_v39 = vrot.slane %v1755_v37, %v1754_v31  ;;  %v1820_v40 = vrot.slane %v1813_v38, %v1754_v31 }
 0x1a4   : > { %1768 = vst.msk [vmem:[%s249_s16] sm:$0x3] %vm1766_vm0, %v1762_v39  ;;  %v1827_v58 = vrot.slane %v1820_v40, %v1754_v31 }
 0x1a6   : > { %1829 = vst.msk [vmem:[%s253_s21] sm:$0x3] %vm1766_vm0, %v1827_v58 }
 0x1a7 PF: > { %s16_s18 = sadd.s32 1, %s2598_s18  }
 0x1a8   : > { %p13_p5 = scmp.ge.s32.totalorder %s16_s18, 4  }
 0x1aa   :  { %15 = sbr.rel (!%p13_p5) target bundleno = 1 (0x1), region = 86 }

// kernel: advanced_colorizer_forward.33
= control target key start
LH: loop header
LB: loop body
LE: loop exit
PB: predicated region body
PF: predicated region fallthrough
CT: control target
= control target key end

     0   :  { %s6519_s18 = smov 0   ;;  %s8330_s0 = inlined_call_operand.vmem [shape: bf16[32,2304], index: 0, kind: input, shape index: {}]   ;;  %s8331_s1 = inlined_call_operand.vmem [shape: bf16[2304,512], index: 1, kind: input, shape index: {}]   ;;  %s8332_s2 = inlined_call_operand.vmem [shape: f32[1,512], index: 2, kind: input, shape index: {}]   ;;  %s8333_s3 = inlined_call_operand.vmem [shape: bf16[32,512], index: 3, kind: output, shape index: {0}]   ;;  %s8334_s4 = inlined_call_operand.vmem [shape: f32[2,1,512], index: 4, kind: output, shape index: {1}]   ;;  %s8335_s5 = inlined_call_operand.vmem [shape: f32[2,1,512], index: 5, kind: output, shape index: {2}]  }
   0x1 LB: > { %s6525_s19 = sadd.s32 4294967295, %s6486_s18   ;;  %p4894_p0 = scmp.ge.s32.totalorder %s6486_s18, 1  ;;  %s6486_s18 = sphi %s6519_s18, %s16_s18  }
   0x2   : > { %p194_p1 = scmp.lt.s32.totalorder %s6486_s18, 3 }
   0x4   : > { %p195_p2 = pnand %p4894_p0, %p194_p1 }
   0x5   : > { %v5589_v0 = vld [vmem:[%s8331_s1 + $0x4] ss:$16 sps:$4 sm:$0xff] (!%p195_p2)   ;;  %v5591_v1 = vld [vmem:[%s8331_s1 + $0xc] ss:$16 sps:$4 sm:$0xff] (!%p195_p2)   ;;  %v5593_v2 = vld [vmem:[%s8331_s1] ss:$16 sps:$4 sm:$0xff] (!%p195_p2)  }
   0x6   : > { %198 = sbr.rel (%p195_p2) target bundleno = 828 (0x33c), region = 32  ;;  %3840 = vmatprep.subr.bf16.mxu0 (!%p195_p2), %v5589_v0  ;;  %v5594_v3 = vld [vmem:[%s8331_s1 + $0x8] ss:$16 sps:$4 sm:$0xff] (!%p195_p2)   ;;  %4227 = vmatprep.subr.bf16.mxu1 (!%p195_p2), %v5591_v1  ;;  %v5595_v4 = vld [vmem:[%s8331_s1 + $0x24] ss:$16 sps:$4 sm:$0xff] (!%p195_p2)   ;;  %s4895_s9 = sshll.u32 (!%p195_p2), %s6525_s19, 1 }
   0x7   : > { %3841 = vmatpush1.bf16.msra.mxu0 (!%p195_p2), %v5593_v2  ;;  %4228 = vmatpush1.bf16.msra.mxu1 (!%p195_p2), %v5594_v3  ;;  %v5597_v5 = vld [vmem:[%s8331_s1 + $0x2c] ss:$16 sps:$4 sm:$0xff] (!%p195_p2)   ;;  %v5599_v6 = vld [vmem:[%s8331_s1 + $0x20] ss:$16 sps:$4 sm:$0xff] (!%p195_p2)   ;;  %v5600_v7 = vld [vmem:[%s8331_s1 + $0x28] ss:$16 sps:$4 sm:$0xff] (!%p195_p2)  }
   0x8   : > { %3842 = vmatprep.subr.bf16.mxu0 (!%p195_p2), %v5595_v4  ;;  %4229 = vmatprep.subr.bf16.mxu1 (!%p195_p2), %v5597_v5  ;;  %v5601_v8 = vld [vmem:[%s8331_s1 + $0x44] ss:$16 sps:$4 sm:$0xff] (!%p195_p2)   ;;  %v5603_v9 = vld [vmem:[%s8331_s1 + $0x4c] ss:$16 sps:$4 sm:$0xff] (!%p195_p2)   ;;  %v5605_v10 = vld [vmem:[%s8331_s1 + $0x40] ss:$16 sps:$4 sm:$0xff] (!%p195_p2)  }
   0x9   : > { %v5606_v11 = vld [vmem:[%s8331_s1 + $0x48] ss:$16 sps:$4 sm:$0xff] (!%p195_p2)   ;;  %v5607_v12 = vld [vmem:[%s8331_s1 + $0x64] ss:$16 sps:$4 sm:$0xff] (!%p195_p2)   ;;  %v5609_v13 = vld [vmem:[%s8331_s1 + $0x6c] ss:$16 sps:$4 sm:$0xff] (!%p195_p2)  }
   0xa   : > { %v5611_v14 = vld [vmem:[%s8331_s1 + $0x60] ss:$16 sps:$4 sm:$0xff] (!%p195_p2)   ;;  %v5612_v15 = vld [vmem:[%s8331_s1 + $0x68] ss:$16 sps:$4 sm:$0xff] (!%p195_p2)   ;;  %v5613_v16 = vld [vmem:[%s8331_s1 + $0x84] ss:$16 sps:$4 sm:$0xff] (!%p195_p2)  }
   0xb   : > { %3843 = vmatpush1.bf16.msra.mxu0 (!%p195_p2), %v5599_v6  ;;  %4230 = vmatpush1.bf16.msra.mxu1 (!%p195_p2), %v5600_v7  ;;  %v5615_v17 = vld [vmem:[%s8331_s1 + $0x8c] ss:$16 sps:$4 sm:$0xff] (!%p195_p2)   ;;  %v5617_v18 = vld [vmem:[%s8331_s1 + $0x80] ss:$16 sps:$4 sm:$0xff] (!%p195_p2)   ;;  %v5618_v19 = vld [vmem:[%s8331_s1 + $0x88] ss:$16 sps:$4 sm:$0xff] (!%p195_p2)  }
   0xc   : > { %3844 = vmatprep.subr.bf16.mxu0 (!%p195_p2), %v5601_v8  ;;  %4231 = vmatprep.subr.bf16.mxu1 (!%p195_p2), %v5603_v9  ;;  %v5619_v20 = vld [vmem:[%s8331_s1 + $0xa4] ss:$16 sps:$4 sm:$0xff] (!%p195_p2)   ;;  %v5621_v21 = vld [vmem:[%s8331_s1 + $0xac] ss:$16 sps:$4 sm:$0xff] (!%p195_p2)   ;;  %v5623_v22 = vld [vmem:[%s8331_s1 + $0xa0] ss:$16 sps:$4 sm:$0xff] (!%p195_p2)  }
   0xd   : > { %v5624_v23 = vld [vmem:[%s8331_s1 + $0xa8] ss:$16 sps:$4 sm:$0xff]   ;;  %v5625_v24 = vld [vmem:[%s8331_s1 + $0xc4] ss:$16 sps:$4 sm:$0xff]   ;;  %v5627_v25 = vld [vmem:[%s8331_s1 + $0xcc] ss:$16 sps:$4 sm:$0xff]  }
   0xe   : > { %v5629_v26 = vld [vmem:[%s8331_s1 + $0xc0] ss:$16 sps:$4 sm:$0xff]   ;;  %v5630_v27 = vld [vmem:[%s8331_s1 + $0xc8] ss:$16 sps:$4 sm:$0xff]   ;;  %v5631_v28 = vld [vmem:[%s8331_s1 + $0xe4] ss:$16 sps:$4 sm:$0xff]  }
   0xf   : > { %3845 = vmatpush1.bf16.msra.mxu0 %v5605_v10  ;;  %4232 = vmatpush1.bf16.msra.mxu1 %v5606_v11  ;;  %v5633_v29 = vld [vmem:[%s8331_s1 + $0xec] ss:$16 sps:$4 sm:$0xff]   ;;  %v5635_v30 = vld [vmem:[%s8331_s1 + $0xe0] ss:$16 sps:$4 sm:$0xff]   ;;  %v5636_v31 = vld [vmem:[%s8331_s1 + $0xe8] ss:$16 sps:$4 sm:$0xff]  }
  0x10   : > { %3846 = vmatprep.subr.bf16.mxu0 %v5607_v12  ;;  %4233 = vmatprep.subr.bf16.mxu1 %v5609_v13  ;;  %v5637_v32 = vld [vmem:[%s8331_s1 + $0x104] ss:$16 sps:$4 sm:$0xff]   ;;  %p233_p3 = scmp.lt.s32.totalorder %s4895_s9, 3  ;;  %v5639_v33 = vld [vmem:[%s8331_s1 + $0x10c] ss:$16 sps:$4 sm:$0xff]   ;;  %p246_p4 = scmp.lt.s32.totalorder %s6525_s19, 1 }
  0x11   : > { %v5641_v34 = vld [vmem:[%s8331_s1 + $0x100] ss:$16 sps:$4 sm:$0xff]   ;;  %v5642_v35 = vld [vmem:[%s8331_s1 + $0x108] ss:$16 sps:$4 sm:$0xff]   ;;  %v5643_v36 = vld [vmem:[%s8331_s1 + $0x124] ss:$16 sps:$4 sm:$0xff]  }
  0x12   : > { %s8337_s9 = smov (!%p233_p3, %s4895_s9), 3  ;;  %v5645_v37 = vld [vmem:[%s8331_s1 + $0x12c] ss:$16 sps:$4 sm:$0xff]   ;;  %v5647_v38 = vld [vmem:[%s8331_s1 + $0x120] ss:$16 sps:$4 sm:$0xff]   ;;  %s8339_s19 = smov (!%p246_p4, %s6525_s19), 1 }
  0x13   : > { %3847 = vmatpush1.bf16.msra.mxu0 %v5611_v14  ;;  %4234 = vmatpush1.bf16.msra.mxu1 %v5612_v15  ;;  %v5648_v39 = vld [vmem:[%s8331_s1 + $0x128] ss:$16 sps:$4 sm:$0xff]   ;;  %v5649_v40 = vld [vmem:[%s8331_s1 + $0x144] ss:$16 sps:$4 sm:$0xff]   ;;  %s5579_s10 = smul.u32 72, %s8337_s9 }
  0x14   : > { %3848 = vmatprep.subr.bf16.mxu0 %v5613_v16  ;;  %4235 = vmatprep.subr.bf16.mxu1 %v5615_v17  ;;  %v5651_v41 = vld [vmem:[%s8331_s1 + $0x14c] ss:$16 sps:$4 sm:$0xff]   ;;  %v5653_v42 = vld [vmem:[%s8331_s1 + $0x140] ss:$16 sps:$4 sm:$0xff]   ;;  %v5654_v43 = vld [vmem:[%s8331_s1 + $0x148] ss:$16 sps:$4 sm:$0xff]  }
  0x15   : > { %v5655_v44 = vld [vmem:[%s8331_s1 + $0x164] ss:$16 sps:$4 sm:$0xff]   ;;  %s6671_s23 = scalar_lea.vmem %s8330_s0, %s5579_s10  ;;  %v5657_v45 = vld [vmem:[%s8331_s1 + $0x16c] ss:$16 sps:$4 sm:$0xff]   ;;  %v5659_v46 = vld [vmem:[%s8331_s1 + $0x160] ss:$16 sps:$4 sm:$0xff]  }
  0x16   : > { %v5660_v47 = vld [vmem:[%s8331_s1 + $0x168] ss:$16 sps:$4 sm:$0xff]   ;;  %v5687_v48 = vld [vmem:[%s6671_s23 + $0x4] ss:$72 sps:$4 sm:$0xff]   ;;  %v5665_v51 = vld [vmem:[%s8331_s1 + $0x180] ss:$16 sps:$4 sm:$0xff]  }
  0x17   : > { %3849 = vmatpush1.bf16.msra.mxu0 %v5617_v18  ;;  %4236 = vmatpush1.bf16.msra.mxu1 %v5618_v19  ;;  %v5661_v49 = vld [vmem:[%s8331_s1 + $0x184] ss:$16 sps:$4 sm:$0xff]   ;;  %v5663_v50 = vld [vmem:[%s8331_s1 + $0x18c] ss:$16 sps:$4 sm:$0xff]   ;;  %v5666_v52 = vld [vmem:[%s8331_s1 + $0x188] ss:$16 sps:$4 sm:$0xff]  }
  0x18   : > { %3850 = vmatprep.subr.bf16.mxu0 %v5619_v20  ;;  %4237 = vmatprep.subr.bf16.mxu1 %v5621_v21  ;;  %v5667_v53 = vld [vmem:[%s8331_s1 + $0x1a4] ss:$16 sps:$4 sm:$0xff]   ;;  %v5669_v54 = vld [vmem:[%s8331_s1 + $0x1ac] ss:$16 sps:$4 sm:$0xff]   ;;  %v5671_v55 = vld [vmem:[%s8331_s1 + $0x1a0] ss:$16 sps:$4 sm:$0xff]  }
  0x19   : > { %3872 = vmatprep.mubr.bf16.mxu0 %v5687_v48  ;;  %4259 = vmatprep.mubr.bf16.mxu1 %v5687_v48  ;;  %v5672_v56 = vld [vmem:[%s8331_s1 + $0x1a8] ss:$16 sps:$4 sm:$0xff]   ;;  %v5673_v57 = vld [vmem:[%s8331_s1 + $0x1c4] ss:$16 sps:$4 sm:$0xff]   ;;  %v5675_v58 = vld [vmem:[%s8331_s1 + $0x1cc] ss:$16 sps:$4 sm:$0xff]  }
  0x1a   : > { %v5677_v59 = vld [vmem:[%s8331_s1 + $0x1c0] ss:$16 sps:$4 sm:$0xff]   ;;  %v5678_v60 = vld [vmem:[%s8331_s1 + $0x1c8] ss:$16 sps:$4 sm:$0xff]   ;;  %v5679_v61 = vld [vmem:[%s8331_s1 + $0x1e4] ss:$16 sps:$4 sm:$0xff]  }
  0x1b   : > { %3851 = vmatpush1.bf16.msra.mxu0 %v5623_v22  ;;  %4238 = vmatpush1.bf16.msra.mxu1 %v5624_v23  ;;  %v5681_v62 = vld [vmem:[%s8331_s1 + $0x1ec] ss:$16 sps:$4 sm:$0xff]   ;;  %v5683_v63 = vld [vmem:[%s8331_s1 + $0x1e0] ss:$16 sps:$4 sm:$0xff]   ;;  %v5684_v0 = vld [vmem:[%s8331_s1 + $0x1e8] ss:$16 sps:$4 sm:$0xff]  }
  0x1c   : > { %3852 = vmatprep.subr.bf16.mxu0 %v5625_v24  ;;  %4239 = vmatprep.subr.bf16.mxu1 %v5627_v25  ;;  %v5690_v1 = vld [vmem:[%s8331_s1 + $0x204] ss:$16 sps:$4 sm:$0xff]   ;;  %v5693_v2 = vld [vmem:[%s8331_s1 + $0x20c] ss:$16 sps:$4 sm:$0xff]   ;;  %v5685_v3 = vld [vmem:[%s6671_s23] ss:$72 sps:$4 sm:$0xff]  }
  0x1d   : > { %v5688_v4 = vld [vmem:[%s8331_s1 + $0x200] ss:$16 sps:$4 sm:$0xff]   ;;  %v5691_v5 = vld [vmem:[%s8331_s1 + $0x208] ss:$16 sps:$4 sm:$0xff]   ;;  %v5696_v6 = vld [vmem:[%s8331_s1 + $0x224] ss:$16 sps:$4 sm:$0xff]  }
  0x1e   : > { %v5699_v7 = vld [vmem:[%s8331_s1 + $0x22c] ss:$16 sps:$4 sm:$0xff]   ;;  %v5694_v8 = vld [vmem:[%s8331_s1 + $0x220] ss:$16 sps:$4 sm:$0xff]   ;;  %v5697_v9 = vld [vmem:[%s8331_s1 + $0x228] ss:$16 sps:$4 sm:$0xff]  }
  0x1f   : > { %3853 = vmatpush1.bf16.msra.mxu0 %v5629_v26  ;;  %4240 = vmatpush1.bf16.msra.mxu1 %v5630_v27  ;;  %v5702_v10 = vld [vmem:[%s8331_s1 + $0x244] ss:$16 sps:$4 sm:$0xff]   ;;  %v5705_v11 = vld [vmem:[%s8331_s1 + $0x24c] ss:$16 sps:$4 sm:$0xff]   ;;  %v5700_v12 = vld [vmem:[%s8331_s1 + $0x240] ss:$16 sps:$4 sm:$0xff]  }
  0x20   : > { %3854 = vmatprep.subr.bf16.mxu0 %v5631_v28  ;;  %4241 = vmatprep.subr.bf16.mxu1 %v5633_v29  ;;  %v5703_v13 = vld [vmem:[%s8331_s1 + $0x248] ss:$16 sps:$4 sm:$0xff]   ;;  %v5708_v14 = vld [vmem:[%s8331_s1 + $0x264] ss:$16 sps:$4 sm:$0xff]   ;;  %v5711_v15 = vld [vmem:[%s8331_s1 + $0x26c] ss:$16 sps:$4 sm:$0xff]  }
  0x21   : > { %v5706_v16 = vld [vmem:[%s8331_s1 + $0x260] ss:$16 sps:$4 sm:$0xff]   ;;  %v5709_v17 = vld [vmem:[%s8331_s1 + $0x268] ss:$16 sps:$4 sm:$0xff]   ;;  %v5714_v18 = vld [vmem:[%s8331_s1 + $0x284] ss:$16 sps:$4 sm:$0xff]  }
  0x22   : > { %v5717_v19 = vld [vmem:[%s8331_s1 + $0x28c] ss:$16 sps:$4 sm:$0xff]   ;;  %v5712_v20 = vld [vmem:[%s8331_s1 + $0x280] ss:$16 sps:$4 sm:$0xff]   ;;  %v5715_v21 = vld [vmem:[%s8331_s1 + $0x288] ss:$16 sps:$4 sm:$0xff]  }
  0x23   : > { %3855 = vmatpush1.bf16.msra.mxu0 %v5635_v30  ;;  %4242 = vmatpush1.bf16.msra.mxu1 %v5636_v31  ;;  %v5720_v22 = vld [vmem:[%s8331_s1 + $0x2a4] ss:$16 sps:$4 sm:$0xff]   ;;  %v5723_v23 = vld [vmem:[%s8331_s1 + $0x2ac] ss:$16 sps:$4 sm:$0xff]   ;;  %v5718_v24 = vld [vmem:[%s8331_s1 + $0x2a0] ss:$16 sps:$4 sm:$0xff]  }
  0x24   : > { %3856 = vmatprep.subr.bf16.mxu0 %v5637_v32  ;;  %4243 = vmatprep.subr.bf16.mxu1 %v5639_v33  ;;  %v5721_v25 = vld [vmem:[%s8331_s1 + $0x2a8] ss:$16 sps:$4 sm:$0xff]   ;;  %v5726_v26 = vld [vmem:[%s8331_s1 + $0x2c4] ss:$16 sps:$4 sm:$0xff]   ;;  %v5729_v27 = vld [vmem:[%s8331_s1 + $0x2cc] ss:$16 sps:$4 sm:$0xff]  }
  0x25   : > { %v5724_v28 = vld [vmem:[%s8331_s1 + $0x2c0] ss:$16 sps:$4 sm:$0xff]   ;;  %v5727_v29 = vld [vmem:[%s8331_s1 + $0x2c8] ss:$16 sps:$4 sm:$0xff]   ;;  %v5786_v30 = vld [vmem:[%s6671_s23 + $0xc] ss:$72 sps:$4 sm:$0xff]  }
  0x26   : > { %v5732_v31 = vld [vmem:[%s8331_s1 + $0x2e4] ss:$16 sps:$4 sm:$0xff]   ;;  %v5735_v32 = vld [vmem:[%s8331_s1 + $0x2ec] ss:$16 sps:$4 sm:$0xff]   ;;  %v5730_v33 = vld [vmem:[%s8331_s1 + $0x2e0] ss:$16 sps:$4 sm:$0xff]  }
  0x27   : > { %3857 = vmatpush1.bf16.msra.mxu0 %v5641_v34  ;;  %4244 = vmatpush1.bf16.msra.mxu1 %v5642_v35  ;;  %v5733_v34 = vld [vmem:[%s8331_s1 + $0x2e8] ss:$16 sps:$4 sm:$0xff]   ;;  %v5738_v35 = vld [vmem:[%s8331_s1 + $0x304] ss:$16 sps:$4 sm:$0xff]   ;;  %v5759_v48 = vld [vmem:[%s8331_s1 + $0x36c] ss:$16 sps:$4 sm:$0xff]  }
  0x28   : > { %3858 = vmatprep.subr.bf16.mxu0 %v5643_v36  ;;  %4245 = vmatprep.subr.bf16.mxu1 %v5645_v37  ;;  %v5741_v36 = vld [vmem:[%s8331_s1 + $0x30c] ss:$16 sps:$4 sm:$0xff]   ;;  %v5736_v37 = vld [vmem:[%s8331_s1 + $0x300] ss:$16 sps:$4 sm:$0xff]  }
  0x2b   : > { %3859 = vmatpush1.bf16.msra.mxu0 %v5647_v38  ;;  %4246 = vmatpush1.bf16.msra.mxu1 %v5648_v39  ;;  %v5739_v38 = vld [vmem:[%s8331_s1 + $0x308] ss:$16 sps:$4 sm:$0xff]   ;;  %v5744_v39 = vld [vmem:[%s8331_s1 + $0x324] ss:$16 sps:$4 sm:$0xff]  }
  0x2c   : > { %3860 = vmatprep.subr.bf16.mxu0 %v5649_v40  ;;  %4247 = vmatprep.subr.bf16.mxu1 %v5651_v41  ;;  %v5747_v40 = vld [vmem:[%s8331_s1 + $0x32c] ss:$16 sps:$4 sm:$0xff]   ;;  %v5742_v41 = vld [vmem:[%s8331_s1 + $0x320] ss:$16 sps:$4 sm:$0xff]  }
  0x2f   : > { %3861 = vmatpush1.bf16.msra.mxu0 %v5653_v42  ;;  %4248 = vmatpush1.bf16.msra.mxu1 %v5654_v43  ;;  %v5745_v42 = vld [vmem:[%s8331_s1 + $0x328] ss:$16 sps:$4 sm:$0xff]   ;;  %v5750_v43 = vld [vmem:[%s8331_s1 + $0x344] ss:$16 sps:$4 sm:$0xff]  }
  0x30   : > { %3862 = vmatprep.subr.bf16.mxu0 %v5655_v44  ;;  %4249 = vmatprep.subr.bf16.mxu1 %v5657_v45  ;;  %v5753_v44 = vld [vmem:[%s8331_s1 + $0x34c] ss:$16 sps:$4 sm:$0xff]   ;;  %v5748_v45 = vld [vmem:[%s8331_s1 + $0x340] ss:$16 sps:$4 sm:$0xff]  }
  0x33   : > { %3863 = vmatpush1.bf16.msra.mxu0 %v5659_v46  ;;  %4250 = vmatpush1.bf16.msra.mxu1 %v5660_v47  ;;  %v5751_v46 = vld [vmem:[%s8331_s1 + $0x348] ss:$16 sps:$4 sm:$0xff]   ;;  %v5756_v47 = vld [vmem:[%s8331_s1 + $0x364] ss:$16 sps:$4 sm:$0xff]  }
  0x34   : > { %3864 = vmatprep.subr.bf16.mxu0 %v5661_v49  ;;  %4251 = vmatprep.subr.bf16.mxu1 %v5663_v50  ;;  %v5754_v49 = vld [vmem:[%s8331_s1 + $0x360] ss:$16 sps:$4 sm:$0xff]   ;;  %v5757_v50 = vld [vmem:[%s8331_s1 + $0x368] ss:$16 sps:$4 sm:$0xff]  }
  0x37   : > { %3865 = vmatpush1.bf16.msra.mxu0 %v5665_v51  ;;  %4252 = vmatpush1.bf16.msra.mxu1 %v5666_v52  ;;  %v5762_v51 = vld [vmem:[%s8331_s1 + $0x384] ss:$16 sps:$4 sm:$0xff]   ;;  %v5765_v52 = vld [vmem:[%s8331_s1 + $0x38c] ss:$16 sps:$4 sm:$0xff]  }
  0x38   : > { %3866 = vmatprep.subr.bf16.mxu0 %v5667_v53  ;;  %4253 = vmatprep.subr.bf16.mxu1 %v5669_v54  ;;  %v5760_v53 = vld [vmem:[%s8331_s1 + $0x380] ss:$16 sps:$4 sm:$0xff]   ;;  %v5763_v54 = vld [vmem:[%s8331_s1 + $0x388] ss:$16 sps:$4 sm:$0xff]  }
  0x3b   : > { %3867 = vmatpush1.bf16.msra.mxu0 %v5671_v55  ;;  %4254 = vmatpush1.bf16.msra.mxu1 %v5672_v56  ;;  %v5768_v55 = vld [vmem:[%s8331_s1 + $0x3a4] ss:$16 sps:$4 sm:$0xff]   ;;  %v5771_v56 = vld [vmem:[%s8331_s1 + $0x3ac] ss:$16 sps:$4 sm:$0xff]  }
  0x3c   : > { %3868 = vmatprep.subr.bf16.mxu0 %v5673_v57  ;;  %4255 = vmatprep.subr.bf16.mxu1 %v5675_v58  ;;  %v5766_v57 = vld [vmem:[%s8331_s1 + $0x3a0] ss:$16 sps:$4 sm:$0xff]   ;;  %v5769_v58 = vld [vmem:[%s8331_s1 + $0x3a8] ss:$16 sps:$4 sm:$0xff]  }
  0x3f   : > { %3869 = vmatpush1.bf16.msra.mxu0 %v5677_v59  ;;  %4256 = vmatpush1.bf16.msra.mxu1 %v5678_v60  ;;  %v5774_v59 = vld [vmem:[%s8331_s1 + $0x3c4] ss:$16 sps:$4 sm:$0xff]   ;;  %v5777_v60 = vld [vmem:[%s8331_s1 + $0x3cc] ss:$16 sps:$4 sm:$0xff]  }
  0x40   : > { %3870 = vmatprep.subr.bf16.mxu0 %v5679_v61  ;;  %4257 = vmatprep.subr.bf16.mxu1 %v5681_v62  ;;  %v5772_v61 = vld [vmem:[%s8331_s1 + $0x3c0] ss:$16 sps:$4 sm:$0xff]   ;;  %v5775_v62 = vld [vmem:[%s8331_s1 + $0x3c8] ss:$16 sps:$4 sm:$0xff]  }
  0x43   : > { %3871 = vmatpush1.bf16.msra.mxu0 %v5683_v63  ;;  %4258 = vmatpush1.bf16.msra.mxu1 %v5684_v0  ;;  %v5780_v63 = vld [vmem:[%s8331_s1 + $0x3e4] ss:$16 sps:$4 sm:$0xff]   ;;  %v5783_v0 = vld [vmem:[%s8331_s1 + $0x3ec] ss:$16 sps:$4 sm:$0xff]  }
  0x44   : > { %3883 = vmatprep.subr.bf16.mxu0 %v5690_v1  ;;  %4270 = vmatprep.subr.bf16.mxu1 %v5693_v2  ;;  %v5778_v1 = vld [vmem:[%s8331_s1 + $0x3e0] ss:$16 sps:$4 sm:$0xff]   ;;  %v5781_v2 = vld [vmem:[%s8331_s1 + $0x3e8] ss:$16 sps:$4 sm:$0xff]  }
  0x46   : > { %3873 = vmatmul.mubr.bf16.vlgmr.msra.gmra.mrb[0].mxu0 %v5685_v3  ;;  %4260 = vmatmul.mubr.bf16.vlgmr.msra.gmra.mrb[0].mxu1 %v5685_v3  ;;  %v5789_v3 = vld [vmem:[%s8331_s1 + $0x404] ss:$16 sps:$4 sm:$0xff]  }
  0x47   : > { %3884 = vmatpush1.bf16.msra.mxu0 %v5688_v4  ;;  %4271 = vmatpush1.bf16.msra.mxu1 %v5691_v5  ;;  %v5792_v4 = vld [vmem:[%s8331_s1 + $0x40c] ss:$16 sps:$4 sm:$0xff]   ;;  %v5784_v5 = vld [vmem:[%s6671_s23 + $0x8] ss:$72 sps:$4 sm:$0xff]  }
  0x48   : > { %3885 = vmatprep.subr.bf16.mxu0 %v5696_v6  ;;  %4272 = vmatprep.subr.bf16.mxu1 %v5699_v7  ;;  %v5787_v6 = vld [vmem:[%s8331_s1 + $0x400] ss:$16 sps:$4 sm:$0xff]   ;;  %v5790_v7 = vld [vmem:[%s8331_s1 + $0x408] ss:$16 sps:$4 sm:$0xff]  }
  0x49   : > { %3915 = vmatprep.mubr.bf16.mxu0 %v5786_v30  ;;  %4302 = vmatprep.mubr.bf16.mxu1 %v5786_v30  ;;  %v5828_v30 = vld [vmem:[%s8331_s1 + $0x4cc] ss:$16 sps:$4 sm:$0xff]  }
  0x4b   : > { %3886 = vmatpush1.bf16.msra.mxu0 %v5694_v8  ;;  %4273 = vmatpush1.bf16.msra.mxu1 %v5697_v9  ;;  %v5795_v8 = vld [vmem:[%s8331_s1 + $0x424] ss:$16 sps:$4 sm:$0xff]   ;;  %v5798_v9 = vld [vmem:[%s8331_s1 + $0x42c] ss:$16 sps:$4 sm:$0xff]  }
  0x4c   : > { %3887 = vmatprep.subr.bf16.mxu0 %v5702_v10  ;;  %4274 = vmatprep.subr.bf16.mxu1 %v5705_v11  ;;  %v5793_v10 = vld [vmem:[%s8331_s1 + $0x420] ss:$16 sps:$4 sm:$0xff]   ;;  %v5796_v11 = vld [vmem:[%s8331_s1 + $0x428] ss:$16 sps:$4 sm:$0xff]  }
  0x4f   : > { %3888 = vmatpush1.bf16.msra.mxu0 %v5700_v12  ;;  %4275 = vmatpush1.bf16.msra.mxu1 %v5703_v13  ;;  %v5885_v12 = vld [vmem:[%s6671_s23 + $0x14] ss:$72 sps:$4 sm:$0xff]  }
  0x50   : > { %3889 = vmatprep.subr.bf16.mxu0 %v5708_v14  ;;  %4276 = vmatprep.subr.bf16.mxu1 %v5711_v15  ;;  %v5801_v13 = vld [vmem:[%s8331_s1 + $0x444] ss:$16 sps:$4 sm:$0xff]   ;;  %v5804_v14 = vld [vmem:[%s8331_s1 + $0x44c] ss:$16 sps:$4 sm:$0xff]   ;;  %v5799_v15 = vld [vmem:[%s8331_s1 + $0x440] ss:$16 sps:$4 sm:$0xff]  }
  0x53   : > { %3890 = vmatpush1.bf16.msra.mxu0 %v5706_v16  ;;  %4277 = vmatpush1.bf16.msra.mxu1 %v5709_v17  ;;  %v5802_v16 = vld [vmem:[%s8331_s1 + $0x448] ss:$16 sps:$4 sm:$0xff]   ;;  %v5807_v17 = vld [vmem:[%s8331_s1 + $0x464] ss:$16 sps:$4 sm:$0xff]  }
  0x54   : > { %3891 = vmatprep.subr.bf16.mxu0 %v5714_v18  ;;  %4278 = vmatprep.subr.bf16.mxu1 %v5717_v19  ;;  %v5810_v18 = vld [vmem:[%s8331_s1 + $0x46c] ss:$16 sps:$4 sm:$0xff]   ;;  %v5805_v19 = vld [vmem:[%s8331_s1 + $0x460] ss:$16 sps:$4 sm:$0xff]  }
  0x57   : > { %3892 = vmatpush1.bf16.msra.mxu0 %v5712_v20  ;;  %4279 = vmatpush1.bf16.msra.mxu1 %v5715_v21  ;;  %v5808_v20 = vld [vmem:[%s8331_s1 + $0x468] ss:$16 sps:$4 sm:$0xff]   ;;  %v5813_v21 = vld [vmem:[%s8331_s1 + $0x484] ss:$16 sps:$4 sm:$0xff]  }
  0x58   : > { %3893 = vmatprep.subr.bf16.mxu0 %v5720_v22  ;;  %4280 = vmatprep.subr.bf16.mxu1 %v5723_v23  ;;  %v5816_v22 = vld [vmem:[%s8331_s1 + $0x48c] ss:$16 sps:$4 sm:$0xff]   ;;  %v5811_v23 = vld [vmem:[%s8331_s1 + $0x480] ss:$16 sps:$4 sm:$0xff]  }
  0x5b   : > { %3894 = vmatpush1.bf16.msra.mxu0 %v5718_v24  ;;  %4281 = vmatpush1.bf16.msra.mxu1 %v5721_v25  ;;  %v5814_v24 = vld [vmem:[%s8331_s1 + $0x488] ss:$16 sps:$4 sm:$0xff]   ;;  %v5819_v25 = vld [vmem:[%s8331_s1 + $0x4a4] ss:$16 sps:$4 sm:$0xff]  }
  0x5c   : > { %3895 = vmatprep.subr.bf16.mxu0 %v5726_v26  ;;  %4282 = vmatprep.subr.bf16.mxu1 %v5729_v27  ;;  %v5822_v26 = vld [vmem:[%s8331_s1 + $0x4ac] ss:$16 sps:$4 sm:$0xff]   ;;  %v5817_v27 = vld [vmem:[%s8331_s1 + $0x4a0] ss:$16 sps:$4 sm:$0xff]  }
  0x5f   : > { %3896 = vmatpush1.bf16.msra.mxu0 %v5724_v28  ;;  %4283 = vmatpush1.bf16.msra.mxu1 %v5727_v29  ;;  %v5820_v28 = vld [vmem:[%s8331_s1 + $0x4a8] ss:$16 sps:$4 sm:$0xff]   ;;  %v5825_v29 = vld [vmem:[%s8331_s1 + $0x4c4] ss:$16 sps:$4 sm:$0xff]  }
  0x60   : > { %3897 = vmatprep.subr.bf16.mxu0 %v5732_v31  ;;  %4284 = vmatprep.subr.bf16.mxu1 %v5735_v32  ;;  %v5823_v31 = vld [vmem:[%s8331_s1 + $0x4c0] ss:$16 sps:$4 sm:$0xff]   ;;  %v5826_v32 = vld [vmem:[%s8331_s1 + $0x4c8] ss:$16 sps:$4 sm:$0xff]  }
  0x63   : > { %3898 = vmatpush1.bf16.msra.mxu0 %v5730_v33  ;;  %4285 = vmatpush1.bf16.msra.mxu1 %v5733_v34  ;;  %v5831_v33 = vld [vmem:[%s8331_s1 + $0x4e4] ss:$16 sps:$4 sm:$0xff]   ;;  %v5834_v34 = vld [vmem:[%s8331_s1 + $0x4ec] ss:$16 sps:$4 sm:$0xff]  }
  0x64   : > { %3899 = vmatprep.subr.bf16.mxu0 %v5738_v35  ;;  %4286 = vmatprep.subr.bf16.mxu1 %v5741_v36  ;;  %v5829_v35 = vld [vmem:[%s8331_s1 + $0x4e0] ss:$16 sps:$4 sm:$0xff]   ;;  %v5832_v36 = vld [vmem:[%s8331_s1 + $0x4e8] ss:$16 sps:$4 sm:$0xff]  }
  0x67   : > { %3900 = vmatpush1.bf16.msra.mxu0 %v5736_v37  ;;  %4287 = vmatpush1.bf16.msra.mxu1 %v5739_v38  ;;  %v5837_v37 = vld [vmem:[%s8331_s1 + $0x504] ss:$16 sps:$4 sm:$0xff]   ;;  %v5840_v38 = vld [vmem:[%s8331_s1 + $0x50c] ss:$16 sps:$4 sm:$0xff]  }
  0x68   : > { %3901 = vmatprep.subr.bf16.mxu0 %v5744_v39  ;;  %4288 = vmatprep.subr.bf16.mxu1 %v5747_v40  ;;  %v5835_v39 = vld [vmem:[%s8331_s1 + $0x500] ss:$16 sps:$4 sm:$0xff]   ;;  %v5838_v40 = vld [vmem:[%s8331_s1 + $0x508] ss:$16 sps:$4 sm:$0xff]  }
  0x6b   : > { %3902 = vmatpush1.bf16.msra.mxu0 %v5742_v41  ;;  %4289 = vmatpush1.bf16.msra.mxu1 %v5745_v42  ;;  %v5843_v41 = vld [vmem:[%s8331_s1 + $0x524] ss:$16 sps:$4 sm:$0xff]   ;;  %v5846_v42 = vld [vmem:[%s8331_s1 + $0x52c] ss:$16 sps:$4 sm:$0xff]  }
  0x6c   : > { %3903 = vmatprep.subr.bf16.mxu0 %v5750_v43  ;;  %4290 = vmatprep.subr.bf16.mxu1 %v5753_v44  ;;  %v5841_v43 = vld [vmem:[%s8331_s1 + $0x520] ss:$16 sps:$4 sm:$0xff]   ;;  %v5844_v44 = vld [vmem:[%s8331_s1 + $0x528] ss:$16 sps:$4 sm:$0xff]  }
  0x6f   : > { %3904 = vmatpush1.bf16.msra.mxu0 %v5748_v45  ;;  %4291 = vmatpush1.bf16.msra.mxu1 %v5751_v46  ;;  %v5849_v45 = vld [vmem:[%s8331_s1 + $0x544] ss:$16 sps:$4 sm:$0xff]   ;;  %v5852_v46 = vld [vmem:[%s8331_s1 + $0x54c] ss:$16 sps:$4 sm:$0xff]  }
  0x70   : > { %3905 = vmatprep.subr.bf16.mxu0 %v5756_v47  ;;  %4292 = vmatprep.subr.bf16.mxu1 %v5759_v48  ;;  %v5847_v47 = vld [vmem:[%s8331_s1 + $0x540] ss:$16 sps:$4 sm:$0xff]   ;;  %v5850_v48 = vld [vmem:[%s8331_s1 + $0x548] ss:$16 sps:$4 sm:$0xff]  }
  0x73   : > { %3906 = vmatpush1.bf16.msra.mxu0 %v5754_v49  ;;  %4293 = vmatpush1.bf16.msra.mxu1 %v5757_v50  ;;  %v5855_v49 = vld [vmem:[%s8331_s1 + $0x564] ss:$16 sps:$4 sm:$0xff]   ;;  %v5858_v50 = vld [vmem:[%s8331_s1 + $0x56c] ss:$16 sps:$4 sm:$0xff]  }
  0x74   : > { %3907 = vmatprep.subr.bf16.mxu0 %v5762_v51  ;;  %4294 = vmatprep.subr.bf16.mxu1 %v5765_v52  ;;  %v5853_v51 = vld [vmem:[%s8331_s1 + $0x560] ss:$16 sps:$4 sm:$0xff]   ;;  %v5856_v52 = vld [vmem:[%s8331_s1 + $0x568] ss:$16 sps:$4 sm:$0xff]  }
  0x77   : > { %3908 = vmatpush1.bf16.msra.mxu0 %v5760_v53  ;;  %4295 = vmatpush1.bf16.msra.mxu1 %v5763_v54  ;;  %v5861_v53 = vld [vmem:[%s8331_s1 + $0x584] ss:$16 sps:$4 sm:$0xff]   ;;  %v5864_v54 = vld [vmem:[%s8331_s1 + $0x58c] ss:$16 sps:$4 sm:$0xff]  }
  0x78   : > { %3909 = vmatprep.subr.bf16.mxu0 %v5768_v55  ;;  %4296 = vmatprep.subr.bf16.mxu1 %v5771_v56  ;;  %v5859_v55 = vld [vmem:[%s8331_s1 + $0x580] ss:$16 sps:$4 sm:$0xff]   ;;  %v5862_v56 = vld [vmem:[%s8331_s1 + $0x588] ss:$16 sps:$4 sm:$0xff]  }
  0x7b   : > { %3910 = vmatpush1.bf16.msra.mxu0 %v5766_v57  ;;  %4297 = vmatpush1.bf16.msra.mxu1 %v5769_v58  ;;  %v5867_v57 = vld [vmem:[%s8331_s1 + $0x5a4] ss:$16 sps:$4 sm:$0xff]   ;;  %v5870_v58 = vld [vmem:[%s8331_s1 + $0x5ac] ss:$16 sps:$4 sm:$0xff]  }
  0x7c   : > { %3911 = vmatprep.subr.bf16.mxu0 %v5774_v59  ;;  %4298 = vmatprep.subr.bf16.mxu1 %v5777_v60  ;;  %v5865_v59 = vld [vmem:[%s8331_s1 + $0x5a0] ss:$16 sps:$4 sm:$0xff]   ;;  %v5868_v60 = vld [vmem:[%s8331_s1 + $0x5a8] ss:$16 sps:$4 sm:$0xff]  }
  0x7f   : > { %3912 = vmatpush1.bf16.msra.mxu0 %v5772_v61  ;;  %4299 = vmatpush1.bf16.msra.mxu1 %v5775_v62  ;;  %v5873_v61 = vld [vmem:[%s8331_s1 + $0x5c4] ss:$16 sps:$4 sm:$0xff]   ;;  %v5876_v62 = vld [vmem:[%s8331_s1 + $0x5cc] ss:$16 sps:$4 sm:$0xff]  }
  0x80   : > { %3913 = vmatprep.subr.bf16.mxu0 %v5780_v63  ;;  %4300 = vmatprep.subr.bf16.mxu1 %v5783_v0  ;;  %v5871_v63 = vld [vmem:[%s8331_s1 + $0x5c0] ss:$16 sps:$4 sm:$0xff]   ;;  %v5874_v0 = vld [vmem:[%s8331_s1 + $0x5c8] ss:$16 sps:$4 sm:$0xff]  }
  0x83   : > { %3914 = vmatpush1.bf16.msra.mxu0 %v5778_v1  ;;  %4301 = vmatpush1.bf16.msra.mxu1 %v5781_v2  ;;  %v5879_v1 = vld [vmem:[%s8331_s1 + $0x5e4] ss:$16 sps:$4 sm:$0xff]   ;;  %v5882_v2 = vld [vmem:[%s8331_s1 + $0x5ec] ss:$16 sps:$4 sm:$0xff]  }
  0x84   : > { %3926 = vmatprep.subr.bf16.mxu0 %v5789_v3  ;;  %4313 = vmatprep.subr.bf16.mxu1 %v5792_v4  ;;  %v5877_v3 = vld [vmem:[%s8331_s1 + $0x5e0] ss:$16 sps:$4 sm:$0xff]   ;;  %v5880_v4 = vld [vmem:[%s8331_s1 + $0x5e8] ss:$16 sps:$4 sm:$0xff]  }
  0x86   : > { %3916 = vmatmul.mubr.bf16.vlgmr.msra.gmra.mrb[0].mxu0 %v5784_v5  ;;  %4303 = vmatmul.mubr.bf16.vlgmr.msra.gmra.mrb[0].mxu1 %v5784_v5  ;;  %v5888_v5 = vld [vmem:[%s8331_s1 + $0x604] ss:$16 sps:$4 sm:$0xff]  }
  0x87   : > { %3927 = vmatpush1.bf16.msra.mxu0 %v5787_v6  ;;  %4314 = vmatpush1.bf16.msra.mxu1 %v5790_v7  ;;  %v5891_v6 = vld [vmem:[%s8331_s1 + $0x60c] ss:$16 sps:$4 sm:$0xff]   ;;  %v5883_v7 = vld [vmem:[%s6671_s23 + $0x10] ss:$72 sps:$4 sm:$0xff]  }
  0x88   : > { %3928 = vmatprep.subr.bf16.mxu0 %v5795_v8  ;;  %4315 = vmatprep.subr.bf16.mxu1 %v5798_v9  ;;  %v5886_v8 = vld [vmem:[%s8331_s1 + $0x600] ss:$16 sps:$4 sm:$0xff]   ;;  %v5889_v9 = vld [vmem:[%s8331_s1 + $0x608] ss:$16 sps:$4 sm:$0xff]  }
  0x89   : > { %3958 = vmatprep.mubr.bf16.mxu0 %v5885_v12  ;;  %4345 = vmatprep.mubr.bf16.mxu1 %v5885_v12  ;;  %v5984_v12 = vld [vmem:[%s6671_s23 + $0x1c] ss:$72 sps:$4 sm:$0xff]  }
  0x8b   : > { %3929 = vmatpush1.bf16.msra.mxu0 %v5793_v10  ;;  %4316 = vmatpush1.bf16.msra.mxu1 %v5796_v11  ;;  %v5894_v10 = vld [vmem:[%s8331_s1 + $0x624] ss:$16 sps:$4 sm:$0xff]   ;;  %v5897_v11 = vld [vmem:[%s8331_s1 + $0x62c] ss:$16 sps:$4 sm:$0xff]  }
  0x8c   : > { %3930 = vmatprep.subr.bf16.mxu0 %v5801_v13  ;;  %4317 = vmatprep.subr.bf16.mxu1 %v5804_v14  ;;  %v5892_v13 = vld [vmem:[%s8331_s1 + $0x620] ss:$16 sps:$4 sm:$0xff]   ;;  %v5895_v14 = vld [vmem:[%s8331_s1 + $0x628] ss:$16 sps:$4 sm:$0xff]  }
  0x8f   : > { %3931 = vmatpush1.bf16.msra.mxu0 %v5799_v15  ;;  %4318 = vmatpush1.bf16.msra.mxu1 %v5802_v16  ;;  %v5900_v15 = vld [vmem:[%s8331_s1 + $0x644] ss:$16 sps:$4 sm:$0xff]   ;;  %v5903_v16 = vld [vmem:[%s8331_s1 + $0x64c] ss:$16 sps:$4 sm:$0xff]  }
  0x90   : > { %3932 = vmatprep.subr.bf16.mxu0 %v5807_v17  ;;  %4319 = vmatprep.subr.bf16.mxu1 %v5810_v18  ;;  %v5898_v17 = vld [vmem:[%s8331_s1 + $0x640] ss:$16 sps:$4 sm:$0xff]   ;;  %v5901_v18 = vld [vmem:[%s8331_s1 + $0x648] ss:$16 sps:$4 sm:$0xff]  }
  0x93   : > { %3933 = vmatpush1.bf16.msra.mxu0 %v5805_v19  ;;  %4320 = vmatpush1.bf16.msra.mxu1 %v5808_v20  ;;  %v5906_v19 = vld [vmem:[%s8331_s1 + $0x664] ss:$16 sps:$4 sm:$0xff]   ;;  %v5909_v20 = vld [vmem:[%s8331_s1 + $0x66c] ss:$16 sps:$4 sm:$0xff]  }
  0x94   : > { %3934 = vmatprep.subr.bf16.mxu0 %v5813_v21  ;;  %4321 = vmatprep.subr.bf16.mxu1 %v5816_v22  ;;  %v5904_v21 = vld [vmem:[%s8331_s1 + $0x660] ss:$16 sps:$4 sm:$0xff]   ;;  %v5907_v22 = vld [vmem:[%s8331_s1 + $0x668] ss:$16 sps:$4 sm:$0xff]  }
  0x97   : > { %3935 = vmatpush1.bf16.msra.mxu0 %v5811_v23  ;;  %4322 = vmatpush1.bf16.msra.mxu1 %v5814_v24  ;;  %v5912_v23 = vld [vmem:[%s8331_s1 + $0x684] ss:$16 sps:$4 sm:$0xff]   ;;  %v5915_v24 = vld [vmem:[%s8331_s1 + $0x68c] ss:$16 sps:$4 sm:$0xff]  }
  0x98   : > { %3936 = vmatprep.subr.bf16.mxu0 %v5819_v25  ;;  %4323 = vmatprep.subr.bf16.mxu1 %v5822_v26  ;;  %v5910_v25 = vld [vmem:[%s8331_s1 + $0x680] ss:$16 sps:$4 sm:$0xff]   ;;  %v5913_v26 = vld [vmem:[%s8331_s1 + $0x688] ss:$16 sps:$4 sm:$0xff]  }
  0x9b   : > { %3937 = vmatpush1.bf16.msra.mxu0 %v5817_v27  ;;  %4324 = vmatpush1.bf16.msra.mxu1 %v5820_v28  ;;  %v5918_v27 = vld [vmem:[%s8331_s1 + $0x6a4] ss:$16 sps:$4 sm:$0xff]   ;;  %v5921_v28 = vld [vmem:[%s8331_s1 + $0x6ac] ss:$16 sps:$4 sm:$0xff]  }
  0x9c   : > { %3938 = vmatprep.subr.bf16.mxu0 %v5825_v29  ;;  %4325 = vmatprep.subr.bf16.mxu1 %v5828_v30  ;;  %v5916_v29 = vld [vmem:[%s8331_s1 + $0x6a0] ss:$16 sps:$4 sm:$0xff]   ;;  %v5919_v30 = vld [vmem:[%s8331_s1 + $0x6a8] ss:$16 sps:$4 sm:$0xff]  }
  0x9f   : > { %3939 = vmatpush1.bf16.msra.mxu0 %v5823_v31  ;;  %4326 = vmatpush1.bf16.msra.mxu1 %v5826_v32  ;;  %v5924_v31 = vld [vmem:[%s8331_s1 + $0x6c4] ss:$16 sps:$4 sm:$0xff]   ;;  %v5927_v32 = vld [vmem:[%s8331_s1 + $0x6cc] ss:$16 sps:$4 sm:$0xff]  }
  0xa0   : > { %3940 = vmatprep.subr.bf16.mxu0 %v5831_v33  ;;  %4327 = vmatprep.subr.bf16.mxu1 %v5834_v34  ;;  %v5922_v33 = vld [vmem:[%s8331_s1 + $0x6c0] ss:$16 sps:$4 sm:$0xff]   ;;  %v5925_v34 = vld [vmem:[%s8331_s1 + $0x6c8] ss:$16 sps:$4 sm:$0xff]  }
  0xa3   : > { %3941 = vmatpush1.bf16.msra.mxu0 %v5829_v35  ;;  %4328 = vmatpush1.bf16.msra.mxu1 %v5832_v36  ;;  %v5930_v35 = vld [vmem:[%s8331_s1 + $0x6e4] ss:$16 sps:$4 sm:$0xff]   ;;  %v5933_v36 = vld [vmem:[%s8331_s1 + $0x6ec] ss:$16 sps:$4 sm:$0xff]  }
  0xa4   : > { %3942 = vmatprep.subr.bf16.mxu0 %v5837_v37  ;;  %4329 = vmatprep.subr.bf16.mxu1 %v5840_v38  ;;  %v5928_v37 = vld [vmem:[%s8331_s1 + $0x6e0] ss:$16 sps:$4 sm:$0xff]   ;;  %v5931_v38 = vld [vmem:[%s8331_s1 + $0x6e8] ss:$16 sps:$4 sm:$0xff]  }
  0xa7   : > { %3943 = vmatpush1.bf16.msra.mxu0 %v5835_v39  ;;  %4330 = vmatpush1.bf16.msra.mxu1 %v5838_v40  ;;  %v5936_v39 = vld [vmem:[%s8331_s1 + $0x704] ss:$16 sps:$4 sm:$0xff]   ;;  %v5939_v40 = vld [vmem:[%s8331_s1 + $0x70c] ss:$16 sps:$4 sm:$0xff]  }
  0xa8   : > { %3944 = vmatprep.subr.bf16.mxu0 %v5843_v41  ;;  %4331 = vmatprep.subr.bf16.mxu1 %v5846_v42  ;;  %v5934_v41 = vld [vmem:[%s8331_s1 + $0x700] ss:$16 sps:$4 sm:$0xff]   ;;  %v5937_v42 = vld [vmem:[%s8331_s1 + $0x708] ss:$16 sps:$4 sm:$0xff]  }
  0xab   : > { %3945 = vmatpush1.bf16.msra.mxu0 %v5841_v43  ;;  %4332 = vmatpush1.bf16.msra.mxu1 %v5844_v44  ;;  %v5942_v43 = vld [vmem:[%s8331_s1 + $0x724] ss:$16 sps:$4 sm:$0xff]   ;;  %v5945_v44 = vld [vmem:[%s8331_s1 + $0x72c] ss:$16 sps:$4 sm:$0xff]  }
  0xac   : > { %3946 = vmatprep.subr.bf16.mxu0 %v5849_v45  ;;  %4333 = vmatprep.subr.bf16.mxu1 %v5852_v46  ;;  %v5940_v45 = vld [vmem:[%s8331_s1 + $0x720] ss:$16 sps:$4 sm:$0xff]   ;;  %v5943_v46 = vld [vmem:[%s8331_s1 + $0x728] ss:$16 sps:$4 sm:$0xff]  }
  0xaf   : > { %3947 = vmatpush1.bf16.msra.mxu0 %v5847_v47  ;;  %4334 = vmatpush1.bf16.msra.mxu1 %v5850_v48  ;;  %v5948_v47 = vld [vmem:[%s8331_s1 + $0x744] ss:$16 sps:$4 sm:$0xff]   ;;  %v5951_v48 = vld [vmem:[%s8331_s1 + $0x74c] ss:$16 sps:$4 sm:$0xff]  }
  0xb0   : > { %3948 = vmatprep.subr.bf16.mxu0 %v5855_v49  ;;  %4335 = vmatprep.subr.bf16.mxu1 %v5858_v50  ;;  %v5946_v49 = vld [vmem:[%s8331_s1 + $0x740] ss:$16 sps:$4 sm:$0xff]   ;;  %v5949_v50 = vld [vmem:[%s8331_s1 + $0x748] ss:$16 sps:$4 sm:$0xff]  }
  0xb3   : > { %3949 = vmatpush1.bf16.msra.mxu0 %v5853_v51  ;;  %4336 = vmatpush1.bf16.msra.mxu1 %v5856_v52  ;;  %v5954_v51 = vld [vmem:[%s8331_s1 + $0x764] ss:$16 sps:$4 sm:$0xff]   ;;  %v5957_v52 = vld [vmem:[%s8331_s1 + $0x76c] ss:$16 sps:$4 sm:$0xff]  }
  0xb4   : > { %3950 = vmatprep.subr.bf16.mxu0 %v5861_v53  ;;  %4337 = vmatprep.subr.bf16.mxu1 %v5864_v54  ;;  %v5952_v53 = vld [vmem:[%s8331_s1 + $0x760] ss:$16 sps:$4 sm:$0xff]   ;;  %v5955_v54 = vld [vmem:[%s8331_s1 + $0x768] ss:$16 sps:$4 sm:$0xff]  }
  0xb7   : > { %3951 = vmatpush1.bf16.msra.mxu0 %v5859_v55  ;;  %4338 = vmatpush1.bf16.msra.mxu1 %v5862_v56  ;;  %v5960_v55 = vld [vmem:[%s8331_s1 + $0x784] ss:$16 sps:$4 sm:$0xff]   ;;  %v5963_v56 = vld [vmem:[%s8331_s1 + $0x78c] ss:$16 sps:$4 sm:$0xff]  }
  0xb8   : > { %3952 = vmatprep.subr.bf16.mxu0 %v5867_v57  ;;  %4339 = vmatprep.subr.bf16.mxu1 %v5870_v58  ;;  %v5958_v57 = vld [vmem:[%s8331_s1 + $0x780] ss:$16 sps:$4 sm:$0xff]   ;;  %v5961_v58 = vld [vmem:[%s8331_s1 + $0x788] ss:$16 sps:$4 sm:$0xff]  }
  0xbb   : > { %3953 = vmatpush1.bf16.msra.mxu0 %v5865_v59  ;;  %4340 = vmatpush1.bf16.msra.mxu1 %v5868_v60  ;;  %v5966_v59 = vld [vmem:[%s8331_s1 + $0x7a4] ss:$16 sps:$4 sm:$0xff]   ;;  %v5969_v60 = vld [vmem:[%s8331_s1 + $0x7ac] ss:$16 sps:$4 sm:$0xff]  }
  0xbc   : > { %3954 = vmatprep.subr.bf16.mxu0 %v5873_v61  ;;  %4341 = vmatprep.subr.bf16.mxu1 %v5876_v62  ;;  %v5964_v61 = vld [vmem:[%s8331_s1 + $0x7a0] ss:$16 sps:$4 sm:$0xff]   ;;  %v5967_v62 = vld [vmem:[%s8331_s1 + $0x7a8] ss:$16 sps:$4 sm:$0xff]  }
  0xbf   : > { %3955 = vmatpush1.bf16.msra.mxu0 %v5871_v63  ;;  %4342 = vmatpush1.bf16.msra.mxu1 %v5874_v0  ;;  %v5972_v63 = vld [vmem:[%s8331_s1 + $0x7c4] ss:$16 sps:$4 sm:$0xff]   ;;  %v5975_v0 = vld [vmem:[%s8331_s1 + $0x7cc] ss:$16 sps:$4 sm:$0xff]  }
  0xc0   : > { %3956 = vmatprep.subr.bf16.mxu0 %v5879_v1  ;;  %4343 = vmatprep.subr.bf16.mxu1 %v5882_v2  ;;  %v5970_v1 = vld [vmem:[%s8331_s1 + $0x7c0] ss:$16 sps:$4 sm:$0xff]   ;;  %v5973_v2 = vld [vmem:[%s8331_s1 + $0x7c8] ss:$16 sps:$4 sm:$0xff]  }
  0xc3   : > { %3957 = vmatpush1.bf16.msra.mxu0 %v5877_v3  ;;  %4344 = vmatpush1.bf16.msra.mxu1 %v5880_v4  ;;  %v5978_v3 = vld [vmem:[%s8331_s1 + $0x7e4] ss:$16 sps:$4 sm:$0xff]   ;;  %v5981_v4 = vld [vmem:[%s8331_s1 + $0x7ec] ss:$16 sps:$4 sm:$0xff]  }
  0xc4   : > { %3969 = vmatprep.subr.bf16.mxu0 %v5888_v5  ;;  %4356 = vmatprep.subr.bf16.mxu1 %v5891_v6  ;;  %v5976_v5 = vld [vmem:[%s8331_s1 + $0x7e0] ss:$16 sps:$4 sm:$0xff]   ;;  %v5979_v6 = vld [vmem:[%s8331_s1 + $0x7e8] ss:$16 sps:$4 sm:$0xff]  }
  0xc6   : > { %3959 = vmatmul.mubr.bf16.vlgmr.msra.gmra.mrb[0].mxu0 %v5883_v7  ;;  %4346 = vmatmul.mubr.bf16.vlgmr.msra.gmra.mrb[0].mxu1 %v5883_v7  ;;  %v5987_v7 = vld [vmem:[%s8331_s1 + $0x804] ss:$16 sps:$4 sm:$0xff]  }
  0xc7   : > { %3970 = vmatpush1.bf16.msra.mxu0 %v5886_v8  ;;  %4357 = vmatpush1.bf16.msra.mxu1 %v5889_v9  ;;  %v5990_v8 = vld [vmem:[%s8331_s1 + $0x80c] ss:$16 sps:$4 sm:$0xff]   ;;  %v5982_v9 = vld [vmem:[%s6671_s23 + $0x18] ss:$72 sps:$4 sm:$0xff]  }
  0xc8   : > { %3971 = vmatprep.subr.bf16.mxu0 %v5894_v10  ;;  %4358 = vmatprep.subr.bf16.mxu1 %v5897_v11  ;;  %v5985_v10 = vld [vmem:[%s8331_s1 + $0x800] ss:$16 sps:$4 sm:$0xff]   ;;  %v5988_v11 = vld [vmem:[%s8331_s1 + $0x808] ss:$16 sps:$4 sm:$0xff]  }
  0xc9   : > { %4001 = vmatprep.mubr.bf16.mxu0 %v5984_v12  ;;  %4388 = vmatprep.mubr.bf16.mxu1 %v5984_v12  ;;  %v5993_v12 = vld [vmem:[%s8331_s1 + $0x824] ss:$16 sps:$4 sm:$0xff]  }
  0xcb   : > { %3972 = vmatpush1.bf16.msra.mxu0 %v5892_v13  ;;  %4359 = vmatpush1.bf16.msra.mxu1 %v5895_v14  ;;  %v5996_v13 = vld [vmem:[%s8331_s1 + $0x82c] ss:$16 sps:$4 sm:$0xff]  }
  0xcc   : > { %3973 = vmatprep.subr.bf16.mxu0 %v5900_v15  ;;  %4360 = vmatprep.subr.bf16.mxu1 %v5903_v16  ;;  %v6083_v14 = vld [vmem:[%s6671_s23 + $0x24] ss:$72 sps:$4 sm:$0xff]   ;;  %v5991_v15 = vld [vmem:[%s8331_s1 + $0x820] ss:$16 sps:$4 sm:$0xff]   ;;  %v5994_v16 = vld [vmem:[%s8331_s1 + $0x828] ss:$16 sps:$4 sm:$0xff]  }
  0xcf   : > { %3974 = vmatpush1.bf16.msra.mxu0 %v5898_v17  ;;  %4361 = vmatpush1.bf16.msra.mxu1 %v5901_v18  ;;  %v5999_v17 = vld [vmem:[%s8331_s1 + $0x844] ss:$16 sps:$4 sm:$0xff]   ;;  %v6002_v18 = vld [vmem:[%s8331_s1 + $0x84c] ss:$16 sps:$4 sm:$0xff]  }
  0xd0   : > { %3975 = vmatprep.subr.bf16.mxu0 %v5906_v19  ;;  %4362 = vmatprep.subr.bf16.mxu1 %v5909_v20  ;;  %v5997_v19 = vld [vmem:[%s8331_s1 + $0x840] ss:$16 sps:$4 sm:$0xff]   ;;  %v6000_v20 = vld [vmem:[%s8331_s1 + $0x848] ss:$16 sps:$4 sm:$0xff]  }
  0xd3   : > { %3976 = vmatpush1.bf16.msra.mxu0 %v5904_v21  ;;  %4363 = vmatpush1.bf16.msra.mxu1 %v5907_v22  ;;  %v6005_v21 = vld [vmem:[%s8331_s1 + $0x864] ss:$16 sps:$4 sm:$0xff]   ;;  %v6008_v22 = vld [vmem:[%s8331_s1 + $0x86c] ss:$16 sps:$4 sm:$0xff]  }
  0xd4   : > { %3977 = vmatprep.subr.bf16.mxu0 %v5912_v23  ;;  %4364 = vmatprep.subr.bf16.mxu1 %v5915_v24  ;;  %v6003_v23 = vld [vmem:[%s8331_s1 + $0x860] ss:$16 sps:$4 sm:$0xff]   ;;  %v6006_v24 = vld [vmem:[%s8331_s1 + $0x868] ss:$16 sps:$4 sm:$0xff]  }
  0xd7   : > { %3978 = vmatpush1.bf16.msra.mxu0 %v5910_v25  ;;  %4365 = vmatpush1.bf16.msra.mxu1 %v5913_v26  ;;  %v6011_v25 = vld [vmem:[%s8331_s1 + $0x884] ss:$16 sps:$4 sm:$0xff]   ;;  %v6014_v26 = vld [vmem:[%s8331_s1 + $0x88c] ss:$16 sps:$4 sm:$0xff]  }
  0xd8   : > { %3979 = vmatprep.subr.bf16.mxu0 %v5918_v27  ;;  %4366 = vmatprep.subr.bf16.mxu1 %v5921_v28  ;;  %v6009_v27 = vld [vmem:[%s8331_s1 + $0x880] ss:$16 sps:$4 sm:$0xff]   ;;  %v6012_v28 = vld [vmem:[%s8331_s1 + $0x888] ss:$16 sps:$4 sm:$0xff]  }
  0xdb   : > { %3980 = vmatpush1.bf16.msra.mxu0 %v5916_v29  ;;  %4367 = vmatpush1.bf16.msra.mxu1 %v5919_v30  ;;  %v6017_v29 = vld [vmem:[%s8331_s1 + $0x8a4] ss:$16 sps:$4 sm:$0xff]   ;;  %v6020_v30 = vld [vmem:[%s8331_s1 + $0x8ac] ss:$16 sps:$4 sm:$0xff]  }
  0xdc   : > { %3981 = vmatprep.subr.bf16.mxu0 %v5924_v31  ;;  %4368 = vmatprep.subr.bf16.mxu1 %v5927_v32  ;;  %v6015_v31 = vld [vmem:[%s8331_s1 + $0x8a0] ss:$16 sps:$4 sm:$0xff]   ;;  %v6018_v32 = vld [vmem:[%s8331_s1 + $0x8a8] ss:$16 sps:$4 sm:$0xff]  }
  0xdf   : > { %3982 = vmatpush1.bf16.msra.mxu0 %v5922_v33  ;;  %4369 = vmatpush1.bf16.msra.mxu1 %v5925_v34  ;;  %v6023_v33 = vld [vmem:[%s8331_s1 + $0x8c4] ss:$16 sps:$4 sm:$0xff]   ;;  %v6026_v34 = vld [vmem:[%s8331_s1 + $0x8cc] ss:$16 sps:$4 sm:$0xff]  }
  0xe0   : > { %3983 = vmatprep.subr.bf16.mxu0 %v5930_v35  ;;  %4370 = vmatprep.subr.bf16.mxu1 %v5933_v36  ;;  %v6021_v35 = vld [vmem:[%s8331_s1 + $0x8c0] ss:$16 sps:$4 sm:$0xff]   ;;  %v6024_v36 = vld [vmem:[%s8331_s1 + $0x8c8] ss:$16 sps:$4 sm:$0xff]  }
  0xe3   : > { %3984 = vmatpush1.bf16.msra.mxu0 %v5928_v37  ;;  %4371 = vmatpush1.bf16.msra.mxu1 %v5931_v38  ;;  %v6029_v37 = vld [vmem:[%s8331_s1 + $0x8e4] ss:$16 sps:$4 sm:$0xff]   ;;  %v6032_v38 = vld [vmem:[%s8331_s1 + $0x8ec] ss:$16 sps:$4 sm:$0xff]  }
  0xe4   : > { %3985 = vmatprep.subr.bf16.mxu0 %v5936_v39  ;;  %4372 = vmatprep.subr.bf16.mxu1 %v5939_v40  ;;  %v6027_v39 = vld [vmem:[%s8331_s1 + $0x8e0] ss:$16 sps:$4 sm:$0xff]   ;;  %v6030_v40 = vld [vmem:[%s8331_s1 + $0x8e8] ss:$16 sps:$4 sm:$0xff]  }
  0xe7   : > { %3986 = vmatpush1.bf16.msra.mxu0 %v5934_v41  ;;  %4373 = vmatpush1.bf16.msra.mxu1 %v5937_v42  ;;  %v6035_v41 = vld [vmem:[%s8331_s1 + $0x904] ss:$16 sps:$4 sm:$0xff]   ;;  %v6038_v42 = vld [vmem:[%s8331_s1 + $0x90c] ss:$16 sps:$4 sm:$0xff]  }
  0xe8   : > { %3987 = vmatprep.subr.bf16.mxu0 %v5942_v43  ;;  %4374 = vmatprep.subr.bf16.mxu1 %v5945_v44  ;;  %v6033_v43 = vld [vmem:[%s8331_s1 + $0x900] ss:$16 sps:$4 sm:$0xff]   ;;  %v6036_v44 = vld [vmem:[%s8331_s1 + $0x908] ss:$16 sps:$4 sm:$0xff]  }
  0xeb   : > { %3988 = vmatpush1.bf16.msra.mxu0 %v5940_v45  ;;  %4375 = vmatpush1.bf16.msra.mxu1 %v5943_v46  ;;  %v6041_v45 = vld [vmem:[%s8331_s1 + $0x924] ss:$16 sps:$4 sm:$0xff]   ;;  %v6044_v46 = vld [vmem:[%s8331_s1 + $0x92c] ss:$16 sps:$4 sm:$0xff]  }
  0xec   : > { %3989 = vmatprep.subr.bf16.mxu0 %v5948_v47  ;;  %4376 = vmatprep.subr.bf16.mxu1 %v5951_v48  ;;  %v6039_v47 = vld [vmem:[%s8331_s1 + $0x920] ss:$16 sps:$4 sm:$0xff]   ;;  %v6042_v48 = vld [vmem:[%s8331_s1 + $0x928] ss:$16 sps:$4 sm:$0xff]  }
  0xef   : > { %3990 = vmatpush1.bf16.msra.mxu0 %v5946_v49  ;;  %4377 = vmatpush1.bf16.msra.mxu1 %v5949_v50  ;;  %v6047_v49 = vld [vmem:[%s8331_s1 + $0x944] ss:$16 sps:$4 sm:$0xff]   ;;  %v6050_v50 = vld [vmem:[%s8331_s1 + $0x94c] ss:$16 sps:$4 sm:$0xff]  }
  0xf0   : > { %3991 = vmatprep.subr.bf16.mxu0 %v5954_v51  ;;  %4378 = vmatprep.subr.bf16.mxu1 %v5957_v52  ;;  %v6045_v51 = vld [vmem:[%s8331_s1 + $0x940] ss:$16 sps:$4 sm:$0xff]   ;;  %v6048_v52 = vld [vmem:[%s8331_s1 + $0x948] ss:$16 sps:$4 sm:$0xff]  }
  0xf3   : > { %3992 = vmatpush1.bf16.msra.mxu0 %v5952_v53  ;;  %4379 = vmatpush1.bf16.msra.mxu1 %v5955_v54  ;;  %v6053_v53 = vld [vmem:[%s8331_s1 + $0x964] ss:$16 sps:$4 sm:$0xff]   ;;  %v6056_v54 = vld [vmem:[%s8331_s1 + $0x96c] ss:$16 sps:$4 sm:$0xff]  }
  0xf4   : > { %3993 = vmatprep.subr.bf16.mxu0 %v5960_v55  ;;  %4380 = vmatprep.subr.bf16.mxu1 %v5963_v56  ;;  %v6051_v55 = vld [vmem:[%s8331_s1 + $0x960] ss:$16 sps:$4 sm:$0xff]   ;;  %v6054_v56 = vld [vmem:[%s8331_s1 + $0x968] ss:$16 sps:$4 sm:$0xff]  }
  0xf7   : > { %3994 = vmatpush1.bf16.msra.mxu0 %v5958_v57  ;;  %4381 = vmatpush1.bf16.msra.mxu1 %v5961_v58  ;;  %v6059_v57 = vld [vmem:[%s8331_s1 + $0x984] ss:$16 sps:$4 sm:$0xff]   ;;  %v6062_v58 = vld [vmem:[%s8331_s1 + $0x98c] ss:$16 sps:$4 sm:$0xff]  }
  0xf8   : > { %3995 = vmatprep.subr.bf16.mxu0 %v5966_v59  ;;  %4382 = vmatprep.subr.bf16.mxu1 %v5969_v60  ;;  %v6057_v59 = vld [vmem:[%s8331_s1 + $0x980] ss:$16 sps:$4 sm:$0xff]   ;;  %v6060_v60 = vld [vmem:[%s8331_s1 + $0x988] ss:$16 sps:$4 sm:$0xff]  }
  0xfb   : > { %3996 = vmatpush1.bf16.msra.mxu0 %v5964_v61  ;;  %4383 = vmatpush1.bf16.msra.mxu1 %v5967_v62  ;;  %v6065_v61 = vld [vmem:[%s8331_s1 + $0x9a4] ss:$16 sps:$4 sm:$0xff]   ;;  %v6068_v62 = vld [vmem:[%s8331_s1 + $0x9ac] ss:$16 sps:$4 sm:$0xff]  }
  0xfc   : > { %3997 = vmatprep.subr.bf16.mxu0 %v5972_v63  ;;  %4384 = vmatprep.subr.bf16.mxu1 %v5975_v0  ;;  %v6063_v63 = vld [vmem:[%s8331_s1 + $0x9a0] ss:$16 sps:$4 sm:$0xff]   ;;  %v6066_v0 = vld [vmem:[%s8331_s1 + $0x9a8] ss:$16 sps:$4 sm:$0xff]  }
  0xff   : > { %3998 = vmatpush1.bf16.msra.mxu0 %v5970_v1  ;;  %4385 = vmatpush1.bf16.msra.mxu1 %v5973_v2  ;;  %v6071_v1 = vld [vmem:[%s8331_s1 + $0x9c4] ss:$16 sps:$4 sm:$0xff]   ;;  %v6074_v2 = vld [vmem:[%s8331_s1 + $0x9cc] ss:$16 sps:$4 sm:$0xff]  }
 0x100   : > { %3999 = vmatprep.subr.bf16.mxu0 %v5978_v3  ;;  %4386 = vmatprep.subr.bf16.mxu1 %v5981_v4  ;;  %v6069_v3 = vld [vmem:[%s8331_s1 + $0x9c0] ss:$16 sps:$4 sm:$0xff]   ;;  %v6072_v4 = vld [vmem:[%s8331_s1 + $0x9c8] ss:$16 sps:$4 sm:$0xff]  }
 0x103   : > { %4000 = vmatpush1.bf16.msra.mxu0 %v5976_v5  ;;  %4387 = vmatpush1.bf16.msra.mxu1 %v5979_v6  ;;  %v6077_v5 = vld [vmem:[%s8331_s1 + $0x9e4] ss:$16 sps:$4 sm:$0xff]   ;;  %v6080_v6 = vld [vmem:[%s8331_s1 + $0x9ec] ss:$16 sps:$4 sm:$0xff]  }
 0x104   : > { %4012 = vmatprep.subr.bf16.mxu0 %v5987_v7  ;;  %4399 = vmatprep.subr.bf16.mxu1 %v5990_v8  ;;  %v6075_v7 = vld [vmem:[%s8331_s1 + $0x9e0] ss:$16 sps:$4 sm:$0xff]   ;;  %v6078_v8 = vld [vmem:[%s8331_s1 + $0x9e8] ss:$16 sps:$4 sm:$0xff]  }
 0x106   : > { %4002 = vmatmul.mubr.bf16.vlgmr.msra.gmra.mrb[0].mxu0 %v5982_v9  ;;  %4389 = vmatmul.mubr.bf16.vlgmr.msra.gmra.mrb[0].mxu1 %v5982_v9  ;;  %v6081_v9 = vld [vmem:[%s6671_s23 + $0x20] ss:$72 sps:$4 sm:$0xff]  }
 0x107   : > { %4013 = vmatpush1.bf16.msra.mxu0 %v5985_v10  ;;  %4400 = vmatpush1.bf16.msra.mxu1 %v5988_v11  ;;  %v6086_v10 = vld [vmem:[%s8331_s1 + $0xa04] ss:$16 sps:$4 sm:$0xff]   ;;  %v6089_v11 = vld [vmem:[%s8331_s1 + $0xa0c] ss:$16 sps:$4 sm:$0xff]  }
 0x108   : > { %4014 = vmatprep.subr.bf16.mxu0 %v5993_v12  ;;  %4401 = vmatprep.subr.bf16.mxu1 %v5996_v13  ;;  %v6084_v12 = vld [vmem:[%s8331_s1 + $0xa00] ss:$16 sps:$4 sm:$0xff]   ;;  %v6087_v13 = vld [vmem:[%s8331_s1 + $0xa08] ss:$16 sps:$4 sm:$0xff]  }
 0x109   : > { %4044 = vmatprep.mubr.bf16.mxu0 %v6083_v14  ;;  %4431 = vmatprep.mubr.bf16.mxu1 %v6083_v14  ;;  %v6092_v14 = vld [vmem:[%s8331_s1 + $0xa24] ss:$16 sps:$4 sm:$0xff]  }
 0x10b   : > { %4015 = vmatpush1.bf16.msra.mxu0 %v5991_v15  ;;  %4402 = vmatpush1.bf16.msra.mxu1 %v5994_v16  ;;  %v6095_v15 = vld [vmem:[%s8331_s1 + $0xa2c] ss:$16 sps:$4 sm:$0xff]  }
 0x10c   : > { %4016 = vmatprep.subr.bf16.mxu0 %v5999_v17  ;;  %4403 = vmatprep.subr.bf16.mxu1 %v6002_v18  ;;  %v6182_v16 = vld [vmem:[%s6671_s23 + $0x2c] ss:$72 sps:$4 sm:$0xff]   ;;  %v6090_v17 = vld [vmem:[%s8331_s1 + $0xa20] ss:$16 sps:$4 sm:$0xff]   ;;  %v6093_v18 = vld [vmem:[%s8331_s1 + $0xa28] ss:$16 sps:$4 sm:$0xff]  }
 0x10f   : > { %4017 = vmatpush1.bf16.msra.mxu0 %v5997_v19  ;;  %4404 = vmatpush1.bf16.msra.mxu1 %v6000_v20  ;;  %v6098_v19 = vld [vmem:[%s8331_s1 + $0xa44] ss:$16 sps:$4 sm:$0xff]   ;;  %v6101_v20 = vld [vmem:[%s8331_s1 + $0xa4c] ss:$16 sps:$4 sm:$0xff]  }
 0x110   : > { %4018 = vmatprep.subr.bf16.mxu0 %v6005_v21  ;;  %4405 = vmatprep.subr.bf16.mxu1 %v6008_v22  ;;  %v6096_v21 = vld [vmem:[%s8331_s1 + $0xa40] ss:$16 sps:$4 sm:$0xff]   ;;  %v6099_v22 = vld [vmem:[%s8331_s1 + $0xa48] ss:$16 sps:$4 sm:$0xff]  }
 0x113   : > { %4019 = vmatpush1.bf16.msra.mxu0 %v6003_v23  ;;  %4406 = vmatpush1.bf16.msra.mxu1 %v6006_v24  ;;  %v6104_v23 = vld [vmem:[%s8331_s1 + $0xa64] ss:$16 sps:$4 sm:$0xff]   ;;  %v6107_v24 = vld [vmem:[%s8331_s1 + $0xa6c] ss:$16 sps:$4 sm:$0xff]  }
 0x114   : > { %4020 = vmatprep.subr.bf16.mxu0 %v6011_v25  ;;  %4407 = vmatprep.subr.bf16.mxu1 %v6014_v26  ;;  %v6102_v25 = vld [vmem:[%s8331_s1 + $0xa60] ss:$16 sps:$4 sm:$0xff]   ;;  %v6105_v26 = vld [vmem:[%s8331_s1 + $0xa68] ss:$16 sps:$4 sm:$0xff]  }
 0x117   : > { %4021 = vmatpush1.bf16.msra.mxu0 %v6009_v27  ;;  %4408 = vmatpush1.bf16.msra.mxu1 %v6012_v28  ;;  %v6110_v27 = vld [vmem:[%s8331_s1 + $0xa84] ss:$16 sps:$4 sm:$0xff]   ;;  %v6113_v28 = vld [vmem:[%s8331_s1 + $0xa8c] ss:$16 sps:$4 sm:$0xff]  }
 0x118   : > { %4022 = vmatprep.subr.bf16.mxu0 %v6017_v29  ;;  %4409 = vmatprep.subr.bf16.mxu1 %v6020_v30  ;;  %v6108_v29 = vld [vmem:[%s8331_s1 + $0xa80] ss:$16 sps:$4 sm:$0xff]   ;;  %v6111_v30 = vld [vmem:[%s8331_s1 + $0xa88] ss:$16 sps:$4 sm:$0xff]  }
 0x11b   : > { %4023 = vmatpush1.bf16.msra.mxu0 %v6015_v31  ;;  %4410 = vmatpush1.bf16.msra.mxu1 %v6018_v32  ;;  %v6116_v31 = vld [vmem:[%s8331_s1 + $0xaa4] ss:$16 sps:$4 sm:$0xff]   ;;  %v6119_v32 = vld [vmem:[%s8331_s1 + $0xaac] ss:$16 sps:$4 sm:$0xff]  }
 0x11c   : > { %4024 = vmatprep.subr.bf16.mxu0 %v6023_v33  ;;  %4411 = vmatprep.subr.bf16.mxu1 %v6026_v34  ;;  %v6114_v33 = vld [vmem:[%s8331_s1 + $0xaa0] ss:$16 sps:$4 sm:$0xff]   ;;  %v6117_v34 = vld [vmem:[%s8331_s1 + $0xaa8] ss:$16 sps:$4 sm:$0xff]  }
 0x11f   : > { %4025 = vmatpush1.bf16.msra.mxu0 %v6021_v35  ;;  %4412 = vmatpush1.bf16.msra.mxu1 %v6024_v36  ;;  %v6122_v35 = vld [vmem:[%s8331_s1 + $0xac4] ss:$16 sps:$4 sm:$0xff]   ;;  %v6125_v36 = vld [vmem:[%s8331_s1 + $0xacc] ss:$16 sps:$4 sm:$0xff]  }
 0x120   : > { %4026 = vmatprep.subr.bf16.mxu0 %v6029_v37  ;;  %4413 = vmatprep.subr.bf16.mxu1 %v6032_v38  ;;  %v6120_v37 = vld [vmem:[%s8331_s1 + $0xac0] ss:$16 sps:$4 sm:$0xff]   ;;  %v6123_v38 = vld [vmem:[%s8331_s1 + $0xac8] ss:$16 sps:$4 sm:$0xff]  }
 0x123   : > { %4027 = vmatpush1.bf16.msra.mxu0 %v6027_v39  ;;  %4414 = vmatpush1.bf16.msra.mxu1 %v6030_v40  ;;  %v6128_v39 = vld [vmem:[%s8331_s1 + $0xae4] ss:$16 sps:$4 sm:$0xff]   ;;  %v6131_v40 = vld [vmem:[%s8331_s1 + $0xaec] ss:$16 sps:$4 sm:$0xff]  }
 0x124   : > { %4028 = vmatprep.subr.bf16.mxu0 %v6035_v41  ;;  %4415 = vmatprep.subr.bf16.mxu1 %v6038_v42  ;;  %v6126_v41 = vld [vmem:[%s8331_s1 + $0xae0] ss:$16 sps:$4 sm:$0xff]   ;;  %v6129_v42 = vld [vmem:[%s8331_s1 + $0xae8] ss:$16 sps:$4 sm:$0xff]  }
 0x127   : > { %4029 = vmatpush1.bf16.msra.mxu0 %v6033_v43  ;;  %4416 = vmatpush1.bf16.msra.mxu1 %v6036_v44  ;;  %v6134_v43 = vld [vmem:[%s8331_s1 + $0xb04] ss:$16 sps:$4 sm:$0xff]   ;;  %v6137_v44 = vld [vmem:[%s8331_s1 + $0xb0c] ss:$16 sps:$4 sm:$0xff]  }
 0x128   : > { %4030 = vmatprep.subr.bf16.mxu0 %v6041_v45  ;;  %4417 = vmatprep.subr.bf16.mxu1 %v6044_v46  ;;  %v6132_v45 = vld [vmem:[%s8331_s1 + $0xb00] ss:$16 sps:$4 sm:$0xff]   ;;  %v6135_v46 = vld [vmem:[%s8331_s1 + $0xb08] ss:$16 sps:$4 sm:$0xff]  }
 0x12b   : > { %4031 = vmatpush1.bf16.msra.mxu0 %v6039_v47  ;;  %4418 = vmatpush1.bf16.msra.mxu1 %v6042_v48  ;;  %v6140_v47 = vld [vmem:[%s8331_s1 + $0xb24] ss:$16 sps:$4 sm:$0xff]   ;;  %v6143_v48 = vld [vmem:[%s8331_s1 + $0xb2c] ss:$16 sps:$4 sm:$0xff]  }
 0x12c   : > { %4032 = vmatprep.subr.bf16.mxu0 %v6047_v49  ;;  %4419 = vmatprep.subr.bf16.mxu1 %v6050_v50  ;;  %v6138_v49 = vld [vmem:[%s8331_s1 + $0xb20] ss:$16 sps:$4 sm:$0xff]   ;;  %v6141_v50 = vld [vmem:[%s8331_s1 + $0xb28] ss:$16 sps:$4 sm:$0xff]  }
 0x12f   : > { %4033 = vmatpush1.bf16.msra.mxu0 %v6045_v51  ;;  %4420 = vmatpush1.bf16.msra.mxu1 %v6048_v52  ;;  %v6146_v51 = vld [vmem:[%s8331_s1 + $0xb44] ss:$16 sps:$4 sm:$0xff]   ;;  %v6149_v52 = vld [vmem:[%s8331_s1 + $0xb4c] ss:$16 sps:$4 sm:$0xff]  }
 0x130   : > { %4034 = vmatprep.subr.bf16.mxu0 %v6053_v53  ;;  %4421 = vmatprep.subr.bf16.mxu1 %v6056_v54  ;;  %v6144_v53 = vld [vmem:[%s8331_s1 + $0xb40] ss:$16 sps:$4 sm:$0xff]   ;;  %v6147_v54 = vld [vmem:[%s8331_s1 + $0xb48] ss:$16 sps:$4 sm:$0xff]  }
 0x133   : > { %4035 = vmatpush1.bf16.msra.mxu0 %v6051_v55  ;;  %4422 = vmatpush1.bf16.msra.mxu1 %v6054_v56  ;;  %v6152_v55 = vld [vmem:[%s8331_s1 + $0xb64] ss:$16 sps:$4 sm:$0xff]   ;;  %v6155_v56 = vld [vmem:[%s8331_s1 + $0xb6c] ss:$16 sps:$4 sm:$0xff]  }
 0x134   : > { %4036 = vmatprep.subr.bf16.mxu0 %v6059_v57  ;;  %4423 = vmatprep.subr.bf16.mxu1 %v6062_v58  ;;  %v6150_v57 = vld [vmem:[%s8331_s1 + $0xb60] ss:$16 sps:$4 sm:$0xff]   ;;  %v6153_v58 = vld [vmem:[%s8331_s1 + $0xb68] ss:$16 sps:$4 sm:$0xff]  }
 0x137   : > { %4037 = vmatpush1.bf16.msra.mxu0 %v6057_v59  ;;  %4424 = vmatpush1.bf16.msra.mxu1 %v6060_v60  ;;  %v6158_v59 = vld [vmem:[%s8331_s1 + $0xb84] ss:$16 sps:$4 sm:$0xff]   ;;  %v6161_v60 = vld [vmem:[%s8331_s1 + $0xb8c] ss:$16 sps:$4 sm:$0xff]  }
 0x138   : > { %4038 = vmatprep.subr.bf16.mxu0 %v6065_v61  ;;  %4425 = vmatprep.subr.bf16.mxu1 %v6068_v62  ;;  %v6156_v61 = vld [vmem:[%s8331_s1 + $0xb80] ss:$16 sps:$4 sm:$0xff]   ;;  %v6159_v62 = vld [vmem:[%s8331_s1 + $0xb88] ss:$16 sps:$4 sm:$0xff]  }
 0x13b   : > { %4039 = vmatpush1.bf16.msra.mxu0 %v6063_v63  ;;  %4426 = vmatpush1.bf16.msra.mxu1 %v6066_v0  ;;  %v6164_v63 = vld [vmem:[%s8331_s1 + $0xba4] ss:$16 sps:$4 sm:$0xff]   ;;  %v6167_v0 = vld [vmem:[%s8331_s1 + $0xbac] ss:$16 sps:$4 sm:$0xff]  }
 0x13c   : > { %4040 = vmatprep.subr.bf16.mxu0 %v6071_v1  ;;  %4427 = vmatprep.subr.bf16.mxu1 %v6074_v2  ;;  %v6162_v1 = vld [vmem:[%s8331_s1 + $0xba0] ss:$16 sps:$4 sm:$0xff]   ;;  %v6165_v2 = vld [vmem:[%s8331_s1 + $0xba8] ss:$16 sps:$4 sm:$0xff]  }
 0x13f   : > { %4041 = vmatpush1.bf16.msra.mxu0 %v6069_v3  ;;  %4428 = vmatpush1.bf16.msra.mxu1 %v6072_v4  ;;  %v6170_v3 = vld [vmem:[%s8331_s1 + $0xbc4] ss:$16 sps:$4 sm:$0xff]   ;;  %v6173_v4 = vld [vmem:[%s8331_s1 + $0xbcc] ss:$16 sps:$4 sm:$0xff]  }
 0x140   : > { %4042 = vmatprep.subr.bf16.mxu0 %v6077_v5  ;;  %4429 = vmatprep.subr.bf16.mxu1 %v6080_v6  ;;  %v6168_v5 = vld [vmem:[%s8331_s1 + $0xbc0] ss:$16 sps:$4 sm:$0xff]   ;;  %v6171_v6 = vld [vmem:[%s8331_s1 + $0xbc8] ss:$16 sps:$4 sm:$0xff]  }
 0x143   : > { %4043 = vmatpush1.bf16.msra.mxu0 %v6075_v7  ;;  %4430 = vmatpush1.bf16.msra.mxu1 %v6078_v8  ;;  %v6176_v7 = vld [vmem:[%s8331_s1 + $0xbe4] ss:$16 sps:$4 sm:$0xff]   ;;  %v6179_v8 = vld [vmem:[%s8331_s1 + $0xbec] ss:$16 sps:$4 sm:$0xff]  }
 0x144   : > { %4055 = vmatprep.subr.bf16.mxu0 %v6086_v10  ;;  %4442 = vmatprep.subr.bf16.mxu1 %v6089_v11  ;;  %v6177_v10 = vld [vmem:[%s8331_s1 + $0xbe8] ss:$16 sps:$4 sm:$0xff]   ;;  %v6185_v11 = vld [vmem:[%s8331_s1 + $0xc04] ss:$16 sps:$4 sm:$0xff]  }
 0x146   : > { %4045 = vmatmul.mubr.bf16.vlgmr.msra.gmra.mrb[0].mxu0 %v6081_v9  ;;  %4432 = vmatmul.mubr.bf16.vlgmr.msra.gmra.mrb[0].mxu1 %v6081_v9  ;;  %v6174_v9 = vld [vmem:[%s8331_s1 + $0xbe0] ss:$16 sps:$4 sm:$0xff]  }
 0x147   : > { %4056 = vmatpush1.bf16.msra.mxu0 %v6084_v12  ;;  %4443 = vmatpush1.bf16.msra.mxu1 %v6087_v13  ;;  %v6188_v12 = vld [vmem:[%s8331_s1 + $0xc0c] ss:$16 sps:$4 sm:$0xff]   ;;  %v6180_v13 = vld [vmem:[%s6671_s23 + $0x28] ss:$72 sps:$4 sm:$0xff]  }
 0x148   : > { %4057 = vmatprep.subr.bf16.mxu0 %v6092_v14  ;;  %4444 = vmatprep.subr.bf16.mxu1 %v6095_v15  ;;  %v6183_v14 = vld [vmem:[%s8331_s1 + $0xc00] ss:$16 sps:$4 sm:$0xff]   ;;  %v6186_v15 = vld [vmem:[%s8331_s1 + $0xc08] ss:$16 sps:$4 sm:$0xff]  }
 0x149   : > { %4087 = vmatprep.mubr.bf16.mxu0 %v6182_v16  ;;  %4474 = vmatprep.mubr.bf16.mxu1 %v6182_v16  ;;  %v6191_v16 = vld [vmem:[%s8331_s1 + $0xc24] ss:$16 sps:$4 sm:$0xff]  }
 0x14b   : > { %4058 = vmatpush1.bf16.msra.mxu0 %v6090_v17  ;;  %4445 = vmatpush1.bf16.msra.mxu1 %v6093_v18  ;;  %v6194_v17 = vld [vmem:[%s8331_s1 + $0xc2c] ss:$16 sps:$4 sm:$0xff]  }
 0x14c   : > { %4059 = vmatprep.subr.bf16.mxu0 %v6098_v19  ;;  %4446 = vmatprep.subr.bf16.mxu1 %v6101_v20  ;;  %v6281_v18 = vld [vmem:[%s6671_s23 + $0x34] ss:$72 sps:$4 sm:$0xff]   ;;  %v6189_v19 = vld [vmem:[%s8331_s1 + $0xc20] ss:$16 sps:$4 sm:$0xff]   ;;  %v6192_v20 = vld [vmem:[%s8331_s1 + $0xc28] ss:$16 sps:$4 sm:$0xff]  }
 0x14f   : > { %4060 = vmatpush1.bf16.msra.mxu0 %v6096_v21  ;;  %4447 = vmatpush1.bf16.msra.mxu1 %v6099_v22  ;;  %v6197_v21 = vld [vmem:[%s8331_s1 + $0xc44] ss:$16 sps:$4 sm:$0xff]   ;;  %v6200_v22 = vld [vmem:[%s8331_s1 + $0xc4c] ss:$16 sps:$4 sm:$0xff]  }
 0x150   : > { %4061 = vmatprep.subr.bf16.mxu0 %v6104_v23  ;;  %4448 = vmatprep.subr.bf16.mxu1 %v6107_v24  ;;  %v6195_v23 = vld [vmem:[%s8331_s1 + $0xc40] ss:$16 sps:$4 sm:$0xff]   ;;  %v6198_v24 = vld [vmem:[%s8331_s1 + $0xc48] ss:$16 sps:$4 sm:$0xff]  }
 0x153   : > { %4062 = vmatpush1.bf16.msra.mxu0 %v6102_v25  ;;  %4449 = vmatpush1.bf16.msra.mxu1 %v6105_v26  ;;  %v6203_v25 = vld [vmem:[%s8331_s1 + $0xc64] ss:$16 sps:$4 sm:$0xff]   ;;  %v6206_v26 = vld [vmem:[%s8331_s1 + $0xc6c] ss:$16 sps:$4 sm:$0xff]  }
 0x154   : > { %4063 = vmatprep.subr.bf16.mxu0 %v6110_v27  ;;  %4450 = vmatprep.subr.bf16.mxu1 %v6113_v28  ;;  %v6201_v27 = vld [vmem:[%s8331_s1 + $0xc60] ss:$16 sps:$4 sm:$0xff]   ;;  %v6204_v28 = vld [vmem:[%s8331_s1 + $0xc68] ss:$16 sps:$4 sm:$0xff]  }
 0x157   : > { %4064 = vmatpush1.bf16.msra.mxu0 %v6108_v29  ;;  %4451 = vmatpush1.bf16.msra.mxu1 %v6111_v30  ;;  %v6209_v29 = vld [vmem:[%s8331_s1 + $0xc84] ss:$16 sps:$4 sm:$0xff]   ;;  %v6212_v30 = vld [vmem:[%s8331_s1 + $0xc8c] ss:$16 sps:$4 sm:$0xff]  }
 0x158   : > { %4065 = vmatprep.subr.bf16.mxu0 %v6116_v31  ;;  %4452 = vmatprep.subr.bf16.mxu1 %v6119_v32  ;;  %v6207_v31 = vld [vmem:[%s8331_s1 + $0xc80] ss:$16 sps:$4 sm:$0xff]   ;;  %v6210_v32 = vld [vmem:[%s8331_s1 + $0xc88] ss:$16 sps:$4 sm:$0xff]  }
 0x15b   : > { %4066 = vmatpush1.bf16.msra.mxu0 %v6114_v33  ;;  %4453 = vmatpush1.bf16.msra.mxu1 %v6117_v34  ;;  %v6215_v33 = vld [vmem:[%s8331_s1 + $0xca4] ss:$16 sps:$4 sm:$0xff]   ;;  %v6218_v34 = vld [vmem:[%s8331_s1 + $0xcac] ss:$16 sps:$4 sm:$0xff]  }
 0x15c   : > { %4067 = vmatprep.subr.bf16.mxu0 %v6122_v35  ;;  %4454 = vmatprep.subr.bf16.mxu1 %v6125_v36  ;;  %v6213_v35 = vld [vmem:[%s8331_s1 + $0xca0] ss:$16 sps:$4 sm:$0xff]   ;;  %v6216_v36 = vld [vmem:[%s8331_s1 + $0xca8] ss:$16 sps:$4 sm:$0xff]  }
 0x15f   : > { %4068 = vmatpush1.bf16.msra.mxu0 %v6120_v37  ;;  %4455 = vmatpush1.bf16.msra.mxu1 %v6123_v38  ;;  %v6221_v37 = vld [vmem:[%s8331_s1 + $0xcc4] ss:$16 sps:$4 sm:$0xff]   ;;  %v6224_v38 = vld [vmem:[%s8331_s1 + $0xccc] ss:$16 sps:$4 sm:$0xff]  }
 0x160   : > { %4069 = vmatprep.subr.bf16.mxu0 %v6128_v39  ;;  %4456 = vmatprep.subr.bf16.mxu1 %v6131_v40  ;;  %v6219_v39 = vld [vmem:[%s8331_s1 + $0xcc0] ss:$16 sps:$4 sm:$0xff]   ;;  %v6222_v40 = vld [vmem:[%s8331_s1 + $0xcc8] ss:$16 sps:$4 sm:$0xff]  }
 0x163   : > { %4070 = vmatpush1.bf16.msra.mxu0 %v6126_v41  ;;  %4457 = vmatpush1.bf16.msra.mxu1 %v6129_v42  ;;  %v6227_v41 = vld [vmem:[%s8331_s1 + $0xce4] ss:$16 sps:$4 sm:$0xff]   ;;  %v6230_v42 = vld [vmem:[%s8331_s1 + $0xcec] ss:$16 sps:$4 sm:$0xff]  }
 0x164   : > { %4071 = vmatprep.subr.bf16.mxu0 %v6134_v43  ;;  %4458 = vmatprep.subr.bf16.mxu1 %v6137_v44  ;;  %v6225_v43 = vld [vmem:[%s8331_s1 + $0xce0] ss:$16 sps:$4 sm:$0xff]   ;;  %v6228_v44 = vld [vmem:[%s8331_s1 + $0xce8] ss:$16 sps:$4 sm:$0xff]  }
 0x167   : > { %4072 = vmatpush1.bf16.msra.mxu0 %v6132_v45  ;;  %4459 = vmatpush1.bf16.msra.mxu1 %v6135_v46  ;;  %v6233_v45 = vld [vmem:[%s8331_s1 + $0xd04] ss:$16 sps:$4 sm:$0xff]   ;;  %v6236_v46 = vld [vmem:[%s8331_s1 + $0xd0c] ss:$16 sps:$4 sm:$0xff]  }
 0x168   : > { %4073 = vmatprep.subr.bf16.mxu0 %v6140_v47  ;;  %4460 = vmatprep.subr.bf16.mxu1 %v6143_v48  ;;  %v6231_v47 = vld [vmem:[%s8331_s1 + $0xd00] ss:$16 sps:$4 sm:$0xff]   ;;  %v6234_v48 = vld [vmem:[%s8331_s1 + $0xd08] ss:$16 sps:$4 sm:$0xff]  }
 0x16b   : > { %4074 = vmatpush1.bf16.msra.mxu0 %v6138_v49  ;;  %4461 = vmatpush1.bf16.msra.mxu1 %v6141_v50  ;;  %v6239_v49 = vld [vmem:[%s8331_s1 + $0xd24] ss:$16 sps:$4 sm:$0xff]   ;;  %v6242_v50 = vld [vmem:[%s8331_s1 + $0xd2c] ss:$16 sps:$4 sm:$0xff]  }
 0x16c   : > { %4075 = vmatprep.subr.bf16.mxu0 %v6146_v51  ;;  %4462 = vmatprep.subr.bf16.mxu1 %v6149_v52  ;;  %v6237_v51 = vld [vmem:[%s8331_s1 + $0xd20] ss:$16 sps:$4 sm:$0xff]   ;;  %v6240_v52 = vld [vmem:[%s8331_s1 + $0xd28] ss:$16 sps:$4 sm:$0xff]  }
 0x16f   : > { %4076 = vmatpush1.bf16.msra.mxu0 %v6144_v53  ;;  %4463 = vmatpush1.bf16.msra.mxu1 %v6147_v54  ;;  %v6245_v53 = vld [vmem:[%s8331_s1 + $0xd44] ss:$16 sps:$4 sm:$0xff]   ;;  %v6248_v54 = vld [vmem:[%s8331_s1 + $0xd4c] ss:$16 sps:$4 sm:$0xff]  }
 0x170   : > { %4077 = vmatprep.subr.bf16.mxu0 %v6152_v55  ;;  %4464 = vmatprep.subr.bf16.mxu1 %v6155_v56  ;;  %v6243_v55 = vld [vmem:[%s8331_s1 + $0xd40] ss:$16 sps:$4 sm:$0xff]   ;;  %v6246_v56 = vld [vmem:[%s8331_s1 + $0xd48] ss:$16 sps:$4 sm:$0xff]  }
 0x173   : > { %4078 = vmatpush1.bf16.msra.mxu0 %v6150_v57  ;;  %4465 = vmatpush1.bf16.msra.mxu1 %v6153_v58  ;;  %v6251_v57 = vld [vmem:[%s8331_s1 + $0xd64] ss:$16 sps:$4 sm:$0xff]   ;;  %v6254_v58 = vld [vmem:[%s8331_s1 + $0xd6c] ss:$16 sps:$4 sm:$0xff]  }
 0x174   : > { %4079 = vmatprep.subr.bf16.mxu0 %v6158_v59  ;;  %4466 = vmatprep.subr.bf16.mxu1 %v6161_v60  ;;  %v6249_v59 = vld [vmem:[%s8331_s1 + $0xd60] ss:$16 sps:$4 sm:$0xff]   ;;  %v6252_v60 = vld [vmem:[%s8331_s1 + $0xd68] ss:$16 sps:$4 sm:$0xff]  }
 0x177   : > { %4080 = vmatpush1.bf16.msra.mxu0 %v6156_v61  ;;  %4467 = vmatpush1.bf16.msra.mxu1 %v6159_v62  ;;  %v6257_v61 = vld [vmem:[%s8331_s1 + $0xd84] ss:$16 sps:$4 sm:$0xff]   ;;  %v6260_v62 = vld [vmem:[%s8331_s1 + $0xd8c] ss:$16 sps:$4 sm:$0xff]  }
 0x178   : > { %4081 = vmatprep.subr.bf16.mxu0 %v6164_v63  ;;  %4468 = vmatprep.subr.bf16.mxu1 %v6167_v0  ;;  %v6255_v63 = vld [vmem:[%s8331_s1 + $0xd80] ss:$16 sps:$4 sm:$0xff]   ;;  %v6258_v0 = vld [vmem:[%s8331_s1 + $0xd88] ss:$16 sps:$4 sm:$0xff]  }
 0x17b   : > { %4082 = vmatpush1.bf16.msra.mxu0 %v6162_v1  ;;  %4469 = vmatpush1.bf16.msra.mxu1 %v6165_v2  ;;  %v6263_v1 = vld [vmem:[%s8331_s1 + $0xda4] ss:$16 sps:$4 sm:$0xff]   ;;  %v6266_v2 = vld [vmem:[%s8331_s1 + $0xdac] ss:$16 sps:$4 sm:$0xff]  }
 0x17c   : > { %4083 = vmatprep.subr.bf16.mxu0 %v6170_v3  ;;  %4470 = vmatprep.subr.bf16.mxu1 %v6173_v4  ;;  %v6261_v3 = vld [vmem:[%s8331_s1 + $0xda0] ss:$16 sps:$4 sm:$0xff]   ;;  %v6264_v4 = vld [vmem:[%s8331_s1 + $0xda8] ss:$16 sps:$4 sm:$0xff]  }
 0x17f   : > { %4084 = vmatpush1.bf16.msra.mxu0 %v6168_v5  ;;  %4471 = vmatpush1.bf16.msra.mxu1 %v6171_v6  ;;  %v6269_v5 = vld [vmem:[%s8331_s1 + $0xdc4] ss:$16 sps:$4 sm:$0xff]   ;;  %v6272_v6 = vld [vmem:[%s8331_s1 + $0xdcc] ss:$16 sps:$4 sm:$0xff]  }
 0x180   : > { %4085 = vmatprep.subr.bf16.mxu0 %v6176_v7  ;;  %4472 = vmatprep.subr.bf16.mxu1 %v6179_v8  ;;  %v6267_v7 = vld [vmem:[%s8331_s1 + $0xdc0] ss:$16 sps:$4 sm:$0xff]   ;;  %v6270_v8 = vld [vmem:[%s8331_s1 + $0xdc8] ss:$16 sps:$4 sm:$0xff]  }
 0x183   : > { %4086 = vmatpush1.bf16.msra.mxu0 %v6174_v9  ;;  %4473 = vmatpush1.bf16.msra.mxu1 %v6177_v10  ;;  %v6275_v9 = vld [vmem:[%s8331_s1 + $0xde4] ss:$16 sps:$4 sm:$0xff]   ;;  %v6278_v10 = vld [vmem:[%s8331_s1 + $0xdec] ss:$16 sps:$4 sm:$0xff]  }
 0x184   : > { %4098 = vmatprep.subr.bf16.mxu0 %v6185_v11  ;;  %4485 = vmatprep.subr.bf16.mxu1 %v6188_v12  ;;  %v6273_v11 = vld [vmem:[%s8331_s1 + $0xde0] ss:$16 sps:$4 sm:$0xff]   ;;  %v6276_v12 = vld [vmem:[%s8331_s1 + $0xde8] ss:$16 sps:$4 sm:$0xff]  }
 0x186   : > { %4088 = vmatmul.mubr.bf16.vlgmr.msra.gmra.mrb[0].mxu0 %v6180_v13  ;;  %4475 = vmatmul.mubr.bf16.vlgmr.msra.gmra.mrb[0].mxu1 %v6180_v13  ;;  %v6284_v13 = vld [vmem:[%s8331_s1 + $0xe04] ss:$16 sps:$4 sm:$0xff]  }
 0x187   : > { %4099 = vmatpush1.bf16.msra.mxu0 %v6183_v14  ;;  %4486 = vmatpush1.bf16.msra.mxu1 %v6186_v15  ;;  %v6287_v14 = vld [vmem:[%s8331_s1 + $0xe0c] ss:$16 sps:$4 sm:$0xff]   ;;  %v6279_v15 = vld [vmem:[%s6671_s23 + $0x30] ss:$72 sps:$4 sm:$0xff]  }
 0x188   : > { %4100 = vmatprep.subr.bf16.mxu0 %v6191_v16  ;;  %4487 = vmatprep.subr.bf16.mxu1 %v6194_v17  ;;  %v6282_v16 = vld [vmem:[%s8331_s1 + $0xe00] ss:$16 sps:$4 sm:$0xff]   ;;  %v6285_v17 = vld [vmem:[%s8331_s1 + $0xe08] ss:$16 sps:$4 sm:$0xff]  }
 0x189   : > { %4130 = vmatprep.mubr.bf16.mxu0 %v6281_v18  ;;  %4517 = vmatprep.mubr.bf16.mxu1 %v6281_v18  ;;  %v6290_v18 = vld [vmem:[%s8331_s1 + $0xe24] ss:$16 sps:$4 sm:$0xff]  }
 0x18b   : > { %4101 = vmatpush1.bf16.msra.mxu0 %v6189_v19  ;;  %4488 = vmatpush1.bf16.msra.mxu1 %v6192_v20  ;;  %v6293_v19 = vld [vmem:[%s8331_s1 + $0xe2c] ss:$16 sps:$4 sm:$0xff]  }
 0x18c   : > { %4102 = vmatprep.subr.bf16.mxu0 %v6197_v21  ;;  %4489 = vmatprep.subr.bf16.mxu1 %v6200_v22  ;;  %v6380_v20 = vld [vmem:[%s6671_s23 + $0x3c] ss:$72 sps:$4 sm:$0xff]   ;;  %v6288_v21 = vld [vmem:[%s8331_s1 + $0xe20] ss:$16 sps:$4 sm:$0xff]   ;;  %v6291_v22 = vld [vmem:[%s8331_s1 + $0xe28] ss:$16 sps:$4 sm:$0xff]  }
 0x18f   : > { %4103 = vmatpush1.bf16.msra.mxu0 %v6195_v23  ;;  %4490 = vmatpush1.bf16.msra.mxu1 %v6198_v24  ;;  %v6296_v23 = vld [vmem:[%s8331_s1 + $0xe44] ss:$16 sps:$4 sm:$0xff]   ;;  %v6299_v24 = vld [vmem:[%s8331_s1 + $0xe4c] ss:$16 sps:$4 sm:$0xff]  }
 0x190   : > { %4104 = vmatprep.subr.bf16.mxu0 %v6203_v25  ;;  %4491 = vmatprep.subr.bf16.mxu1 %v6206_v26  ;;  %v6294_v25 = vld [vmem:[%s8331_s1 + $0xe40] ss:$16 sps:$4 sm:$0xff]   ;;  %v6297_v26 = vld [vmem:[%s8331_s1 + $0xe48] ss:$16 sps:$4 sm:$0xff]  }
 0x193   : > { %4105 = vmatpush1.bf16.msra.mxu0 %v6201_v27  ;;  %4492 = vmatpush1.bf16.msra.mxu1 %v6204_v28  ;;  %v6302_v27 = vld [vmem:[%s8331_s1 + $0xe64] ss:$16 sps:$4 sm:$0xff]   ;;  %v6305_v28 = vld [vmem:[%s8331_s1 + $0xe6c] ss:$16 sps:$4 sm:$0xff]  }
 0x194   : > { %4106 = vmatprep.subr.bf16.mxu0 %v6209_v29  ;;  %4493 = vmatprep.subr.bf16.mxu1 %v6212_v30  ;;  %v6300_v29 = vld [vmem:[%s8331_s1 + $0xe60] ss:$16 sps:$4 sm:$0xff]   ;;  %v6303_v30 = vld [vmem:[%s8331_s1 + $0xe68] ss:$16 sps:$4 sm:$0xff]  }
 0x197   : > { %4107 = vmatpush1.bf16.msra.mxu0 %v6207_v31  ;;  %4494 = vmatpush1.bf16.msra.mxu1 %v6210_v32  ;;  %v6308_v31 = vld [vmem:[%s8331_s1 + $0xe84] ss:$16 sps:$4 sm:$0xff]   ;;  %v6311_v32 = vld [vmem:[%s8331_s1 + $0xe8c] ss:$16 sps:$4 sm:$0xff]  }
 0x198   : > { %4108 = vmatprep.subr.bf16.mxu0 %v6215_v33  ;;  %4495 = vmatprep.subr.bf16.mxu1 %v6218_v34  ;;  %v6306_v33 = vld [vmem:[%s8331_s1 + $0xe80] ss:$16 sps:$4 sm:$0xff]   ;;  %v6309_v34 = vld [vmem:[%s8331_s1 + $0xe88] ss:$16 sps:$4 sm:$0xff]  }
 0x19b   : > { %4109 = vmatpush1.bf16.msra.mxu0 %v6213_v35  ;;  %4496 = vmatpush1.bf16.msra.mxu1 %v6216_v36  ;;  %v6314_v35 = vld [vmem:[%s8331_s1 + $0xea4] ss:$16 sps:$4 sm:$0xff]   ;;  %v6317_v36 = vld [vmem:[%s8331_s1 + $0xeac] ss:$16 sps:$4 sm:$0xff]  }
 0x19c   : > { %4110 = vmatprep.subr.bf16.mxu0 %v6221_v37  ;;  %4497 = vmatprep.subr.bf16.mxu1 %v6224_v38  ;;  %v6312_v37 = vld [vmem:[%s8331_s1 + $0xea0] ss:$16 sps:$4 sm:$0xff]   ;;  %v6315_v38 = vld [vmem:[%s8331_s1 + $0xea8] ss:$16 sps:$4 sm:$0xff]  }
 0x19f   : > { %4111 = vmatpush1.bf16.msra.mxu0 %v6219_v39  ;;  %4498 = vmatpush1.bf16.msra.mxu1 %v6222_v40  ;;  %v6320_v39 = vld [vmem:[%s8331_s1 + $0xec4] ss:$16 sps:$4 sm:$0xff]   ;;  %v6323_v40 = vld [vmem:[%s8331_s1 + $0xecc] ss:$16 sps:$4 sm:$0xff]  }
 0x1a0   : > { %4112 = vmatprep.subr.bf16.mxu0 %v6227_v41  ;;  %4499 = vmatprep.subr.bf16.mxu1 %v6230_v42  ;;  %v6318_v41 = vld [vmem:[%s8331_s1 + $0xec0] ss:$16 sps:$4 sm:$0xff]   ;;  %v6321_v42 = vld [vmem:[%s8331_s1 + $0xec8] ss:$16 sps:$4 sm:$0xff]  }
 0x1a3   : > { %4113 = vmatpush1.bf16.msra.mxu0 %v6225_v43  ;;  %4500 = vmatpush1.bf16.msra.mxu1 %v6228_v44  ;;  %v6326_v43 = vld [vmem:[%s8331_s1 + $0xee4] ss:$16 sps:$4 sm:$0xff]   ;;  %v6329_v44 = vld [vmem:[%s8331_s1 + $0xeec] ss:$16 sps:$4 sm:$0xff]  }
 0x1a4   : > { %4114 = vmatprep.subr.bf16.mxu0 %v6233_v45  ;;  %4501 = vmatprep.subr.bf16.mxu1 %v6236_v46  ;;  %v6324_v45 = vld [vmem:[%s8331_s1 + $0xee0] ss:$16 sps:$4 sm:$0xff]   ;;  %v6327_v46 = vld [vmem:[%s8331_s1 + $0xee8] ss:$16 sps:$4 sm:$0xff]  }
 0x1a7   : > { %4115 = vmatpush1.bf16.msra.mxu0 %v6231_v47  ;;  %4502 = vmatpush1.bf16.msra.mxu1 %v6234_v48  ;;  %v6332_v47 = vld [vmem:[%s8331_s1 + $0xf04] ss:$16 sps:$4 sm:$0xff]   ;;  %v6335_v48 = vld [vmem:[%s8331_s1 + $0xf0c] ss:$16 sps:$4 sm:$0xff]  }
 0x1a8   : > { %4116 = vmatprep.subr.bf16.mxu0 %v6239_v49  ;;  %4503 = vmatprep.subr.bf16.mxu1 %v6242_v50  ;;  %v6330_v49 = vld [vmem:[%s8331_s1 + $0xf00] ss:$16 sps:$4 sm:$0xff]   ;;  %v6333_v50 = vld [vmem:[%s8331_s1 + $0xf08] ss:$16 sps:$4 sm:$0xff]  }
 0x1ab   : > { %4117 = vmatpush1.bf16.msra.mxu0 %v6237_v51  ;;  %4504 = vmatpush1.bf16.msra.mxu1 %v6240_v52  ;;  %v6338_v51 = vld [vmem:[%s8331_s1 + $0xf24] ss:$16 sps:$4 sm:$0xff]   ;;  %v6341_v52 = vld [vmem:[%s8331_s1 + $0xf2c] ss:$16 sps:$4 sm:$0xff]  }
 0x1ac   : > { %4118 = vmatprep.subr.bf16.mxu0 %v6245_v53  ;;  %4505 = vmatprep.subr.bf16.mxu1 %v6248_v54  ;;  %v6336_v53 = vld [vmem:[%s8331_s1 + $0xf20] ss:$16 sps:$4 sm:$0xff]   ;;  %v6339_v54 = vld [vmem:[%s8331_s1 + $0xf28] ss:$16 sps:$4 sm:$0xff]  }
 0x1af   : > { %4119 = vmatpush1.bf16.msra.mxu0 %v6243_v55  ;;  %4506 = vmatpush1.bf16.msra.mxu1 %v6246_v56  ;;  %v6344_v55 = vld [vmem:[%s8331_s1 + $0xf44] ss:$16 sps:$4 sm:$0xff]   ;;  %v6347_v56 = vld [vmem:[%s8331_s1 + $0xf4c] ss:$16 sps:$4 sm:$0xff]  }
 0x1b0   : > { %4120 = vmatprep.subr.bf16.mxu0 %v6251_v57  ;;  %4507 = vmatprep.subr.bf16.mxu1 %v6254_v58  ;;  %v6342_v57 = vld [vmem:[%s8331_s1 + $0xf40] ss:$16 sps:$4 sm:$0xff]   ;;  %v6345_v58 = vld [vmem:[%s8331_s1 + $0xf48] ss:$16 sps:$4 sm:$0xff]  }
 0x1b3   : > { %4121 = vmatpush1.bf16.msra.mxu0 %v6249_v59  ;;  %4508 = vmatpush1.bf16.msra.mxu1 %v6252_v60  ;;  %v6350_v59 = vld [vmem:[%s8331_s1 + $0xf64] ss:$16 sps:$4 sm:$0xff]   ;;  %v6353_v60 = vld [vmem:[%s8331_s1 + $0xf6c] ss:$16 sps:$4 sm:$0xff]  }
 0x1b4   : > { %4122 = vmatprep.subr.bf16.mxu0 %v6257_v61  ;;  %4509 = vmatprep.subr.bf16.mxu1 %v6260_v62  ;;  %v6348_v61 = vld [vmem:[%s8331_s1 + $0xf60] ss:$16 sps:$4 sm:$0xff]   ;;  %v6351_v62 = vld [vmem:[%s8331_s1 + $0xf68] ss:$16 sps:$4 sm:$0xff]  }
 0x1b7   : > { %4123 = vmatpush1.bf16.msra.mxu0 %v6255_v63  ;;  %4510 = vmatpush1.bf16.msra.mxu1 %v6258_v0  ;;  %v6356_v63 = vld [vmem:[%s8331_s1 + $0xf84] ss:$16 sps:$4 sm:$0xff]   ;;  %v6359_v0 = vld [vmem:[%s8331_s1 + $0xf8c] ss:$16 sps:$4 sm:$0xff]  }
 0x1b8   : > { %4124 = vmatprep.subr.bf16.mxu0 %v6263_v1  ;;  %4511 = vmatprep.subr.bf16.mxu1 %v6266_v2  ;;  %v6354_v1 = vld [vmem:[%s8331_s1 + $0xf80] ss:$16 sps:$4 sm:$0xff]   ;;  %v6357_v2 = vld [vmem:[%s8331_s1 + $0xf88] ss:$16 sps:$4 sm:$0xff]  }
 0x1bb   : > { %4125 = vmatpush1.bf16.msra.mxu0 %v6261_v3  ;;  %4512 = vmatpush1.bf16.msra.mxu1 %v6264_v4  ;;  %v6362_v3 = vld [vmem:[%s8331_s1 + $0xfa4] ss:$16 sps:$4 sm:$0xff]   ;;  %v6365_v4 = vld [vmem:[%s8331_s1 + $0xfac] ss:$16 sps:$4 sm:$0xff]  }
 0x1bc   : > { %4126 = vmatprep.subr.bf16.mxu0 %v6269_v5  ;;  %4513 = vmatprep.subr.bf16.mxu1 %v6272_v6  ;;  %v6360_v5 = vld [vmem:[%s8331_s1 + $0xfa0] ss:$16 sps:$4 sm:$0xff]   ;;  %v6363_v6 = vld [vmem:[%s8331_s1 + $0xfa8] ss:$16 sps:$4 sm:$0xff]  }
 0x1bf   : > { %4127 = vmatpush1.bf16.msra.mxu0 %v6267_v7  ;;  %4514 = vmatpush1.bf16.msra.mxu1 %v6270_v8  ;;  %v6368_v7 = vld [vmem:[%s8331_s1 + $0xfc4] ss:$16 sps:$4 sm:$0xff]   ;;  %v6371_v8 = vld [vmem:[%s8331_s1 + $0xfcc] ss:$16 sps:$4 sm:$0xff]  }
 0x1c0   : > { %4128 = vmatprep.subr.bf16.mxu0 %v6275_v9  ;;  %4515 = vmatprep.subr.bf16.mxu1 %v6278_v10  ;;  %v6366_v9 = vld [vmem:[%s8331_s1 + $0xfc0] ss:$16 sps:$4 sm:$0xff]   ;;  %v6369_v10 = vld [vmem:[%s8331_s1 + $0xfc8] ss:$16 sps:$4 sm:$0xff]  }
 0x1c3   : > { %4129 = vmatpush1.bf16.msra.mxu0 %v6273_v11  ;;  %4516 = vmatpush1.bf16.msra.mxu1 %v6276_v12  ;;  %v6374_v11 = vld [vmem:[%s8331_s1 + $0xfe4] ss:$16 sps:$4 sm:$0xff]   ;;  %v6377_v12 = vld [vmem:[%s8331_s1 + $0xfec] ss:$16 sps:$4 sm:$0xff]  }
 0x1c4   : > { %4141 = vmatprep.subr.bf16.mxu0 %v6284_v13  ;;  %4528 = vmatprep.subr.bf16.mxu1 %v6287_v14  ;;  %v6372_v13 = vld [vmem:[%s8331_s1 + $0xfe0] ss:$16 sps:$4 sm:$0xff]   ;;  %v6375_v14 = vld [vmem:[%s8331_s1 + $0xfe8] ss:$16 sps:$4 sm:$0xff]  }
 0x1c6   : > { %4131 = vmatmul.mubr.bf16.vlgmr.msra.gmra.mrb[0].mxu0 %v6279_v15  ;;  %4518 = vmatmul.mubr.bf16.vlgmr.msra.gmra.mrb[0].mxu1 %v6279_v15  ;;  %v6383_v15 = vld [vmem:[%s8331_s1 + $0x1004] ss:$16 sps:$4 sm:$0xff]  }
 0x1c7   : > { %4142 = vmatpush1.bf16.msra.mxu0 %v6282_v16  ;;  %4529 = vmatpush1.bf16.msra.mxu1 %v6285_v17  ;;  %v6386_v16 = vld [vmem:[%s8331_s1 + $0x100c] ss:$16 sps:$4 sm:$0xff]   ;;  %v6378_v17 = vld [vmem:[%s6671_s23 + $0x38] ss:$72 sps:$4 sm:$0xff]  }
 0x1c8   : > { %4143 = vmatprep.subr.bf16.mxu0 %v6290_v18  ;;  %4530 = vmatprep.subr.bf16.mxu1 %v6293_v19  ;;  %v6381_v18 = vld [vmem:[%s8331_s1 + $0x1000] ss:$16 sps:$4 sm:$0xff]   ;;  %v6384_v19 = vld [vmem:[%s8331_s1 + $0x1008] ss:$16 sps:$4 sm:$0xff]  }
 0x1c9   : > { %4173 = vmatprep.mubr.bf16.mxu0 %v6380_v20  ;;  %4560 = vmatprep.mubr.bf16.mxu1 %v6380_v20  ;;  %v6389_v20 = vld [vmem:[%s8331_s1 + $0x1024] ss:$16 sps:$4 sm:$0xff]  }
 0x1cb   : > { %4144 = vmatpush1.bf16.msra.mxu0 %v6288_v21  ;;  %4531 = vmatpush1.bf16.msra.mxu1 %v6291_v22  ;;  %v6392_v21 = vld [vmem:[%s8331_s1 + $0x102c] ss:$16 sps:$4 sm:$0xff]  }
 0x1cc   : > { %4145 = vmatprep.subr.bf16.mxu0 %v6296_v23  ;;  %4532 = vmatprep.subr.bf16.mxu1 %v6299_v24  ;;  %v6479_v22 = vld [vmem:[%s6671_s23 + $0x44] ss:$72 sps:$4 sm:$0xff]   ;;  %v6387_v23 = vld [vmem:[%s8331_s1 + $0x1020] ss:$16 sps:$4 sm:$0xff]   ;;  %v6390_v24 = vld [vmem:[%s8331_s1 + $0x1028] ss:$16 sps:$4 sm:$0xff]  }
 0x1cf   : > { %4146 = vmatpush1.bf16.msra.mxu0 %v6294_v25  ;;  %4533 = vmatpush1.bf16.msra.mxu1 %v6297_v26  ;;  %v6395_v25 = vld [vmem:[%s8331_s1 + $0x1044] ss:$16 sps:$4 sm:$0xff]   ;;  %v6398_v26 = vld [vmem:[%s8331_s1 + $0x104c] ss:$16 sps:$4 sm:$0xff]  }
 0x1d0   : > { %4147 = vmatprep.subr.bf16.mxu0 %v6302_v27  ;;  %4534 = vmatprep.subr.bf16.mxu1 %v6305_v28  ;;  %v6393_v27 = vld [vmem:[%s8331_s1 + $0x1040] ss:$16 sps:$4 sm:$0xff]   ;;  %v6396_v28 = vld [vmem:[%s8331_s1 + $0x1048] ss:$16 sps:$4 sm:$0xff]  }
 0x1d3   : > { %4148 = vmatpush1.bf16.msra.mxu0 %v6300_v29  ;;  %4535 = vmatpush1.bf16.msra.mxu1 %v6303_v30  ;;  %v6401_v29 = vld [vmem:[%s8331_s1 + $0x1064] ss:$16 sps:$4 sm:$0xff]   ;;  %v6404_v30 = vld [vmem:[%s8331_s1 + $0x106c] ss:$16 sps:$4 sm:$0xff]  }
 0x1d4   : > { %4149 = vmatprep.subr.bf16.mxu0 %v6308_v31  ;;  %4536 = vmatprep.subr.bf16.mxu1 %v6311_v32  ;;  %v6399_v31 = vld [vmem:[%s8331_s1 + $0x1060] ss:$16 sps:$4 sm:$0xff]   ;;  %v6402_v32 = vld [vmem:[%s8331_s1 + $0x1068] ss:$16 sps:$4 sm:$0xff]  }
 0x1d7   : > { %4150 = vmatpush1.bf16.msra.mxu0 %v6306_v33  ;;  %4537 = vmatpush1.bf16.msra.mxu1 %v6309_v34  ;;  %v6407_v33 = vld [vmem:[%s8331_s1 + $0x1084] ss:$16 sps:$4 sm:$0xff]   ;;  %v6410_v34 = vld [vmem:[%s8331_s1 + $0x108c] ss:$16 sps:$4 sm:$0xff]  }
 0x1d8   : > { %4151 = vmatprep.subr.bf16.mxu0 %v6314_v35  ;;  %4538 = vmatprep.subr.bf16.mxu1 %v6317_v36  ;;  %v6405_v35 = vld [vmem:[%s8331_s1 + $0x1080] ss:$16 sps:$4 sm:$0xff]   ;;  %v6408_v36 = vld [vmem:[%s8331_s1 + $0x1088] ss:$16 sps:$4 sm:$0xff]  }
 0x1db   : > { %4152 = vmatpush1.bf16.msra.mxu0 %v6312_v37  ;;  %4539 = vmatpush1.bf16.msra.mxu1 %v6315_v38  ;;  %v6413_v37 = vld [vmem:[%s8331_s1 + $0x10a4] ss:$16 sps:$4 sm:$0xff]   ;;  %v6416_v38 = vld [vmem:[%s8331_s1 + $0x10ac] ss:$16 sps:$4 sm:$0xff]  }
 0x1dc   : > { %4153 = vmatprep.subr.bf16.mxu0 %v6320_v39  ;;  %4540 = vmatprep.subr.bf16.mxu1 %v6323_v40  ;;  %v6411_v39 = vld [vmem:[%s8331_s1 + $0x10a0] ss:$16 sps:$4 sm:$0xff]   ;;  %v6414_v40 = vld [vmem:[%s8331_s1 + $0x10a8] ss:$16 sps:$4 sm:$0xff]  }
 0x1df   : > { %4154 = vmatpush1.bf16.msra.mxu0 %v6318_v41  ;;  %4541 = vmatpush1.bf16.msra.mxu1 %v6321_v42  ;;  %v6419_v41 = vld [vmem:[%s8331_s1 + $0x10c4] ss:$16 sps:$4 sm:$0xff]   ;;  %v6422_v42 = vld [vmem:[%s8331_s1 + $0x10cc] ss:$16 sps:$4 sm:$0xff]  }
 0x1e0   : > { %4155 = vmatprep.subr.bf16.mxu0 %v6326_v43  ;;  %4542 = vmatprep.subr.bf16.mxu1 %v6329_v44  ;;  %v6417_v43 = vld [vmem:[%s8331_s1 + $0x10c0] ss:$16 sps:$4 sm:$0xff]   ;;  %v6420_v44 = vld [vmem:[%s8331_s1 + $0x10c8] ss:$16 sps:$4 sm:$0xff]  }
 0x1e3   : > { %4156 = vmatpush1.bf16.msra.mxu0 %v6324_v45  ;;  %4543 = vmatpush1.bf16.msra.mxu1 %v6327_v46  ;;  %v6425_v45 = vld [vmem:[%s8331_s1 + $0x10e4] ss:$16 sps:$4 sm:$0xff]   ;;  %v6428_v46 = vld [vmem:[%s8331_s1 + $0x10ec] ss:$16 sps:$4 sm:$0xff]  }
 0x1e4   : > { %4157 = vmatprep.subr.bf16.mxu0 %v6332_v47  ;;  %4544 = vmatprep.subr.bf16.mxu1 %v6335_v48  ;;  %v6423_v47 = vld [vmem:[%s8331_s1 + $0x10e0] ss:$16 sps:$4 sm:$0xff]   ;;  %v6426_v48 = vld [vmem:[%s8331_s1 + $0x10e8] ss:$16 sps:$4 sm:$0xff]  }
 0x1e7   : > { %4158 = vmatpush1.bf16.msra.mxu0 %v6330_v49  ;;  %4545 = vmatpush1.bf16.msra.mxu1 %v6333_v50  ;;  %v6431_v49 = vld [vmem:[%s8331_s1 + $0x1104] ss:$16 sps:$4 sm:$0xff]   ;;  %v6434_v50 = vld [vmem:[%s8331_s1 + $0x110c] ss:$16 sps:$4 sm:$0xff]  }
 0x1e8   : > { %4159 = vmatprep.subr.bf16.mxu0 %v6338_v51  ;;  %4546 = vmatprep.subr.bf16.mxu1 %v6341_v52  ;;  %v6429_v51 = vld [vmem:[%s8331_s1 + $0x1100] ss:$16 sps:$4 sm:$0xff]   ;;  %v6432_v52 = vld [vmem:[%s8331_s1 + $0x1108] ss:$16 sps:$4 sm:$0xff]  }
 0x1eb   : > { %4160 = vmatpush1.bf16.msra.mxu0 %v6336_v53  ;;  %4547 = vmatpush1.bf16.msra.mxu1 %v6339_v54  ;;  %v6437_v53 = vld [vmem:[%s8331_s1 + $0x1124] ss:$16 sps:$4 sm:$0xff]   ;;  %v6440_v54 = vld [vmem:[%s8331_s1 + $0x112c] ss:$16 sps:$4 sm:$0xff]  }
 0x1ec   : > { %4161 = vmatprep.subr.bf16.mxu0 %v6344_v55  ;;  %4548 = vmatprep.subr.bf16.mxu1 %v6347_v56  ;;  %v6435_v55 = vld [vmem:[%s8331_s1 + $0x1120] ss:$16 sps:$4 sm:$0xff]   ;;  %v6438_v56 = vld [vmem:[%s8331_s1 + $0x1128] ss:$16 sps:$4 sm:$0xff]  }
 0x1ef   : > { %4162 = vmatpush1.bf16.msra.mxu0 %v6342_v57  ;;  %4549 = vmatpush1.bf16.msra.mxu1 %v6345_v58  ;;  %v6443_v57 = vld [vmem:[%s8331_s1 + $0x1144] ss:$16 sps:$4 sm:$0xff]   ;;  %v6446_v58 = vld [vmem:[%s8331_s1 + $0x114c] ss:$16 sps:$4 sm:$0xff]  }
 0x1f0   : > { %4163 = vmatprep.subr.bf16.mxu0 %v6350_v59  ;;  %4550 = vmatprep.subr.bf16.mxu1 %v6353_v60  ;;  %v6441_v59 = vld [vmem:[%s8331_s1 + $0x1140] ss:$16 sps:$4 sm:$0xff]   ;;  %v6444_v60 = vld [vmem:[%s8331_s1 + $0x1148] ss:$16 sps:$4 sm:$0xff]  }
 0x1f3   : > { %4164 = vmatpush1.bf16.msra.mxu0 %v6348_v61  ;;  %4551 = vmatpush1.bf16.msra.mxu1 %v6351_v62  ;;  %v6449_v61 = vld [vmem:[%s8331_s1 + $0x1164] ss:$16 sps:$4 sm:$0xff]   ;;  %v6452_v62 = vld [vmem:[%s8331_s1 + $0x116c] ss:$16 sps:$4 sm:$0xff]  }
 0x1f4   : > { %4165 = vmatprep.subr.bf16.mxu0 %v6356_v63  ;;  %4552 = vmatprep.subr.bf16.mxu1 %v6359_v0  ;;  %v6447_v63 = vld [vmem:[%s8331_s1 + $0x1160] ss:$16 sps:$4 sm:$0xff]   ;;  %v6450_v0 = vld [vmem:[%s8331_s1 + $0x1168] ss:$16 sps:$4 sm:$0xff]  }
 0x1f7   : > { %4166 = vmatpush1.bf16.msra.mxu0 %v6354_v1  ;;  %4553 = vmatpush1.bf16.msra.mxu1 %v6357_v2  ;;  %v6455_v1 = vld [vmem:[%s8331_s1 + $0x1184] ss:$16 sps:$4 sm:$0xff]   ;;  %v6458_v2 = vld [vmem:[%s8331_s1 + $0x118c] ss:$16 sps:$4 sm:$0xff]  }
 0x1f8   : > { %4167 = vmatprep.subr.bf16.mxu0 %v6362_v3  ;;  %4554 = vmatprep.subr.bf16.mxu1 %v6365_v4  ;;  %v6453_v3 = vld [vmem:[%s8331_s1 + $0x1180] ss:$16 sps:$4 sm:$0xff]   ;;  %v6456_v4 = vld [vmem:[%s8331_s1 + $0x1188] ss:$16 sps:$4 sm:$0xff]  }
 0x1fb   : > { %4168 = vmatpush1.bf16.msra.mxu0 %v6360_v5  ;;  %4555 = vmatpush1.bf16.msra.mxu1 %v6363_v6  ;;  %v6461_v5 = vld [vmem:[%s8331_s1 + $0x11a4] ss:$16 sps:$4 sm:$0xff]   ;;  %v6464_v6 = vld [vmem:[%s8331_s1 + $0x11ac] ss:$16 sps:$4 sm:$0xff]  }
 0x1fc   : > { %4169 = vmatprep.subr.bf16.mxu0 %v6368_v7  ;;  %4556 = vmatprep.subr.bf16.mxu1 %v6371_v8  ;;  %v6459_v7 = vld [vmem:[%s8331_s1 + $0x11a0] ss:$16 sps:$4 sm:$0xff]   ;;  %v6462_v8 = vld [vmem:[%s8331_s1 + $0x11a8] ss:$16 sps:$4 sm:$0xff]  }
 0x1ff   : > { %4170 = vmatpush1.bf16.msra.mxu0 %v6366_v9  ;;  %4557 = vmatpush1.bf16.msra.mxu1 %v6369_v10  ;;  %v6467_v9 = vld [vmem:[%s8331_s1 + $0x11c4] ss:$16 sps:$4 sm:$0xff]   ;;  %v6470_v10 = vld [vmem:[%s8331_s1 + $0x11cc] ss:$16 sps:$4 sm:$0xff]  }
 0x200   : > { %4171 = vmatprep.subr.bf16.mxu0 %v6374_v11  ;;  %4558 = vmatprep.subr.bf16.mxu1 %v6377_v12  ;;  %v6465_v11 = vld [vmem:[%s8331_s1 + $0x11c0] ss:$16 sps:$4 sm:$0xff]   ;;  %v6468_v12 = vld [vmem:[%s8331_s1 + $0x11c8] ss:$16 sps:$4 sm:$0xff]  }
 0x203   : > { %4172 = vmatpush1.bf16.msra.mxu0 %v6372_v13  ;;  %4559 = vmatpush1.bf16.msra.mxu1 %v6375_v14  ;;  %v6473_v13 = vld [vmem:[%s8331_s1 + $0x11e4] ss:$16 sps:$4 sm:$0xff]   ;;  %v6476_v14 = vld [vmem:[%s8331_s1 + $0x11ec] ss:$16 sps:$4 sm:$0xff]  }
 0x204   : > { %4184 = vmatprep.subr.bf16.mxu0 %v6383_v15  ;;  %4571 = vmatprep.subr.bf16.mxu1 %v6386_v16  ;;  %v6471_v15 = vld [vmem:[%s8331_s1 + $0x11e0] ss:$16 sps:$4 sm:$0xff]   ;;  %v6474_v16 = vld [vmem:[%s8331_s1 + $0x11e8] ss:$16 sps:$4 sm:$0xff]  }
 0x206   : > { %4174 = vmatmul.mubr.bf16.vlgmr.msra.gmra.mrb[0].mxu0 %v6378_v17  ;;  %4561 = vmatmul.mubr.bf16.vlgmr.msra.gmra.mrb[0].mxu1 %v6378_v17  ;;  %v6477_v17 = vld [vmem:[%s6671_s23 + $0x40] ss:$72 sps:$4 sm:$0xff]   ;;  %s5502_s23 = sshll.u32 %s8337_s9, 4  ;;  %s4900_s9 = sshll.u32 %s8339_s19, 2 }
 0x207   : > { %4185 = vmatpush1.bf16.msra.mxu0 %v6381_v18  ;;  %4572 = vmatpush1.bf16.msra.mxu1 %v6384_v19  ;;  %v850_v18 = vlaneseq  ;;  %s8301_s16 = scalar_lea.vmem %s8333_s3, %s5502_s23  ;;  %s249_s21 = scalar_lea.vmem %s8334_s4, %s4900_s9 }
 0x208   : > { %4186 = vmatprep.subr.bf16.mxu0 %v6389_v20  ;;  %4573 = vmatprep.subr.bf16.mxu1 %v6392_v21  ;;  %s253_s25 = scalar_lea.vmem %s8335_s5, %s4900_s9 }
 0x209   : > { %4216 = vmatprep.mubr.bf16.mxu0 %v6479_v22  ;;  %4603 = vmatprep.mubr.bf16.mxu1 %v6479_v22  ;;  %v8285_v19 = vshrl.u32 %v850_v18, 7  ;;  %v848_v22 = vld [vmem:[%s8332_s2] sm:$0xf]  ;;  %vm4673_vm0 = vcmp.lt.s32.totalorder %v850_v18, 512 }
 0x20b   : > { %4187 = vmatpush1.bf16.msra.mxu0 %v6387_v23  ;;  %4574 = vmatpush1.bf16.msra.mxu1 %v6390_v24  ;;  %v852_v20 = vsub.s32 0, %v8285_v19  ;;  %v860_v21 = vsub.s32 2, %v8285_v19  ;;  %v856_v23 = vsub.s32 1, %v8285_v19  ;;  %v864_v24 = vsub.s32 3, %v8285_v19 }
 0x20c   : > { %4188 = vmatprep.subr.bf16.mxu0 %v6395_v25  ;;  %4575 = vmatprep.subr.bf16.mxu1 %v6398_v26 }
 0x20d   : > { %v853_v25 = vrot.slane %v848_v22, %v852_v20  ;;  %v861_v26 = vrot.slane %v848_v22, %v860_v21 }
 0x20f   : > { %4189 = vmatpush1.bf16.msra.mxu0 %v6393_v27  ;;  %4576 = vmatpush1.bf16.msra.mxu1 %v6396_v28  ;;  %v857_v27 = vrot.slane %v848_v22, %v856_v23  ;;  %v865_v28 = vrot.slane %v848_v22, %v864_v24 }
 0x210   : > { %4190 = vmatprep.subr.bf16.mxu0 %v6401_v29  ;;  %4577 = vmatprep.subr.bf16.mxu1 %v6404_v30  ;;  %v6488_v29 = vmov 1966171168  }
 0x211   : > { %v8294_v30 = vunpack.c.l.s4 %v6488_v29 }
 0x213   : > { %4191 = vmatpush1.bf16.msra.mxu0 %v6399_v31  ;;  %4578 = vmatpush1.bf16.msra.mxu1 %v6402_v32 }
 0x214   : > { %4192 = vmatprep.subr.bf16.mxu0 %v6407_v33  ;;  %4579 = vmatprep.subr.bf16.mxu1 %v6410_v34 }
 0x217   : > { %4193 = vmatpush1.bf16.msra.mxu0 %v6405_v35  ;;  %4580 = vmatpush1.bf16.msra.mxu1 %v6408_v36 }
 0x218   : > { %4194 = vmatprep.subr.bf16.mxu0 %v6413_v37  ;;  %4581 = vmatprep.subr.bf16.mxu1 %v6416_v38 }
 0x21b   : > { %4195 = vmatpush1.bf16.msra.mxu0 %v6411_v39  ;;  %4582 = vmatpush1.bf16.msra.mxu1 %v6414_v40 }
 0x21c   : > { %4196 = vmatprep.subr.bf16.mxu0 %v6419_v41  ;;  %4583 = vmatprep.subr.bf16.mxu1 %v6422_v42  ;;  %v4650_v41 = vunpack.c.0.s8 %v8294_v30 }
 0x21f   : > { %4197 = vmatpush1.bf16.msra.mxu0 %v6417_v43  ;;  %4584 = vmatpush1.bf16.msra.mxu1 %v6420_v44 }
 0x220   : > { %4198 = vmatprep.subr.bf16.mxu0 %v6425_v45  ;;  %4585 = vmatprep.subr.bf16.mxu1 %v6428_v46 }
 0x223   : > { %4199 = vmatpush1.bf16.msra.mxu0 %v6423_v47  ;;  %4586 = vmatpush1.bf16.msra.mxu1 %v6426_v48 }
 0x224   : > { %4200 = vmatprep.subr.bf16.mxu0 %v6431_v49  ;;  %4587 = vmatprep.subr.bf16.mxu1 %v6434_v50 }
 0x227   : > { %4201 = vmatpush1.bf16.msra.mxu0 %v6429_v51  ;;  %4588 = vmatpush1.bf16.msra.mxu1 %v6432_v52 }
 0x228   : > { %4202 = vmatprep.subr.bf16.mxu0 %v6437_v53  ;;  %4589 = vmatprep.subr.bf16.mxu1 %v6440_v54 }
 0x22b   : > { %4203 = vmatpush1.bf16.msra.mxu0 %v6435_v55  ;;  %4590 = vmatpush1.bf16.msra.mxu1 %v6438_v56 }
 0x22c   : > { %4204 = vmatprep.subr.bf16.mxu0 %v6443_v57  ;;  %4591 = vmatprep.subr.bf16.mxu1 %v6446_v58 }
 0x22f   : > { %4205 = vmatpush1.bf16.msra.mxu0 %v6441_v59  ;;  %4592 = vmatpush1.bf16.msra.mxu1 %v6444_v60 }
 0x230   : > { %4206 = vmatprep.subr.bf16.mxu0 %v6449_v61  ;;  %4593 = vmatprep.subr.bf16.mxu1 %v6452_v62 }
 0x233   : > { %4207 = vmatpush1.bf16.msra.mxu0 %v6447_v63  ;;  %4594 = vmatpush1.bf16.msra.mxu1 %v6450_v0 }
 0x234   : > { %4208 = vmatprep.subr.bf16.mxu0 %v6455_v1  ;;  %4595 = vmatprep.subr.bf16.mxu1 %v6458_v2 }
 0x237   : > { %4209 = vmatpush1.bf16.msra.mxu0 %v6453_v3  ;;  %4596 = vmatpush1.bf16.msra.mxu1 %v6456_v4 }
 0x238   : > { %4210 = vmatprep.subr.bf16.mxu0 %v6461_v5  ;;  %4597 = vmatprep.subr.bf16.mxu1 %v6464_v6 }
 0x23b   : > { %4211 = vmatpush1.bf16.msra.mxu0 %v6459_v7  ;;  %4598 = vmatpush1.bf16.msra.mxu1 %v6462_v8 }
 0x23c   : > { %4212 = vmatprep.subr.bf16.mxu0 %v6467_v9  ;;  %4599 = vmatprep.subr.bf16.mxu1 %v6470_v10 }
 0x23f   : > { %4213 = vmatpush1.bf16.msra.mxu0 %v6465_v11  ;;  %4600 = vmatpush1.bf16.msra.mxu1 %v6468_v12 }
 0x240   : > { %4214 = vmatprep.subr.bf16.mxu0 %v6473_v13  ;;  %4601 = vmatprep.subr.bf16.mxu1 %v6476_v14 }
 0x243   : > { %4215 = vmatpush1.bf16.msra.mxu0 %v6471_v15  ;;  %4602 = vmatpush1.bf16.msra.mxu1 %v6474_v16 }
 0x246   : > { %4217 = vmatmul.mubr.bf16.vlgmr.msra.gmra.mrb[0].mxu0 %v6477_v17  ;;  %4604 = vmatmul.mubr.bf16.vlgmr.msra.gmra.mrb[0].mxu1 %v6477_v17 }
 0x319   : > { %v4218_v31 = vpop.f32.mrb[0].mxu0  ;;  %v4605_v32 = vpop.f32.mrb[0].mxu1 }
 0x31a   : > { %v5507_v33 = vadd.f32 %v4218_v31, %v853_v25  ;;  %v5511_v34 = vadd.f32 %v4605_v32, %v861_v26  ;;  %v4220_v35 = vpop.f32.mrb[1].mxu0  ;;  %v4607_v36 = vpop.f32.mrb[1].mxu1 }
 0x31b   : > { %v5508_v37 = vadd.f32 %v4220_v35, %v857_v27  ;;  %v5512_v38 = vadd.f32 %v4607_v36, %v865_v28  ;;  %v4222_v39 = vpop.f32.mrb[2].mxu0  ;;  %v4609_v40 = vpop.f32.mrb[2].mxu1 }
 0x31c   : > { %v5509_v42 = vadd.f32 %v4222_v39, %v853_v25  ;;  %v8303_v43 = vadd.f32 %v4609_v40, %v861_v26  ;;  %v4224_v44 = vpop.f32.mrb[3].mxu0  ;;  %v4611_v45 = vpop.f32.mrb[3].mxu1  ;;  %v4676_v46 = vmul.f32 %v5507_v33, %v5507_v33  ;;  %v4678_v47 = vmul.f32 %v5511_v34, %v5511_v34 }
 0x31d   : > { %v5503_v48 = vpack.c.bf16 %v5508_v37, %v5507_v33  ;;  %v5504_v49 = vpack.c.bf16 %v5512_v38, %v5511_v34  ;;  %v4677_v54 = vmul.f32 %v5508_v37, %v5508_v37  ;;  %v4679_v55 = vmul.f32 %v5512_v38, %v5512_v38 }
 0x31e   : > { %v4614_v50 = vadd.f32 %v5509_v42, %v5507_v33  ;;  %v4680_v51 = vmul.f32 %v5509_v42, %v5509_v42  ;;  %v4628_v52 = vadd.f32 %v8303_v43, %v5511_v34  ;;  %v4682_v53 = vmul.f32 %v8303_v43, %v8303_v43 }
 0x31f   : > { %4766 = vst [vmem:[%s8301_s16] sm:$0xff] %v5503_v48  ;;  %4767 = vst [vmem:[%s8301_s16 + $0x8] sm:$0xff] %v5504_v49  ;;  %v5510_v56 = vadd.f32 %v4224_v44, %v857_v27  ;;  %v5514_v57 = vadd.f32 %v4611_v45, %v865_v28 }
 0x320   : > { %v4615_v58 = vrot.slane %v4614_v50, 4  ;;  %v4684_v59 = vadd.f32 %v4680_v51, %v4676_v46  ;;  %v4629_v60 = vrot.slane %v4628_v52, 4  ;;  %v4698_v61 = vadd.f32 %v4682_v53, %v4678_v47 }
 0x321   : > { %v4621_v62 = vadd.f32 %v5510_v56, %v5508_v37  ;;  %v4681_v63 = vmul.f32 %v5510_v56, %v5510_v56  ;;  %v5505_v0 = vpack.c.bf16 %v5510_v56, %v5509_v42  ;;  %v4635_v1 = vadd.f32 %v5514_v57, %v5512_v38 }
 0x322   : > { %v4616_v2 = vadd.f32 %v4615_v58, %v4614_v50  ;;  %v4685_v3 = vrot.slane %v4684_v59, 4  ;;  %v4630_v4 = vadd.f32 %v4629_v60, %v4628_v52  ;;  %v4699_v5 = vrot.slane %v4698_v61, 4 }
 0x323   : > { %v4622_v6 = vrot.slane %v4621_v62, 4  ;;  %v4691_v7 = vadd.f32 %v4681_v63, %v4677_v54  ;;  %4768 = vst [vmem:[%s8301_s16 + $0x10] sm:$0xff] %v5505_v0  ;;  %v4636_v8 = vrot.slane %v4635_v1, 4  ;;  %v4683_v9 = vmul.f32 %v5514_v57, %v5514_v57 }
 0x324   : > { %v4617_v10 = vrot.slane %v4616_v2, 2  ;;  %v4686_v11 = vadd.f32 %v4685_v3, %v4684_v59  ;;  %v4631_v12 = vrot.slane %v4630_v4, 2  ;;  %v4700_v13 = vadd.f32 %v4699_v5, %v4698_v61 }
 0x325   : > { %v4623_v14 = vadd.f32 %v4622_v6, %v4621_v62  ;;  %v4692_v15 = vrot.slane %v4691_v7, 4  ;;  %v4637_v16 = vadd.f32 %v4636_v8, %v4635_v1  ;;  %v4705_v17 = vadd.f32 %v4683_v9, %v4679_v55 }
 0x326   : > { %v4618_v20 = vadd.f32 %v4617_v10, %v4616_v2  ;;  %v4687_v21 = vrot.slane %v4686_v11, 2  ;;  %v4632_v22 = vadd.f32 %v4631_v12, %v4630_v4  ;;  %v4701_v23 = vrot.slane %v4700_v13, 2 }
 0x327   : > { %v4624_v24 = vrot.slane %v4623_v14, 2  ;;  %v4693_v25 = vadd.f32 %v4692_v15, %v4691_v7  ;;  %v4638_v26 = vrot.slane %v4637_v16, 2  ;;  %v4706_v27 = vrot.slane %v4705_v17, 4 }
 0x328   : > { %v4619_v28 = vrot.slane %v4618_v20, 1  ;;  %v4688_v29 = vadd.f32 %v4687_v21, %v4686_v11  ;;  %v4633_v31 = vrot.slane %v4632_v22, 1  ;;  %v4702_v32 = vadd.f32 %v4701_v23, %v4700_v13 }
 0x329   : > { %v4625_v33 = vadd.f32 %v4624_v24, %v4623_v14  ;;  %v4694_v34 = vrot.slane %v4693_v25, 2  ;;  %v4639_v35 = vadd.f32 %v4638_v26, %v4637_v16  ;;  %v4707_v36 = vadd.f32 %v4706_v27, %v4705_v17 }
 0x32a   : > { %v4620_v37 = vadd.f32 %v4619_v28, %v4618_v20  ;;  %v4689_v38 = vrot.slane %v4688_v29, 1  ;;  %v4634_v39 = vadd.f32 %v4633_v31, %v4632_v22  ;;  %v4703_v40 = vrot.slane %v4702_v32, 1 }
 0x32b   : > { %v4626_v42 = vrot.slane %v4625_v33, 1  ;;  %v4695_v44 = vadd.f32 %v4694_v34, %v4693_v25  ;;  %v4640_v45 = vrot.slane %v4639_v35, 1  ;;  %v4708_v46 = vrot.slane %v4707_v36, 2 }
 0x32c   : > { %v4653_v47 = vsub.s32 %v4650_v41, %v8285_v19  ;;  %v4690_v48 = vadd.f32 %v4689_v38, %v4688_v29  ;;  %v5506_v49 = vpack.c.bf16 %v5514_v57, %v8303_v43  ;;  %v4704_v54 = vadd.f32 %v4703_v40, %v4702_v32 }
 0x32d   : > { %v4627_v50 = vadd.f32 %v4626_v42, %v4625_v33  ;;  %v4696_v51 = vrot.slane %v4695_v44, 1  ;;  %v4641_v52 = vadd.f32 %v4640_v45, %v4639_v35  ;;  %v4709_v53 = vadd.f32 %v4708_v46, %v4707_v36 }
 0x32e   : > { %4769 = vst [vmem:[%s8301_s16 + $0x18] sm:$0xff] %v5506_v49 }
 0x32f   : > { %v4646_v55 = vcombine.low %v4620_v37, %v4627_v50  ;;  %v4697_v56 = vadd.f32 %v4696_v51, %v4695_v44  ;;  %v4647_v58 = vcombine.low %v4634_v39, %v4641_v52  ;;  %v4710_v59 = vrot.slane %v4709_v53, 1 }
 0x331   : > { %v4654_v60 = vrot.slane %v4646_v55, %v4653_v47  ;;  %v4716_v61 = vcombine.low %v4690_v48, %v4697_v56  ;;  %v4661_v30 = vrot.slane %v4647_v58, %v4653_v47  ;;  %v4711_v19 = vadd.f32 %v4710_v59, %v4709_v53 }
 0x333   : > { %v4724_v41 = vrot.slane %v4716_v61, %v4653_v47  ;;  %v4662_v62 = vcombine.low %v4654_v60, %v4661_v30  ;;  %v4717_v43 = vcombine.low %v4704_v54, %v4711_v19 }
 0x335   : > { %v4669_v57 = vrot.slane %v4662_v62, %v4653_v47  ;;  %v4731_v63 = vrot.slane %v4717_v43, %v4653_v47 }
 0x337   : > { %4675 = vst.msk [vmem:[%s249_s21] sm:$0xf] %vm4673_vm0, %v4669_v57  ;;  %v4732_v0 = vcombine.low %v4724_v41, %v4731_v63 }
 0x339   : > { %v4739_v1 = vrot.slane %v4732_v0, %v4653_v47 }
 0x33b   : > { %4741 = vst.msk [vmem:[%s253_s25] sm:$0xf] %vm4673_vm0, %v4739_v1 }
 0x33c PF: > { %s16_s18 = sadd.s32 1, %s6486_s18  }
 0x33d   : > { %p13_p5 = scmp.ge.s32.totalorder %s16_s18, 4  }
 0x33f   :  { %15 = sbr.rel (!%p13_p5) target bundleno = 1 (0x1), region = 86 }

// kernel: advanced_colorizer_forward.35
= control target key start
LH: loop header
LB: loop body
LE: loop exit
PB: predicated region body
PF: predicated region fallthrough
CT: control target
= control target key end

     0   :  { %s2314_s12 = smov 0   ;;  %s2720_s0 = inlined_call_operand.vmem [shape: bf16[512,576], index: 0, kind: input, shape index: {}]   ;;  %s2721_s1 = inlined_call_operand.vmem [shape: bf16[576,128], index: 1, kind: input, shape index: {}]   ;;  %s2722_s2 = inlined_call_operand.vmem [shape: f32[1,128], index: 2, kind: input, shape index: {}]   ;;  %s2723_s3 = inlined_call_operand.vmem [shape: f32[512,128], index: 3, kind: output, shape index: {}]  }
   0x1 LB: > { %s1621_s13 = sadd.s32 4294967295, %s2292_s12   ;;  %p1625_p0 = scmp.ge.s32.totalorder %s2292_s12, 1  ;;  %s2292_s12 = sphi %s2314_s12, %s13_s12  }
   0x2   : > { %p139_p1 = scmp.lt.s32.totalorder %s2292_s12, 3 }
   0x4   : > { %p140_p2 = pnand %p1625_p0, %p139_p1 }
   0x5   : > { %v2074_v0 = vld [vmem:[%s2721_s1 + $0x40] sm:$0xff] (!%p140_p2)   ;;  %s1626_s16 = sshll.u32 (!%p140_p2), %s1621_s13, 5  ;;  %v2076_v2 = vld [vmem:[%s2721_s1 + $0x48] sm:$0xff] (!%p140_p2)   ;;  %v2078_v4 = vld [vmem:[%s2721_s1 + $0x50] sm:$0xff] (!%p140_p2)   ;;  %vm969_vm0 = vcmask (!%p140_p2), 523264  }
   0x6   : > { %143 = sbr.rel (%p140_p2) target bundleno = 424 (0x1a8), region = 32  ;;  %v2075_v1 = vld [vmem:[%s2721_s1] sm:$0xff] (!%p140_p2)   ;;  %1765 = vmatprep.subr.bf16.mxu0 (!%p140_p2), %v2074_v0  ;;  %2049 = vmatprep.subr.bf16.mxu1 (!%p140_p2), %v2074_v0  ;;  %p165_p3 = scmp.lt.s32.totalorder (!%p140_p2), %s1626_s16, 63  ;;  %v2077_v3 = vld [vmem:[%s2721_s1 + $0x8] sm:$0xff] (!%p140_p2)   ;;  %v2079_v5 = vld [vmem:[%s2721_s1 + $0x10] sm:$0xff] (!%p140_p2)  }
   0x7   : > { %1766 = vmatpush3.bf16.msra.mxu0 (!%p140_p2), %v2075_v1  ;;  %2057 = vmatpush3.bf16.msra.mxu1 (!%p140_p2), %v2075_v1  ;;  %v2080_v6 = vld [vmem:[%s2721_s1 + $0x58] sm:$0xff] (!%p140_p2)   ;;  %v2082_v8 = vld [vmem:[%s2721_s1 + $0x60] sm:$0xff] (!%p140_p2)   ;;  %v2084_v10 = vld [vmem:[%s2721_s1 + $0x68] sm:$0xff] (!%p140_p2)  }
   0x8   : > { %1767 = vmatprep.subr.bf16.mxu0 (!%p140_p2), %v2076_v2  ;;  %2050 = vmatprep.subr.bf16.mxu1 (!%p140_p2), %v2076_v2  ;;  %v2081_v7 = vld [vmem:[%s2721_s1 + $0x18] sm:$0xff] (!%p140_p2)   ;;  %v2083_v9 = vld [vmem:[%s2721_s1 + $0x20] sm:$0xff] (!%p140_p2)   ;;  %v2085_v13 = vld [vmem:[%s2721_s1 + $0x28] sm:$0xff] (!%p140_p2)  }
   0x9   : > { %v2086_v14 = vld [vmem:[%s2721_s1 + $0x70] sm:$0xff] (!%p140_p2)   ;;  %v2088_v16 = vld [vmem:[%s2721_s1 + $0x78] sm:$0xff] (!%p140_p2)   ;;  %v2096_v18 = vld [vmem:[%s2721_s1 + $0xc0] sm:$0xff] (!%p140_p2)  }
   0xa   : > { %v2087_v15 = vld [vmem:[%s2721_s1 + $0x30] sm:$0xff] (!%p140_p2)   ;;  %v2089_v17 = vld [vmem:[%s2721_s1 + $0x38] sm:$0xff] (!%p140_p2)   ;;  %v2099_v19 = vld [vmem:[%s2721_s1 + $0x100] sm:$0xff] (!%p140_p2)  }
   0xb   : > { %1768 = vmatpush3.bf16.msra.mxu0 (!%p140_p2), %v2077_v3  ;;  %2058 = vmatpush3.bf16.msra.mxu1 (!%p140_p2), %v2077_v3  ;;  %v2097_v22 = vld [vmem:[%s2721_s1 + $0x80] sm:$0xff] (!%p140_p2)   ;;  %v2098_v23 = vld [vmem:[%s2721_s1 + $0xc8] sm:$0xff] (!%p140_p2)   ;;  %v2107_v28 = vld [vmem:[%s2721_s1 + $0xd0] sm:$0xff] (!%p140_p2)  }
   0xc   : > { %1769 = vmatprep.subr.bf16.mxu0 (!%p140_p2), %v2078_v4  ;;  %2051 = vmatprep.subr.bf16.mxu1 (!%p140_p2), %v2078_v4  ;;  %v2100_v26 = vld [vmem:[%s2721_s1 + $0x88] sm:$0xff] (!%p140_p2)   ;;  %v2108_v30 = vld [vmem:[%s2721_s1 + $0x90] sm:$0xff] (!%p140_p2)   ;;  %v2109_v31 = vld [vmem:[%s2721_s1 + $0xd8] sm:$0xff] (!%p140_p2)  }
   0xd   : > { %s2725_s16 = smov (!%p165_p3, %s1626_s16), 63  ;;  %v2110_v34 = vld [vmem:[%s2721_s1 + $0x98] sm:$0xff]   ;;  %v2130_v35 = vld [vmem:[%s2721_s1 + $0x108] sm:$0xff]   ;;  %v2117_v37 = vld [vmem:[%s2721_s1 + $0xe0] sm:$0xff]  }
   0xe   : > { %s2065_s29 = smul.u32 20, %s2725_s16  ;;  %v2118_v39 = vld [vmem:[%s2721_s1 + $0xa0] sm:$0xff]   ;;  %v2119_v40 = vld [vmem:[%s2721_s1 + $0xe8] sm:$0xff]   ;;  %v2127_v46 = vld [vmem:[%s2721_s1 + $0xf0] sm:$0xff]   ;;  %s1629_s19 = sshll.u32 %s2725_s16, 3 }
   0xf   : > { %1770 = vmatpush3.bf16.msra.mxu0 %v2079_v5  ;;  %2059 = vmatpush3.bf16.msra.mxu1 %v2079_v5  ;;  %v2120_v43 = vld [vmem:[%s2721_s1 + $0xa8] sm:$0xff]   ;;  %v2150_v47 = vld [vmem:[%s2721_s1 + $0x110] sm:$0xff]   ;;  %v2129_v49 = vld [vmem:[%s2721_s1 + $0xf8] sm:$0xff]   ;;  %s2635_s16 = scalar_lea.vmem %s2723_s3, %s1629_s19 }
  0x10   : > { %1771 = vmatprep.subr.bf16.mxu0 %v2080_v6  ;;  %2052 = vmatprep.subr.bf16.mxu1 %v2080_v6  ;;  %s2355_s9 = scalar_lea.vmem %s2720_s0, %s2065_s29  ;;  %v2128_v48 = vld [vmem:[%s2721_s1 + $0xb0] sm:$0xff]   ;;  %v2131_v52 = vld [vmem:[%s2721_s1 + $0xb8] sm:$0xff]  }
  0x11   : > { %v2092_v11 = vld [vmem:[%s2355_s9 + $0x4] ss:$20 sps:$4 sm:$0xff]   ;;  %v2090_v20 = vld [vmem:[%s2355_s9] ss:$20 sps:$4 sm:$0xff]   ;;  %v2105_v27 = vld [vmem:[%s2355_s9 + $0x28] ss:$20 sps:$4 sm:$0xff]  }
  0x12   : > { %v2095_v12 = vld [vmem:[%s2355_s9 + $0x1e4] ss:$20 sps:$4 sm:$0xff]   ;;  %1050 = vmatprep.mubr.bf16.mxu0 %v2092_v11  ;;  %v2093_v21 = vld [vmem:[%s2355_s9 + $0x1e0] ss:$20 sps:$4 sm:$0xff]   ;;  %v2106_v29 = vld [vmem:[%s2355_s9 + $0x208] ss:$20 sps:$4 sm:$0xff]  }
  0x13   : > { %1772 = vmatpush3.bf16.msra.mxu0 %v2081_v7  ;;  %2060 = vmatpush3.bf16.msra.mxu1 %v2081_v7  ;;  %v2101_v24 = vld [vmem:[%s2355_s9 + $0x2c] ss:$20 sps:$4 sm:$0xff]   ;;  %v2111_v32 = vld [vmem:[%s2355_s9 + $0x54] ss:$20 sps:$4 sm:$0xff]   ;;  %v2115_v36 = vld [vmem:[%s2355_s9 + $0x50] ss:$20 sps:$4 sm:$0xff]  }
  0x14   : > { %1773 = vmatprep.subr.bf16.mxu0 %v2082_v8  ;;  %2053 = vmatprep.subr.bf16.mxu1 %v2082_v8  ;;  %v2103_v25 = vld [vmem:[%s2355_s9 + $0x20c] ss:$20 sps:$4 sm:$0xff]   ;;  %v2113_v33 = vld [vmem:[%s2355_s9 + $0x234] ss:$20 sps:$4 sm:$0xff]   ;;  %v2116_v38 = vld [vmem:[%s2355_s9 + $0x230] ss:$20 sps:$4 sm:$0xff]  }
  0x15   : > { %1146 = vmatprep.mubr.bf16.mxu1 %v2095_v12  ;;  %v2121_v41 = vld [vmem:[%s2355_s9 + $0x7c] ss:$20 sps:$4 sm:$0xff]   ;;  %v2125_v44 = vld [vmem:[%s2355_s9 + $0x78] ss:$20 sps:$4 sm:$0xff]   ;;  %v2137_v54 = vld [vmem:[%s2355_s9 + $0xa0] ss:$20 sps:$4 sm:$0xff]  }
  0x16   : > { %v2123_v42 = vld [vmem:[%s2355_s9 + $0x25c] ss:$20 sps:$4 sm:$0xff]   ;;  %v2126_v45 = vld [vmem:[%s2355_s9 + $0x258] ss:$20 sps:$4 sm:$0xff]   ;;  %v2140_v57 = vld [vmem:[%s2355_s9 + $0x34] ss:$20 sps:$4 sm:$0xff]  }
  0x17   : > { %1774 = vmatpush3.bf16.msra.mxu0 %v2083_v9  ;;  %2061 = vmatpush3.bf16.msra.mxu1 %v2083_v9  ;;  %v2132_v50 = vld [vmem:[%s2355_s9 + $0xa4] ss:$20 sps:$4 sm:$0xff]   ;;  %v2136_v51 = vld [vmem:[%s2355_s9 + $0xc] ss:$20 sps:$4 sm:$0xff]   ;;  %v2134_v53 = vld [vmem:[%s2355_s9 + $0x8] ss:$20 sps:$4 sm:$0xff]  }
  0x18   : > { %1775 = vmatprep.subr.bf16.mxu0 %v2084_v10  ;;  %2054 = vmatprep.subr.bf16.mxu1 %v2084_v10  ;;  %v2138_v55 = vld [vmem:[%s2355_s9 + $0xcc] ss:$20 sps:$4 sm:$0xff]   ;;  %v2169_v56 = vld [vmem:[%s2721_s1 + $0x118] sm:$0xff]   ;;  %v2143_v59 = vld [vmem:[%s2355_s9 + $0x30] ss:$20 sps:$4 sm:$0xff]  }
  0x19   : > { %v2142_v58 = vld [vmem:[%s2355_s9 + $0xc8] ss:$20 sps:$4 sm:$0xff]   ;;  %v2148_v62 = vld [vmem:[%s2355_s9 + $0xf0] ss:$20 sps:$4 sm:$0xff]   ;;  %v2149_v63 = vld [vmem:[%s2355_s9 + $0x58] ss:$20 sps:$4 sm:$0xff]  }
  0x1a   : > { %v2144_v60 = vld [vmem:[%s2355_s9 + $0xf4] ss:$20 sps:$4 sm:$0xff]   ;;  %v2146_v61 = vld [vmem:[%s2355_s9 + $0x5c] ss:$20 sps:$4 sm:$0xff]   ;;  %v2153_v1 = vld [vmem:[%s2355_s9 + $0x84] ss:$20 sps:$4 sm:$0xff]  }
  0x1b   : > { %1776 = vmatpush3.bf16.msra.mxu0 %v2085_v13  ;;  %2062 = vmatpush3.bf16.msra.mxu1 %v2085_v13  ;;  %v2151_v0 = vld [vmem:[%s2355_s9 + $0x11c] ss:$20 sps:$4 sm:$0xff]   ;;  %v2155_v2 = vld [vmem:[%s2355_s9 + $0x118] ss:$20 sps:$4 sm:$0xff]   ;;  %v2156_v3 = vld [vmem:[%s2355_s9 + $0x80] ss:$20 sps:$4 sm:$0xff]  }
  0x1c   : > { %1777 = vmatprep.subr.bf16.mxu0 %v2086_v14  ;;  %2055 = vmatprep.subr.bf16.mxu1 %v2086_v14  ;;  %v2157_v4 = vld [vmem:[%s2355_s9 + $0x144] ss:$20 sps:$4 sm:$0xff]   ;;  %v2159_v5 = vld [vmem:[%s2355_s9 + $0xac] ss:$20 sps:$4 sm:$0xff]   ;;  %v2162_v7 = vld [vmem:[%s2355_s9 + $0xa8] ss:$20 sps:$4 sm:$0xff]  }
  0x1d   : > { %v2161_v6 = vld [vmem:[%s2355_s9 + $0x140] ss:$20 sps:$4 sm:$0xff]   ;;  %v2167_v10 = vld [vmem:[%s2355_s9 + $0x168] ss:$20 sps:$4 sm:$0xff]   ;;  %v2168_v11 = vld [vmem:[%s2355_s9 + $0xd0] ss:$20 sps:$4 sm:$0xff]  }
  0x1e   : > { %v2163_v8 = vld [vmem:[%s2355_s9 + $0x16c] ss:$20 sps:$4 sm:$0xff]   ;;  %v2165_v9 = vld [vmem:[%s2355_s9 + $0xd4] ss:$20 sps:$4 sm:$0xff]   ;;  %v2172_v13 = vld [vmem:[%s2355_s9 + $0xfc] ss:$20 sps:$4 sm:$0xff]  }
  0x1f   : > { %1778 = vmatpush3.bf16.msra.mxu0 %v2087_v15  ;;  %2063 = vmatpush3.bf16.msra.mxu1 %v2087_v15  ;;  %v2170_v12 = vld [vmem:[%s2355_s9 + $0x194] ss:$20 sps:$4 sm:$0xff]   ;;  %v2174_v14 = vld [vmem:[%s2355_s9 + $0x190] ss:$20 sps:$4 sm:$0xff]   ;;  %v2175_v15 = vld [vmem:[%s2355_s9 + $0xf8] ss:$20 sps:$4 sm:$0xff]  }
  0x20   : > { %1779 = vmatprep.subr.bf16.mxu0 %v2088_v16  ;;  %2056 = vmatprep.subr.bf16.mxu1 %v2088_v16  ;;  %v2176_v16 = vld [vmem:[%s2355_s9 + $0x1bc] ss:$20 sps:$4 sm:$0xff]  }
  0x23   : > { %1780 = vmatpush3.bf16.msra.mxu0 %v2089_v17  ;;  %2064 = vmatpush3.bf16.msra.mxu1 %v2089_v17  ;;  %v2178_v17 = vld [vmem:[%s2355_s9 + $0x124] ss:$20 sps:$4 sm:$0xff]  }
  0x24   : > { %1877 = vmatprep.subr.bf16.mxu1 %v2096_v18  ;;  %2009 = vmatprep.subr.bf16.mxu0 %v2099_v19  ;;  %v2180_v18 = vld [vmem:[%s2355_s9 + $0x1b8] ss:$20 sps:$4 sm:$0xff]  }
  0x26   : > { %1051 = vmatmul.mubr.bf16.vlgmr.msra.gmra.mrb[0].mxu0 %v2090_v20  ;;  %1147 = vmatmul.mubr.bf16.vlgmr.msra.gmra.mrb[0].mxu1 %v2093_v21  ;;  %v2182_v20 = vld [vmem:[%s2355_s9 + $0x14c] ss:$20 sps:$4 sm:$0xff]   ;;  %v2184_v21 = vld [vmem:[%s2355_s9 + $0x10] ss:$20 sps:$4 sm:$0xff]  }
  0x27   : > { %1878 = vmatpush3.bf16.msra.mxu1 %v2097_v22  ;;  %2010 = vmatpush3.bf16.msra.mxu0 %v2099_v19  ;;  %v2181_v19 = vld [vmem:[%s2355_s9 + $0x120] ss:$20 sps:$4 sm:$0xff]   ;;  %v2185_v22 = vld [vmem:[%s2355_s9 + $0x148] ss:$20 sps:$4 sm:$0xff]  }
  0x28   : > { %1879 = vmatprep.subr.bf16.mxu1 %v2098_v23  ;;  %1058 = vmatprep.mubr.bf16.mxu0 %v2101_v24  ;;  %v2186_v23 = vld [vmem:[%s2355_s9 + $0x38] ss:$20 sps:$4 sm:$0xff]   ;;  %v2187_v24 = vld [vmem:[%s2355_s9 + $0x174] ss:$20 sps:$4 sm:$0xff]  }
  0x29   : > { %1154 = vmatprep.mubr.bf16.mxu1 %v2103_v25  ;;  %2011 = vmatprep.subr.bf16.mxu0 %v2130_v35  ;;  %v2189_v25 = vld [vmem:[%s2355_s9 + $0x60] ss:$20 sps:$4 sm:$0xff]  }
  0x2b   : > { %1880 = vmatpush3.bf16.msra.mxu1 %v2100_v26  ;;  %2012 = vmatpush3.bf16.msra.mxu0 %v2130_v35  ;;  %v2190_v26 = vld [vmem:[%s2355_s9 + $0x170] ss:$20 sps:$4 sm:$0xff]   ;;  %v2201_v35 = vld [vmem:[%s2355_s9 + $0x128] ss:$20 sps:$4 sm:$0xff]  }
  0x2c   : > { %1881 = vmatprep.subr.bf16.mxu1 %v2107_v28  ;;  %2013 = vmatprep.subr.bf16.mxu0 %v2150_v47  ;;  %v2192_v28 = vld [vmem:[%s2355_s9 + $0x19c] ss:$20 sps:$4 sm:$0xff]  }
  0x2e   : > { %1059 = vmatmul.mubr.bf16.gmra.mrb[4].mxu0 %v2105_v27  ;;  %1155 = vmatmul.mubr.bf16.gmra.mrb[4].mxu1 %v2106_v29  ;;  %v2191_v27 = vld [vmem:[%s2355_s9 + $0x88] ss:$20 sps:$4 sm:$0xff]   ;;  %v2194_v29 = vld [vmem:[%s2355_s9 + $0xb0] ss:$20 sps:$4 sm:$0xff]  }
  0x2f   : > { %1882 = vmatpush3.bf16.msra.mxu1 %v2108_v30  ;;  %1066 = vmatprep.mubr.bf16.mxu0 %v2111_v32  ;;  %v2195_v30 = vld [vmem:[%s2355_s9 + $0x198] ss:$20 sps:$4 sm:$0xff]  }
  0x30   : > { %1883 = vmatprep.subr.bf16.mxu1 %v2109_v31  ;;  %1162 = vmatprep.mubr.bf16.mxu1 %v2113_v33  ;;  %v2196_v31 = vld [vmem:[%s2355_s9 + $0xd8] ss:$20 sps:$4 sm:$0xff]   ;;  %v2199_v33 = vld [vmem:[%s2355_s9 + $0x100] ss:$20 sps:$4 sm:$0xff]  }
  0x31   : > { %2014 = vmatpush3.bf16.msra.mxu0 %v2150_v47  ;;  %v2197_v32 = vld [vmem:[%s2355_s9 + $0x1c4] ss:$20 sps:$4 sm:$0xff]  }
  0x32   : > { %2015 = vmatprep.subr.bf16.mxu0 %v2169_v56  ;;  %v2216_v47 = vld [vmem:[%s2355_s9 + $0x218] ss:$20 sps:$4 sm:$0xff]  }
  0x33   : > { %1884 = vmatpush3.bf16.msra.mxu1 %v2110_v34  ;;  %v2200_v34 = vld [vmem:[%s2355_s9 + $0x1c0] ss:$20 sps:$4 sm:$0xff]  }
  0x34   : > { %1885 = vmatprep.subr.bf16.mxu1 %v2117_v37  ;;  %v2204_v37 = vld [vmem:[%s2355_s9 + $0x150] ss:$20 sps:$4 sm:$0xff]  }
  0x35   : > { %2016 = vmatpush3.bf16.msra.mxu0 %v2169_v56 }
  0x36   : > { %1067 = vmatmul.mubr.bf16.gmra.mrb[8].mxu0 %v2115_v36  ;;  %1163 = vmatmul.mubr.bf16.gmra.mrb[8].mxu1 %v2116_v38  ;;  %v2202_v36 = vld [vmem:[%s2355_s9 + $0x1ec] ss:$20 sps:$4 sm:$0xff]   ;;  %v2205_v38 = vld [vmem:[%s2355_s9 + $0x1e8] ss:$20 sps:$4 sm:$0xff]  }
  0x37   : > { %1886 = vmatpush3.bf16.msra.mxu1 %v2118_v39  ;;  %1074 = vmatprep.mubr.bf16.mxu0 %v2121_v41  ;;  %v2206_v39 = vld [vmem:[%s2355_s9 + $0x178] ss:$20 sps:$4 sm:$0xff]   ;;  %v2209_v41 = vld [vmem:[%s2355_s9 + $0x1a0] ss:$20 sps:$4 sm:$0xff]  }
  0x38   : > { %1887 = vmatprep.subr.bf16.mxu1 %v2119_v40  ;;  %1170 = vmatprep.mubr.bf16.mxu1 %v2123_v42  ;;  %v2207_v40 = vld [vmem:[%s2355_s9 + $0x214] ss:$20 sps:$4 sm:$0xff]   ;;  %v2210_v42 = vld [vmem:[%s2355_s9 + $0x210] ss:$20 sps:$4 sm:$0xff]  }
  0x3b   : > { %1888 = vmatpush3.bf16.msra.mxu1 %v2120_v43  ;;  %v2211_v43 = vld [vmem:[%s2355_s9 + $0x1c8] ss:$20 sps:$4 sm:$0xff]  }
  0x3c   : > { %1889 = vmatprep.subr.bf16.mxu1 %v2127_v46  ;;  %v2215_v46 = vld [vmem:[%s2355_s9 + $0x238] ss:$20 sps:$4 sm:$0xff]  }
  0x3e   : > { %1075 = vmatmul.mubr.bf16.gmra.mrb[12].mxu0 %v2125_v44  ;;  %1171 = vmatmul.mubr.bf16.gmra.mrb[12].mxu1 %v2126_v45  ;;  %v2212_v44 = vld [vmem:[%s2355_s9 + $0x23c] ss:$20 sps:$4 sm:$0xff]  }
  0x3f   : > { %1890 = vmatpush3.bf16.msra.mxu1 %v2128_v48  ;;  %1082 = vmatprep.mubr.bf16.mxu0 %v2132_v50  ;;  %v2214_v45 = vld [vmem:[%s2355_s9 + $0x1f0] ss:$20 sps:$4 sm:$0xff]   ;;  %v2220_v50 = vld [vmem:[%s2355_s9 + $0x260] ss:$20 sps:$4 sm:$0xff]  }
  0x40   : > { %1891 = vmatprep.subr.bf16.mxu1 %v2129_v49  ;;  %1211 = vmatprep.mubr.bf16.mxu1 %v2136_v51  ;;  %v2217_v48 = vld [vmem:[%s2355_s9 + $0x264] ss:$20 sps:$4 sm:$0xff]   ;;  %v2219_v49 = vld [vmem:[%s2355_s9 + $0x240] ss:$20 sps:$4 sm:$0xff]   ;;  %v2221_v51 = vld [vmem:[%s2355_s9 + $0x268] ss:$20 sps:$4 sm:$0xff]  }
  0x43   : > { %1892 = vmatpush3.bf16.msra.mxu1 %v2131_v52 }
  0x46   : > { %1083 = vmatmul.mubr.bf16.gmra.mrb[16].mxu0 %v2137_v54  ;;  %1212 = vmatmul.mubr.bf16.vlgmr.msra.gmra.mrb[16].mxu1 %v2134_v53 }
  0x47   : > { %1090 = vmatprep.mubr.bf16.mxu0 %v2138_v55  ;;  %1219 = vmatprep.mubr.bf16.mxu1 %v2140_v57 }
  0x4e   : > { %1091 = vmatmul.mubr.bf16.gmra.mrb[20].mxu0 %v2142_v58  ;;  %1220 = vmatmul.mubr.bf16.gmra.mrb[20].mxu1 %v2143_v59 }
  0x4f   : > { %1098 = vmatprep.mubr.bf16.mxu0 %v2144_v60  ;;  %1227 = vmatprep.mubr.bf16.mxu1 %v2146_v61 }
  0x56   : > { %1099 = vmatmul.mubr.bf16.gmra.mrb[24].mxu0 %v2148_v62  ;;  %1228 = vmatmul.mubr.bf16.gmra.mrb[24].mxu1 %v2149_v63 }
  0x57   : > { %1106 = vmatprep.mubr.bf16.mxu0 %v2151_v0  ;;  %1235 = vmatprep.mubr.bf16.mxu1 %v2153_v1 }
  0x5e   : > { %1107 = vmatmul.mubr.bf16.gmra.mrb[28].mxu0 %v2155_v2  ;;  %1236 = vmatmul.mubr.bf16.gmra.mrb[28].mxu1 %v2156_v3 }
  0x5f   : > { %1114 = vmatprep.mubr.bf16.mxu0 %v2157_v4  ;;  %1243 = vmatprep.mubr.bf16.mxu1 %v2159_v5 }
  0x66   : > { %1115 = vmatmul.mubr.bf16.gmra.mrb[32].mxu0 %v2161_v6  ;;  %1244 = vmatmul.mubr.bf16.gmra.mrb[32].mxu1 %v2162_v7 }
  0x67   : > { %1122 = vmatprep.mubr.bf16.mxu0 %v2163_v8  ;;  %1251 = vmatprep.mubr.bf16.mxu1 %v2165_v9 }
  0x6e   : > { %1123 = vmatmul.mubr.bf16.gmra.mrb[36].mxu0 %v2167_v10  ;;  %1252 = vmatmul.mubr.bf16.gmra.mrb[36].mxu1 %v2168_v11 }
  0x6f   : > { %1130 = vmatprep.mubr.bf16.mxu0 %v2170_v12  ;;  %1259 = vmatprep.mubr.bf16.mxu1 %v2172_v13 }
  0x76   : > { %1131 = vmatmul.mubr.bf16.gmra.mrb[40].mxu0 %v2174_v14  ;;  %1260 = vmatmul.mubr.bf16.gmra.mrb[40].mxu1 %v2175_v15 }
  0x77   : > { %1138 = vmatprep.mubr.bf16.mxu0 %v2176_v16  ;;  %1267 = vmatprep.mubr.bf16.mxu1 %v2178_v17 }
  0x7e   : > { %1139 = vmatmul.mubr.bf16.gmra.mrb[44].mxu0 %v2180_v18  ;;  %1268 = vmatmul.mubr.bf16.gmra.mrb[44].mxu1 %v2181_v19 }
  0x7f   : > { %1275 = vmatprep.mubr.bf16.mxu1 %v2182_v20  ;;  %2017 = vmatprep.mubr.msk.bf16.mxu0 %vm969_vm0, %v2184_v21 }
  0x86   : > { %1276 = vmatmul.mubr.bf16.gmra.mrb[48].mxu1 %v2185_v22  ;;  %2018 = vmatmul.mubr.msk.bf16.vlgmr.msra.gmra.mrb[48].mxu0 %vm969_vm0, %v2186_v23 }
  0x87   : > { %1283 = vmatprep.mubr.bf16.mxu1 %v2187_v24  ;;  %2021 = vmatprep.mubr.msk.bf16.mxu0 %vm969_vm0, %v2189_v25 }
  0x8e   : > { %1284 = vmatmul.mubr.bf16.gmra.mrb[52].mxu1 %v2190_v26  ;;  %2022 = vmatmul.mubr.msk.bf16.gmra.mrb[52].mxu0 %vm969_vm0, %v2191_v27 }
  0x8f   : > { %1291 = vmatprep.mubr.bf16.mxu1 %v2192_v28  ;;  %2025 = vmatprep.mubr.msk.bf16.mxu0 %vm969_vm0, %v2194_v29 }
  0x96   : > { %1292 = vmatmul.mubr.bf16.gmra.mrb[56].mxu1 %v2195_v30  ;;  %2026 = vmatmul.mubr.msk.bf16.gmra.mrb[56].mxu0 %vm969_vm0, %v2196_v31 }
  0x97   : > { %1299 = vmatprep.mubr.bf16.mxu1 %v2197_v32  ;;  %2029 = vmatprep.mubr.msk.bf16.mxu0 %vm969_vm0, %v2199_v33 }
  0x9e   : > { %1300 = vmatmul.mubr.bf16.gmra.mrb[60].mxu1 %v2200_v34  ;;  %2030 = vmatmul.mubr.msk.bf16.gmra.mrb[60].mxu0 %vm969_vm0, %v2201_v35 }
  0x9f   : > { %1307 = vmatprep.mubr.bf16.mxu1 %v2202_v36  ;;  %2033 = vmatprep.mubr.msk.bf16.mxu0 %vm969_vm0, %v2204_v37 }
  0xa6   : > { %1308 = vmatmul.mubr.bf16.gmra.mrb[64].mxu1 %v2205_v38  ;;  %2034 = vmatmul.mubr.msk.bf16.gmra.mrb[64].mxu0 %vm969_vm0, %v2206_v39  ;;  %v2553_v38 = vld [vmem:[%s2722_s2] ss:$0 sm:$0xff] }
  0xa7   : > { %1315 = vmatprep.mubr.bf16.mxu1 %v2207_v40  ;;  %2037 = vmatprep.mubr.msk.bf16.mxu0 %vm969_vm0, %v2209_v41 }
  0xae   : > { %1316 = vmatmul.mubr.bf16.gmra.mrb[68].mxu1 %v2210_v42  ;;  %2038 = vmatmul.mubr.msk.bf16.gmra.mrb[68].mxu0 %vm969_vm0, %v2211_v43 }
  0xaf   : > { %1323 = vmatprep.mubr.bf16.mxu1 %v2212_v44  ;;  %2041 = vmatprep.mubr.msk.bf16.mxu0 %vm969_vm0, %v2214_v45 }
  0xb6   : > { %1324 = vmatmul.mubr.bf16.gmra.mrb[72].mxu1 %v2215_v46  ;;  %2042 = vmatmul.mubr.msk.bf16.gmra.mrb[72].mxu0 %vm969_vm0, %v2216_v47 }
  0xb7   : > { %1331 = vmatprep.mubr.bf16.mxu1 %v2217_v48  ;;  %2045 = vmatprep.mubr.msk.bf16.mxu0 %vm969_vm0, %v2219_v49 }
  0xbe   : > { %1332 = vmatmul.mubr.bf16.gmra.mrb[76].mxu1 %v2220_v50  ;;  %2046 = vmatmul.mubr.msk.bf16.gmra.mrb[76].mxu0 %vm969_vm0, %v2221_v51 }
  0xf9   : > { %v1853_v52 = vpop.f32.mrb[0].mxu1  ;;  %v1781_v53 = vpop.f32.mrb[0].mxu0 }
  0xfa   : > { %v1854_v54 = vpop.f32.mrb[1].mxu1  ;;  %v1782_v55 = vpop.f32.mrb[1].mxu0 }
  0xfb   : > { %v2534_v56 = vadd.f32 %v1854_v54, %v1853_v52  ;;  %v1856_v57 = vpop.f32.mrb[2].mxu1  ;;  %v1783_v58 = vadd.f32 %v1782_v55, %v1781_v53  ;;  %v1784_v59 = vpop.f32.mrb[2].mxu0 }
  0xfc   : > { %v1857_v60 = vpop.f32.mrb[3].mxu1  ;;  %v1785_v61 = vpop.f32.mrb[3].mxu0 }
  0xfd   : > { %v2536_v62 = vadd.f32 %v1857_v60, %v1856_v57  ;;  %v1786_v63 = vadd.f32 %v1785_v61, %v1784_v59  ;;  %v1053_v41 = vadd.f32 %v1783_v58, %v2553_v38 }
  0xff   : > { %v1056_v48 = vadd.f32 %v1786_v63, %v2553_v38 }
 0x101   : > { %v1859_v0 = vpop.f32.mrb[4].mxu1  ;;  %v1787_v1 = vpop.f32.mrb[4].mxu0 }
 0x102   : > { %v1860_v2 = vpop.f32.mrb[5].mxu1  ;;  %v1788_v3 = vpop.f32.mrb[5].mxu0 }
 0x103   : > { %v2538_v4 = vadd.f32 %v1860_v2, %v1859_v0  ;;  %v1862_v5 = vpop.f32.mrb[6].mxu1  ;;  %v1789_v6 = vadd.f32 %v1788_v3, %v1787_v1  ;;  %v1790_v7 = vpop.f32.mrb[6].mxu0 }
 0x104   : > { %v1863_v8 = vpop.f32.mrb[7].mxu1  ;;  %v1791_v9 = vpop.f32.mrb[7].mxu0 }
 0x105   : > { %v2540_v10 = vadd.f32 %v1863_v8, %v1862_v5  ;;  %v1792_v11 = vadd.f32 %v1791_v9, %v1790_v7  ;;  %v1061_v58 = vadd.f32 %v1789_v6, %v2553_v38 }
 0x107   : > { %v1064_v63 = vadd.f32 %v1792_v11, %v2553_v38 }
 0x109   : > { %v1865_v12 = vpop.f32.mrb[8].mxu1  ;;  %v1793_v13 = vpop.f32.mrb[8].mxu0 }
 0x10a   : > { %v1866_v14 = vpop.f32.mrb[9].mxu1  ;;  %v1794_v15 = vpop.f32.mrb[9].mxu0 }
 0x10b   : > { %v2542_v16 = vadd.f32 %v1866_v14, %v1865_v12  ;;  %v1868_v17 = vpop.f32.mrb[10].mxu1  ;;  %v1795_v18 = vadd.f32 %v1794_v15, %v1793_v13  ;;  %v1796_v19 = vpop.f32.mrb[10].mxu0 }
 0x10c   : > { %v1869_v20 = vpop.f32.mrb[11].mxu1  ;;  %v1797_v21 = vpop.f32.mrb[11].mxu0 }
 0x10d   : > { %v2544_v22 = vadd.f32 %v1869_v20, %v1868_v17  ;;  %v1798_v23 = vadd.f32 %v1797_v21, %v1796_v19  ;;  %v1069_v6 = vadd.f32 %v1795_v18, %v2553_v38 }
 0x10f   : > { %v1072_v11 = vadd.f32 %v1798_v23, %v2553_v38 }
 0x111   : > { %v1871_v24 = vpop.f32.mrb[12].mxu1  ;;  %v1799_v25 = vpop.f32.mrb[12].mxu0 }
 0x112   : > { %v1872_v26 = vpop.f32.mrb[13].mxu1  ;;  %v1800_v27 = vpop.f32.mrb[13].mxu0 }
 0x113   : > { %v2546_v28 = vadd.f32 %v1872_v26, %v1871_v24  ;;  %v1874_v29 = vpop.f32.mrb[14].mxu1  ;;  %v1801_v30 = vadd.f32 %v1800_v27, %v1799_v25  ;;  %v1802_v31 = vpop.f32.mrb[14].mxu0 }
 0x114   : > { %v1875_v32 = vpop.f32.mrb[15].mxu1  ;;  %v1803_v33 = vpop.f32.mrb[15].mxu0 }
 0x115   : > { %v2548_v34 = vadd.f32 %v1875_v32, %v1874_v29  ;;  %v1804_v35 = vadd.f32 %v1803_v33, %v1802_v31  ;;  %v1077_v18 = vadd.f32 %v1801_v30, %v2553_v38 }
 0x117   : > { %v1080_v23 = vadd.f32 %v1804_v35, %v2553_v38 }
 0x119   : > { %v1893_v36 = vpop.f32.mrb[16].mxu1  ;;  %v1805_v37 = vpop.f32.mrb[16].mxu0 }
 0x11a   : > { %v1894_v39 = vpop.f32.mrb[17].mxu1  ;;  %v1806_v40 = vpop.f32.mrb[17].mxu0 }
 0x11b   : > { %v1895_v42 = vadd.f32 %v1894_v39, %v1893_v36  ;;  %v1896_v43 = vpop.f32.mrb[18].mxu1  ;;  %v1807_v44 = vadd.f32 %v1806_v40, %v1805_v37  ;;  %v1808_v45 = vpop.f32.mrb[18].mxu0 }
 0x11c   : > { %v1897_v46 = vpop.f32.mrb[19].mxu1  ;;  %v1809_v47 = vpop.f32.mrb[19].mxu0 }
 0x11d   : > { %v1898_v49 = vadd.f32 %v1897_v46, %v1896_v43  ;;  %v1810_v50 = vadd.f32 %v1809_v47, %v1808_v45  ;;  %v2557_v51 = vadd.f32 %v1895_v42, %v1053_v41  ;;  %v1085_v30 = vadd.f32 %v1807_v44, %v2553_v38 }
 0x11f   : > { %v2559_v52 = vadd.f32 %v1898_v49, %v1056_v48  ;;  %v1088_v35 = vadd.f32 %v1810_v50, %v2553_v38 }
 0x121   : > { %v1899_v53 = vpop.f32.mrb[20].mxu1  ;;  %v1811_v54 = vpop.f32.mrb[20].mxu0 }
 0x122   : > { %v1900_v55 = vpop.f32.mrb[21].mxu1  ;;  %v1812_v57 = vpop.f32.mrb[21].mxu0 }
 0x123   : > { %v1901_v59 = vadd.f32 %v1900_v55, %v1899_v53  ;;  %v1902_v60 = vpop.f32.mrb[22].mxu1  ;;  %v1813_v61 = vadd.f32 %v1812_v57, %v1811_v54  ;;  %v1814_v0 = vpop.f32.mrb[22].mxu0 }
 0x124   : > { %v1903_v1 = vpop.f32.mrb[23].mxu1  ;;  %v1815_v2 = vpop.f32.mrb[23].mxu0 }
 0x125   : > { %v1904_v3 = vadd.f32 %v1903_v1, %v1902_v60  ;;  %v1816_v5 = vadd.f32 %v1815_v2, %v1814_v0  ;;  %v2563_v7 = vadd.f32 %v1901_v59, %v1061_v58  ;;  %v1093_v44 = vadd.f32 %v1813_v61, %v2553_v38 }
 0x127   : > { %v2565_v8 = vadd.f32 %v1904_v3, %v1064_v63  ;;  %v1096_v50 = vadd.f32 %v1816_v5, %v2553_v38 }
 0x129   : > { %v1905_v9 = vpop.f32.mrb[24].mxu1  ;;  %v1817_v12 = vpop.f32.mrb[24].mxu0 }
 0x12a   : > { %v1906_v13 = vpop.f32.mrb[25].mxu1  ;;  %v1818_v14 = vpop.f32.mrb[25].mxu0 }
 0x12b   : > { %v1907_v15 = vadd.f32 %v1906_v13, %v1905_v9  ;;  %v1908_v17 = vpop.f32.mrb[26].mxu1  ;;  %v1819_v19 = vadd.f32 %v1818_v14, %v1817_v12  ;;  %v1820_v20 = vpop.f32.mrb[26].mxu0 }
 0x12c   : > { %v1909_v21 = vpop.f32.mrb[27].mxu1  ;;  %v1821_v24 = vpop.f32.mrb[27].mxu0 }
 0x12d   : > { %v1910_v25 = vadd.f32 %v1909_v21, %v1908_v17  ;;  %v1822_v26 = vadd.f32 %v1821_v24, %v1820_v20  ;;  %v2569_v27 = vadd.f32 %v1907_v15, %v1069_v6 }
 0x12f   : > { %v2571_v29 = vadd.f32 %v1910_v25, %v1072_v11 }
 0x131   : > { %v1911_v31 = vpop.f32.mrb[28].mxu1  ;;  %v1823_v32 = vpop.f32.mrb[28].mxu0 }
 0x132   : > { %v1912_v33 = vpop.f32.mrb[29].mxu1  ;;  %v1824_v36 = vpop.f32.mrb[29].mxu0 }
 0x133   : > { %v1913_v37 = vadd.f32 %v1912_v33, %v1911_v31  ;;  %v1914_v39 = vpop.f32.mrb[30].mxu1  ;;  %v1825_v40 = vadd.f32 %v1824_v36, %v1823_v32  ;;  %v1826_v41 = vpop.f32.mrb[30].mxu0 }
 0x134   : > { %v1915_v42 = vpop.f32.mrb[31].mxu1  ;;  %v1827_v43 = vpop.f32.mrb[31].mxu0 }
 0x135   : > { %v1916_v45 = vadd.f32 %v1915_v42, %v1914_v39  ;;  %v1828_v46 = vadd.f32 %v1827_v43, %v1826_v41  ;;  %v2575_v47 = vadd.f32 %v1913_v37, %v1077_v18  ;;  %v1101_v39 = vadd.f32 %v1819_v19, %v2553_v38 }
 0x137   : > { %v2577_v48 = vadd.f32 %v1916_v45, %v1080_v23 }
 0x139   : > { %v1917_v49 = vpop.f32.mrb[32].mxu1  ;;  %v1829_v53 = vpop.f32.mrb[32].mxu0 }
 0x13a   : > { %v1918_v54 = vpop.f32.mrb[33].mxu1  ;;  %v1830_v55 = vpop.f32.mrb[33].mxu0 }
 0x13b   : > { %v1919_v57 = vadd.f32 %v1918_v54, %v1917_v49  ;;  %v1920_v58 = vpop.f32.mrb[34].mxu1  ;;  %v1831_v59 = vadd.f32 %v1830_v55, %v1829_v53  ;;  %v1832_v60 = vpop.f32.mrb[34].mxu0  ;;  %v1104_v49 = vadd.f32 %v1822_v26, %v2553_v38 }
 0x13c   : > { %v1921_v0 = vpop.f32.mrb[35].mxu1  ;;  %v1833_v1 = vpop.f32.mrb[35].mxu0 }
 0x13d   : > { %v1922_v2 = vadd.f32 %v1921_v0, %v1920_v58  ;;  %v1834_v63 = vadd.f32 %v1833_v1, %v1832_v60  ;;  %v2581_v3 = vadd.f32 %v1919_v57, %v1085_v30  ;;  %v1109_v0 = vadd.f32 %v1825_v40, %v2553_v38 }
 0x13f   : > { %v2583_v9 = vadd.f32 %v1922_v2, %v1088_v35 }
 0x141   : > { %v1923_v12 = vpop.f32.mrb[36].mxu1  ;;  %v1835_v13 = vpop.f32.mrb[36].mxu0 }
 0x142   : > { %v1924_v14 = vpop.f32.mrb[37].mxu1  ;;  %v1836_v6 = vpop.f32.mrb[37].mxu0 }
 0x143   : > { %v1925_v15 = vadd.f32 %v1924_v14, %v1923_v12  ;;  %v1926_v17 = vpop.f32.mrb[38].mxu1  ;;  %v2586_v20 = vadd.f32 %v1836_v6, %v1835_v13  ;;  %v1838_v21 = vpop.f32.mrb[38].mxu0  ;;  %v1112_v14 = vadd.f32 %v1828_v46, %v2553_v38 }
 0x144   : > { %v1927_v24 = vpop.f32.mrb[39].mxu1  ;;  %v1839_v11 = vpop.f32.mrb[39].mxu0 }
 0x145   : > { %v1928_v25 = vadd.f32 %v1927_v24, %v1926_v17  ;;  %v2589_v31 = vadd.f32 %v1839_v11, %v1838_v21  ;;  %v2591_v32 = vadd.f32 %v1925_v15, %v1093_v44 }
 0x147   : > { %v2593_v33 = vadd.f32 %v1928_v25, %v1096_v50  ;;  %v1117_v25 = vadd.f32 %v1831_v59, %v2553_v38 }
 0x149   : > { %v1929_v36 = vpop.f32.mrb[40].mxu1  ;;  %v1841_v18 = vpop.f32.mrb[40].mxu0 }
 0x14a   : > { %v1930_v37 = vpop.f32.mrb[41].mxu1  ;;  %v1842_v61 = vpop.f32.mrb[41].mxu0 }
 0x14b   : > { %v1931_v41 = vadd.f32 %v1930_v37, %v1929_v36  ;;  %v1932_v42 = vpop.f32.mrb[42].mxu1  ;;  %v2596_v43 = vadd.f32 %v1842_v61, %v1841_v18  ;;  %v1844_v23 = vpop.f32.mrb[42].mxu0  ;;  %v1120_v61 = vadd.f32 %v1834_v63, %v2553_v38 }
 0x14c   : > { %v1933_v45 = vpop.f32.mrb[43].mxu1  ;;  %v1845_v5 = vpop.f32.mrb[43].mxu0 }
 0x14d   : > { %v1934_v53 = vadd.f32 %v1933_v45, %v1932_v42  ;;  %v2599_v54 = vadd.f32 %v1845_v5, %v1844_v23  ;;  %v2601_v55 = vadd.f32 %v1931_v41, %v1101_v39 }
 0x14f   : > { %v2603_v30 = vadd.f32 %v1934_v53, %v1104_v49 }
 0x151   : > { %v1935_v57 = vpop.f32.mrb[44].mxu1  ;;  %v1847_v58 = vpop.f32.mrb[44].mxu0 }
 0x152   : > { %v1936_v60 = vpop.f32.mrb[45].mxu1  ;;  %v1848_v19 = vpop.f32.mrb[45].mxu0 }
 0x153   : > { %v1937_v1 = vadd.f32 %v1936_v60, %v1935_v57  ;;  %v1938_v35 = vpop.f32.mrb[46].mxu1  ;;  %v2606_v2 = vadd.f32 %v1848_v19, %v1847_v58  ;;  %v1850_v12 = vpop.f32.mrb[46].mxu0  ;;  %v1128_v19 = vadd.f32 %v2589_v31, %v2553_v38 }
 0x154   : > { %v1939_v13 = vpop.f32.mrb[47].mxu1  ;;  %v1851_v26 = vpop.f32.mrb[47].mxu0 }
 0x155   : > { %v1940_v6 = vadd.f32 %v1939_v13, %v1938_v35  ;;  %v2609_v44 = vadd.f32 %v1851_v26, %v1850_v12  ;;  %v2611_v15 = vadd.f32 %v1937_v1, %v1109_v0 }
 0x157   : > { %v2613_v17 = vadd.f32 %v1940_v6, %v1112_v14 }
 0x159   : > { %v1941_v21 = vpop.f32.mrb[48].mxu1  ;;  %v2019_v24 = vpop.f32.mrb[48].mxu0 }
 0x15a   : > { %v1383_v40 = vadd.f32 %v2019_v24, %v2563_v7  ;;  %v1942_v11 = vpop.f32.mrb[49].mxu1  ;;  %v1374_v50 = vpop.f32.mrb[49].mxu0 }
 0x15b   : > { %v1943_v36 = vadd.f32 %v1942_v11, %v1941_v21  ;;  %v1375_v18 = vadd.f32 %v1374_v50, %v2557_v51  ;;  %v1944_v46 = vpop.f32.mrb[50].mxu1  ;;  %v2020_v37 = vpop.f32.mrb[50].mxu0 }
 0x15c   : > { %2222 = vtanh.f32 %v1383_v40  ;;  %v1386_v39 = vadd.f32 %v2020_v37, %v2565_v8  ;;  %v1945_v41 = vpop.f32.mrb[51].mxu1  ;;  %v1377_v42 = vpop.f32.mrb[51].mxu0  ;;  %v1125_v8 = vadd.f32 %v2586_v20, %v2553_v38  ;;  %v1133_v40 = vadd.f32 %v2596_v43, %v2553_v38 }
 0x15d   : > { %2224 = vtanh.f32 %v1375_v18  ;;  %v1946_v23 = vadd.f32 %v1945_v41, %v1944_v46  ;;  %v1378_v7 = vadd.f32 %v1377_v42, %v2559_v52  ;;  %v2621_v45 = vadd.f32 %v1943_v36, %v1117_v25 }
 0x15e   : > { %2226 = vtanh.f32 %v1386_v39  ;;  %v1136_v18 = vadd.f32 %v2599_v54, %v2553_v38 }
 0x15f   : > { %2228 = vtanh.f32 %v1378_v7  ;;  %v2623_v59 = vadd.f32 %v1946_v23, %v1120_v61 }
 0x161   : > { %v1947_v51 = vpop.f32.mrb[52].mxu1  ;;  %v2023_v5 = vpop.f32.mrb[52].mxu0 }
 0x162   : > { %v1399_v63 = vadd.f32 %v2023_v5, %v2575_v47  ;;  %v1948_v49 = vpop.f32.mrb[53].mxu1  ;;  %v1390_v53 = vpop.f32.mrb[53].mxu0 }
 0x163   : > { %v1949_v57 = vadd.f32 %v1948_v49, %v1947_v51  ;;  %v1391_v58 = vadd.f32 %v1390_v53, %v2569_v27  ;;  %v1950_v52 = vpop.f32.mrb[54].mxu1  ;;  %v2024_v60 = vpop.f32.mrb[54].mxu0 }
 0x164   : > { %2230 = vtanh.f32 %v1399_v63  ;;  %v1402_v47 = vadd.f32 %v2024_v60, %v2577_v48  ;;  %v1951_v20 = vpop.f32.mrb[55].mxu1  ;;  %v1393_v0 = vpop.f32.mrb[55].mxu0  ;;  %v1141_v63 = vadd.f32 %v2606_v2, %v2553_v38 }
 0x165   : > { %2232 = vtanh.f32 %v1391_v58  ;;  %v1952_v27 = vadd.f32 %v1951_v20, %v1950_v52  ;;  %v1394_v1 = vadd.f32 %v1393_v0, %v2571_v29  ;;  %v2639_v35 = vadd.f32 %v1949_v57, %v1125_v8 }
 0x166   : > { %v2223_v31 = vpop.eup %2222  ;;  %2234 = vtanh.f32 %v1402_v47  ;;  %v1144_v58 = vadd.f32 %v2609_v44, %v2553_v38 }
 0x167   : > { %v2225_v12 = vpop.eup %2224  ;;  %1535 = vst [vmem:[%s2635_s16 + $0x10] sm:$0xff] %v2223_v31  ;;  %2236 = vtanh.f32 %v1394_v1  ;;  %v2642_v13 = vadd.f32 %v1952_v27, %v1128_v19 }
 0x168   : > { %v2227_v26 = vpop.eup %2226  ;;  %1533 = vst [vmem:[%s2635_s16] sm:$0xff] %v2225_v12 }
 0x169   : > { %v2229_v48 = vpop.eup %2228  ;;  %1536 = vst [vmem:[%s2635_s16 + $0x18] sm:$0xff] %v2227_v26  ;;  %v1953_v14 = vpop.f32.mrb[56].mxu1 }
 0x16a   : > { %v2027_v6 = vpop.f32.mrb[56].mxu0  ;;  %1534 = vst [vmem:[%s2635_s16 + $0x8] sm:$0xff] %v2229_v48  ;;  %v1954_v24 = vpop.f32.mrb[57].mxu1 }
 0x16b   : > { %v1415_v21 = vadd.f32 %v2027_v6, %v2591_v32  ;;  %v1406_v29 = vpop.f32.mrb[57].mxu0  ;;  %v1955_v11 = vadd.f32 %v1954_v24, %v1953_v14  ;;  %v1956_v25 = vpop.f32.mrb[58].mxu1  ;;  %v1152_v24 = vadd.f32 %v2536_v62, %v2553_v38 }
 0x16c   : > { %v1407_v50 = vadd.f32 %v1406_v29, %v2581_v3  ;;  %v2028_v36 = vpop.f32.mrb[58].mxu0  ;;  %v1957_v32 = vpop.f32.mrb[59].mxu1 }
 0x16d   : > { %2238 = vtanh.f32 %v1415_v21  ;;  %v1418_v46 = vadd.f32 %v2028_v36, %v2593_v33  ;;  %v1409_v37 = vpop.f32.mrb[59].mxu0  ;;  %v1958_v61 = vadd.f32 %v1957_v32, %v1956_v25  ;;  %v2655_v39 = vadd.f32 %v1955_v11, %v1133_v40 }
 0x16e   : > { %2240 = vtanh.f32 %v1407_v50  ;;  %v1410_v43 = vadd.f32 %v1409_v37, %v2583_v9  ;;  %v2231_v3 = vpop.eup %2230 }
 0x16f   : > { %2242 = vtanh.f32 %v1418_v46  ;;  %v2233_v41 = vpop.eup %2232  ;;  %1539 = vst [vmem:[%s2635_s16 + $0x30] sm:$0xff] %v2231_v3  ;;  %v2658_v54 = vadd.f32 %v1958_v61, %v1136_v18 }
 0x170   : > { %2244 = vtanh.f32 %v1410_v43  ;;  %v2235_v42 = vpop.eup %2234  ;;  %1537 = vst [vmem:[%s2635_s16 + $0x20] sm:$0xff] %v2233_v41 }
 0x171   : > { %v2237_v33 = vpop.eup %2236  ;;  %1540 = vst [vmem:[%s2635_s16 + $0x38] sm:$0xff] %v2235_v42  ;;  %v1959_v23 = vpop.f32.mrb[60].mxu1 }
 0x172   : > { %v2031_v7 = vpop.f32.mrb[60].mxu0  ;;  %1538 = vst [vmem:[%s2635_s16 + $0x28] sm:$0xff] %v2237_v33  ;;  %v1960_v5 = vpop.f32.mrb[61].mxu1  ;;  %v1160_v33 = vadd.f32 %v2540_v10, %v2553_v38 }
 0x173   : > { %v1431_v51 = vadd.f32 %v2031_v7, %v2611_v15  ;;  %v1422_v9 = vpop.f32.mrb[61].mxu0  ;;  %v1961_v49 = vadd.f32 %v1960_v5, %v1959_v23  ;;  %v1962_v8 = vpop.f32.mrb[62].mxu1 }
 0x174   : > { %v1423_v53 = vadd.f32 %v1422_v9, %v2601_v55  ;;  %v2032_v57 = vpop.f32.mrb[62].mxu0  ;;  %v1963_v15 = vpop.f32.mrb[63].mxu1 }
 0x175   : > { %2246 = vtanh.f32 %v1431_v51  ;;  %v1434_v52 = vadd.f32 %v2032_v57, %v2613_v17  ;;  %v1425_v60 = vpop.f32.mrb[63].mxu0  ;;  %v1964_v19 = vadd.f32 %v1963_v15, %v1962_v8  ;;  %v1302_v47 = vadd.f32 %v1961_v49, %v1141_v63 }
 0x176   : > { %2248 = vtanh.f32 %v1423_v53  ;;  %v1426_v2 = vadd.f32 %v1425_v60, %v2603_v30  ;;  %v1149_v30 = vadd.f32 %v2534_v56, %v2553_v38 }
 0x177   : > { %v2239_v20 = vpop.eup %2238  ;;  %2250 = vtanh.f32 %v1434_v52  ;;  %v1305_v0 = vadd.f32 %v1964_v19, %v1144_v58 }
 0x178   : > { %v2241_v55 = vpop.eup %2240  ;;  %1543 = vst [vmem:[%s2635_s16 + $0x50] sm:$0xff] %v2239_v20  ;;  %2252 = vtanh.f32 %v1426_v2  ;;  %v1168_v20 = vadd.f32 %v2544_v22, %v2553_v38 }
 0x179   : > { %v2243_v44 = vpop.eup %2242  ;;  %1541 = vst [vmem:[%s2635_s16 + $0x40] sm:$0xff] %v2241_v55  ;;  %v1965_v17 = vpop.f32.mrb[64].mxu1 }
 0x17a   : > { %v2245_v27 = vpop.eup %2244  ;;  %1544 = vst [vmem:[%s2635_s16 + $0x58] sm:$0xff] %v2243_v44  ;;  %v2035_v1 = vpop.f32.mrb[64].mxu0 }
 0x17b   : > { %1542 = vst [vmem:[%s2635_s16 + $0x48] sm:$0xff] %v2245_v27  ;;  %v1447_v31 = vadd.f32 %v2035_v1, %v2639_v35  ;;  %v1966_v12 = vpop.f32.mrb[65].mxu1  ;;  %v1438_v26 = vpop.f32.mrb[65].mxu0 }
 0x17c   : > { %v1967_v48 = vadd.f32 %v1966_v12, %v1965_v17  ;;  %v1439_v14 = vadd.f32 %v1438_v26, %v2621_v45  ;;  %v1968_v6 = vpop.f32.mrb[66].mxu1  ;;  %v2036_v21 = vpop.f32.mrb[66].mxu0 }
 0x17d   : > { %2254 = vtanh.f32 %v1447_v31  ;;  %v1450_v29 = vadd.f32 %v2036_v21, %v2642_v13  ;;  %v1969_v35 = vpop.f32.mrb[67].mxu1  ;;  %v1441_v40 = vpop.f32.mrb[67].mxu0  ;;  %v1173_v21 = vadd.f32 %v2546_v28, %v2553_v38 }
 0x17e   : > { %2256 = vtanh.f32 %v1439_v14  ;;  %v1970_v11 = vadd.f32 %v1969_v35, %v1968_v6  ;;  %v1442_v56 = vadd.f32 %v1441_v40, %v2623_v59  ;;  %v1310_v50 = vadd.f32 %v1967_v48, %v1149_v30 }
 0x17f   : > { %v2247_v25 = vpop.eup %2246  ;;  %2258 = vtanh.f32 %v1450_v29  ;;  %v1157_v59 = vadd.f32 %v2538_v4, %v2553_v38 }
 0x180   : > { %v2249_v45 = vpop.eup %2248  ;;  %1547 = vst [vmem:[%s2635_s16 + $0x70] sm:$0xff] %v2247_v25  ;;  %2260 = vtanh.f32 %v1442_v56  ;;  %v1313_v36 = vadd.f32 %v1970_v11, %v1152_v24  ;;  %v1176_v11 = vadd.f32 %v2548_v34, %v2553_v38 }
 0x181   : > { %v2251_v62 = vpop.eup %2250  ;;  %1545 = vst [vmem:[%s2635_s16 + $0x60] sm:$0xff] %v2249_v45  ;;  %v1971_v13 = vpop.f32.mrb[68].mxu1 }
 0x182   : > { %v2253_v18 = vpop.eup %2252  ;;  %1548 = vst [vmem:[%s2635_s16 + $0x78] sm:$0xff] %v2251_v62  ;;  %v2039_v46 = vpop.f32.mrb[68].mxu0 }
 0x183   : > { %1546 = vst [vmem:[%s2635_s16 + $0x68] sm:$0xff] %v2253_v18  ;;  %v1463_v32 = vadd.f32 %v2039_v46, %v1302_v47  ;;  %v1972_v37 = vpop.f32.mrb[69].mxu1  ;;  %v1454_v61 = vpop.f32.mrb[69].mxu0 }
 0x184   : > { %v1973_v43 = vadd.f32 %v1972_v37, %v1971_v13  ;;  %v1455_v3 = vadd.f32 %v1454_v61, %v2655_v39  ;;  %v1974_v41 = vpop.f32.mrb[70].mxu1  ;;  %v2040_v42 = vpop.f32.mrb[70].mxu0 }
 0x185   : > { %2262 = vtanh.f32 %v1463_v32  ;;  %v1466_v23 = vadd.f32 %v2040_v42, %v1305_v0  ;;  %v1975_v7 = vpop.f32.mrb[71].mxu1  ;;  %v1457_v51 = vpop.f32.mrb[71].mxu0 }
 0x186   : > { %2264 = vtanh.f32 %v1455_v3  ;;  %v1976_v5 = vadd.f32 %v1975_v7, %v1974_v41  ;;  %v1458_v4 = vadd.f32 %v1457_v51, %v2658_v54  ;;  %v1318_v9 = vadd.f32 %v1973_v43, %v1157_v59 }
 0x187   : > { %v2255_v63 = vpop.eup %2254  ;;  %2266 = vtanh.f32 %v1466_v23  ;;  %v1165_v54 = vadd.f32 %v2542_v16, %v2553_v38 }
 0x188   : > { %v2257_v39 = vpop.eup %2256  ;;  %1551 = vst [vmem:[%s2635_s16 + $0x90] sm:$0xff] %v2255_v63  ;;  %2268 = vtanh.f32 %v1458_v4  ;;  %v1321_v49 = vadd.f32 %v1976_v5, %v1160_v33 }
 0x189   : > { %v2259_v53 = vpop.eup %2258  ;;  %1549 = vst [vmem:[%s2635_s16 + $0x80] sm:$0xff] %v2257_v39  ;;  %v1977_v8 = vpop.f32.mrb[72].mxu1 }
 0x18a   : > { %v2261_v10 = vpop.eup %2260  ;;  %1552 = vst [vmem:[%s2635_s16 + $0x98] sm:$0xff] %v2259_v53  ;;  %v2043_v57 = vpop.f32.mrb[72].mxu0 }
 0x18b   : > { %1550 = vst [vmem:[%s2635_s16 + $0x88] sm:$0xff] %v2261_v10  ;;  %v1479_v58 = vadd.f32 %v2043_v57, %v1318_v9  ;;  %v1978_v52 = vpop.f32.mrb[73].mxu1  ;;  %v1470_v15 = vpop.f32.mrb[73].mxu0 }
 0x18c   : > { %v1979_v60 = vadd.f32 %v1978_v52, %v1977_v8  ;;  %v1471_v19 = vadd.f32 %v1470_v15, %v1310_v50  ;;  %v1980_v2 = vpop.f32.mrb[74].mxu1  ;;  %v2044_v47 = vpop.f32.mrb[74].mxu0 }
 0x18d   : > { %2270 = vtanh.f32 %v1479_v58  ;;  %v1482_v55 = vadd.f32 %v2044_v47, %v1321_v49  ;;  %v1981_v0 = vpop.f32.mrb[75].mxu1  ;;  %v1473_v44 = vpop.f32.mrb[75].mxu0 }
 0x18e   : > { %2272 = vtanh.f32 %v1471_v19  ;;  %v1982_v27 = vadd.f32 %v1981_v0, %v1980_v2  ;;  %v1474_v17 = vadd.f32 %v1473_v44, %v1313_v36  ;;  %v1326_v1 = vadd.f32 %v1979_v60, %v1165_v54 }
 0x18f   : > { %v2263_v16 = vpop.eup %2262  ;;  %2274 = vtanh.f32 %v1482_v55 }
 0x190   : > { %v2265_v31 = vpop.eup %2264  ;;  %1555 = vst [vmem:[%s2635_s16 + $0xb0] sm:$0xff] %v2263_v16  ;;  %2276 = vtanh.f32 %v1474_v17  ;;  %v1329_v12 = vadd.f32 %v1982_v27, %v1168_v20 }
 0x191   : > { %v2267_v26 = vpop.eup %2266  ;;  %1553 = vst [vmem:[%s2635_s16 + $0xa0] sm:$0xff] %v2265_v31  ;;  %v1983_v30 = vpop.f32.mrb[76].mxu1 }
 0x192   : > { %v2269_v22 = vpop.eup %2268  ;;  %1556 = vst [vmem:[%s2635_s16 + $0xb8] sm:$0xff] %v2267_v26  ;;  %v2047_v48 = vpop.f32.mrb[76].mxu0 }
 0x193   : > { %1554 = vst [vmem:[%s2635_s16 + $0xa8] sm:$0xff] %v2269_v22  ;;  %v1984_v14 = vpop.f32.mrb[77].mxu1  ;;  %v1486_v6 = vpop.f32.mrb[77].mxu0 }
 0x194   : > { %v1985_v24 = vadd.f32 %v1984_v14, %v1983_v30  ;;  %v1487_v29 = vadd.f32 %v1486_v6, %v1326_v1  ;;  %v1986_v35 = vpop.f32.mrb[78].mxu1  ;;  %v2048_v40 = vpop.f32.mrb[78].mxu0 }
 0x195   : > { %v1987_v56 = vpop.f32.mrb[79].mxu1  ;;  %v1489_v50 = vpop.f32.mrb[79].mxu0 }
 0x196   : > { %v1334_v25 = vadd.f32 %v1985_v24, %v1173_v21  ;;  %2278 = vtanh.f32 %v1487_v29  ;;  %v1988_v45 = vadd.f32 %v1987_v56, %v1986_v35  ;;  %v1490_v36 = vadd.f32 %v1489_v50, %v1329_v12 }
 0x197   : > { %v2271_v62 = vpop.eup %2270 }
 0x198   : > { %v2273_v18 = vpop.eup %2272  ;;  %1559 = vst [vmem:[%s2635_s16 + $0xd0] sm:$0xff] %v2271_v62  ;;  %v1495_v28 = vadd.f32 %v2047_v48, %v1334_v25  ;;  %v1337_v13 = vadd.f32 %v1988_v45, %v1176_v11  ;;  %2280 = vtanh.f32 %v1490_v36 }
 0x199   : > { %v2275_v46 = vpop.eup %2274  ;;  %1557 = vst [vmem:[%s2635_s16 + $0xc0] sm:$0xff] %v2273_v18 }
 0x19a   : > { %v2277_v34 = vpop.eup %2276  ;;  %1560 = vst [vmem:[%s2635_s16 + $0xd8] sm:$0xff] %v2275_v46  ;;  %2282 = vtanh.f32 %v1495_v28  ;;  %v1498_v38 = vadd.f32 %v2048_v40, %v1337_v13 }
 0x19b   : > { %1558 = vst [vmem:[%s2635_s16 + $0xc8] sm:$0xff] %v2277_v34 }
 0x19c   : > { %2284 = vtanh.f32 %v1498_v38 }
 0x1a0   : > { %v2279_v32 = vpop.eup %2278 }
 0x1a1   : > { %1561 = vst [vmem:[%s2635_s16 + $0xe0] sm:$0xff] %v2279_v32 }
 0x1a2   : > { %v2281_v37 = vpop.eup %2280 }
 0x1a3   : > { %1562 = vst [vmem:[%s2635_s16 + $0xe8] sm:$0xff] %v2281_v37 }
 0x1a4   : > { %v2283_v61 = vpop.eup %2282 }
 0x1a5   : > { %1563 = vst [vmem:[%s2635_s16 + $0xf0] sm:$0xff] %v2283_v61 }
 0x1a6   : > { %v2285_v59 = vpop.eup %2284 }
 0x1a7   : > { %1564 = vst [vmem:[%s2635_s16 + $0xf8] sm:$0xff] %v2285_v59 }
 0x1a8 PF: > { %s13_s12 = sadd.s32 1, %s2292_s12  }
 0x1a9   : > { %p10_p4 = scmp.ge.s32.totalorder %s13_s12, 4  }
 0x1ab   :  { %12 = sbr.rel (!%p10_p4) target bundleno = 1 (0x1), region = 62 }

</bundles_post_ra>
